<compile_context>
chip_gen: v6e
topology: v6e:2x2x1
jax: 0.10.0
libtpu: 0.0.40
codegen_flags: <defaults>
</compile_context>

<pallas_src>
import functools

import jax
import jax.numpy as jnp
from jax.experimental import pallas as pl
from jax.experimental.pallas import tpu as pltpu

_EPS = 1e-5                      # PyTorch GroupNorm default eps
_MXU_DTYPE = jnp.bfloat16        # matmul-input dtype (accumulation stays f32)


# ---------------------------------------------------------------------------
# Compiler params (per-generation VMEM budget)
# ---------------------------------------------------------------------------
def _vmem_limit_bytes():
    try:
        kind = jax.devices()[0].device_kind.lower()
    except Exception:
        return 64 * 1024 * 1024
    if "v7" in kind:
        return 48 * 1024 * 1024          # leave headroom of 64 MiB physical
    if any(t in kind for t in ("v5 lite", "v5e", "v6 lite", "v6e")):
        return 96 * 1024 * 1024          # 128 MiB physical
    return 64 * 1024 * 1024


def _compiler_params():
    return pltpu.CompilerParams(dimension_semantics=("parallel",),
                                vmem_limit_bytes=_vmem_limit_bytes())


# ---------------------------------------------------------------------------
# In-kernel helpers
# ---------------------------------------------------------------------------
def _zero_pad_border(pad_ref):
    """Zero only the 1-pixel border of the (Hp, Wp, C) pad scratch."""
    Hp, Wp, C = pad_ref.shape
    zrow = jnp.zeros((1, Wp, C), pad_ref.dtype)
    zcol = jnp.zeros((Hp, 1, C), pad_ref.dtype)
    pad_ref[0:1, :, :] = zrow
    pad_ref[Hp - 1:Hp, :, :] = zrow
    pad_ref[:, 0:1, :] = zcol
    pad_ref[:, Wp - 1:Wp, :] = zcol


def _conv3x3_acc(pad_ref, w_ref, H, W):
    """3x3 'same' conv: 9 accumulated MXU matmuls over shifted views.

    pad_ref: (H+2, W+2, C) zero-padded bf16 scratch.
    w_ref:   (9, C, Cout) bf16, k ordered (kh, kw).
    Returns (H*W, Cout) f32 (no im2col temp is materialised).
    """
    C = pad_ref.shape[-1]
    acc = None
    for k in range(9):
        dy, dx = divmod(k, 3)
        win = pad_ref[dy:dy + H, dx:dx + W, :].reshape(H * W, C)
        part = jnp.dot(win, w_ref[k], preferred_element_type=jnp.float32)
        acc = part if acc is None else acc + part
    return acc


# ---------------------------------------------------------------------------
# Fused ResNetBlock kernel:
#   conv3x3+GN+SiLU -> (+ precomputed time emb) -> conv3x3+GN+SiLU -> (+res)
# ---------------------------------------------------------------------------
def _resnet_block_kernel(*refs, num_groups, has_res):
    if has_res:
        (x_ref, te_ref, w1_ref, b1_ref, g1_ref, be1_ref,
         w2_ref, b2_ref, g2_ref, be2_ref, gmap_ref, gmapT_ref,
         rw_ref, rb_ref, o_ref, pad1_ref, pad2_ref) = refs
    else:
        (x_ref, te_ref, w1_ref, b1_ref, g1_ref, be1_ref,
         w2_ref, b2_ref, g2_ref, be2_ref, gmap_ref, gmapT_ref,
         o_ref, pad1_ref, pad2_ref) = refs

    _, H, W, Cin = x_ref.shape
    Cout = b1_ref.shape[-1]
    HW = H * W
    inv_n = 1.0 / float((Cout // num_groups) * HW)

    def group_broadcast(row):
        # (1, Cout) channel stats -> per-group sum -> broadcast back per channel.
        g = jnp.dot(row, gmap_ref[...], preferred_element_type=jnp.float32)
        return jnp.dot(g, gmapT_ref[...], preferred_element_type=jnp.float32)

    def group_norm_silu(acc, gamma_ref, beta_ref):
        # Centered (two-pass) variance; all statistics in f32.
        mean = group_broadcast(jnp.sum(acc, axis=0, keepdims=True)) * inv_n
        d = acc - mean
        var = group_broadcast(jnp.sum(d * d, axis=0, keepdims=True)) * inv_n
        y = d * jax.lax.rsqrt(var + _EPS) * gamma_ref[...].astype(jnp.float32) \
            + beta_ref[...].astype(jnp.float32)
        return y * jax.nn.sigmoid(y)                      # SiLU

    x = x_ref[0]                                          # (H, W, Cin)

    # --- block1: conv3x3 + bias + GroupNorm + SiLU --------------------------
    _zero_pad_border(pad1_ref)
    pad1_ref[1:H + 1, 1:W + 1, :] = x.astype(pad1_ref.dtype)
    h = _conv3x3_acc(pad1_ref, w1_ref, H, W) + b1_ref[...].astype(jnp.float32)
    h = group_norm_silu(h, g1_ref, be1_ref)               # (HW, Cout) f32

    # --- time embedding (MLP precomputed on host side), broadcast add -------
    h = h + te_ref[0].astype(jnp.float32)                 # (1, Cout) per batch

    # --- block2: conv3x3 + bias + GroupNorm + SiLU --------------------------
    _zero_pad_border(pad2_ref)
    pad2_ref[1:H + 1, 1:W + 1, :] = h.reshape(H, W, Cout).astype(pad2_ref.dtype)
    h2 = _conv3x3_acc(pad2_ref, w2_ref, H, W) + b2_ref[...].astype(jnp.float32)
    h2 = group_norm_silu(h2, g2_ref, be2_ref)             # (HW, Cout) f32

    # --- residual (1x1 projection or identity), fused -----------------------
    x_flat = x.reshape(HW, Cin)
    if has_res:
        res = jnp.dot(x_flat.astype(rw_ref.dtype), rw_ref[...],
                      preferred_element_type=jnp.float32) \
              + rb_ref[...].astype(jnp.float32)
    else:
        res = x_flat.astype(jnp.float32)                  # Cin == Cout here

    o_ref[0] = (h2 + res).astype(o_ref.dtype)             # lane-dense (HW, Cout)


# ---------------------------------------------------------------------------
# Fused UpsampleBlock kernel:
#   separable bilinear 2x (align_corners=True) + conv3x3 + bias
# ---------------------------------------------------------------------------
def _upsample_conv_kernel(x_ref, r_ref, c_ref, w_ref, b_ref, o_ref, pad_ref):
    _, H, WC = x_ref.shape
    Ho = pad_ref.shape[0] - 2
    Wo = pad_ref.shape[1] - 2
    C = pad_ref.shape[2]
    W = WC // C

    # Row interpolation: (Ho, H) @ (H, W*C)  -- single 2-D MXU matmul on the
    # lane-dense input slab (no Kronecker matrix).
    y = jnp.dot(r_ref[...], x_ref[0].astype(r_ref.dtype),
                preferred_element_type=jnp.float32)            # (Ho, W*C) f32
    y3 = y.astype(c_ref.dtype).reshape(Ho, W, C)               # (Ho, W, C)

    # Column interpolation: batched matmul over the Ho rows.
    cm = jnp.broadcast_to(c_ref[...], (Ho, Wo, W))             # (Ho, Wo, W)
    up = jnp.einsum('bow,bwc->boc', cm, y3,
                    preferred_element_type=jnp.float32)        # (Ho, Wo, C) f32

    # conv3x3 + bias on the upsampled tensor (stays in VMEM).
    _zero_pad_border(pad_ref)
    pad_ref[1:Ho + 1, 1:Wo + 1, :] = up.astype(pad_ref.dtype)
    acc = _conv3x3_acc(pad_ref, w_ref, Ho, Wo) + b_ref[...].astype(jnp.float32)
    o_ref[0] = acc.astype(o_ref.dtype)                         # (Ho*Wo, Cout)


# ---------------------------------------------------------------------------
# pallas_call wrappers
# ---------------------------------------------------------------------------
def _conv_w9(w):
    # PyTorch (Cout, Cin, kh, kw) -> (9, Cin, Cout), k ordered (kh, kw).
    cout, cin = w.shape[0], w.shape[1]
    return jnp.transpose(w, (2, 3, 1, 0)).reshape(9, cin, cout)


def _const_spec(shape):
    # Grid-invariant operand: single-buffered (block index never changes).
    return pl.BlockSpec(shape, lambda i, _s=shape: (0,) * len(_s),
                        pipeline_mode=pl.Buffered(1))


def resnet_block_forward(x, t_emb, p, num_groups):
    """x: (B, H, W, Cin) NHWC ; t_emb: (B, T).  Returns (B, H, W, Cout)."""
    B, H, W, Cin = x.shape
    Cout = p["conv1_b"].shape[0]
    assert Cout % num_groups == 0, (Cout, num_groups)
    has_res = "res_w" in p
    if not has_res:
        assert Cin == Cout, (Cin, Cout)

    cg = Cout // num_groups
    gmap = (jnp.arange(Cout)[:, None] // cg
            == jnp.arange(num_groups)[None, :]).astype(jnp.float32)  # (Cout, G)

    # Time-embedding MLP hoisted out of the kernel: one (B,T)@(T,Cout) matmul.
    te = (jax.nn.silu(t_emb.astype(jnp.float32))
          @ p["time_w"].T.astype(jnp.float32)
          + p["time_b"].astype(jnp.float32))                         # (B, Cout)

    row = lambda v: v.reshape(1, -1)
    bf = lambda v: v.astype(_MXU_DTYPE)

    inputs = [
        x,
        te.reshape(B, 1, Cout),
        bf(_conv_w9(p["conv1_w"])), row(p["conv1_b"]),
        row(p["gn1_gamma"]), row(p["gn1_beta"]),
        bf(_conv_w9(p["conv2_w"])), row(p["conv2_b"]),
        row(p["gn2_gamma"]), row(p["gn2_beta"]),
        gmap, gmap.T,
    ]
    in_specs = [
        pl.BlockSpec((1, H, W, Cin), lambda i: (i, 0, 0, 0)),
        pl.BlockSpec((1, 1, Cout), lambda i: (i, 0, 0)),
        _const_spec((9, Cin, Cout)), _const_spec((1, Cout)),
        _const_spec((1, Cout)), _const_spec((1, Cout)),
        _const_spec((9, Cout, Cout)), _const_spec((1, Cout)),
        _const_spec((1, Cout)), _const_spec((1, Cout)),
        _const_spec((Cout, num_groups)), _const_spec((num_groups, Cout)),
    ]
    if has_res:
        inputs += [bf(p["res_w"].reshape(Cout, Cin).T), row(p["res_b"])]
        in_specs += [_const_spec((Cin, Cout)), _const_spec((1, Cout))]

    kernel = functools.partial(_resnet_block_kernel,
                               num_groups=num_groups, has_res=has_res)
    # TODO(synk): for production UNet sizes add an H-tile grid axis (halo via
    #             the pad scratch, GroupNorm accumulate/finalize across an
    #             'arbitrary' trailing axis) so one tile fits v7x's 64 MiB and
    #             the pipeline has depth at small B; pad Cout<128 to a full
    #             lane for unmasked stores.
    out = pl.pallas_call(
        kernel,
        out_shape=jax.ShapeDtypeStruct((B, H * W, Cout), x.dtype),
        grid=(B,),
        in_specs=in_specs,
        out_specs=pl.BlockSpec((1, H * W, Cout), lambda i: (i, 0, 0)),
        scratch_shapes=[pltpu.VMEM((H + 2, W + 2, Cin), _MXU_DTYPE),
                        pltpu.VMEM((H + 2, W + 2, Cout), _MXU_DTYPE)],
        compiler_params=_compiler_params(),
    )(*inputs)
    return out.reshape(B, H, W, Cout)


def _interp_matrix(n_in, n_out):
    """1-D bilinear interpolation weights (F.interpolate, align_corners=True)."""
    if n_in == 1:
        return jnp.ones((n_out, 1), jnp.float32)
    pos = jnp.arange(n_out, dtype=jnp.float32) * (n_in - 1) / (n_out - 1)
    lo = jnp.clip(jnp.floor(pos).astype(jnp.int32), 0, n_in - 2)
    frac = pos - lo.astype(jnp.float32)
    return (jax.nn.one_hot(lo, n_in, dtype=jnp.float32) * (1.0 - frac)[:, None]
            + jax.nn.one_hot(lo + 1, n_in, dtype=jnp.float32) * frac[:, None])


def upsample_conv_forward(x, w, b, scale=2.0):
    """Fused separable bilinear upsample (align_corners=True) + conv3x3 + bias."""
    B, H, W, C = x.shape
    Cout = w.shape[0]
    Ho, Wo = int(H * scale), int(W * scale)
    r = _interp_matrix(H, Ho).astype(_MXU_DTYPE)      # (Ho, H) row weights
    c = _interp_matrix(W, Wo).astype(_MXU_DTYPE)      # (Wo, W) column weights

    out = pl.pallas_call(
        _upsample_conv_kernel,
        out_shape=jax.ShapeDtypeStruct((B, Ho * Wo, Cout), x.dtype),
        grid=(B,),
        in_specs=[
            pl.BlockSpec((1, H, W * C), lambda i: (i, 0, 0)),   # lane-dense slab
            _const_spec((Ho, H)),
            _const_spec((Wo, W)),
            _const_spec((9, C, Cout)),
            _const_spec((1, Cout)),
        ],
        out_specs=pl.BlockSpec((1, Ho * Wo, Cout), lambda i: (i, 0, 0)),
        scratch_shapes=[pltpu.VMEM((Ho + 2, Wo + 2, C), _MXU_DTYPE)],
        compiler_params=_compiler_params(),
    )(x.reshape(B, H, W * C), r, c,
      _conv_w9(w).astype(_MXU_DTYPE), b.reshape(1, Cout))
    return out.reshape(B, Ho, Wo, Cout)


# ---------------------------------------------------------------------------
# Top-level forward (PyTorch NCHW interface) and parameter init
# ---------------------------------------------------------------------------
def conv_up_block_forward(x_nchw, t_emb, params):
    # TODO(synk): drop these two boundary transposes (one HBM pass each) if the
    #             surrounding model runs NHWC end to end.
    x = jnp.transpose(x_nchw, (0, 2, 3, 1))                  # NCHW -> NHWC
    for p in params["resnet_blocks"]:
        x = resnet_block_forward(x, t_emb, p, params["num_groups"])
    if params["upsample"] is not None:
        up = params["upsample"]
        x = upsample_conv_forward(x, up["conv_w"], up["conv_b"], scale=2.0)
    return jnp.transpose(x, (0, 3, 1, 2))                    # NHWC -> NCHW


def init_params(key, in_channels, out_channels, num_layers,
                time_emb_channels, num_groups, upsample=True):
    params = {"num_groups": num_groups, "resnet_blocks": [], "upsample": None}

    def nrm(k, shape, scale=0.1):
        return scale * jax.random.normal(k, shape, jnp.float32)

    for i in range(num_layers):
        in_c = in_channels if i == 0 else out_channels
        key, *ks = jax.random.split(key, 13)
        blk = {
            "conv1_w": nrm(ks[0], (out_channels, in_c, 3, 3)),
            "conv1_b": nrm(ks[1], (out_channels,)),
            "gn1_gamma": 1.0 + nrm(ks[2], (out_channels,)),
            "gn1_beta": nrm(ks[3], (out_channels,)),
            "time_w": nrm(ks[4], (out_channels, time_emb_channels)),
            "time_b": nrm(ks[5], (out_channels,)),
            "conv2_w": nrm(ks[6], (out_channels, out_channels, 3, 3)),
            "conv2_b": nrm(ks[7], (out_channels,)),
            "gn2_gamma": 1.0 + nrm(ks[8], (out_channels,)),
            "gn2_beta": nrm(ks[9], (out_channels,)),
        }
        if in_c != out_channels:
            blk["res_w"] = nrm(ks[10], (out_channels, in_c, 1, 1))
            blk["res_b"] = nrm(ks[11], (out_channels,))
        params["resnet_blocks"].append(blk)

    if upsample:
        key, k1, k2 = jax.random.split(key, 3)
        params["upsample"] = {
            "conv_w": nrm(k1, (out_channels, out_channels, 3, 3)),
            "conv_b": nrm(k2, (out_channels,)),
        }
    return params


if __name__ == "__main__":
    B, Cin, Cout = 2, 4, 8
    H = W = 16
    num_layers, T, num_groups = 2, 32, 8

    root = jax.random.PRNGKey(0)
    k_x, k_t, k_p = jax.random.split(root, 3)
    x = jax.random.normal(k_x, (B, Cin, H, W), jnp.float32)      # NCHW input
    t_emb = jax.random.normal(k_t, (B, T), jnp.float32)
    params = init_params(k_p, Cin, Cout, num_layers, T, num_groups, upsample=True)

    out = conv_up_block_forward(x, t_emb, params)
    out = jax.block_until_ready(out)

    assert out.shape == (B, Cout, 2 * H, 2 * W), out.shape
    assert bool(jnp.all(jnp.isfinite(out)))
    print("KERNEL_OK")
</pallas_src>

<mosaic_0001>
module attributes {stable_mosaic.version = 11 : i64} {
  func.func @_resnet_block_kernel(%arg0: i32, %arg1: memref<1x16x16x4xf32, #tpu.memory_space<vmem>>, %arg2: memref<1x1x8xf32, #tpu.memory_space<vmem>>, %arg3: memref<9x4x8xbf16, #tpu.memory_space<vmem>>, %arg4: memref<1x8xf32, #tpu.memory_space<vmem>>, %arg5: memref<1x8xf32, #tpu.memory_space<vmem>>, %arg6: memref<1x8xf32, #tpu.memory_space<vmem>>, %arg7: memref<9x8x8xbf16, #tpu.memory_space<vmem>>, %arg8: memref<1x8xf32, #tpu.memory_space<vmem>>, %arg9: memref<1x8xf32, #tpu.memory_space<vmem>>, %arg10: memref<1x8xf32, #tpu.memory_space<vmem>>, %arg11: memref<8x8xf32, #tpu.memory_space<vmem>>, %arg12: memref<8x8xf32, #tpu.memory_space<vmem>>, %arg13: memref<4x8xbf16, #tpu.memory_space<vmem>>, %arg14: memref<1x8xf32, #tpu.memory_space<vmem>>, %arg15: memref<1x256x8xf32, #tpu.memory_space<vmem>>, %arg16: memref<18x18x4xbf16, #tpu.memory_space<vmem>>, %arg17: memref<18x18x8xbf16, #tpu.memory_space<vmem>>) attributes {dimension_semantics = [#tpu.dimension_semantics<parallel>], iteration_bounds = array<i64: 2>, scalar_prefetch = 0 : i64, scratch_operands = 2 : i64, tpu.core_type = #tpu.core_type<tc>, window_params = [{transform_indices = @transform_0, window_bounds = array<i64: 1, 16, 16, 4>}, {transform_indices = @transform_1, window_bounds = array<i64: 1, 1, 8>}, {pipeline_mode = #tpu.pipeline_mode<synchronous>, transform_indices = @transform_2, window_bounds = array<i64: 9, 4, 8>}, {pipeline_mode = #tpu.pipeline_mode<synchronous>, transform_indices = @transform_3, window_bounds = array<i64: 1, 8>}, {pipeline_mode = #tpu.pipeline_mode<synchronous>, transform_indices = @transform_4, window_bounds = array<i64: 1, 8>}, {pipeline_mode = #tpu.pipeline_mode<synchronous>, transform_indices = @transform_5, window_bounds = array<i64: 1, 8>}, {pipeline_mode = #tpu.pipeline_mode<synchronous>, transform_indices = @transform_6, window_bounds = array<i64: 9, 8, 8>}, {pipeline_mode = #tpu.pipeline_mode<synchronous>, transform_indices = @transform_7, window_bounds = array<i64: 1, 8>}, {pipeline_mode = #tpu.pipeline_mode<synchronous>, transform_indices = @transform_8, window_bounds = array<i64: 1, 8>}, {pipeline_mode = #tpu.pipeline_mode<synchronous>, transform_indices = @transform_9, window_bounds = array<i64: 1, 8>}, {pipeline_mode = #tpu.pipeline_mode<synchronous>, transform_indices = @transform_10, window_bounds = array<i64: 8, 8>}, {pipeline_mode = #tpu.pipeline_mode<synchronous>, transform_indices = @transform_11, window_bounds = array<i64: 8, 8>}, {pipeline_mode = #tpu.pipeline_mode<synchronous>, transform_indices = @transform_12, window_bounds = array<i64: 4, 8>}, {pipeline_mode = #tpu.pipeline_mode<synchronous>, transform_indices = @transform_13, window_bounds = array<i64: 1, 8>}, {transform_indices = @transform_14, window_bounds = array<i64: 1, 256, 8>}]} {
    %c0 = arith.constant 0 : index
    %c0_0 = arith.constant 0 : index
    %c0_1 = arith.constant 0 : index
    %c0_2 = arith.constant 0 : index
    %0 = vector.load %arg1[%c0, %c0_0, %c0_1, %c0_2] : memref<1x16x16x4xf32, #tpu.memory_space<vmem>>, vector<1x16x16x4xf32>
    %1 = vector.shape_cast %0 : vector<1x16x16x4xf32> to vector<16x16x4xf32>
    %cst = arith.constant 0.000000e+00 : bf16
    %2 = vector.broadcast %cst : bf16 to vector<1x18x4xbf16>
    %cst_3 = arith.constant 0.000000e+00 : bf16
    %3 = vector.broadcast %cst_3 : bf16 to vector<18x1x4xbf16>
    %c0_4 = arith.constant 0 : index
    %c0_5 = arith.constant 0 : index
    %c0_6 = arith.constant 0 : index
    %4 = vector.load %arg16[%c0_4, %c0_5, %c0_6] : memref<18x18x4xbf16, #tpu.memory_space<vmem>>, vector<1x18x4xbf16>
    tpu.vector_store %arg16[%c0_4, %c0_5, %c0_6], %2 {strides = array<i32>} : memref<18x18x4xbf16, #tpu.memory_space<vmem>>, vector<1x18x4xbf16>,
    %c17 = arith.constant 17 : index
    %c0_7 = arith.constant 0 : index
    %c0_8 = arith.constant 0 : index
    %5 = vector.load %arg16[%c17, %c0_7, %c0_8] : memref<18x18x4xbf16, #tpu.memory_space<vmem>>, vector<1x18x4xbf16>
    tpu.vector_store %arg16[%c17, %c0_7, %c0_8], %2 {strides = array<i32>} : memref<18x18x4xbf16, #tpu.memory_space<vmem>>, vector<1x18x4xbf16>,
    %c0_9 = arith.constant 0 : index
    %c0_10 = arith.constant 0 : index
    %c0_11 = arith.constant 0 : index
    %6 = vector.load %arg16[%c0_9, %c0_10, %c0_11] : memref<18x18x4xbf16, #tpu.memory_space<vmem>>, vector<18x1x4xbf16>
    tpu.vector_store %arg16[%c0_9, %c0_10, %c0_11], %3 {strides = array<i32>} : memref<18x18x4xbf16, #tpu.memory_space<vmem>>, vector<18x1x4xbf16>,
    %c0_12 = arith.constant 0 : index
    %c17_13 = arith.constant 17 : index
    %c0_14 = arith.constant 0 : index
    %7 = vector.load %arg16[%c0_12, %c17_13, %c0_14] : memref<18x18x4xbf16, #tpu.memory_space<vmem>>, vector<18x1x4xbf16>
    tpu.vector_store %arg16[%c0_12, %c17_13, %c0_14], %3 {strides = array<i32>} : memref<18x18x4xbf16, #tpu.memory_space<vmem>>, vector<18x1x4xbf16>,
    %8 = arith.truncf %1 : vector<16x16x4xf32> to vector<16x16x4xbf16>
    %c1 = arith.constant 1 : index
    %c1_15 = arith.constant 1 : index
    %c0_16 = arith.constant 0 : index
    %9 = vector.load %arg16[%c1, %c1_15, %c0_16] : memref<18x18x4xbf16, #tpu.memory_space<vmem>>, vector<16x16x4xbf16>
    tpu.vector_store %arg16[%c1, %c1_15, %c0_16], %8 {strides = array<i32>} : memref<18x18x4xbf16, #tpu.memory_space<vmem>>, vector<16x16x4xbf16>,
    %c0_17 = arith.constant 0 : index
    %c0_18 = arith.constant 0 : index
    %c0_19 = arith.constant 0 : index
    %10 = vector.load %arg16[%c0_17, %c0_18, %c0_19] : memref<18x18x4xbf16, #tpu.memory_space<vmem>>, vector<16x16x4xbf16>
    %11 = vector.shape_cast %10 : vector<16x16x4xbf16> to vector<256x4xbf16>
    %c0_20 = arith.constant 0 : index
    %c0_21 = arith.constant 0 : index
    %c0_22 = arith.constant 0 : index
    %12 = vector.load %arg3[%c0_20, %c0_21, %c0_22] : memref<9x4x8xbf16, #tpu.memory_space<vmem>>, vector<1x4x8xbf16>
    %13 = vector.shape_cast %12 : vector<1x4x8xbf16> to vector<4x8xbf16>
    %cst_23 = arith.constant dense<0.000000e+00> : vector<256x8xf32>
    %14 = tpu.matmul %11, %13, %cst_23 {dimension_numbers = #tpu.dot_dimension_numbers<[1], [0], [0], [1], [0, 0, 1, 1], [], []>} : vector<256x4xbf16>, vector<4x8xbf16>, vector<256x8xf32> -> vector<256x8xf32>
    %c0_24 = arith.constant 0 : index
    %c1_25 = arith.constant 1 : index
    %c0_26 = arith.constant 0 : index
    %15 = vector.load %arg16[%c0_24, %c1_25, %c0_26] : memref<18x18x4xbf16, #tpu.memory_space<vmem>>, vector<16x16x4xbf16>
    %16 = vector.shape_cast %15 : vector<16x16x4xbf16> to vector<256x4xbf16>
    %c1_27 = arith.constant 1 : index
    %c0_28 = arith.constant 0 : index
    %c0_29 = arith.constant 0 : index
    %17 = vector.load %arg3[%c1_27, %c0_28, %c0_29] : memref<9x4x8xbf16, #tpu.memory_space<vmem>>, vector<1x4x8xbf16>
    %18 = vector.shape_cast %17 : vector<1x4x8xbf16> to vector<4x8xbf16>
    %cst_30 = arith.constant dense<0.000000e+00> : vector<256x8xf32>
    %19 = tpu.matmul %16, %18, %cst_30 {dimension_numbers = #tpu.dot_dimension_numbers<[1], [0], [0], [1], [0, 0, 1, 1], [], []>} : vector<256x4xbf16>, vector<4x8xbf16>, vector<256x8xf32> -> vector<256x8xf32>
    %20 = arith.addf %14, %19 : vector<256x8xf32>
    %c0_31 = arith.constant 0 : index
    %c2 = arith.constant 2 : index
    %c0_32 = arith.constant 0 : index
    %21 = vector.load %arg16[%c0_31, %c2, %c0_32] : memref<18x18x4xbf16, #tpu.memory_space<vmem>>, vector<16x16x4xbf16>
    %22 = vector.shape_cast %21 : vector<16x16x4xbf16> to vector<256x4xbf16>
    %c2_33 = arith.constant 2 : index
    %c0_34 = arith.constant 0 : index
    %c0_35 = arith.constant 0 : index
    %23 = vector.load %arg3[%c2_33, %c0_34, %c0_35] : memref<9x4x8xbf16, #tpu.memory_space<vmem>>, vector<1x4x8xbf16>
    %24 = vector.shape_cast %23 : vector<1x4x8xbf16> to vector<4x8xbf16>
    %cst_36 = arith.constant dense<0.000000e+00> : vector<256x8xf32>
    %25 = tpu.matmul %22, %24, %cst_36 {dimension_numbers = #tpu.dot_dimension_numbers<[1], [0], [0], [1], [0, 0, 1, 1], [], []>} : vector<256x4xbf16>, vector<4x8xbf16>, vector<256x8xf32> -> vector<256x8xf32>
    %26 = arith.addf %20, %25 : vector<256x8xf32>
    %c1_37 = arith.constant 1 : index
    %c0_38 = arith.constant 0 : index
    %c0_39 = arith.constant 0 : index
    %27 = vector.load %arg16[%c1_37, %c0_38, %c0_39] : memref<18x18x4xbf16, #tpu.memory_space<vmem>>, vector<16x16x4xbf16>
    %28 = vector.shape_cast %27 : vector<16x16x4xbf16> to vector<256x4xbf16>
    %c3 = arith.constant 3 : index
    %c0_40 = arith.constant 0 : index
    %c0_41 = arith.constant 0 : index
    %29 = vector.load %arg3[%c3, %c0_40, %c0_41] : memref<9x4x8xbf16, #tpu.memory_space<vmem>>, vector<1x4x8xbf16>
    %30 = vector.shape_cast %29 : vector<1x4x8xbf16> to vector<4x8xbf16>
    %cst_42 = arith.constant dense<0.000000e+00> : vector<256x8xf32>
    %31 = tpu.matmul %28, %30, %cst_42 {dimension_numbers = #tpu.dot_dimension_numbers<[1], [0], [0], [1], [0, 0, 1, 1], [], []>} : vector<256x4xbf16>, vector<4x8xbf16>, vector<256x8xf32> -> vector<256x8xf32>
    %32 = arith.addf %26, %31 : vector<256x8xf32>
    %c1_43 = arith.constant 1 : index
    %c1_44 = arith.constant 1 : index
    %c0_45 = arith.constant 0 : index
    %33 = vector.load %arg16[%c1_43, %c1_44, %c0_45] : memref<18x18x4xbf16, #tpu.memory_space<vmem>>, vector<16x16x4xbf16>
    %34 = vector.shape_cast %33 : vector<16x16x4xbf16> to vector<256x4xbf16>
    %c4 = arith.constant 4 : index
    %c0_46 = arith.constant 0 : index
    %c0_47 = arith.constant 0 : index
    %35 = vector.load %arg3[%c4, %c0_46, %c0_47] : memref<9x4x8xbf16, #tpu.memory_space<vmem>>, vector<1x4x8xbf16>
    %36 = vector.shape_cast %35 : vector<1x4x8xbf16> to vector<4x8xbf16>
    %cst_48 = arith.constant dense<0.000000e+00> : vector<256x8xf32>
    %37 = tpu.matmul %34, %36, %cst_48 {dimension_numbers = #tpu.dot_dimension_numbers<[1], [0], [0], [1], [0, 0, 1, 1], [], []>} : vector<256x4xbf16>, vector<4x8xbf16>, vector<256x8xf32> -> vector<256x8xf32>
    %38 = arith.addf %32, %37 : vector<256x8xf32>
    %c1_49 = arith.constant 1 : index
    %c2_50 = arith.constant 2 : index
    %c0_51 = arith.constant 0 : index
    %39 = vector.load %arg16[%c1_49, %c2_50, %c0_51] : memref<18x18x4xbf16, #tpu.memory_space<vmem>>, vector<16x16x4xbf16>
    %40 = vector.shape_cast %39 : vector<16x16x4xbf16> to vector<256x4xbf16>
    %c5 = arith.constant 5 : index
    %c0_52 = arith.constant 0 : index
    %c0_53 = arith.constant 0 : index
    %41 = vector.load %arg3[%c5, %c0_52, %c0_53] : memref<9x4x8xbf16, #tpu.memory_space<vmem>>, vector<1x4x8xbf16>
    %42 = vector.shape_cast %41 : vector<1x4x8xbf16> to vector<4x8xbf16>
    %cst_54 = arith.constant dense<0.000000e+00> : vector<256x8xf32>
    %43 = tpu.matmul %40, %42, %cst_54 {dimension_numbers = #tpu.dot_dimension_numbers<[1], [0], [0], [1], [0, 0, 1, 1], [], []>} : vector<256x4xbf16>, vector<4x8xbf16>, vector<256x8xf32> -> vector<256x8xf32>
    %44 = arith.addf %38, %43 : vector<256x8xf32>
    %c2_55 = arith.constant 2 : index
    %c0_56 = arith.constant 0 : index
    %c0_57 = arith.constant 0 : index
    %45 = vector.load %arg16[%c2_55, %c0_56, %c0_57] : memref<18x18x4xbf16, #tpu.memory_space<vmem>>, vector<16x16x4xbf16>
    %46 = vector.shape_cast %45 : vector<16x16x4xbf16> to vector<256x4xbf16>
    %c6 = arith.constant 6 : index
    %c0_58 = arith.constant 0 : index
    %c0_59 = arith.constant 0 : index
    %47 = vector.load %arg3[%c6, %c0_58, %c0_59] : memref<9x4x8xbf16, #tpu.memory_space<vmem>>, vector<1x4x8xbf16>
    %48 = vector.shape_cast %47 : vector<1x4x8xbf16> to vector<4x8xbf16>
    %cst_60 = arith.constant dense<0.000000e+00> : vector<256x8xf32>
    %49 = tpu.matmul %46, %48, %cst_60 {dimension_numbers = #tpu.dot_dimension_numbers<[1], [0], [0], [1], [0, 0, 1, 1], [], []>} : vector<256x4xbf16>, vector<4x8xbf16>, vector<256x8xf32> -> vector<256x8xf32>
    %50 = arith.addf %44, %49 : vector<256x8xf32>
    %c2_61 = arith.constant 2 : index
    %c1_62 = arith.constant 1 : index
    %c0_63 = arith.constant 0 : index
    %51 = vector.load %arg16[%c2_61, %c1_62, %c0_63] : memref<18x18x4xbf16, #tpu.memory_space<vmem>>, vector<16x16x4xbf16>
    %52 = vector.shape_cast %51 : vector<16x16x4xbf16> to vector<256x4xbf16>
    %c7 = arith.constant 7 : index
    %c0_64 = arith.constant 0 : index
    %c0_65 = arith.constant 0 : index
    %53 = vector.load %arg3[%c7, %c0_64, %c0_65] : memref<9x4x8xbf16, #tpu.memory_space<vmem>>, vector<1x4x8xbf16>
    %54 = vector.shape_cast %53 : vector<1x4x8xbf16> to vector<4x8xbf16>
    %cst_66 = arith.constant dense<0.000000e+00> : vector<256x8xf32>
    %55 = tpu.matmul %52, %54, %cst_66 {dimension_numbers = #tpu.dot_dimension_numbers<[1], [0], [0], [1], [0, 0, 1, 1], [], []>} : vector<256x4xbf16>, vector<4x8xbf16>, vector<256x8xf32> -> vector<256x8xf32>
    %56 = arith.addf %50, %55 : vector<256x8xf32>
    %c2_67 = arith.constant 2 : index
    %c2_68 = arith.constant 2 : index
    %c0_69 = arith.constant 0 : index
    %57 = vector.load %arg16[%c2_67, %c2_68, %c0_69] : memref<18x18x4xbf16, #tpu.memory_space<vmem>>, vector<16x16x4xbf16>
    %58 = vector.shape_cast %57 : vector<16x16x4xbf16> to vector<256x4xbf16>
    %c8 = arith.constant 8 : index
    %c0_70 = arith.constant 0 : index
    %c0_71 = arith.constant 0 : index
    %59 = vector.load %arg3[%c8, %c0_70, %c0_71] : memref<9x4x8xbf16, #tpu.memory_space<vmem>>, vector<1x4x8xbf16>
    %60 = vector.shape_cast %59 : vector<1x4x8xbf16> to vector<4x8xbf16>
    %cst_72 = arith.constant dense<0.000000e+00> : vector<256x8xf32>
    %61 = tpu.matmul %58, %60, %cst_72 {dimension_numbers = #tpu.dot_dimension_numbers<[1], [0], [0], [1], [0, 0, 1, 1], [], []>} : vector<256x4xbf16>, vector<4x8xbf16>, vector<256x8xf32> -> vector<256x8xf32>
    %62 = arith.addf %56, %61 : vector<256x8xf32>
    %c0_73 = arith.constant 0 : index
    %c0_74 = arith.constant 0 : index
    %63 = vector.load %arg4[%c0_73, %c0_74] : memref<1x8xf32, #tpu.memory_space<vmem>>, vector<1x8xf32>
    %64 = vector.broadcast %63 : vector<1x8xf32> to vector<256x8xf32>
    %65 = arith.addf %62, %64 : vector<256x8xf32>
    %cst_75 = arith.constant dense<0.000000e+00> : vector<8xf32>
    %66 = vector.multi_reduction <add>, %65, %cst_75 [0] : vector<256x8xf32> to vector<8xf32>
    %67 = vector.shape_cast %66 : vector<8xf32> to vector<1x8xf32>
    %c0_76 = arith.constant 0 : index
    %c0_77 = arith.constant 0 : index
    %68 = vector.load %arg11[%c0_76, %c0_77] : memref<8x8xf32, #tpu.memory_space<vmem>>, vector<8x8xf32>
    %cst_78 = arith.constant dense<0.000000e+00> : vector<1x8xf32>
    %69 = tpu.matmul %67, %68, %cst_78 {dimension_numbers = #tpu.dot_dimension_numbers<[1], [0], [0], [1], [0, 0, 1, 1], [], []>} : vector<1x8xf32>, vector<8x8xf32>, vector<1x8xf32> -> vector<1x8xf32>
    %c0_79 = arith.constant 0 : index
    %c0_80 = arith.constant 0 : index
    %70 = vector.load %arg12[%c0_79, %c0_80] : memref<8x8xf32, #tpu.memory_space<vmem>>, vector<8x8xf32>
    %cst_81 = arith.constant dense<0.000000e+00> : vector<1x8xf32>
    %71 = tpu.matmul %69, %70, %cst_81 {dimension_numbers = #tpu.dot_dimension_numbers<[1], [0], [0], [1], [0, 0, 1, 1], [], []>} : vector<1x8xf32>, vector<8x8xf32>, vector<1x8xf32> -> vector<1x8xf32>
    %cst_82 = arith.constant 3.906250e-03 : f32
    %72 = vector.broadcast %cst_82 : f32 to vector<1x8xf32>
    %73 = arith.mulf %71, %72 : vector<1x8xf32>
    %74 = vector.broadcast %73 : vector<1x8xf32> to vector<256x8xf32>
    %75 = arith.subf %65, %74 : vector<256x8xf32>
    %76 = arith.mulf %75, %75 : vector<256x8xf32>
    %cst_83 = arith.constant dense<0.000000e+00> : vector<8xf32>
    %77 = vector.multi_reduction <add>, %76, %cst_83 [0] : vector<256x8xf32> to vector<8xf32>
    %78 = vector.shape_cast %77 : vector<8xf32> to vector<1x8xf32>
    %c0_84 = arith.constant 0 : index
    %c0_85 = arith.constant 0 : index
    %79 = vector.load %arg11[%c0_84, %c0_85] : memref<8x8xf32, #tpu.memory_space<vmem>>, vector<8x8xf32>
    %cst_86 = arith.constant dense<0.000000e+00> : vector<1x8xf32>
    %80 = tpu.matmul %78, %79, %cst_86 {dimension_numbers = #tpu.dot_dimension_numbers<[1], [0], [0], [1], [0, 0, 1, 1], [], []>} : vector<1x8xf32>, vector<8x8xf32>, vector<1x8xf32> -> vector<1x8xf32>
    %c0_87 = arith.constant 0 : index
    %c0_88 = arith.constant 0 : index
    %81 = vector.load %arg12[%c0_87, %c0_88] : memref<8x8xf32, #tpu.memory_space<vmem>>, vector<8x8xf32>
    %cst_89 = arith.constant dense<0.000000e+00> : vector<1x8xf32>
    %82 = tpu.matmul %80, %81, %cst_89 {dimension_numbers = #tpu.dot_dimension_numbers<[1], [0], [0], [1], [0, 0, 1, 1], [], []>} : vector<1x8xf32>, vector<8x8xf32>, vector<1x8xf32> -> vector<1x8xf32>
    %cst_90 = arith.constant 3.906250e-03 : f32
    %83 = vector.broadcast %cst_90 : f32 to vector<1x8xf32>
    %84 = arith.mulf %82, %83 : vector<1x8xf32>
    %cst_91 = arith.constant 9.99999974E-6 : f32
    %85 = vector.broadcast %cst_91 : f32 to vector<1x8xf32>
    %86 = arith.addf %84, %85 : vector<1x8xf32>
    %87 = math.rsqrt %86 : vector<1x8xf32>
    %88 = vector.broadcast %87 : vector<1x8xf32> to vector<256x8xf32>
    %89 = arith.mulf %75, %88 : vector<256x8xf32>
    %c0_92 = arith.constant 0 : index
    %c0_93 = arith.constant 0 : index
    %90 = vector.load %arg5[%c0_92, %c0_93] : memref<1x8xf32, #tpu.memory_space<vmem>>, vector<1x8xf32>
    %91 = vector.broadcast %90 : vector<1x8xf32> to vector<256x8xf32>
    %92 = arith.mulf %89, %91 : vector<256x8xf32>
    %c0_94 = arith.constant 0 : index
    %c0_95 = arith.constant 0 : index
    %93 = vector.load %arg6[%c0_94, %c0_95] : memref<1x8xf32, #tpu.memory_space<vmem>>, vector<1x8xf32>
    %94 = vector.broadcast %93 : vector<1x8xf32> to vector<256x8xf32>
    %95 = arith.addf %92, %94 : vector<256x8xf32>
    %96 = arith.negf %95 : vector<256x8xf32>
    %97 = math.exp %96 : vector<256x8xf32>
    %cst_96 = arith.constant 1.000000e+00 : f32
    %98 = vector.broadcast %cst_96 : f32 to vector<256x8xf32>
    %99 = arith.addf %98, %97 : vector<256x8xf32>
    %100 = arith.divf %98, %99 : vector<256x8xf32>
    %101 = arith.mulf %95, %100 : vector<256x8xf32>
    %c0_97 = arith.constant 0 : index
    %c0_98 = arith.constant 0 : index
    %c0_99 = arith.constant 0 : index
    %102 = vector.load %arg2[%c0_97, %c0_98, %c0_99] : memref<1x1x8xf32, #tpu.memory_space<vmem>>, vector<1x1x8xf32>
    %103 = vector.shape_cast %102 : vector<1x1x8xf32> to vector<1x8xf32>
    %104 = vector.broadcast %103 : vector<1x8xf32> to vector<256x8xf32>
    %105 = arith.addf %101, %104 : vector<256x8xf32>
    %cst_100 = arith.constant 0.000000e+00 : bf16
    %106 = vector.broadcast %cst_100 : bf16 to vector<1x18x8xbf16>
    %cst_101 = arith.constant 0.000000e+00 : bf16
    %107 = vector.broadcast %cst_101 : bf16 to vector<18x1x8xbf16>
    %c0_102 = arith.constant 0 : index
    %c0_103 = arith.constant 0 : index
    %c0_104 = arith.constant 0 : index
    %108 = vector.load %arg17[%c0_102, %c0_103, %c0_104] : memref<18x18x8xbf16, #tpu.memory_space<vmem>>, vector<1x18x8xbf16>
    tpu.vector_store %arg17[%c0_102, %c0_103, %c0_104], %106 {strides = array<i32>} : memref<18x18x8xbf16, #tpu.memory_space<vmem>>, vector<1x18x8xbf16>,
    %c17_105 = arith.constant 17 : index
    %c0_106 = arith.constant 0 : index
    %c0_107 = arith.constant 0 : index
    %109 = vector.load %arg17[%c17_105, %c0_106, %c0_107] : memref<18x18x8xbf16, #tpu.memory_space<vmem>>, vector<1x18x8xbf16>
    tpu.vector_store %arg17[%c17_105, %c0_106, %c0_107], %106 {strides = array<i32>} : memref<18x18x8xbf16, #tpu.memory_space<vmem>>, vector<1x18x8xbf16>,
    %c0_108 = arith.constant 0 : index
    %c0_109 = arith.constant 0 : index
    %c0_110 = arith.constant 0 : index
    %110 = vector.load %arg17[%c0_108, %c0_109, %c0_110] : memref<18x18x8xbf16, #tpu.memory_space<vmem>>, vector<18x1x8xbf16>
    tpu.vector_store %arg17[%c0_108, %c0_109, %c0_110], %107 {strides = array<i32>} : memref<18x18x8xbf16, #tpu.memory_space<vmem>>, vector<18x1x8xbf16>,
    %c0_111 = arith.constant 0 : index
    %c17_112 = arith.constant 17 : index
    %c0_113 = arith.constant 0 : index
    %111 = vector.load %arg17[%c0_111, %c17_112, %c0_113] : memref<18x18x8xbf16, #tpu.memory_space<vmem>>, vector<18x1x8xbf16>
    tpu.vector_store %arg17[%c0_111, %c17_112, %c0_113], %107 {strides = array<i32>} : memref<18x18x8xbf16, #tpu.memory_space<vmem>>, vector<18x1x8xbf16>,
    %112 = vector.shape_cast %105 : vector<256x8xf32> to vector<16x16x8xf32>
    %113 = arith.truncf %112 : vector<16x16x8xf32> to vector<16x16x8xbf16>
    %c1_114 = arith.constant 1 : index
    %c1_115 = arith.constant 1 : index
    %c0_116 = arith.constant 0 : index
    %114 = vector.load %arg17[%c1_114, %c1_115, %c0_116] : memref<18x18x8xbf16, #tpu.memory_space<vmem>>, vector<16x16x8xbf16>
    tpu.vector_store %arg17[%c1_114, %c1_115, %c0_116], %113 {strides = array<i32>} : memref<18x18x8xbf16, #tpu.memory_space<vmem>>, vector<16x16x8xbf16>,
    %c0_117 = arith.constant 0 : index
    %c0_118 = arith.constant 0 : index
    %c0_119 = arith.constant 0 : index
    %115 = vector.load %arg17[%c0_117, %c0_118, %c0_119] : memref<18x18x8xbf16, #tpu.memory_space<vmem>>, vector<16x16x8xbf16>
    %116 = vector.shape_cast %115 : vector<16x16x8xbf16> to vector<256x8xbf16>
    %c0_120 = arith.constant 0 : index
    %c0_121 = arith.constant 0 : index
    %c0_122 = arith.constant 0 : index
    %117 = vector.load %arg7[%c0_120, %c0_121, %c0_122] : memref<9x8x8xbf16, #tpu.memory_space<vmem>>, vector<1x8x8xbf16>
    %118 = vector.shape_cast %117 : vector<1x8x8xbf16> to vector<8x8xbf16>
    %cst_123 = arith.constant dense<0.000000e+00> : vector<256x8xf32>
    %119 = tpu.matmul %116, %118, %cst_123 {dimension_numbers = #tpu.dot_dimension_numbers<[1], [0], [0], [1], [0, 0, 1, 1], [], []>} : vector<256x8xbf16>, vector<8x8xbf16>, vector<256x8xf32> -> vector<256x8xf32>
    %c0_124 = arith.constant 0 : index
    %c1_125 = arith.constant 1 : index
    %c0_126 = arith.constant 0 : index
    %120 = vector.load %arg17[%c0_124, %c1_125, %c0_126] : memref<18x18x8xbf16, #tpu.memory_space<vmem>>, vector<16x16x8xbf16>
    %121 = vector.shape_cast %120 : vector<16x16x8xbf16> to vector<256x8xbf16>
    %c1_127 = arith.constant 1 : index
    %c0_128 = arith.constant 0 : index
    %c0_129 = arith.constant 0 : index
    %122 = vector.load %arg7[%c1_127, %c0_128, %c0_129] : memref<9x8x8xbf16, #tpu.memory_space<vmem>>, vector<1x8x8xbf16>
    %123 = vector.shape_cast %122 : vector<1x8x8xbf16> to vector<8x8xbf16>
    %cst_130 = arith.constant dense<0.000000e+00> : vector<256x8xf32>
    %124 = tpu.matmul %121, %123, %cst_130 {dimension_numbers = #tpu.dot_dimension_numbers<[1], [0], [0], [1], [0, 0, 1, 1], [], []>} : vector<256x8xbf16>, vector<8x8xbf16>, vector<256x8xf32> -> vector<256x8xf32>
    %125 = arith.addf %119, %124 : vector<256x8xf32>
    %c0_131 = arith.constant 0 : index
    %c2_132 = arith.constant 2 : index
    %c0_133 = arith.constant 0 : index
    %126 = vector.load %arg17[%c0_131, %c2_132, %c0_133] : memref<18x18x8xbf16, #tpu.memory_space<vmem>>, vector<16x16x8xbf16>
    %127 = vector.shape_cast %126 : vector<16x16x8xbf16> to vector<256x8xbf16>
    %c2_134 = arith.constant 2 : index
    %c0_135 = arith.constant 0 : index
    %c0_136 = arith.constant 0 : index
    %128 = vector.load %arg7[%c2_134, %c0_135, %c0_136] : memref<9x8x8xbf16, #tpu.memory_space<vmem>>, vector<1x8x8xbf16>
    %129 = vector.shape_cast %128 : vector<1x8x8xbf16> to vector<8x8xbf16>
    %cst_137 = arith.constant dense<0.000000e+00> : vector<256x8xf32>
    %130 = tpu.matmul %127, %129, %cst_137 {dimension_numbers = #tpu.dot_dimension_numbers<[1], [0], [0], [1], [0, 0, 1, 1], [], []>} : vector<256x8xbf16>, vector<8x8xbf16>, vector<256x8xf32> -> vector<256x8xf32>
    %131 = arith.addf %125, %130 : vector<256x8xf32>
    %c1_138 = arith.constant 1 : index
    %c0_139 = arith.constant 0 : index
    %c0_140 = arith.constant 0 : index
    %132 = vector.load %arg17[%c1_138, %c0_139, %c0_140] : memref<18x18x8xbf16, #tpu.memory_space<vmem>>, vector<16x16x8xbf16>
    %133 = vector.shape_cast %132 : vector<16x16x8xbf16> to vector<256x8xbf16>
    %c3_141 = arith.constant 3 : index
    %c0_142 = arith.constant 0 : index
    %c0_143 = arith.constant 0 : index
    %134 = vector.load %arg7[%c3_141, %c0_142, %c0_143] : memref<9x8x8xbf16, #tpu.memory_space<vmem>>, vector<1x8x8xbf16>
    %135 = vector.shape_cast %134 : vector<1x8x8xbf16> to vector<8x8xbf16>
    %cst_144 = arith.constant dense<0.000000e+00> : vector<256x8xf32>
    %136 = tpu.matmul %133, %135, %cst_144 {dimension_numbers = #tpu.dot_dimension_numbers<[1], [0], [0], [1], [0, 0, 1, 1], [], []>} : vector<256x8xbf16>, vector<8x8xbf16>, vector<256x8xf32> -> vector<256x8xf32>
    %137 = arith.addf %131, %136 : vector<256x8xf32>
    %c1_145 = arith.constant 1 : index
    %c1_146 = arith.constant 1 : index
    %c0_147 = arith.constant 0 : index
    %138 = vector.load %arg17[%c1_145, %c1_146, %c0_147] : memref<18x18x8xbf16, #tpu.memory_space<vmem>>, vector<16x16x8xbf16>
    %139 = vector.shape_cast %138 : vector<16x16x8xbf16> to vector<256x8xbf16>
    %c4_148 = arith.constant 4 : index
    %c0_149 = arith.constant 0 : index
    %c0_150 = arith.constant 0 : index
    %140 = vector.load %arg7[%c4_148, %c0_149, %c0_150] : memref<9x8x8xbf16, #tpu.memory_space<vmem>>, vector<1x8x8xbf16>
    %141 = vector.shape_cast %140 : vector<1x8x8xbf16> to vector<8x8xbf16>
    %cst_151 = arith.constant dense<0.000000e+00> : vector<256x8xf32>
    %142 = tpu.matmul %139, %141, %cst_151 {dimension_numbers = #tpu.dot_dimension_numbers<[1], [0], [0], [1], [0, 0, 1, 1], [], []>} : vector<256x8xbf16>, vector<8x8xbf16>, vector<256x8xf32> -> vector<256x8xf32>
    %143 = arith.addf %137, %142 : vector<256x8xf32>
    %c1_152 = arith.constant 1 : index
    %c2_153 = arith.constant 2 : index
    %c0_154 = arith.constant 0 : index
    %144 = vector.load %arg17[%c1_152, %c2_153, %c0_154] : memref<18x18x8xbf16, #tpu.memory_space<vmem>>, vector<16x16x8xbf16>
    %145 = vector.shape_cast %144 : vector<16x16x8xbf16> to vector<256x8xbf16>
    %c5_155 = arith.constant 5 : index
    %c0_156 = arith.constant 0 : index
    %c0_157 = arith.constant 0 : index
    %146 = vector.load %arg7[%c5_155, %c0_156, %c0_157] : memref<9x8x8xbf16, #tpu.memory_space<vmem>>, vector<1x8x8xbf16>
    %147 = vector.shape_cast %146 : vector<1x8x8xbf16> to vector<8x8xbf16>
    %cst_158 = arith.constant dense<0.000000e+00> : vector<256x8xf32>
    %148 = tpu.matmul %145, %147, %cst_158 {dimension_numbers = #tpu.dot_dimension_numbers<[1], [0], [0], [1], [0, 0, 1, 1], [], []>} : vector<256x8xbf16>, vector<8x8xbf16>, vector<256x8xf32> -> vector<256x8xf32>
    %149 = arith.addf %143, %148 : vector<256x8xf32>
    %c2_159 = arith.constant 2 : index
    %c0_160 = arith.constant 0 : index
    %c0_161 = arith.constant 0 : index
    %150 = vector.load %arg17[%c2_159, %c0_160, %c0_161] : memref<18x18x8xbf16, #tpu.memory_space<vmem>>, vector<16x16x8xbf16>
    %151 = vector.shape_cast %150 : vector<16x16x8xbf16> to vector<256x8xbf16>
    %c6_162 = arith.constant 6 : index
    %c0_163 = arith.constant 0 : index
    %c0_164 = arith.constant 0 : index
    %152 = vector.load %arg7[%c6_162, %c0_163, %c0_164] : memref<9x8x8xbf16, #tpu.memory_space<vmem>>, vector<1x8x8xbf16>
    %153 = vector.shape_cast %152 : vector<1x8x8xbf16> to vector<8x8xbf16>
    %cst_165 = arith.constant dense<0.000000e+00> : vector<256x8xf32>
    %154 = tpu.matmul %151, %153, %cst_165 {dimension_numbers = #tpu.dot_dimension_numbers<[1], [0], [0], [1], [0, 0, 1, 1], [], []>} : vector<256x8xbf16>, vector<8x8xbf16>, vector<256x8xf32> -> vector<256x8xf32>
    %155 = arith.addf %149, %154 : vector<256x8xf32>
    %c2_166 = arith.constant 2 : index
    %c1_167 = arith.constant 1 : index
    %c0_168 = arith.constant 0 : index
    %156 = vector.load %arg17[%c2_166, %c1_167, %c0_168] : memref<18x18x8xbf16, #tpu.memory_space<vmem>>, vector<16x16x8xbf16>
    %157 = vector.shape_cast %156 : vector<16x16x8xbf16> to vector<256x8xbf16>
    %c7_169 = arith.constant 7 : index
    %c0_170 = arith.constant 0 : index
    %c0_171 = arith.constant 0 : index
    %158 = vector.load %arg7[%c7_169, %c0_170, %c0_171] : memref<9x8x8xbf16, #tpu.memory_space<vmem>>, vector<1x8x8xbf16>
    %159 = vector.shape_cast %158 : vector<1x8x8xbf16> to vector<8x8xbf16>
    %cst_172 = arith.constant dense<0.000000e+00> : vector<256x8xf32>
    %160 = tpu.matmul %157, %159, %cst_172 {dimension_numbers = #tpu.dot_dimension_numbers<[1], [0], [0], [1], [0, 0, 1, 1], [], []>} : vector<256x8xbf16>, vector<8x8xbf16>, vector<256x8xf32> -> vector<256x8xf32>
    %161 = arith.addf %155, %160 : vector<256x8xf32>
    %c2_173 = arith.constant 2 : index
    %c2_174 = arith.constant 2 : index
    %c0_175 = arith.constant 0 : index
    %162 = vector.load %arg17[%c2_173, %c2_174, %c0_175] : memref<18x18x8xbf16, #tpu.memory_space<vmem>>, vector<16x16x8xbf16>
    %163 = vector.shape_cast %162 : vector<16x16x8xbf16> to vector<256x8xbf16>
    %c8_176 = arith.constant 8 : index
    %c0_177 = arith.constant 0 : index
    %c0_178 = arith.constant 0 : index
    %164 = vector.load %arg7[%c8_176, %c0_177, %c0_178] : memref<9x8x8xbf16, #tpu.memory_space<vmem>>, vector<1x8x8xbf16>
    %165 = vector.shape_cast %164 : vector<1x8x8xbf16> to vector<8x8xbf16>
    %cst_179 = arith.constant dense<0.000000e+00> : vector<256x8xf32>
    %166 = tpu.matmul %163, %165, %cst_179 {dimension_numbers = #tpu.dot_dimension_numbers<[1], [0], [0], [1], [0, 0, 1, 1], [], []>} : vector<256x8xbf16>, vector<8x8xbf16>, vector<256x8xf32> -> vector<256x8xf32>
    %167 = arith.addf %161, %166 : vector<256x8xf32>
    %c0_180 = arith.constant 0 : index
    %c0_181 = arith.constant 0 : index
    %168 = vector.load %arg8[%c0_180, %c0_181] : memref<1x8xf32, #tpu.memory_space<vmem>>, vector<1x8xf32>
    %169 = vector.broadcast %168 : vector<1x8xf32> to vector<256x8xf32>
    %170 = arith.addf %167, %169 : vector<256x8xf32>
    %cst_182 = arith.constant dense<0.000000e+00> : vector<8xf32>
    %171 = vector.multi_reduction <add>, %170, %cst_182 [0] : vector<256x8xf32> to vector<8xf32>
    %172 = vector.shape_cast %171 : vector<8xf32> to vector<1x8xf32>
    %c0_183 = arith.constant 0 : index
    %c0_184 = arith.constant 0 : index
    %173 = vector.load %arg11[%c0_183, %c0_184] : memref<8x8xf32, #tpu.memory_space<vmem>>, vector<8x8xf32>
    %cst_185 = arith.constant dense<0.000000e+00> : vector<1x8xf32>
    %174 = tpu.matmul %172, %173, %cst_185 {dimension_numbers = #tpu.dot_dimension_numbers<[1], [0], [0], [1], [0, 0, 1, 1], [], []>} : vector<1x8xf32>, vector<8x8xf32>, vector<1x8xf32> -> vector<1x8xf32>
    %c0_186 = arith.constant 0 : index
    %c0_187 = arith.constant 0 : index
    %175 = vector.load %arg12[%c0_186, %c0_187] : memref<8x8xf32, #tpu.memory_space<vmem>>, vector<8x8xf32>
    %cst_188 = arith.constant dense<0.000000e+00> : vector<1x8xf32>
    %176 = tpu.matmul %174, %175, %cst_188 {dimension_numbers = #tpu.dot_dimension_numbers<[1], [0], [0], [1], [0, 0, 1, 1], [], []>} : vector<1x8xf32>, vector<8x8xf32>, vector<1x8xf32> -> vector<1x8xf32>
    %cst_189 = arith.constant 3.906250e-03 : f32
    %177 = vector.broadcast %cst_189 : f32 to vector<1x8xf32>
    %178 = arith.mulf %176, %177 : vector<1x8xf32>
    %179 = vector.broadcast %178 : vector<1x8xf32> to vector<256x8xf32>
    %180 = arith.subf %170, %179 : vector<256x8xf32>
    %181 = arith.mulf %180, %180 : vector<256x8xf32>
    %cst_190 = arith.constant dense<0.000000e+00> : vector<8xf32>
    %182 = vector.multi_reduction <add>, %181, %cst_190 [0] : vector<256x8xf32> to vector<8xf32>
    %183 = vector.shape_cast %182 : vector<8xf32> to vector<1x8xf32>
    %c0_191 = arith.constant 0 : index
    %c0_192 = arith.constant 0 : index
    %184 = vector.load %arg11[%c0_191, %c0_192] : memref<8x8xf32, #tpu.memory_space<vmem>>, vector<8x8xf32>
    %cst_193 = arith.constant dense<0.000000e+00> : vector<1x8xf32>
    %185 = tpu.matmul %183, %184, %cst_193 {dimension_numbers = #tpu.dot_dimension_numbers<[1], [0], [0], [1], [0, 0, 1, 1], [], []>} : vector<1x8xf32>, vector<8x8xf32>, vector<1x8xf32> -> vector<1x8xf32>
    %c0_194 = arith.constant 0 : index
    %c0_195 = arith.constant 0 : index
    %186 = vector.load %arg12[%c0_194, %c0_195] : memref<8x8xf32, #tpu.memory_space<vmem>>, vector<8x8xf32>
    %cst_196 = arith.constant dense<0.000000e+00> : vector<1x8xf32>
    %187 = tpu.matmul %185, %186, %cst_196 {dimension_numbers = #tpu.dot_dimension_numbers<[1], [0], [0], [1], [0, 0, 1, 1], [], []>} : vector<1x8xf32>, vector<8x8xf32>, vector<1x8xf32> -> vector<1x8xf32>
    %cst_197 = arith.constant 3.906250e-03 : f32
    %188 = vector.broadcast %cst_197 : f32 to vector<1x8xf32>
    %189 = arith.mulf %187, %188 : vector<1x8xf32>
    %cst_198 = arith.constant 9.99999974E-6 : f32
    %190 = vector.broadcast %cst_198 : f32 to vector<1x8xf32>
    %191 = arith.addf %189, %190 : vector<1x8xf32>
    %192 = math.rsqrt %191 : vector<1x8xf32>
    %193 = vector.broadcast %192 : vector<1x8xf32> to vector<256x8xf32>
    %194 = arith.mulf %180, %193 : vector<256x8xf32>
    %c0_199 = arith.constant 0 : index
    %c0_200 = arith.constant 0 : index
    %195 = vector.load %arg9[%c0_199, %c0_200] : memref<1x8xf32, #tpu.memory_space<vmem>>, vector<1x8xf32>
    %196 = vector.broadcast %195 : vector<1x8xf32> to vector<256x8xf32>
    %197 = arith.mulf %194, %196 : vector<256x8xf32>
    %c0_201 = arith.constant 0 : index
    %c0_202 = arith.constant 0 : index
    %198 = vector.load %arg10[%c0_201, %c0_202] : memref<1x8xf32, #tpu.memory_space<vmem>>, vector<1x8xf32>
    %199 = vector.broadcast %198 : vector<1x8xf32> to vector<256x8xf32>
    %200 = arith.addf %197, %199 : vector<256x8xf32>
    %201 = arith.negf %200 : vector<256x8xf32>
    %202 = math.exp %201 : vector<256x8xf32>
    %cst_203 = arith.constant 1.000000e+00 : f32
    %203 = vector.broadcast %cst_203 : f32 to vector<256x8xf32>
    %204 = arith.addf %203, %202 : vector<256x8xf32>
    %205 = arith.divf %203, %204 : vector<256x8xf32>
    %206 = arith.mulf %200, %205 : vector<256x8xf32>
    %207 = vector.shape_cast %1 : vector<16x16x4xf32> to vector<256x4xf32>
    %208 = arith.truncf %207 : vector<256x4xf32> to vector<256x4xbf16>
    %c0_204 = arith.constant 0 : index
    %c0_205 = arith.constant 0 : index
    %209 = vector.load %arg13[%c0_204, %c0_205] : memref<4x8xbf16, #tpu.memory_space<vmem>>, vector<4x8xbf16>
    %cst_206 = arith.constant dense<0.000000e+00> : vector<256x8xf32>
    %210 = tpu.matmul %208, %209, %cst_206 {dimension_numbers = #tpu.dot_dimension_numbers<[1], [0], [0], [1], [0, 0, 1, 1], [], []>} : vector<256x4xbf16>, vector<4x8xbf16>, vector<256x8xf32> -> vector<256x8xf32>
    %c0_207 = arith.constant 0 : index
    %c0_208 = arith.constant 0 : index
    %211 = vector.load %arg14[%c0_207, %c0_208] : memref<1x8xf32, #tpu.memory_space<vmem>>, vector<1x8xf32>
    %212 = vector.broadcast %211 : vector<1x8xf32> to vector<256x8xf32>
    %213 = arith.addf %210, %212 : vector<256x8xf32>
    %214 = arith.addf %206, %213 : vector<256x8xf32>
    %c0_209 = arith.constant 0 : index
    %c0_210 = arith.constant 0 : index
    %c0_211 = arith.constant 0 : index
    %215 = vector.load %arg15[%c0_209, %c0_210, %c0_211] : memref<1x256x8xf32, #tpu.memory_space<vmem>>, vector<1x256x8xf32>
    %216 = vector.shape_cast %215 : vector<1x256x8xf32> to vector<256x8xf32>
    %217 = vector.shape_cast %214 : vector<256x8xf32> to vector<1x256x8xf32>
    tpu.vector_store %arg15[%c0_209, %c0_210, %c0_211], %217 {strides = array<i32>} : memref<1x256x8xf32, #tpu.memory_space<vmem>>, vector<1x256x8xf32>,
    return
  }
  func.func @transform_0(%arg0: i32) -> (i32, i32, i32, i32) {
    %c0_i32 = arith.constant 0 : i32
    %c0_i32_0 = arith.constant 0 : i32
    %c0_i32_1 = arith.constant 0 : i32
    %c0_i32_2 = arith.constant 0 : i32
    return %arg0, %c0_i32, %c0_i32_0, %c0_i32_1 : i32, i32, i32, i32
  }
  func.func @transform_1(%arg0: i32) -> (i32, i32, i32) {
    %c0_i32 = arith.constant 0 : i32
    %c0_i32_0 = arith.constant 0 : i32
    %c0_i32_1 = arith.constant 0 : i32
    return %arg0, %c0_i32, %c0_i32_0 : i32, i32, i32
  }
  func.func @transform_2(%arg0: i32) -> (i32, i32, i32) {
    %c0_i32 = arith.constant 0 : i32
    %c0_i32_0 = arith.constant 0 : i32
    %c0_i32_1 = arith.constant 0 : i32
    %c0_i32_2 = arith.constant 0 : i32
    return %c0_i32, %c0_i32_0, %c0_i32_1 : i32, i32, i32
  }
  func.func @transform_3(%arg0: i32) -> (i32, i32) {
    %c0_i32 = arith.constant 0 : i32
    %c0_i32_0 = arith.constant 0 : i32
    %c0_i32_1 = arith.constant 0 : i32
    return %c0_i32, %c0_i32_0 : i32, i32
  }
  func.func @transform_4(%arg0: i32) -> (i32, i32) {
    %c0_i32 = arith.constant 0 : i32
    %c0_i32_0 = arith.constant 0 : i32
    %c0_i32_1 = arith.constant 0 : i32
    return %c0_i32, %c0_i32_0 : i32, i32
  }
  func.func @transform_5(%arg0: i32) -> (i32, i32) {
    %c0_i32 = arith.constant 0 : i32
    %c0_i32_0 = arith.constant 0 : i32
    %c0_i32_1 = arith.constant 0 : i32
    return %c0_i32, %c0_i32_0 : i32, i32
  }
  func.func @transform_6(%arg0: i32) -> (i32, i32, i32) {
    %c0_i32 = arith.constant 0 : i32
    %c0_i32_0 = arith.constant 0 : i32
    %c0_i32_1 = arith.constant 0 : i32
    %c0_i32_2 = arith.constant 0 : i32
    return %c0_i32, %c0_i32_0, %c0_i32_1 : i32, i32, i32
  }
  func.func @transform_7(%arg0: i32) -> (i32, i32) {
    %c0_i32 = arith.constant 0 : i32
    %c0_i32_0 = arith.constant 0 : i32
    %c0_i32_1 = arith.constant 0 : i32
    return %c0_i32, %c0_i32_0 : i32, i32
  }
  func.func @transform_8(%arg0: i32) -> (i32, i32) {
    %c0_i32 = arith.constant 0 : i32
    %c0_i32_0 = arith.constant 0 : i32
    %c0_i32_1 = arith.constant 0 : i32
    return %c0_i32, %c0_i32_0 : i32, i32
  }
  func.func @transform_9(%arg0: i32) -> (i32, i32) {
    %c0_i32 = arith.constant 0 : i32
    %c0_i32_0 = arith.constant 0 : i32
    %c0_i32_1 = arith.constant 0 : i32
    return %c0_i32, %c0_i32_0 : i32, i32
  }
  func.func @transform_10(%arg0: i32) -> (i32, i32) {
    %c0_i32 = arith.constant 0 : i32
    %c0_i32_0 = arith.constant 0 : i32
    %c0_i32_1 = arith.constant 0 : i32
    return %c0_i32, %c0_i32_0 : i32, i32
  }
  func.func @transform_11(%arg0: i32) -> (i32, i32) {
    %c0_i32 = arith.constant 0 : i32
    %c0_i32_0 = arith.constant 0 : i32
    %c0_i32_1 = arith.constant 0 : i32
    return %c0_i32, %c0_i32_0 : i32, i32
  }
  func.func @transform_12(%arg0: i32) -> (i32, i32) {
    %c0_i32 = arith.constant 0 : i32
    %c0_i32_0 = arith.constant 0 : i32
    %c0_i32_1 = arith.constant 0 : i32
    return %c0_i32, %c0_i32_0 : i32, i32
  }
  func.func @transform_13(%arg0: i32) -> (i32, i32) {
    %c0_i32 = arith.constant 0 : i32
    %c0_i32_0 = arith.constant 0 : i32
    %c0_i32_1 = arith.constant 0 : i32
    return %c0_i32, %c0_i32_0 : i32, i32
  }
  func.func @transform_14(%arg0: i32) -> (i32, i32, i32) {
    %c0_i32 = arith.constant 0 : i32
    %c0_i32_0 = arith.constant 0 : i32
    %c0_i32_1 = arith.constant 0 : i32
    return %arg0, %c0_i32, %c0_i32_0 : i32, i32, i32
  }
}

</mosaic_0001>

<bundles_post_ra>
// kernel: tpu_custom_call.1
= control target key start
LH: loop header
LB: loop body
LE: loop exit
PB: predicated region body
PF: predicated region fallthrough
CT: control target
= control target key end

     0   :  { %s15559_s29 = smov 0   ;;  %s22368_s0 = inlined_call_operand.vmem [shape: f32[2,16,16,4], index: 0, kind: input, shape index: {}]   ;;  %s22369_s1 = inlined_call_operand.vmem [shape: f32[2,1,8], index: 1, kind: input, shape index: {}]   ;;  %s22370_s2 = inlined_call_operand.vmem [shape: bf16[9,4,8], index: 2, kind: input, shape index: {}]   ;;  %s22371_s3 = inlined_call_operand.vmem [shape: f32[1,8], index: 3, kind: input, shape index: {}]   ;;  %s22372_s4 = inlined_call_operand.vmem [shape: f32[1,8], index: 4, kind: input, shape index: {}]   ;;  %s22373_s5 = inlined_call_operand.vmem [shape: f32[1,8], index: 5, kind: input, shape index: {}]   ;;  %s22374_s6 = inlined_call_operand.vmem [shape: bf16[9,8,8], index: 6, kind: input, shape index: {}]   ;;  %s22375_s7 = inlined_call_operand.vmem [shape: f32[1,8], index: 7, kind: input, shape index: {}]   ;;  %s22376_s8 = inlined_call_operand.vmem [shape: f32[1,8], index: 8, kind: input, shape index: {}]   ;;  %s22377_s9 = inlined_call_operand.vmem [shape: f32[1,8], index: 9, kind: input, shape index: {}]   ;;  %s22378_s10 = inlined_call_operand.vmem [shape: f32[8,8], index: 10, kind: input, shape index: {}]   ;;  %s22379_s11 = inlined_call_operand.vmem [shape: f32[8,8], index: 11, kind: input, shape index: {}]   ;;  %s22380_s12 = inlined_call_operand.vmem [shape: bf16[4,8], index: 12, kind: input, shape index: {}]   ;;  %s22381_s13 = inlined_call_operand.vmem [shape: f32[1,8], index: 13, kind: input, shape index: {}]   ;;  %s22382_s14 = inlined_call_operand.vmem [shape: f32[2,256,8], index: 14, kind: output, shape index: {}]  }
   0x1 LB: > { %s13080_s30 = sadd.s32 4294967295, %s15479_s29   ;;  %p13084_p0 = scmp.ge.s32.totalorder %s15479_s29, 1  ;;  %s15479_s29 = sphi %s15559_s29, %s24_s29  }
   0x2   : > { %p420_p1 = scmp.lt.s32.totalorder %s15479_s29, 3 }
   0x4   : > { %p421_p2 = pnand %p13084_p0, %p420_p1 }
   0x6   : > { %424 = sbr.rel (%p421_p2) target bundleno = 3224 (0xc98), region = 76 }
   0xb   : > { %v13121_v0 = vld [vmem:[%s22370_s2 + $0x2] sm:$0x3]  ;;  %vm1705_vm0 = vcmask 1041408   ;;  %vm515_vm1 = vcmask 27648   ;;  %vm518_vm2 = vcmask 24576   ;;  %v15481_v2 = vmov 0  }
   0xc   : > { %15032 = vmatprep.subr.msk.bf16.mxu0 %vm1705_vm0, %v13121_v0  ;;  %15033 = vmatprep.subr.msk.bf16.mxu1 %vm1705_vm0, %v13121_v0  ;;  %v1707_v1 = vsel %vm1705_vm0, %v13121_v0, 0  ;;  %516 = vst.msk [vmem:[#allocation2] sm:$0xf] %vm515_vm1, %v15481_v2  ;;  %517 = vst.msk [vmem:[#allocation2 + $0x4] sm:$0xf] %vm515_vm1, %v15481_v2  ;;  %vm6649_vm6 = vcmask 60416  }
   0xd   : > { %519 = vst.msk [vmem:[#allocation2 + $0x8] sm:$0x1] %vm518_vm2, %v15481_v2  ;;  %523 = vst.msk [vmem:[#allocation2 + $0xd4] sm:$0x1] %vm518_vm2, %v15481_v2  ;;  %vm525_vm3 = vsmask.f32 256  ;;  %14345 = vmatpush3.bf16.msra.mxu0 %v1707_v1  ;;  %15031 = vmatpush3.bf16.msra.mxu1 %v1707_v1 }
   0xe   : > { %vm581_vm4 = vsmask.f32 7938  ;;  %521 = vst.msk [vmem:[#allocation2 + $0xcc] sm:$0xf] %vm515_vm1, %v15481_v2  ;;  %522 = vst.msk [vmem:[#allocation2 + $0xd0] sm:$0xf] %vm515_vm1, %v15481_v2 }
   0xf   : > { %vm15581_vm5 = vmand %vm518_vm2, %vm525_vm3  ;;  %vm6652_vm7 = vcmask 57344   ;;  %v22437_v4 = vmov 0  ;;  %6650 = vst.msk [vmem:[#allocation3] sm:$0xf] %vm6649_vm6, %v15481_v2  ;;  %p469_p3 = scmp.lt.s32.totalorder %s13080_s30, 1  ;;  %v22442_v56 = vmov 0 }
  0x10   : > { %vm15587_vm8 = vmand %vm518_vm2, %vm581_vm4  ;;  %6651 = vst.msk [vmem:[#allocation3 + $0x4] sm:$0xf] %vm6649_vm6, %v15481_v2  ;;  %v530_v5 = vld [vmem:[#allocation2 + $0xc] sm:$0x1]  ;;  %v586_v6 = vld [vmem:[#allocation2 + $0x14] sm:$0x1] }
  0x11   : > { %v22438_v4 = vsel %vm15587_vm8, 4294967295, %v22437_v4  ;;  %6653 = vst.msk [vmem:[#allocation3 + $0x8] sm:$0x1] %vm6652_vm7, %v15481_v2  ;;  %6657 = vst.msk [vmem:[#allocation3 + $0xd4] sm:$0x1] %vm6652_vm7, %v15481_v2  ;;  %v531_v7 = vsel %vm15581_vm5, 0, %v530_v5 }
  0x12   : > { %22439 = vst [vmem:[#allocation4_spill] sm:$0xff] %v22438_v4  ;;  %6655 = vst.msk [vmem:[#allocation3 + $0xcc] sm:$0xf] %vm6649_vm6, %v15481_v2  ;;  %v587_v8 = vsel %vm15587_vm8, 0, %v586_v6  ;;  %v551_v9 = vld [vmem:[#allocation2 + $0x60] sm:$0x1] }
  0x13   : > { %6656 = vst.msk [vmem:[#allocation3 + $0xd0] sm:$0xf] %vm6649_vm6, %v15481_v2  ;;  %s22864_s30 = smov (!%p469_p3, %s13080_s30), 1  ;;  %532 = vst [vmem:[#allocation2 + $0xc] sm:$0x1] %v531_v7  ;;  %v552_v10 = vsel %vm15581_vm5, 0, %v551_v9 }
  0x14   : > { %588 = vst [vmem:[#allocation2 + $0x14] sm:$0x1] %v587_v8  ;;  %v607_v11 = vld [vmem:[#allocation2 + $0x68] sm:$0x1]  ;;  %v1202_v12 = vld [vmem:[%s22370_s2] sm:$0x3]  ;;  %vm15652_vm12 = vmand %vm515_vm1, %vm581_vm4  ;;  %s476_s22 = scalar_lea.vmem %s22369_s1, %s22864_s30 }
  0x15   : > { %553 = vst [vmem:[#allocation2 + $0x60] sm:$0x1] %v552_v10  ;;  %v608_v13 = vsel %vm15587_vm8, 0, %v607_v11  ;;  %15034 = vmatprep.subr.msk.bf16.mxu1 %vm1705_vm0, %v1202_v12  ;;  %v554_v14 = vld [vmem:[#allocation2 + $0x6c] sm:$0x1]  ;;  %s13939_s19 = sshll.u32 %s22864_s30, 8 }
  0x16   : > { %v610_v15 = vld [vmem:[#allocation2 + $0x74] sm:$0x1]  ;;  %609 = vst [vmem:[#allocation2 + $0x68] sm:$0x1] %v608_v13  ;;  %v555_v16 = vsel %vm15581_vm5, 0, %v554_v14  ;;  %s15630_s24 = scalar_lea.vmem %s22368_s0, %s13939_s19  ;;  %v15647_v45 = vsel %vm1705_vm0, %v1202_v12, 0  ;;  %s22152_s17 = scalar_lea.vmem %s22382_s14, %s13939_s19 }
  0x17   : > { %v611_v17 = vsel %vm15587_vm8, 0, %v610_v15  ;;  %v15623_v18 = vld [vmem:[%s22370_s2 + $0x4] sm:$0x3]  ;;  %v527_v19 = vld [vmem:[#allocation2] sm:$0x1]  ;;  %v484_v27 = vld [vmem:[%s15630_s24 + $0x8] sm:$0xff] }
  0x18   : > { %v583_v20 = vld [vmem:[#allocation2 + $0x8] sm:$0x1]  ;;  %v1171_v21 = vld [vmem:[#allocation2 + $0x4] sm:$0xf]  ;;  %vm1219_vm9 = vsmask.f32 3328  ;;  %15035 = vmatprep.subr.msk.bf16.mxu0 %vm1705_vm0, %v15623_v18  ;;  %v13942_v29 = vpack.c.bf16 %v484_v27, %v484_v27 }
  0x19   : > { %556 = vst [vmem:[#allocation2 + $0x6c] sm:$0x1] %v555_v16  ;;  %612 = vst [vmem:[#allocation2 + $0x74] sm:$0x1] %v611_v17  ;;  %v528_v22 = vsel %vm15581_vm5, 0, %v527_v19  ;;  %v584_v23 = vsel %vm15587_vm8, 0, %v583_v20 }
  0x1a   : > { %v1232_v24 = vshll.u32 %v1171_v21, 16  ;;  %v1236_v25 = vshrl.u32 %v1171_v21, 16  ;;  %v483_v26 = vld [vmem:[%s15630_s24] sm:$0xff]  ;;  %529 = vst [vmem:[#allocation2] sm:$0x1] %v528_v22  ;;  %v497_v30 = vld [vmem:[%s15630_s24 + $0x70] sm:$0xff] }
  0x1b   : > { %585 = vst [vmem:[#allocation2 + $0x8] sm:$0x1] %v584_v23  ;;  %vm1220_vm10 = vsmask.f32 7440  ;;  %v13941_v28 = vpack.c.bf16 %v483_v26, %v483_v26  ;;  %vm733_vm11 = vsmask.f32 4368  ;;  %v13955_v34 = vpack.c.bf16 %v497_v30, %v497_v30 }
  0x1c   : > { %v498_v31 = vld [vmem:[%s15630_s24 + $0x78] sm:$0xff]  ;;  %v15642_v32 = vrot.slane %v1232_v24, 5  ;;  %v1238_v33 = vrot.slane %v1236_v25, 4  ;;  %v744_v38 = vshrl.u32 %v13942_v29, 16  ;;  %v747_v39 = vshll.u32 %v13942_v29, 16  ;;  %v499_v40 = vld [vmem:[%s15630_s24 + $0x80] sm:$0xff]  ;;  %vm15662_vm13 = vmor %vm525_vm3, %vm733_vm11 }
  0x1d   : > { %v13956_v35 = vpack.c.bf16 %v498_v31, %v498_v31  ;;  %v736_v36 = vshrl.u32 %v13941_v28, 16  ;;  %v739_v37 = vshll.u32 %v13941_v28, 16  ;;  %v500_v41 = vld [vmem:[%s15630_s24 + $0x88] sm:$0xff]  ;;  %v855_v42 = vshrl.u32 %v13955_v34, 16  ;;  %v1062_v61 = vld [vmem:[#allocation2 + $0x14] sm:$0x1]  ;;  %vm15671_vm15 = vmor %vm1219_vm9, %vm1220_vm10 }
  0x1e   : > { %v858_v43 = vshll.u32 %v13955_v34, 16  ;;  %v1239_v46 = vor.u32 %v1238_v33, %v15642_v32  ;;  %v746_v48 = vrot.slane %v744_v38, 7  ;;  %v1058_v51 = vld [vmem:[#allocation2 + $0xc] sm:$0xf]  ;;  %v15656_v54 = vpack.c.bf16 %v499_v40, %v499_v40  ;;  %v1107_v62 = vld [vmem:[#allocation2 + $0x60] sm:$0xf]  ;;  %vm18923_vm11 = vmand %vm6649_vm6, %vm581_vm4 }
  0x1f   : > { %v863_v44 = vshrl.u32 %v13956_v35, 16  ;;  %v738_v47 = vrot.slane %v736_v36, 7  ;;  %v866_v49 = vshll.u32 %v13956_v35, 16  ;;  %v857_v52 = vrot.slane %v855_v42, 7  ;;  %v1111_v11 = vld [vmem:[#allocation2 + $0x68] sm:$0x1] }
  0x20   : > { %v15658_v55 = vpack.c.bf16 %v500_v41, %v500_v41  ;;  %v22443_v56 = vsel %vm15662_vm13, 4294967295, %v22442_v56  ;;  %v749_v59 = vor.u32 %v747_v39, %v746_v48  ;;  %v751_v60 = vrot.slane %v746_v48, 4  ;;  %v533_v17 = vld [vmem:[#allocation2 + $0x18] sm:$0x1]  ;;  %v589_v19 = vld [vmem:[#allocation2 + $0x20] sm:$0x1] }
  0x21   : > { %v865_v53 = vrot.slane %v863_v44, 7  ;;  %22444 = vst [vmem:[#allocation5_spill] sm:$0xff] %v22443_v56  ;;  %v741_v57 = vor.u32 %v739_v37, %v738_v47  ;;  %v742_v58 = vrot.slane %v738_v47, 4  ;;  %v1170_v63 = vld [vmem:[#allocation2] sm:$0xf]  ;;  %v860_v1 = vor.u32 %v858_v43, %v857_v52  ;;  %v485_v24 = vld [vmem:[%s15630_s24 + $0x10] sm:$0xff] }
  0x22   : > { %v15666_v0 = vld [vmem:[#allocation2 + $0x8] sm:$0x1]  ;;  %v861_v2 = vrot.slane %v857_v52, 4  ;;  %v1223_v7 = vshrl.u32 %v1170_v63, 16  ;;  %v1226_v8 = vshll.u32 %v1170_v63, 16  ;;  %v1240_v9 = vrot.slane %v1239_v46, 4 }
  0x23   : > { %v868_v5 = vor.u32 %v866_v49, %v865_v53  ;;  %v870_v6 = vrot.slane %v865_v53, 4  ;;  %v1242_v10 = vshll.u32 %v15666_v0, 16  ;;  %vm1656_vm14 = vcmask 31744   ;;  %v536_v25 = vld [vmem:[#allocation2 + $0x24] sm:$0x1]  ;;  %v486_v30 = vld [vmem:[%s15630_s24 + $0x18] sm:$0xff] }
  0x24   : > { %v22445_v12 = vmov 0  ;;  %v750_v13 = vsel %vm15662_vm13, %v742_v58, %v749_v59  ;;  %v1059_v14 = vsel %vm15652_vm12, %v741_v57, %v1058_v51  ;;  %v1063_v15 = vsel %vm15581_vm5, %v751_v60, %v1062_v61  ;;  %v592_v31 = vld [vmem:[#allocation2 + $0x2c] sm:$0x1]  ;;  %v1118_v43 = vld [vmem:[#allocation2 + $0x74] sm:$0x1] }
  0x25   : > { %v22446_v12 = vsel %vm15671_vm15, 4294967295, %v22445_v12  ;;  %v869_v16 = vsel %vm15662_vm13, %v861_v2, %v868_v5  ;;  %v1225_v20 = vrot.slane %v1223_v7, 4  ;;  %v1228_v21 = vrot.slane %v1226_v8, 5  ;;  %1060 = vst [vmem:[#allocation2 + $0xc] sm:$0xf] %v1059_v14 }
  0x26   : > { %22447 = vst [vmem:[#allocation6_spill] sm:$0xff] %v22446_v12  ;;  %v1244_v22 = vrot.slane %v1242_v10, 5  ;;  %1061 = vst.msk [vmem:[#allocation2 + $0x10] sm:$0xf] %vm515_vm1, %v750_v13  ;;  %v1108_v23 = vsel %vm15652_vm12, %v860_v1, %v1107_v62  ;;  %v1112_v26 = vsel %vm15581_vm5, %v870_v6, %v1111_v11  ;;  %v872_v27 = vshrl.u32 %v15656_v54, 16 }
  0x27   : > { %1064 = vst [vmem:[#allocation2 + $0x14] sm:$0x1] %v1063_v15  ;;  %1110 = vst.msk [vmem:[#allocation2 + $0x64] sm:$0xf] %vm515_vm1, %v869_v16  ;;  %v875_v28 = vshll.u32 %v15656_v54, 16  ;;  %v880_v29 = vshrl.u32 %v15658_v55, 16  ;;  %v1229_v33 = vor.u32 %v1228_v21, %v1225_v20  ;;  %v15701_v41 = vpack.c.bf16 %v485_v24, %v485_v24 }
  0x28   : > { %1109 = vst [vmem:[#allocation2 + $0x60] sm:$0xf] %v1108_v23  ;;  %v1245_v34 = vsel %vm15671_vm15, %v1240_v9, %v1244_v22  ;;  %1113 = vst [vmem:[#allocation2 + $0x68] sm:$0x1] %v1112_v26  ;;  %v883_v35 = vshll.u32 %v15658_v55, 16  ;;  %v534_v36 = vsel %vm15581_vm5, 0, %v533_v17  ;;  %v15703_v44 = vpack.c.bf16 %v486_v30, %v486_v30 }
  0x29   : > { %v874_v37 = vrot.slane %v872_v27, 7  ;;  %v882_v38 = vrot.slane %v880_v29, 7  ;;  %v1114_v39 = vld [vmem:[#allocation2 + $0x6c] sm:$0xf]  ;;  %535 = vst [vmem:[#allocation2 + $0x18] sm:$0x1] %v534_v36 }
  0x2a   : > { %v590_v40 = vsel %vm15587_vm8, 0, %v589_v19  ;;  %v1230_v42 = vrot.slane %v1229_v33, 4  ;;  %v537_v46 = vsel %vm15581_vm5, 0, %v536_v25  ;;  %v593_v47 = vsel %vm15587_vm8, 0, %v592_v31  ;;  %v487_v27 = vld [vmem:[%s15630_s24 + $0x20] sm:$0xff] }
  0x2b   : > { %591 = vst [vmem:[#allocation2 + $0x20] sm:$0x1] %v590_v40  ;;  %v877_v48 = vor.u32 %v875_v28, %v874_v37  ;;  %v878_v49 = vrot.slane %v874_v37, 4  ;;  %v885_v51 = vor.u32 %v883_v35, %v882_v38  ;;  %v887_v52 = vrot.slane %v882_v38, 4  ;;  %538 = vst [vmem:[#allocation2 + $0x24] sm:$0x1] %v537_v46 }
  0x2c   : > { %594 = vst [vmem:[#allocation2 + $0x2c] sm:$0x1] %v593_v47  ;;  %v1235_v53 = vsel %vm15671_vm15, %v1230_v42, %v15642_v32  ;;  %v2218_v54 = vrot.slane %v15666_v0, 5  ;;  %v15715_v55 = vsel %vm1705_vm0, %v15623_v18, 0  ;;  %v753_v57 = vshrl.u32 %v15701_v41, 16  ;;  %v488_v28 = vld [vmem:[%s15630_s24 + $0x28] sm:$0xff] }
  0x2d   : > { %v13122_v58 = vcombine.low %v1235_v53, %v1245_v34  ;;  %v1172_v59 = vld [vmem:[#allocation2 + $0xc] sm:$0xf]  ;;  %v15718_v60 = vld [vmem:[#allocation2 + $0x10] sm:$0xf]  ;;  %v886_v62 = vsel %vm15662_vm13, %v878_v49, %v885_v51  ;;  %v1115_v63 = vsel %vm15652_vm12, %v877_v48, %v1114_v39  ;;  %v1119_v32 = vsel %vm15581_vm5, %v887_v52, %v1118_v43  ;;  %v6675_v12 = vld [vmem:[#allocation3 + $0x3c] sm:$0x1] }
  0x2e   : > { %v1204_v61 = vld [vmem:[#allocation2 + $0x14] sm:$0x1]  ;;  %v1247_v1 = vshrl.u32 %v1172_v59, 16  ;;  %v1250_v2 = vshll.u32 %v1172_v59, 16  ;;  %v1256_v18 = vshll.u32 %v15718_v60, 16  ;;  %v1260_v5 = vshrl.u32 %v15718_v60, 16 }
  0x2f   : > { %v1186_v6 = vld [vmem:[#allocation2 + $0x60] sm:$0xf]  ;;  %1116 = vst [vmem:[#allocation2 + $0x6c] sm:$0xf] %v1115_v63  ;;  %1117 = vst.msk [vmem:[#allocation2 + $0x70] sm:$0xf] %vm515_vm1, %v886_v62  ;;  %14346 = vmatprep.mubr.msk.bf16.mxu0 %vm1656_vm14, %v13122_v58  ;;  %v13945_v43 = vpack.c.bf16 %v487_v27, %v487_v27  ;;  %v15735_v46 = vpack.c.bf16 %v488_v28, %v488_v28 }
  0x30   : > { %1120 = vst [vmem:[#allocation2 + $0x74] sm:$0x1] %v1119_v32  ;;  %v1266_v7 = vshll.u32 %v1204_v61, 16  ;;  %v1187_v8 = vld [vmem:[#allocation2 + $0x64] sm:$0xf]  ;;  %v1415_v9 = vshrl.u32 %v1186_v6, 16 }
  0x31   : > { %v756_v10 = vshll.u32 %v15701_v41, 16  ;;  %v761_v11 = vshrl.u32 %v15703_v44, 16  ;;  %v1249_v13 = vrot.slane %v1247_v1, 4  ;;  %v1252_v14 = vrot.slane %v1250_v2, 5  ;;  %v1211_v17 = vld [vmem:[#allocation2 + $0x68] sm:$0x1] }
  0x32   : > { %v1258_v15 = vrot.slane %v1256_v18, 5  ;;  %v1262_v16 = vrot.slane %v1260_v5, 4  ;;  %v1268_v19 = vrot.slane %v1266_v7, 5  ;;  %v1417_v20 = vrot.slane %v1415_v9, 4  ;;  %v1065_v32 = vld [vmem:[#allocation2 + $0x18] sm:$0xf] }
  0x33   : > { %v1418_v21 = vshll.u32 %v1186_v6, 16  ;;  %v1424_v22 = vshll.u32 %v1187_v8, 16  ;;  %v1253_v23 = vor.u32 %v1252_v14, %v1249_v13  ;;  %v1428_v25 = vshrl.u32 %v1187_v8, 16 }
  0x34   : > { %v1263_v24 = vor.u32 %v1262_v16, %v1258_v15  ;;  %v1434_v26 = vshll.u32 %v1211_v17, 16  ;;  %v2222_v29 = vrot.slane %v15718_v60, 5  ;;  %v755_v33 = vrot.slane %v753_v57, 7  ;;  %v1069_v16 = vld [vmem:[#allocation2 + $0x20] sm:$0x1] }
  0x35   : > { %v1420_v30 = vrot.slane %v1418_v21, 5  ;;  %v1426_v31 = vrot.slane %v1424_v22, 5  ;;  %v1254_v34 = vrot.slane %v1253_v23, 4  ;;  %v1430_v36 = vrot.slane %v1428_v25, 4  ;;  %v557_v17 = vld [vmem:[#allocation2 + $0x78] sm:$0x1] }
  0x36   : > { %v1264_v35 = vrot.slane %v1263_v24, 4  ;;  %v1436_v37 = vrot.slane %v1434_v26, 5  ;;  %v1188_v39 = vld [vmem:[#allocation2 + $0x6c] sm:$0xf]  ;;  %v1189_v40 = vld [vmem:[#allocation2 + $0x70] sm:$0xf]  ;;  %v758_v42 = vor.u32 %v756_v10, %v755_v33 }
  0x37   : > { %v1421_v38 = vor.u32 %v1420_v30, %v1417_v20  ;;  %v1212_v41 = vld [vmem:[#allocation2 + $0x74] sm:$0x1]  ;;  %v1259_v47 = vsel %vm15671_vm15, %v1254_v34, %v1258_v15  ;;  %v1431_v49 = vor.u32 %v1430_v36, %v1426_v31  ;;  %v1439_v51 = vshrl.u32 %v1188_v39, 16  ;;  %v613_v23 = vld [vmem:[#allocation2 + $0x80] sm:$0x1]  ;;  %v502_v30 = vld [vmem:[%s15630_s24 + $0x98] sm:$0xff] }
  0x38   : > { %v1269_v48 = vsel %vm15671_vm15, %v1264_v35, %v1268_v19  ;;  %v1442_v57 = vshll.u32 %v1188_v39, 16  ;;  %v1448_v58 = vshll.u32 %v1189_v40, 16  ;;  %v1452_v62 = vshrl.u32 %v1189_v40, 16  ;;  %v501_v25 = vld [vmem:[%s15630_s24 + $0x90] sm:$0xff]  ;;  %v616_v39 = vld [vmem:[#allocation2 + $0x8c] sm:$0x1] }
  0x39   : > { %v13123_v52 = vcombine.low %v1259_v47, %v1269_v48  ;;  %v1422_v53 = vrot.slane %v1421_v38, 4  ;;  %v1432_v59 = vrot.slane %v1431_v49, 4  ;;  %v1441_v61 = vrot.slane %v1439_v51, 4  ;;  %v539_v47 = vld [vmem:[#allocation2 + $0x30] sm:$0x1] }
  0x3a   : > { %v1458_v63 = vshll.u32 %v1212_v41, 16  ;;  %v1444_v2 = vrot.slane %v1442_v57, 5  ;;  %v1450_v18 = vrot.slane %v1448_v58, 5  ;;  %v759_v5 = vrot.slane %v755_v33, 4  ;;  %v560_v33 = vld [vmem:[#allocation2 + $0x84] sm:$0x1] }
  0x3b   : > { %14347 = vmatmul.mubr.msk.bf16.vlgmr.msra.gmra.mxu0 %vm1656_vm14, %v13123_v52  ;;  %v1427_v1 = vsel %vm15671_vm15, %v1422_v53, %v1426_v31  ;;  %v1437_v6 = vsel %vm15671_vm15, %v1432_v59, %v1436_v37  ;;  %v1454_v7 = vrot.slane %v1452_v62, 4  ;;  %v763_v9 = vrot.slane %v761_v11, 7  ;;  %v1072_v37 = vld [vmem:[#allocation2 + $0x24] sm:$0xf]  ;;  %v13268_v58 = vld [vmem:[%s22370_s2 + $0x8] sm:$0x3] }
  0x3c   : > { %v1460_v8 = vrot.slane %v1458_v63, 5  ;;  %14413 = vmatpush3.bf16.msra.mxu0 %v15715_v55  ;;  %v13130_v10 = vcombine.low %v1427_v1, %v1437_v6  ;;  %v1445_v13 = vor.u32 %v1444_v2, %v1441_v61  ;;  %v764_v14 = vshll.u32 %v15703_v44, 16  ;;  %v503_v53 = vld [vmem:[%s15630_s24 + $0xa0] sm:$0xff]  ;;  %v504_v63 = vld [vmem:[%s15630_s24 + $0xa8] sm:$0xff] }
  0x3d   : > { %v1066_v15 = vsel %vm15652_vm12, %v758_v42, %v1065_v32  ;;  %v1455_v19 = vor.u32 %v1454_v7, %v1450_v18  ;;  %v768_v20 = vrot.slane %v763_v9, 4  ;;  %v770_v21 = vshrl.u32 %v13945_v43, 16  ;;  %v13235_v57 = vld [vmem:[%s22370_s2 + $0x6] sm:$0x3]  ;;  %15037 = vmatprep.subr.msk.bf16.mxu0 %vm1705_vm0, %v13268_v58  ;;  %v489_v7 = vld [vmem:[%s15630_s24 + $0x30] sm:$0xff] }
  0x3e   : > { %1067 = vst [vmem:[#allocation2 + $0x18] sm:$0xf] %v1066_v15  ;;  %v773_v22 = vshll.u32 %v13945_v43, 16  ;;  %14362 = vmatprep.mubr.msk.bf16.mxu1 %vm1656_vm14, %v13130_v10  ;;  %v1446_v55 = vrot.slane %v1445_v13, 4  ;;  %v766_v11 = vor.u32 %v764_v14, %v763_v9  ;;  %v778_v24 = vshrl.u32 %v15735_v46, 16 }
  0x3f   : > { %v781_v44 = vshll.u32 %v15735_v46, 16  ;;  %v1456_v26 = vrot.slane %v1455_v19, 4  ;;  %v1070_v27 = vsel %vm15581_vm5, %v768_v20, %v1069_v16  ;;  %v772_v28 = vrot.slane %v770_v21, 7  ;;  %v1076_v43 = vld [vmem:[#allocation2 + $0x2c] sm:$0x1] }
  0x40   : > { %v558_v31 = vsel %vm15581_vm5, 0, %v557_v17  ;;  %v1451_v34 = vsel %vm15671_vm15, %v1446_v55, %v1450_v18  ;;  %v767_v35 = vsel %vm15662_vm13, %v759_v5, %v766_v11  ;;  %1071 = vst [vmem:[#allocation2 + $0x20] sm:$0x1] %v1070_v27  ;;  %v780_v36 = vrot.slane %v778_v24, 7  ;;  %v491_v55 = vld [vmem:[%s15630_s24 + $0x40] sm:$0xff] }
  0x41   : > { %559 = vst [vmem:[#allocation2 + $0x78] sm:$0x1] %v558_v31  ;;  %v614_v38 = vsel %vm15587_vm8, 0, %v613_v23  ;;  %v1461_v40 = vsel %vm15671_vm15, %v1456_v26, %v1460_v8  ;;  %1068 = vst.msk [vmem:[#allocation2 + $0x1c] sm:$0xf] %vm515_vm1, %v767_v35  ;;  %v775_v41 = vor.u32 %v773_v22, %v772_v28  ;;  %v776_v42 = vrot.slane %v772_v28, 4 }
  0x42   : > { %615 = vst [vmem:[#allocation2 + $0x80] sm:$0x1] %v614_v38  ;;  %v13959_v46 = vpack.c.bf16 %v501_v25, %v501_v25  ;;  %v13131_v48 = vcombine.low %v1451_v34, %v1461_v40  ;;  %v783_v49 = vor.u32 %v781_v44, %v780_v36  ;;  %v785_v51 = vrot.slane %v780_v36, 4  ;;  %v490_v23 = vld [vmem:[%s15630_s24 + $0x38] sm:$0xff] }
  0x43   : > { %v13960_v52 = vpack.c.bf16 %v502_v30, %v502_v30  ;;  %v1073_v59 = vsel %vm15652_vm12, %v775_v41, %v1072_v37  ;;  %v561_v32 = vsel %vm15581_vm5, 0, %v560_v33  ;;  %v617_v13 = vsel %vm15587_vm8, 0, %v616_v39 }
  0x44   : > { %v889_v61 = vshrl.u32 %v13959_v46, 16  ;;  %v892_v62 = vshll.u32 %v13959_v46, 16  ;;  %14363 = vmatmul.mubr.msk.bf16.vlgmr.msra.gmra.mxu1 %vm1656_vm14, %v13131_v48  ;;  %v784_v2 = vsel %vm15662_vm13, %v776_v42, %v783_v49  ;;  %1074 = vst [vmem:[#allocation2 + $0x24] sm:$0xf] %v1073_v59  ;;  %v1077_v18 = vsel %vm15581_vm5, %v785_v51, %v1076_v43  ;;  %562 = vst [vmem:[#allocation2 + $0x84] sm:$0x1] %v561_v32 }
  0x45   : > { %v1174_v1 = vld [vmem:[#allocation2 + $0x18] sm:$0xf]  ;;  %v897_v5 = vshrl.u32 %v13960_v52, 16  ;;  %v900_v6 = vshll.u32 %v13960_v52, 16  ;;  %14379 = vmatpush3.bf16.msra.mxu1 %v15647_v45  ;;  %1075 = vst.msk [vmem:[#allocation2 + $0x28] sm:$0xf] %vm515_vm1, %v784_v2  ;;  %v13961_v15 = vpack.c.bf16 %v503_v53, %v503_v53  ;;  %v15791_v16 = vpack.c.bf16 %v504_v63, %v504_v63 }
  0x46   : > { %v1271_v8 = vshrl.u32 %v1174_v1, 16  ;;  %v1274_v9 = vshll.u32 %v1174_v1, 16  ;;  %1078 = vst [vmem:[#allocation2 + $0x2c] sm:$0x1] %v1077_v18  ;;  %v891_v10 = vrot.slane %v889_v61, 7  ;;  %v540_v17 = vsel %vm15581_vm5, 0, %v539_v47  ;;  %15036 = vmatprep.subr.msk.bf16.mxu1 %vm1705_vm0, %v13235_v57 }
  0x47   : > { %v899_v14 = vrot.slane %v897_v5, 7  ;;  %618 = vst [vmem:[#allocation2 + $0x8c] sm:$0x1] %v617_v13  ;;  %v1205_v45 = vld [vmem:[#allocation2 + $0x20] sm:$0x1]  ;;  %v15798_v27 = vpack.c.bf16 %v489_v7, %v489_v7  ;;  %v906_v38 = vshrl.u32 %v13961_v15, 16  ;;  %v15811_v51 = vpack.c.bf16 %v490_v23, %v490_v23 }
  0x48   : > { %v1273_v19 = vrot.slane %v1271_v8, 4  ;;  %v1276_v20 = vrot.slane %v1274_v9, 5  ;;  %v894_v21 = vor.u32 %v892_v62, %v891_v10  ;;  %v895_v22 = vrot.slane %v891_v10, 4  ;;  %541 = vst [vmem:[#allocation2 + $0x30] sm:$0x1] %v540_v17 }
  0x49   : > { %v1175_v11 = vld [vmem:[#allocation2 + $0x1c] sm:$0xf]  ;;  %v1290_v24 = vshll.u32 %v1205_v45, 16  ;;  %v902_v44 = vor.u32 %v900_v6, %v899_v14  ;;  %v904_v25 = vrot.slane %v899_v14, 4  ;;  %v1121_v26 = vld [vmem:[#allocation2 + $0x78] sm:$0xf]  ;;  %v15813_v52 = vpack.c.bf16 %v491_v55, %v491_v55 }
  0x4a   : > { %v1277_v28 = vor.u32 %v1276_v20, %v1273_v19  ;;  %v1280_v30 = vshll.u32 %v1175_v11, 16  ;;  %v1284_v31 = vshrl.u32 %v1175_v11, 16  ;;  %v1122_v33 = vsel %vm15652_vm12, %v894_v21, %v1121_v26  ;;  %v1125_v34 = vld [vmem:[#allocation2 + $0x80] sm:$0x1]  ;;  %v595_v11 = vld [vmem:[#allocation2 + $0x38] sm:$0x1] }
  0x4b   : > { %v1292_v35 = vrot.slane %v1290_v24, 5  ;;  %v903_v36 = vsel %vm15662_vm13, %v895_v22, %v902_v44  ;;  %1123 = vst [vmem:[#allocation2 + $0x78] sm:$0xf] %v1122_v33  ;;  %v1126_v37 = vsel %vm15581_vm5, %v904_v25, %v1125_v34  ;;  %v1176_v42 = vld [vmem:[#allocation2 + $0x24] sm:$0xf]  ;;  %v909_v43 = vshll.u32 %v13961_v15, 16 }
  0x4c   : > { %v1278_v39 = vrot.slane %v1277_v28, 4  ;;  %v1282_v40 = vrot.slane %v1280_v30, 5  ;;  %v1286_v41 = vrot.slane %v1284_v31, 4  ;;  %1124 = vst.msk [vmem:[#allocation2 + $0x7c] sm:$0xf] %vm515_vm1, %v903_v36  ;;  %v1295_v48 = vshrl.u32 %v1176_v42, 16 }
  0x4d   : > { %1127 = vst [vmem:[#allocation2 + $0x80] sm:$0x1] %v1126_v37  ;;  %v15807_v46 = vld [vmem:[#allocation2 + $0x28] sm:$0xf]  ;;  %v15809_v47 = vld [vmem:[#allocation2 + $0x2c] sm:$0x1] }
  0x4e   : > { %v1298_v49 = vshll.u32 %v1176_v42, 16  ;;  %v1283_v53 = vsel %vm15671_vm15, %v1278_v39, %v1282_v40  ;;  %v1287_v57 = vor.u32 %v1286_v41, %v1282_v40  ;;  %v1304_v58 = vshll.u32 %v15807_v46, 16  ;;  %v1128_v6 = vld [vmem:[#allocation2 + $0x84] sm:$0xf]  ;;  %v1132_v28 = vld [vmem:[#allocation2 + $0x8c] sm:$0x1] }
  0x4f   : > { %v1308_v59 = vshrl.u32 %v15807_v46, 16  ;;  %v1297_v61 = vrot.slane %v1295_v48, 4  ;;  %v1314_v63 = vshll.u32 %v15809_v47, 16  ;;  %v908_v32 = vrot.slane %v906_v38, 7  ;;  %v542_v34 = vld [vmem:[#allocation2 + $0x3c] sm:$0x1] }
  0x50   : > { %v1300_v62 = vrot.slane %v1298_v49, 5  ;;  %v1288_v1 = vrot.slane %v1287_v57, 4  ;;  %v1306_v2 = vrot.slane %v1304_v58, 5  ;;  %v914_v5 = vshrl.u32 %v15791_v16, 16  ;;  %v492_v39 = vld [vmem:[%s15630_s24 + $0x48] sm:$0xff] }
  0x51   : > { %v1310_v18 = vrot.slane %v1308_v59, 4  ;;  %v1316_v8 = vrot.slane %v1314_v63, 5  ;;  %v911_v9 = vor.u32 %v909_v43, %v908_v32  ;;  %v912_v10 = vrot.slane %v908_v32, 4  ;;  %v598_v48 = vld [vmem:[#allocation2 + $0x44] sm:$0x1] }
  0x52   : > { %v1301_v7 = vor.u32 %v1300_v62, %v1297_v61  ;;  %v1293_v13 = vsel %vm15671_vm15, %v1288_v1, %v1292_v35  ;;  %v1190_v15 = vld [vmem:[#allocation2 + $0x78] sm:$0xf]  ;;  %v916_v17 = vrot.slane %v914_v5, 7  ;;  %v917_v45 = vshll.u32 %v15791_v16, 16 }
  0x53   : > { %v1311_v14 = vor.u32 %v1310_v18, %v1306_v2  ;;  %v13124_v19 = vcombine.low %v1283_v53, %v1293_v13  ;;  %v1191_v21 = vld [vmem:[#allocation2 + $0x7c] sm:$0xf]  ;;  %v1463_v23 = vshrl.u32 %v1190_v15, 16  ;;  %v1129_v55 = vsel %vm15652_vm12, %v911_v9, %v1128_v6 }
  0x54   : > { %v1302_v20 = vrot.slane %v1301_v7, 4  ;;  %v1213_v22 = vld [vmem:[#allocation2 + $0x80] sm:$0x1]  ;;  %v1466_v44 = vshll.u32 %v1190_v15, 16  ;;  %v1472_v25 = vshll.u32 %v1191_v21, 16  ;;  %v1476_v26 = vshrl.u32 %v1191_v21, 16 }
  0x55   : > { %v1312_v24 = vrot.slane %v1311_v14, 4  ;;  %1130 = vst [vmem:[#allocation2 + $0x84] sm:$0xf] %v1129_v55  ;;  %14350 = vmatprep.mubr.msk.bf16.mxu0 %vm1656_vm14, %v13124_v19  ;;  %v1465_v30 = vrot.slane %v1463_v23, 4  ;;  %v1482_v31 = vshll.u32 %v1213_v22, 16  ;;  %v919_v33 = vor.u32 %v917_v45, %v916_v17 }
  0x56   : > { %v1307_v16 = vsel %vm15671_vm15, %v1302_v20, %v1306_v2  ;;  %v1468_v36 = vrot.slane %v1466_v44, 5  ;;  %v1474_v37 = vrot.slane %v1472_v25, 5  ;;  %v1478_v38 = vrot.slane %v1476_v26, 4  ;;  %v1079_v14 = vld [vmem:[#allocation2 + $0x30] sm:$0xf] }
  0x57   : > { %v1317_v35 = vsel %vm15671_vm15, %v1312_v24, %v1316_v8  ;;  %v1484_v41 = vrot.slane %v1482_v31, 5  ;;  %v920_v42 = vsel %vm15662_vm13, %v912_v10, %v919_v33  ;;  %v921_v43 = vrot.slane %v916_v17, 4  ;;  %v563_v55 = vld [vmem:[#allocation2 + $0x90] sm:$0x1] }
  0x58   : > { %v13125_v40 = vcombine.low %v1307_v16, %v1317_v35  ;;  %v1469_v49 = vor.u32 %v1468_v36, %v1465_v30  ;;  %v1479_v53 = vor.u32 %v1478_v38, %v1474_v37  ;;  %1131 = vst.msk [vmem:[#allocation2 + $0x88] sm:$0xf] %vm515_vm1, %v920_v42  ;;  %v596_v57 = vsel %vm15587_vm8, 0, %v595_v11  ;;  %v505_v35 = vld [vmem:[%s15630_s24 + $0xb0] sm:$0xff]  ;;  %v506_v36 = vld [vmem:[%s15630_s24 + $0xb8] sm:$0xff] }
  0x59   : > { %v787_v58 = vshrl.u32 %v15798_v27, 16  ;;  %v1133_v59 = vsel %vm15581_vm5, %v921_v43, %v1132_v28  ;;  %597 = vst [vmem:[#allocation2 + $0x38] sm:$0x1] %v596_v57  ;;  %v790_v61 = vshll.u32 %v15798_v27, 16  ;;  %v795_v62 = vshrl.u32 %v15811_v51, 16 }
  0x5a   : > { %14351 = vmatmul.mubr.msk.bf16.gmra.mxu0 %vm1656_vm14, %v13125_v40  ;;  %v798_v63 = vshll.u32 %v15811_v51, 16  ;;  %v1470_v32 = vrot.slane %v1469_v49, 4  ;;  %v1480_v1 = vrot.slane %v1479_v53, 4  ;;  %1134 = vst [vmem:[#allocation2 + $0x8c] sm:$0x1] %v1133_v59  ;;  %v543_v18 = vsel %vm15581_vm5, 0, %v542_v34 }
  0x5b   : > { %v789_v2 = vrot.slane %v787_v58, 7  ;;  %v797_v6 = vrot.slane %v795_v62, 7  ;;  %544 = vst [vmem:[#allocation2 + $0x3c] sm:$0x1] %v543_v18  ;;  %v599_v7 = vsel %vm15587_vm8, 0, %v598_v48  ;;  %v13950_v8 = vpack.c.bf16 %v492_v39, %v492_v39  ;;  %v508_v59 = vld [vmem:[%s15630_s24 + $0xc8] sm:$0xff] }
  0x5c   : > { %v1192_v5 = vld [vmem:[#allocation2 + $0x84] sm:$0xf]  ;;  %v804_v27 = vshrl.u32 %v15813_v52, 16  ;;  %v1475_v9 = vsel %vm15671_vm15, %v1470_v32, %v1474_v37  ;;  %v1485_v51 = vsel %vm15671_vm15, %v1480_v1, %v1484_v41  ;;  %600 = vst [vmem:[#allocation2 + $0x44] sm:$0x1] %v599_v7  ;;  %v807_v25 = vshll.u32 %v15813_v52, 16 }
  0x5d   : > { %v1487_v10 = vshrl.u32 %v1192_v5, 16  ;;  %v1490_v13 = vshll.u32 %v1192_v5, 16  ;;  %v13132_v15 = vcombine.low %v1475_v9, %v1485_v51  ;;  %v792_v17 = vor.u32 %v790_v61, %v789_v2  ;;  %v619_v28 = vld [vmem:[#allocation2 + $0x98] sm:$0x1]  ;;  %v507_v41 = vld [vmem:[%s15630_s24 + $0xc0] sm:$0xff]  ;;  %v493_v61 = vld [vmem:[%s15630_s24 + $0x50] sm:$0xff] }
  0x5e   : > { %v793_v45 = vrot.slane %v789_v2, 4  ;;  %v800_v19 = vor.u32 %v798_v63, %v797_v6  ;;  %v802_v22 = vrot.slane %v797_v6, 4  ;;  %v806_v23 = vrot.slane %v804_v27, 7  ;;  %v566_v42 = vld [vmem:[#allocation2 + $0x9c] sm:$0x1] }
  0x5f   : > { %v1489_v20 = vrot.slane %v1487_v10, 4  ;;  %v1492_v21 = vrot.slane %v1490_v13, 5  ;;  %14366 = vmatprep.mubr.msk.bf16.mxu1 %vm1656_vm14, %v13132_v15  ;;  %v15854_v11 = vld [vmem:[#allocation2 + $0x88] sm:$0xf]  ;;  %v1080_v44 = vsel %vm15652_vm12, %v792_v17, %v1079_v14  ;;  %v812_v26 = vshrl.u32 %v13950_v8, 16 }
  0x60   : > { %v801_v24 = vsel %vm15662_vm13, %v793_v45, %v800_v19  ;;  %v1496_v30 = vshll.u32 %v15854_v11, 16  ;;  %v1500_v31 = vshrl.u32 %v15854_v11, 16  ;;  %1081 = vst [vmem:[#allocation2 + $0x30] sm:$0xf] %v1080_v44  ;;  %v1083_v33 = vld [vmem:[#allocation2 + $0x38] sm:$0x1]  ;;  %v809_v38 = vor.u32 %v807_v25, %v806_v23 }
  0x61   : > { %v1493_v16 = vor.u32 %v1492_v21, %v1489_v20  ;;  %1082 = vst.msk [vmem:[#allocation2 + $0x34] sm:$0xf] %vm515_vm1, %v801_v24  ;;  %v810_v34 = vrot.slane %v806_v23, 4  ;;  %v1214_v37 = vld [vmem:[#allocation2 + $0x8c] sm:$0x1]  ;;  %v1084_v52 = vsel %vm15581_vm5, %v802_v22, %v1083_v33  ;;  %v814_v39 = vrot.slane %v812_v26, 7 }
  0x62   : > { %v815_v40 = vshll.u32 %v13950_v8, 16  ;;  %v622_v43 = vld [vmem:[#allocation2 + $0xa4] sm:$0x1]  ;;  %v1498_v49 = vrot.slane %v1496_v30, 5  ;;  %v1502_v53 = vrot.slane %v1500_v31, 4  ;;  %v1506_v57 = vshll.u32 %v1214_v37, 16 }
  0x63   : > { %v1494_v48 = vrot.slane %v1493_v16, 4  ;;  %1085 = vst [vmem:[#allocation2 + $0x38] sm:$0x1] %v1084_v52  ;;  %v1086_v58 = vld [vmem:[#allocation2 + $0x3c] sm:$0xf]  ;;  %v819_v63 = vrot.slane %v814_v39, 4  ;;  %v13963_v9 = vpack.c.bf16 %v505_v35, %v505_v35  ;;  %v13964_v51 = vpack.c.bf16 %v506_v36, %v506_v36 }
  0x64   : > { %v817_v62 = vor.u32 %v815_v40, %v814_v39  ;;  %v1087_v32 = vsel %vm15652_vm12, %v809_v38, %v1086_v58  ;;  %v1090_v1 = vld [vmem:[#allocation2 + $0x44] sm:$0x1]  ;;  %v564_v2 = vsel %vm15581_vm5, 0, %v563_v55  ;;  %v1503_v5 = vor.u32 %v1502_v53, %v1498_v49 }
  0x65   : > { %v1499_v18 = vsel %vm15671_vm15, %v1494_v48, %v1498_v49  ;;  %v1508_v6 = vrot.slane %v1506_v57, 5  ;;  %1088 = vst [vmem:[#allocation2 + $0x3c] sm:$0xf] %v1087_v32  ;;  %565 = vst [vmem:[#allocation2 + $0x90] sm:$0x1] %v564_v2  ;;  %v620_v7 = vsel %vm15587_vm8, 0, %v619_v28  ;;  %v1091_v27 = vsel %vm15581_vm5, %v819_v63, %v1090_v1 }
  0x66   : > { %v818_v8 = vsel %vm15662_vm13, %v810_v34, %v817_v62  ;;  %621 = vst [vmem:[#allocation2 + $0x98] sm:$0x1] %v620_v7  ;;  %v1504_v10 = vrot.slane %v1503_v5, 4  ;;  %1092 = vst [vmem:[#allocation2 + $0x44] sm:$0x1] %v1091_v27  ;;  %v567_v13 = vsel %vm15581_vm5, 0, %v566_v42  ;;  %v15888_v15 = vpack.c.bf16 %v507_v41, %v507_v41 }
  0x67   : > { %1089 = vst.msk [vmem:[#allocation2 + $0x40] sm:$0xf] %vm515_vm1, %v818_v8  ;;  %v623_v14 = vsel %vm15587_vm8, 0, %v622_v43  ;;  %v15890_v17 = vld [vmem:[#allocation2 + $0x30] sm:$0xf]  ;;  %v923_v19 = vshrl.u32 %v13963_v9, 16  ;;  %v15894_v21 = vpack.c.bf16 %v508_v59, %v508_v59  ;;  %v15896_v22 = vpack.c.bf16 %v493_v61, %v493_v61 }
  0x68   : > { %v15892_v45 = vld [vmem:[#allocation2 + $0x34] sm:$0xf]  ;;  %v926_v20 = vshll.u32 %v13963_v9, 16  ;;  %568 = vst [vmem:[#allocation2 + $0x9c] sm:$0x1] %v567_v13  ;;  %v1509_v23 = vsel %vm15671_vm15, %v1504_v10, %v1508_v6  ;;  %v1319_v55 = vshrl.u32 %v15890_v17, 16 }
  0x69   : > { %624 = vst [vmem:[#allocation2 + $0xa4] sm:$0x1] %v623_v14  ;;  %v1322_v24 = vshll.u32 %v15890_v17, 16  ;;  %v1328_v44 = vshll.u32 %v15892_v45, 16  ;;  %v13133_v25 = vcombine.low %v1499_v18, %v1509_v23  ;;  %v1332_v28 = vshrl.u32 %v15892_v45, 16  ;;  %v494_v23 = vld [vmem:[%s15630_s24 + $0x58] sm:$0xff] }
  0x6a   : > { %v15903_v26 = vld [vmem:[#allocation2 + $0x38] sm:$0x1]  ;;  %v925_v16 = vrot.slane %v923_v19, 7  ;;  %v931_v30 = vshrl.u32 %v13964_v51, 16  ;;  %v1321_v31 = vrot.slane %v1319_v55, 4  ;;  %v934_v58 = vshll.u32 %v13964_v51, 16 }
  0x6b   : > { %v1324_v33 = vrot.slane %v1322_v24, 5  ;;  %v1330_v34 = vrot.slane %v1328_v44, 5  ;;  %v1338_v35 = vshll.u32 %v15903_v26, 16  ;;  %14367 = vmatmul.mubr.msk.bf16.gmra.mxu1 %vm1656_vm14, %v13133_v25  ;;  %v1334_v36 = vrot.slane %v1332_v28, 4  ;;  %v545_v10 = vld [vmem:[#allocation2 + $0x48] sm:$0x1] }
  0x6c   : > { %v15908_v37 = vld [vmem:[#allocation2 + $0x3c] sm:$0xf]  ;;  %v928_v52 = vor.u32 %v926_v20, %v925_v16  ;;  %v929_v38 = vrot.slane %v925_v16, 4  ;;  %v933_v39 = vrot.slane %v931_v30, 7  ;;  %v1135_v48 = vld [vmem:[#allocation2 + $0x90] sm:$0xf] }
  0x6d   : > { %v1325_v40 = vor.u32 %v1324_v33, %v1321_v31  ;;  %v1340_v41 = vrot.slane %v1338_v35, 5  ;;  %v1343_v42 = vshrl.u32 %v15908_v37, 16  ;;  %v1346_v43 = vshll.u32 %v15908_v37, 16  ;;  %v15914_v57 = vld [vmem:[#allocation2 + $0x44] sm:$0x1] }
  0x6e   : > { %v1335_v49 = vor.u32 %v1334_v36, %v1330_v34  ;;  %v15912_v53 = vld [vmem:[#allocation2 + $0x40] sm:$0xf]  ;;  %v938_v59 = vrot.slane %v933_v39, 4  ;;  %v1136_v61 = vsel %vm15652_vm12, %v928_v52, %v1135_v48  ;;  %v1139_v2 = vld [vmem:[#allocation2 + $0x98] sm:$0x1]  ;;  %v1362_v6 = vshll.u32 %v15914_v57, 16 }
  0x6f   : > { %v1326_v62 = vrot.slane %v1325_v40, 4  ;;  %v1345_v63 = vrot.slane %v1343_v42, 4  ;;  %v1348_v32 = vrot.slane %v1346_v43, 5  ;;  %v1352_v1 = vshll.u32 %v15912_v53, 16  ;;  %1137 = vst [vmem:[#allocation2 + $0x90] sm:$0xf] %v1136_v61 }
  0x70   : > { %v1336_v18 = vrot.slane %v1335_v49, 4  ;;  %v1356_v5 = vshrl.u32 %v15912_v53, 16  ;;  %v936_v7 = vor.u32 %v934_v58, %v933_v39  ;;  %v1140_v51 = vsel %vm15581_vm5, %v938_v59, %v1139_v2  ;;  %v601_v55 = vld [vmem:[#allocation2 + $0x50] sm:$0x1]  ;;  %v1142_v36 = vld [vmem:[#allocation2 + $0x9c] sm:$0xf] }
  0x71   : > { %v1331_v8 = vsel %vm15671_vm15, %v1326_v62, %v1330_v34  ;;  %v1349_v27 = vor.u32 %v1348_v32, %v1345_v63  ;;  %v1354_v9 = vrot.slane %v1352_v1, 5  ;;  %v1364_v19 = vrot.slane %v1362_v6, 5  ;;  %1141 = vst [vmem:[#allocation2 + $0x98] sm:$0x1] %v1140_v51  ;;  %v1146_v58 = vld [vmem:[#allocation2 + $0xa4] sm:$0x1] }
  0x72   : > { %v1341_v13 = vsel %vm15671_vm15, %v1336_v18, %v1340_v41  ;;  %v1358_v14 = vrot.slane %v1356_v5, 4  ;;  %v937_v20 = vsel %vm15662_vm13, %v929_v38, %v936_v7  ;;  %v940_v25 = vshrl.u32 %v15888_v15, 16  ;;  %v548_v32 = vld [vmem:[#allocation2 + $0x54] sm:$0x1]  ;;  %v604_v6 = vld [vmem:[#allocation2 + $0x5c] sm:$0x1] }
  0x73   : > { %v13126_v24 = vcombine.low %v1331_v8, %v1341_v13  ;;  %v1350_v44 = vrot.slane %v1349_v27, 4  ;;  %1138 = vst.msk [vmem:[#allocation2 + $0x94] sm:$0xf] %vm515_vm1, %v937_v20  ;;  %v943_v28 = vshll.u32 %v15888_v15, 16  ;;  %v948_v30 = vshrl.u32 %v15894_v21, 16 }
  0x74   : > { %v1359_v16 = vor.u32 %v1358_v14, %v1354_v9  ;;  %v951_v31 = vshll.u32 %v15894_v21, 16  ;;  %v546_v33 = vsel %vm15581_vm5, 0, %v545_v10  ;;  %v942_v35 = vrot.slane %v940_v25, 7  ;;  %v495_v10 = vld [vmem:[%s15630_s24 + $0x60] sm:$0xff]  ;;  %v569_v13 = vld [vmem:[#allocation2 + $0xa8] sm:$0x1] }
  0x75   : > { %14354 = vmatprep.mubr.msk.bf16.mxu0 %vm1656_vm14, %v13126_v24  ;;  %v1355_v34 = vsel %vm15671_vm15, %v1350_v44, %v1354_v9  ;;  %547 = vst [vmem:[#allocation2 + $0x48] sm:$0x1] %v546_v33  ;;  %v602_v52 = vsel %vm15587_vm8, 0, %v601_v55  ;;  %v15942_v15 = vpack.c.bf16 %v494_v23, %v494_v23  ;;  %v950_v40 = vrot.slane %v948_v30, 7  ;;  %v496_v55 = vld [vmem:[%s15630_s24 + $0x68] sm:$0xff] }
  0x76   : > { %v1360_v38 = vrot.slane %v1359_v16, 4  ;;  %v1194_v39 = vld [vmem:[#allocation2 + $0x90] sm:$0xf]  ;;  %603 = vst [vmem:[#allocation2 + $0x50] sm:$0x1] %v602_v52  ;;  %v821_v21 = vshrl.u32 %v15896_v22, 16  ;;  %v945_v48 = vor.u32 %v943_v28, %v942_v35 }
  0x77   : > { %v824_v41 = vshll.u32 %v15896_v22, 16  ;;  %v1511_v42 = vshrl.u32 %v1194_v39, 16  ;;  %v1514_v43 = vshll.u32 %v1194_v39, 16  ;;  %v946_v49 = vrot.slane %v942_v35, 4  ;;  %v625_v24 = vld [vmem:[#allocation2 + $0xb0] sm:$0x1] }
  0x78   : > { %v1365_v59 = vsel %vm15671_vm15, %v1360_v38, %v1364_v19  ;;  %v953_v61 = vor.u32 %v951_v31, %v950_v40  ;;  %v955_v62 = vrot.slane %v950_v40, 4  ;;  %v15948_v63 = vrot.slane %v821_v21, 7  ;;  %v15950_v2 = vld [vmem:[#allocation2 + $0x98] sm:$0x1] }
  0x79   : > { %v13127_v1 = vcombine.low %v1355_v34, %v1365_v59  ;;  %v1513_v18 = vrot.slane %v1511_v42, 4  ;;  %v1516_v5 = vrot.slane %v1514_v43, 5  ;;  %v1143_v22 = vsel %vm15652_vm12, %v945_v48, %v1142_v36 }
  0x7a   : > { %v15954_v7 = vld [vmem:[#allocation2 + $0x94] sm:$0xf]  ;;  %v1530_v8 = vshll.u32 %v15950_v2, 16  ;;  %v954_v27 = vsel %vm15662_vm13, %v946_v49, %v953_v61  ;;  %1144 = vst [vmem:[#allocation2 + $0x9c] sm:$0xf] %v1143_v22  ;;  %v1147_v9 = vsel %vm15581_vm5, %v955_v62, %v1146_v58  ;;  %v826_v51 = vor.u32 %v824_v41, %v15948_v63 }
  0x7b   : > { %14355 = vmatmul.mubr.msk.bf16.gmra.mxu0 %vm1656_vm14, %v13127_v1  ;;  %v1517_v14 = vor.u32 %v1516_v5, %v1513_v18  ;;  %v1520_v19 = vshll.u32 %v15954_v7, 16  ;;  %v1524_v20 = vshrl.u32 %v15954_v7, 16  ;;  %1145 = vst.msk [vmem:[#allocation2 + $0xa0] sm:$0xf] %vm515_vm1, %v954_v27  ;;  %1148 = vst [vmem:[#allocation2 + $0xa4] sm:$0x1] %v1147_v9  ;;  %v13953_v39 = vpack.c.bf16 %v495_v10, %v495_v10 }
  0x7c   : > { %v827_v23 = vrot.slane %v15948_v63, 4  ;;  %v1532_v44 = vrot.slane %v1530_v8, 5  ;;  %v829_v25 = vshrl.u32 %v15942_v15, 16  ;;  %v832_v28 = vshll.u32 %v15942_v15, 16  ;;  %v1093_v16 = vld [vmem:[#allocation2 + $0x48] sm:$0xf] }
  0x7d   : > { %v549_v30 = vsel %vm15581_vm5, 0, %v548_v32  ;;  %v1518_v31 = vrot.slane %v1517_v14, 4  ;;  %v1522_v33 = vrot.slane %v1520_v19, 5  ;;  %v1526_v34 = vrot.slane %v1524_v20, 4  ;;  %v1097_v52 = vld [vmem:[#allocation2 + $0x50] sm:$0x1] }
  0x7e   : > { %v1094_v35 = vsel %vm15652_vm12, %v826_v51, %v1093_v16  ;;  %550 = vst [vmem:[#allocation2 + $0x54] sm:$0x1] %v549_v30  ;;  %v831_v36 = vrot.slane %v829_v25, 7  ;;  %v605_v38 = vsel %vm15587_vm8, 0, %v604_v6  ;;  %v13954_v40 = vpack.c.bf16 %v496_v55, %v496_v55  ;;  %v509_v15 = vld [vmem:[%s15630_s24 + $0xd0] sm:$0xff] }
  0x7f   : > { %1095 = vst [vmem:[#allocation2 + $0x48] sm:$0xf] %v1094_v35  ;;  %v1523_v21 = vsel %vm15671_vm15, %v1518_v31, %v1522_v33  ;;  %v1527_v41 = vor.u32 %v1526_v34, %v1522_v33  ;;  %606 = vst [vmem:[#allocation2 + $0x5c] sm:$0x1] %v605_v38  ;;  %v570_v42 = vsel %vm15581_vm5, 0, %v569_v13  ;;  %v626_v43 = vsel %vm15587_vm8, 0, %v625_v24 }
  0x80   : > { %v834_v48 = vor.u32 %v832_v28, %v831_v36  ;;  %v836_v49 = vrot.slane %v831_v36, 4  ;;  %v838_v58 = vshrl.u32 %v13953_v39, 16  ;;  %v841_v59 = vshll.u32 %v13953_v39, 16  ;;  %571 = vst [vmem:[#allocation2 + $0xa8] sm:$0x1] %v570_v42  ;;  %v510_v36 = vld [vmem:[%s15630_s24 + $0xd8] sm:$0xff] }
  0x81   : > { %627 = vst [vmem:[#allocation2 + $0xb0] sm:$0x1] %v626_v43  ;;  %v1528_v61 = vrot.slane %v1527_v41, 4  ;;  %v15984_v62 = vld [vmem:[#allocation2 + $0x9c] sm:$0xf]  ;;  %v846_v63 = vshrl.u32 %v13954_v40, 16  ;;  %v15986_v1 = vpack.c.bf16 %v509_v15, %v509_v15 }
  0x82   : > { %v849_v32 = vshll.u32 %v13954_v40, 16  ;;  %v15988_v18 = vld [vmem:[#allocation2 + $0xa0] sm:$0xf]  ;;  %v15990_v5 = vld [vmem:[#allocation2 + $0xa4] sm:$0x1]  ;;  %v1535_v22 = vshrl.u32 %v15984_v62, 16  ;;  %v835_v8 = vsel %vm15662_vm13, %v827_v23, %v834_v48  ;;  %v1098_v27 = vsel %vm15581_vm5, %v836_v49, %v1097_v52 }
  0x83   : > { %v1538_v6 = vshll.u32 %v15984_v62, 16  ;;  %v1533_v9 = vsel %vm15671_vm15, %v1528_v61, %v1532_v44  ;;  %v1544_v51 = vshll.u32 %v15988_v18, 16  ;;  %v1548_v10 = vshrl.u32 %v15988_v18, 16  ;;  %1096 = vst.msk [vmem:[#allocation2 + $0x4c] sm:$0xf] %vm515_vm1, %v835_v8 }
  0x84   : > { %v1554_v13 = vshll.u32 %v15990_v5, 16  ;;  %1099 = vst [vmem:[#allocation2 + $0x50] sm:$0x1] %v1098_v27  ;;  %v13134_v14 = vcombine.low %v1523_v21, %v1533_v9  ;;  %v1537_v19 = vrot.slane %v1535_v22, 4  ;;  %v840_v23 = vrot.slane %v838_v58, 7 }
  0x85   : > { %v1540_v20 = vrot.slane %v1538_v6, 5  ;;  %v1100_v55 = vld [vmem:[#allocation2 + $0x54] sm:$0xf]  ;;  %v1546_v24 = vrot.slane %v1544_v51, 5  ;;  %v1550_v25 = vrot.slane %v1548_v10, 4  ;;  %v848_v44 = vrot.slane %v846_v63, 7 }
  0x86   : > { %v1556_v28 = vrot.slane %v1554_v13, 5  ;;  %v16004_v16 = vld [vmem:[#allocation2 + $0x48] sm:$0xf]  ;;  %14370 = vmatprep.mubr.msk.bf16.mxu1 %vm1656_vm14, %v13134_v14  ;;  %v843_v34 = vor.u32 %v841_v59, %v840_v23  ;;  %v1104_v35 = vld [vmem:[#allocation2 + $0x5c] sm:$0x1]  ;;  %v844_v38 = vrot.slane %v840_v23, 4  ;;  %v13968_v58 = vpack.c.bf16 %v510_v36, %v510_v36 }
  0x87   : > { %v1541_v30 = vor.u32 %v1540_v20, %v1537_v19  ;;  %v1367_v31 = vshrl.u32 %v16004_v16, 16  ;;  %v1370_v33 = vshll.u32 %v16004_v16, 16  ;;  %v1551_v52 = vor.u32 %v1550_v25, %v1546_v24  ;;  %v572_v59 = vld [vmem:[#allocation2 + $0xb4] sm:$0x1]  ;;  %v628_v23 = vld [vmem:[#allocation2 + $0xbc] sm:$0x1] }
  0x88   : > { %v851_v39 = vor.u32 %v849_v32, %v848_v44  ;;  %v853_v40 = vrot.slane %v848_v44, 4  ;;  %v1101_v42 = vsel %vm15652_vm12, %v843_v34, %v1100_v55  ;;  %v957_v6 = vshrl.u32 %v15986_v1, 16  ;;  %v16030_v55 = vld [vmem:[#allocation2 + $0x14] sm:$0x1]  ;;  %v1149_v44 = vld [vmem:[#allocation2 + $0xa8] sm:$0xf] }
  0x89   : > { %v1542_v15 = vrot.slane %v1541_v30, 4  ;;  %v1369_v21 = vrot.slane %v1367_v31, 4  ;;  %v1372_v41 = vrot.slane %v1370_v33, 5  ;;  %v1552_v43 = vrot.slane %v1551_v52, 4  ;;  %1102 = vst [vmem:[#allocation2 + $0x54] sm:$0xf] %v1101_v42 }
  0x8a   : > { %v852_v48 = vsel %vm15662_vm13, %v844_v38, %v851_v39  ;;  %v1105_v49 = vsel %vm15581_vm5, %v853_v40, %v1104_v35  ;;  %v16018_v63 = vld [vmem:[#allocation2 + $0x4c] sm:$0xf]  ;;  %v960_v8 = vshll.u32 %v15986_v1, 16  ;;  %v959_v19 = vrot.slane %v957_v6, 7  ;;  %v511_v34 = vld [vmem:[%s15630_s24 + $0xe0] sm:$0xff] }
  0x8b   : > { %v1547_v61 = vsel %vm15671_vm15, %v1542_v15, %v1546_v24  ;;  %v16020_v32 = vld [vmem:[#allocation2 + $0x50] sm:$0x1]  ;;  %v1373_v22 = vor.u32 %v1372_v41, %v1369_v21  ;;  %1103 = vst.msk [vmem:[#allocation2 + $0x58] sm:$0xf] %vm515_vm1, %v852_v48  ;;  %1106 = vst [vmem:[#allocation2 + $0x5c] sm:$0x1] %v1105_v49  ;;  %v1557_v27 = vsel %vm15671_vm15, %v1552_v43, %v1556_v28 }
  0x8c   : > { %v1376_v9 = vshll.u32 %v16018_v63, 16  ;;  %v1380_v51 = vshrl.u32 %v16018_v63, 16  ;;  %v1386_v10 = vshll.u32 %v16020_v32, 16  ;;  %v13135_v13 = vcombine.low %v1547_v61, %v1557_v27  ;;  %v512_v35 = vld [vmem:[%s15630_s24 + $0xe8] sm:$0xff]  ;;  %v1153_v43 = vld [vmem:[#allocation2 + $0xb0] sm:$0x1] }
  0x8d   : > { %v1374_v14 = vrot.slane %v1373_v22, 4  ;;  %v965_v20 = vshrl.u32 %v13968_v58, 16  ;;  %v2225_v1 = vrot.slane %v16030_v55, 5  ;;  %v968_v28 = vshll.u32 %v13968_v58, 16  ;;  %v15408_v55 = vld [vmem:[%s22370_s2 + $0x8] sm:$0x3] }
  0x8e   : > { %v1378_v24 = vrot.slane %v1376_v9, 5  ;;  %v1382_v25 = vrot.slane %v1380_v51, 4  ;;  %14371 = vmatmul.mubr.msk.bf16.gmra.mxu1 %vm1656_vm14, %v13135_v13  ;;  %v1388_v30 = vrot.slane %v1386_v10, 5  ;;  %v962_v31 = vor.u32 %v960_v8, %v959_v19 }
  0x8f   : > { %v967_v33 = vrot.slane %v965_v20, 7  ;;  %v573_v36 = vsel %vm15581_vm5, 0, %v572_v59  ;;  %v963_v38 = vrot.slane %v959_v19, 4  ;;  %v629_v39 = vsel %vm15587_vm8, 0, %v628_v23  ;;  %v2162_v19 = vld [vmem:[#allocation2] sm:$0xe] }
  0x90   : > { %v1383_v52 = vor.u32 %v1382_v25, %v1378_v24  ;;  %574 = vst [vmem:[#allocation2 + $0xb4] sm:$0x1] %v573_v36  ;;  %v1379_v40 = vsel %vm15671_vm15, %v1374_v14, %v1378_v24  ;;  %v16042_v15 = vld [vmem:[#allocation2 + $0x54] sm:$0xf]  ;;  %v1150_v42 = vsel %vm15652_vm12, %v962_v31, %v1149_v44  ;;  %630 = vst [vmem:[#allocation2 + $0xbc] sm:$0x1] %v629_v39 }
  0x91   : > { %v970_v21 = vor.u32 %v968_v28, %v967_v33  ;;  %v972_v41 = vrot.slane %v967_v33, 4  ;;  %v1391_v59 = vshrl.u32 %v16042_v15, 16  ;;  %1151 = vst [vmem:[#allocation2 + $0xa8] sm:$0xf] %v1150_v42  ;;  %v13969_v61 = vpack.c.bf16 %v511_v34, %v511_v34  ;;  %v2163_v20 = vld [vmem:[#allocation2 + $0xc] sm:$0xe] }
  0x92   : > { %v1384_v48 = vrot.slane %v1383_v52, 4  ;;  %v16046_v49 = vld [vmem:[#allocation2 + $0x58] sm:$0xf]  ;;  %v16048_v58 = vld [vmem:[#allocation2 + $0x5c] sm:$0x1]  ;;  %v13970_v22 = vpack.c.bf16 %v512_v35, %v512_v35  ;;  %v1394_v6 = vshll.u32 %v16042_v15, 16 }
  0x93   : > { %v1400_v8 = vshll.u32 %v16046_v49, 16  ;;  %v1404_v27 = vshrl.u32 %v16046_v49, 16  ;;  %v1410_v9 = vshll.u32 %v16048_v58, 16  ;;  %v1393_v10 = vrot.slane %v1391_v59, 4 }
  0x94   : > { %v1389_v51 = vsel %vm15671_vm15, %v1384_v48, %v1388_v30  ;;  %v971_v13 = vsel %vm15662_vm13, %v963_v38, %v970_v21  ;;  %v1154_v14 = vsel %vm15581_vm5, %v972_v41, %v1153_v43  ;;  %v1396_v24 = vrot.slane %v1394_v6, 5  ;;  %v16065_v43 = vld [vmem:[#allocation2 + $0x4] sm:$0xf] }
  0x95   : > { %v13128_v23 = vcombine.low %v1379_v40, %v1389_v51  ;;  %v1402_v25 = vrot.slane %v1400_v8, 5  ;;  %v1406_v28 = vrot.slane %v1404_v27, 4  ;;  %1152 = vst.msk [vmem:[#allocation2 + $0xac] sm:$0xf] %vm515_vm1, %v971_v13  ;;  %1155 = vst [vmem:[#allocation2 + $0xb0] sm:$0x1] %v1154_v14 }
  0x96   : > { %v1412_v44 = vrot.slane %v1410_v9, 5  ;;  %v974_v31 = vshrl.u32 %v13969_v61, 16  ;;  %v977_v33 = vshll.u32 %v13969_v61, 16  ;;  %v982_v30 = vshrl.u32 %v13970_v22, 16 }
  0x97   : > { %14358 = vmatprep.mubr.msk.bf16.mxu0 %vm1656_vm14, %v13128_v23  ;;  %v1397_v34 = vor.u32 %v1396_v24, %v1393_v10  ;;  %v1407_v35 = vor.u32 %v1406_v28, %v1402_v25  ;;  %v985_v36 = vshll.u32 %v13970_v22, 16  ;;  %vm2210_vm2 = vcmask 1042432   ;;  %v1156_v39 = vld [vmem:[#allocation2 + $0xb4] sm:$0xf]  ;;  %v1160_v13 = vld [vmem:[#allocation2 + $0xbc] sm:$0x1] }
  0x98   : > { %v976_v52 = vrot.slane %v974_v31, 7  ;;  %v984_v38 = vrot.slane %v982_v30, 7  ;;  %vm2211_vm9 = vcmask 1046532   ;;  %v13186_v40 = vrot.slane %v2162_v19, 9  ;;  %v16063_v42 = vld [vmem:[#allocation2 + $0xa8] sm:$0xf] }
  0x99   : > { %v1398_v21 = vrot.slane %v1397_v34, 4  ;;  %v1408_v41 = vrot.slane %v1407_v35, 4  ;;  %v2215_v48 = vrot.slane %v16065_v43, 5  ;;  %v13187_v59 = vrot.slane %v2163_v20, 9  ;;  %vm16076_vm10 = vmor %vm2210_vm2, %vm2211_vm9 }
  0x9a   : > { %v1559_v61 = vshrl.u32 %v16063_v42, 16  ;;  %v1562_v6 = vshll.u32 %v16063_v42, 16  ;;  %v979_v22 = vor.u32 %v977_v33, %v976_v52  ;;  %v980_v8 = vrot.slane %v976_v52, 4 }
  0x9b   : > { %v1403_v27 = vsel %vm15671_vm15, %v1398_v21, %v1402_v25  ;;  %v1413_v9 = vsel %vm15671_vm15, %v1408_v41, %v1412_v44  ;;  %v987_v51 = vor.u32 %v985_v36, %v984_v38  ;;  %v989_v10 = vrot.slane %v984_v38, 4  ;;  %v2164_v38 = vld [vmem:[#allocation2 + $0x18] sm:$0xe] }
  0x9c   : > { %v22448_v14 = vmov 0  ;;  %v13129_v19 = vcombine.low %v1403_v27, %v1413_v9  ;;  %v16080_v20 = vld [vmem:[#allocation2 + $0xac] sm:$0xf]  ;;  %v16082_v23 = vld [vmem:[#allocation2 + $0xb0] sm:$0x1]  ;;  %v1561_v24 = vrot.slane %v1559_v61, 4  ;;  %v1157_v25 = vsel %vm15652_vm12, %v979_v22, %v1156_v39 }
  0x9d   : > { %v22449_v14 = vsel %vm16076_vm10, 4294967295, %v22448_v14  ;;  %v1564_v28 = vrot.slane %v1562_v6, 5  ;;  %v1568_v44 = vshll.u32 %v16080_v20, 16  ;;  %v1572_v31 = vshrl.u32 %v16080_v20, 16  ;;  %1158 = vst [vmem:[#allocation2 + $0xb4] sm:$0xf] %v1157_v25 }
  0x9e   : > { %22450 = vst [vmem:[#allocation7_spill] sm:$0xff] %v22449_v14  ;;  %v1578_v33 = vshll.u32 %v16082_v23, 16  ;;  %v988_v30 = vsel %vm15662_vm13, %v980_v8, %v987_v51  ;;  %14359 = vmatmul.mubr.msk.bf16.gmra.mxu0 %vm1656_vm14, %v13129_v19  ;;  %v1161_v35 = vsel %vm15581_vm5, %v989_v10, %v1160_v13  ;;  %v2216_v36 = vsel %vm16076_vm10, %v13186_v40, %v2215_v48  ;;  %v2165_v9 = vld [vmem:[#allocation2 + $0x24] sm:$0xe]  ;;  %v16111_v51 = vld [vmem:[#allocation2 + $0x1c] sm:$0xf] }
  0x9f   : > { %v1565_v34 = vor.u32 %v1564_v28, %v1561_v24  ;;  %1159 = vst.msk [vmem:[#allocation2 + $0xb8] sm:$0xf] %vm515_vm1, %v988_v30  ;;  %v2217_v52 = vrot.slane %v2215_v48, 4  ;;  %v1570_v39 = vrot.slane %v1568_v44, 5  ;;  %v1574_v21 = vrot.slane %v1572_v31, 4 }
  0xa0   : > { %1162 = vst [vmem:[#allocation2 + $0xbc] sm:$0x1] %v1161_v35  ;;  %v2223_v6 = vsel %vm16076_vm10, %v13187_v59, %v2222_v29  ;;  %v2224_v22 = vrot.slane %v2222_v29, 4  ;;  %v1580_v48 = vrot.slane %v1578_v33, 5  ;;  %v13188_v27 = vrot.slane %v2164_v38, 9 }
  0xa1   : > { %v1566_v41 = vrot.slane %v1565_v34, 4  ;;  %v2219_v61 = vsel %vm16076_vm10, %v2217_v52, %v2218_v54  ;;  %v1575_v40 = vor.u32 %v1574_v21, %v1570_v39  ;;  %v2229_v54 = vrot.slane %v16111_v51, 5  ;;  %v15407_v10 = vld [vmem:[#allocation2 + $0x20] sm:$0x1] }
  0xa2   : > { %v13203_v8 = vcombine.low %v2216_v36, %v2219_v61  ;;  %v2226_v0 = vsel %vm16076_vm10, %v2224_v22, %v2225_v1  ;;  %v2232_v13 = vrot.slane %v15407_v10, 5  ;;  %v3508_v19 = vsel %vm1705_vm0, %v15408_v55, 0  ;;  %v16124_v1 = vld [vmem:[%s22370_s2 + $0xc] sm:$0x3] }
  0xa3   : > { %v1571_v60 = vsel %vm15671_vm15, %v1566_v41, %v1570_v39  ;;  %v1576_v29 = vrot.slane %v1575_v40, 4  ;;  %v13204_v59 = vcombine.low %v2223_v6, %v2226_v0  ;;  %v2230_v28 = vsel %vm16076_vm10, %v13188_v27, %v2229_v54  ;;  %v2166_v41 = vld [vmem:[#allocation2 + $0x30] sm:$0xe] }
  0xa4   : > { %14414 = vmatprep.mubr.msk.bf16.mxu0 %vm1656_vm14, %v13203_v8  ;;  %v16126_v24 = vld [vmem:[#allocation2 + $0xb4] sm:$0xf]  ;;  %v2231_v25 = vrot.slane %v2229_v54, 4  ;;  %v13189_v44 = vrot.slane %v2165_v9, 9  ;;  %v2236_v31 = vrot.slane %v15807_v46, 5  ;;  %v2239_v36 = vrot.slane %v15809_v47, 5 }
  0xa5   : > { %v1581_v33 = vsel %vm15671_vm15, %v1576_v29, %v1580_v48  ;;  %v1583_v34 = vshrl.u32 %v16126_v24, 16  ;;  %v1586_v35 = vshll.u32 %v16126_v24, 16  ;;  %v13190_v54 = vrot.slane %v2166_v41, 9 }
  0xa6   : > { %v16133_v30 = vld [vmem:[#allocation2 + $0xb8] sm:$0xf]  ;;  %v13136_v52 = vcombine.low %v1571_v60, %v1581_v33  ;;  %14415 = vmatmul.mubr.msk.bf16.vlgmr.msra.gmra.mxu0 %vm1656_vm14, %v13204_v59  ;;  %v2233_v46 = vsel %vm16076_vm10, %v2231_v25, %v2232_v13  ;;  %v2237_v8 = vsel %vm16076_vm10, %v13189_v44, %v2236_v31  ;;  %v2238_v27 = vrot.slane %v2236_v31, 4  ;;  %v2167_v13 = vld [vmem:[#allocation2 + $0x3c] sm:$0xe] }
  0xa7   : > { %v16138_v38 = vld [vmem:[#allocation2 + $0xbc] sm:$0x1]  ;;  %v1592_v39 = vshll.u32 %v16133_v30, 16  ;;  %v1596_v21 = vshrl.u32 %v16133_v30, 16  ;;  %v1585_v61 = vrot.slane %v1583_v34, 4  ;;  %v1588_v6 = vrot.slane %v1586_v35, 5  ;;  %14481 = vmatpush3.bf16.msra.mxu0 %v3508_v19 }
  0xa8   : > { %v1602_v22 = vshll.u32 %v16138_v38, 16  ;;  %v13205_v40 = vcombine.low %v2230_v28, %v2233_v46  ;;  %14374 = vmatprep.mubr.msk.bf16.mxu1 %vm1656_vm14, %v13136_v52  ;;  %15039 = vmatprep.subr.msk.bf16.mxu0 %vm1705_vm0, %v16124_v1  ;;  %v2243_v10 = vrot.slane %v15892_v45, 5  ;;  %v2240_v29 = vsel %vm16076_vm10, %v2238_v27, %v2239_v36  ;;  %v2168_v19 = vld [vmem:[#allocation2 + $0x48] sm:$0xe]  ;;  %v2169_v46 = vld [vmem:[#allocation2 + $0x54] sm:$0xe] }
  0xa9   : > { %v1594_v47 = vrot.slane %v1592_v39, 5  ;;  %v1598_v48 = vrot.slane %v1596_v21, 4  ;;  %v1589_v9 = vor.u32 %v1588_v6, %v1585_v61  ;;  %v2246_v59 = vrot.slane %v15903_v26, 5  ;;  %v15409_v61 = vld [vmem:[#allocation2] sm:$0xf] }
  0xaa   : > { %v1604_v0 = vrot.slane %v1602_v22, 5  ;;  %14418 = vmatprep.mubr.msk.bf16.mxu0 %vm1656_vm14, %v13205_v40  ;;  %v13158_v55 = vcombine.low %v15890_v17, %v15892_v45  ;;  %v13206_v25 = vcombine.low %v2237_v8, %v2240_v29  ;;  %v2244_v44 = vsel %vm16076_vm10, %v13190_v54, %v2243_v10  ;;  %v16185_v29 = vld [vmem:[#allocation2 + $0x64] sm:$0xf] }
  0xab   : > { %v1599_v60 = vor.u32 %v1598_v48, %v1594_v47  ;;  %v1590_v28 = vrot.slane %v1589_v9, 4  ;;  %v2245_v31 = vrot.slane %v2243_v10, 4  ;;  %v13191_v34 = vrot.slane %v2167_v13, 9 }
  0xac   : > { %v2250_v35 = vrot.slane %v15912_v53, 5  ;;  %v2253_v52 = vrot.slane %v15914_v57, 5  ;;  %v13159_v39 = vcombine.low %v15908_v37, %v15912_v53  ;;  %v13192_v21 = vrot.slane %v2168_v19, 9  ;;  %v2171_v19 = vld [vmem:[#allocation2 + $0x6c] sm:$0xe] }
  0xad   : > { %v1600_v33 = vrot.slane %v1599_v60, 4  ;;  %v1595_v36 = vsel %vm15671_vm15, %v1590_v28, %v1594_v47  ;;  %v2247_v26 = vsel %vm16076_vm10, %v2245_v31, %v2246_v59  ;;  %v13154_v6 = vcombine.low %v15409_v61, %v16065_v43  ;;  %v15411_v28 = vld [vmem:[#allocation2 + $0x68] sm:$0x1] }
  0xae   : > { %14419 = vmatmul.mubr.msk.bf16.gmra.mxu0 %vm1656_vm14, %v13206_v25  ;;  %v13207_v57 = vcombine.low %v2244_v44, %v2247_v26  ;;  %v2252_v22 = vrot.slane %v2250_v35, 4  ;;  %v2251_v47 = vsel %vm16076_vm10, %v13191_v34, %v2250_v35  ;;  %v2257_v48 = vrot.slane %v16018_v63, 5  ;;  %v15414_v35 = vld [vmem:[#allocation2 + $0x10] sm:$0xf] }
  0xaf   : > { %v1605_v41 = vsel %vm15671_vm15, %v1600_v33, %v1604_v0  ;;  %v2260_v8 = vrot.slane %v16020_v32, 5  ;;  %v13193_v9 = vrot.slane %v2169_v46, 9  ;;  %v2264_v43 = vrot.slane %v16046_v49, 5  ;;  %v2170_v0 = vld [vmem:[#allocation2 + $0x60] sm:$0xe] }
  0xb0   : > { %v13137_v40 = vcombine.low %v1595_v36, %v1605_v41  ;;  %14422 = vmatprep.mubr.msk.bf16.mxu0 %vm1656_vm14, %v13207_v57  ;;  %v2254_v27 = vsel %vm16076_vm10, %v2252_v22, %v2253_v52  ;;  %v2258_v54 = vsel %vm16076_vm10, %v13192_v21, %v2257_v48  ;;  %v2259_v10 = vrot.slane %v2257_v48, 4  ;;  %v16190_v33 = vld [vmem:[#allocation2 + $0x70] sm:$0xf]  ;;  %v2172_v21 = vld [vmem:[#allocation2 + $0x78] sm:$0xe] }
  0xb1   : > { %v2267_v13 = vrot.slane %v16048_v58, 5  ;;  %v13208_v32 = vcombine.low %v2251_v47, %v2254_v27  ;;  %v2266_v60 = vrot.slane %v2264_v43, 4  ;;  %v2271_v59 = vrot.slane %v16185_v29, 5  ;;  %v15413_v58 = vld [vmem:[#allocation2 + $0xc] sm:$0xf] }
  0xb2   : > { %14375 = vmatmul.mubr.msk.bf16.gmra.mxu1 %vm1656_vm14, %v13137_v40  ;;  %v2274_v25 = vrot.slane %v15411_v28, 5  ;;  %v2261_v44 = vsel %vm16076_vm10, %v2259_v10, %v2260_v8  ;;  %v13194_v31 = vrot.slane %v2170_v0, 9  ;;  %v2278_v34 = vrot.slane %v16190_v33, 5  ;;  %v2174_v46 = vld [vmem:[#allocation2 + $0x90] sm:$0xe] }
  0xb3   : > { %14380 = vmatprep.mubr.msk.bf16.mxu1 %vm1656_vm14, %v13154_v6  ;;  %v13155_v52 = vcombine.low %v15413_v58, %v15414_v35  ;;  %v13209_v36 = vcombine.low %v2258_v54, %v2261_v44  ;;  %v2273_v26 = vrot.slane %v2271_v59, 4  ;;  %v15415_v41 = vld [vmem:[%s22370_s2 + $0x6] sm:$0x3]  ;;  %v2265_v6 = vsel %vm16076_vm10, %v13193_v9, %v2264_v43  ;;  %v15416_v40 = vld [vmem:[#allocation2 + $0x18] sm:$0xf] }
  0xb4   : > { %v2782_v61 = vsel %vm1705_vm0, %v15415_v41, 0  ;;  %v2268_v57 = vsel %vm16076_vm10, %v2266_v60, %v2267_v13  ;;  %v13195_v22 = vrot.slane %v2171_v19, 9  ;;  %v13156_v47 = vcombine.low %v15416_v40, %v16111_v51  ;;  %v16203_v8 = vld [vmem:[#allocation2 + $0x7c] sm:$0xf]  ;;  %v2173_v0 = vld [vmem:[#allocation2 + $0x84] sm:$0xe] }
  0xb5   : > { %v2280_v48 = vrot.slane %v2278_v34, 4  ;;  %v2285_v27 = vrot.slane %v16203_v8, 5  ;;  %v16209_v54 = vld [vmem:[%s22370_s2 + $0xa] sm:$0x3]  ;;  %v2272_v9 = vsel %vm16076_vm10, %v13194_v31, %v2271_v59  ;;  %v2275_v51 = vsel %vm16076_vm10, %v2273_v26, %v2274_v25  ;;  %v15418_v43 = vld [vmem:[#allocation2 + $0x74] sm:$0x1] }
  0xb6   : > { %14423 = vmatmul.mubr.msk.bf16.gmra.mxu0 %vm1656_vm14, %v13208_v32  ;;  %v2281_v10 = vrot.slane %v15418_v43, 5  ;;  %v13196_v13 = vrot.slane %v2172_v21, 9  ;;  %v15419_v32 = vld [vmem:[#allocation2 + $0x24] sm:$0xf]  ;;  %v15420_v60 = vld [vmem:[#allocation2 + $0x28] sm:$0xf]  ;;  %v13210_v28 = vcombine.low %v2265_v6, %v2268_v57  ;;  %v13211_v59 = vcombine.low %v2272_v9, %v2275_v51 }
  0xb7   : > { %14426 = vmatprep.mubr.msk.bf16.mxu0 %vm1656_vm14, %v13209_v36  ;;  %v13157_v19 = vcombine.low %v15419_v32, %v15420_v60  ;;  %v2175_v44 = vld [vmem:[#allocation2 + $0x9c] sm:$0xe]  ;;  %v2287_v58 = vrot.slane %v2285_v27, 4  ;;  %v15421_v35 = vld [vmem:[#allocation2 + $0x80] sm:$0x1]  ;;  %v2292_v36 = vrot.slane %v15854_v11, 5  ;;  %v16221_v25 = vsel %vm16076_vm10, %v13195_v22, %v2278_v34 }
  0xb8   : > { %v2288_v41 = vrot.slane %v15421_v35, 5  ;;  %v13198_v40 = vrot.slane %v2174_v46, 9  ;;  %v2299_v31 = vrot.slane %v15954_v7, 5  ;;  %v2302_v26 = vrot.slane %v15950_v2, 5  ;;  %v15422_v22 = vld [vmem:[#allocation2 + $0x8c] sm:$0x1] }
  0xb9   : > { %v2286_v21 = vsel %vm16076_vm10, %v13196_v13, %v2285_v27  ;;  %v13197_v11 = vrot.slane %v2173_v0, 9  ;;  %v13199_v46 = vrot.slane %v2175_v44, 9  ;;  %v2306_v7 = vrot.slane %v15988_v18, 5  ;;  %v2977_v27 = vld [vmem:[#allocation2 + $0xc] sm:$0xf] }
  0xba   : > { %14381 = vmatmul.mubr.msk.bf16.vlgmr.msra.gmra.mxu1 %vm1656_vm14, %v13155_v52  ;;  %v2282_v52 = vsel %vm16076_vm10, %v2280_v48, %v2281_v10  ;;  %v2301_v34 = vrot.slane %v2299_v31, 4  ;;  %v2309_v2 = vrot.slane %v15990_v5, 5  ;;  %v2289_v6 = vsel %vm16076_vm10, %v2287_v58, %v2288_v41  ;;  %v2176_v13 = vld [vmem:[#allocation2 + $0xa8] sm:$0xe]  ;;  %v2177_v58 = vld [vmem:[#allocation2 + $0xb4] sm:$0xe] }
  0xbb   : > { %14447 = vmatpush3.bf16.msra.mxu1 %v2782_v61  ;;  %14384 = vmatprep.mubr.msk.bf16.mxu1 %vm1656_vm14, %v13156_v47  ;;  %v16233_v61 = vsel %vm16076_vm10, %v13198_v40, %v2299_v31  ;;  %v2294_v57 = vrot.slane %v2292_v36, 4  ;;  %v2295_v47 = vrot.slane %v15422_v22, 5  ;;  %v13167_v48 = vcombine.low %v15984_v62, %v15988_v18  ;;  %v16265_v35 = vld [vmem:[#allocation2 + $0x10] sm:$0xf] }
  0xbc   : > { %15038 = vmatprep.subr.msk.bf16.mxu1 %vm1705_vm0, %v16209_v54  ;;  %v16244_v0 = vsel %vm16076_vm10, %v2301_v34, %v2302_v26  ;;  %v16248_v9 = vsel %vm16076_vm10, %v13199_v46, %v2306_v7  ;;  %v2308_v5 = vrot.slane %v2306_v7, 4  ;;  %v2313_v51 = vrot.slane %v16080_v20, 5 }
  0xbd   : > { %v13212_v43 = vcombine.low %v16221_v25, %v2282_v52  ;;  %v13215_v10 = vcombine.low %v16233_v61, %v16244_v0  ;;  %v13213_v32 = vcombine.low %v2286_v21, %v2289_v6  ;;  %v16257_v60 = vsel %vm16076_vm10, %v13197_v11, %v2292_v36  ;;  %v2980_v25 = vld [vmem:[#allocation2 + $0x18] sm:$0xf]  ;;  %v2979_v11 = vld [vmem:[#allocation2 + $0x14] sm:$0x1] }
  0xbe   : > { %14427 = vmatmul.mubr.msk.bf16.gmra.mxu0 %vm1656_vm14, %v13210_v28  ;;  %v16261_v28 = vsel %vm16076_vm10, %v2308_v5, %v2309_v2  ;;  %v13168_v44 = vcombine.low %v16063_v42, %v16080_v20  ;;  %v16270_v41 = vsel %vm16076_vm10, %v2294_v57, %v2295_v47  ;;  %v2320_v40 = vrot.slane %v16133_v30, 5  ;;  %v2981_v57 = vld [vmem:[#allocation2 + $0x1c] sm:$0xf] }
  0xbf   : > { %14430 = vmatprep.mubr.msk.bf16.mxu0 %vm1656_vm14, %v13211_v59  ;;  %v13216_v36 = vcombine.low %v16248_v9, %v16261_v28  ;;  %v13200_v31 = vrot.slane %v2176_v13, 9  ;;  %v2316_v26 = vrot.slane %v16082_v23, 5  ;;  %v3026_v52 = vshrl.u32 %v2977_v27, 16  ;;  %v16291_v13 = vld [vmem:[#allocation2 + $0x60] sm:$0xf] }
  0xc0   : > { %v13201_v21 = vrot.slane %v2177_v58, 9  ;;  %v3029_v46 = vshll.u32 %v2977_v27, 16  ;;  %v3035_v34 = vshll.u32 %v16265_v35, 16  ;;  %v3039_v7 = vshrl.u32 %v16265_v35, 16  ;;  %v2984_v59 = vld [vmem:[#allocation2 + $0x28] sm:$0xf] }
  0xc1   : > { %v2323_v2 = vrot.slane %v16138_v38, 5  ;;  %v3028_v6 = vrot.slane %v3026_v52, 4  ;;  %v3050_v22 = vshrl.u32 %v2980_v25, 16  ;;  %v3053_v17 = vshll.u32 %v2980_v25, 16  ;;  %v2983_v25 = vld [vmem:[#allocation2 + $0x24] sm:$0xf] }
  0xc2   : > { %14385 = vmatmul.mubr.msk.bf16.gmra.mxu1 %vm1656_vm14, %v13157_v19  ;;  %v2315_v19 = vrot.slane %v2313_v51, 4  ;;  %v2322_v45 = vrot.slane %v2320_v40, 4  ;;  %v16285_v47 = vrot.slane %v3035_v34, 5  ;;  %v3041_v5 = vrot.slane %v3039_v7, 4 }
  0xc3   : > { %14388 = vmatprep.mubr.msk.bf16.mxu1 %vm1656_vm14, %v13158_v55  ;;  %v3031_v55 = vrot.slane %v3029_v46, 5  ;;  %v13160_v23 = vcombine.low %v16004_v16, %v16018_v63  ;;  %v13161_v27 = vcombine.low %v16042_v15, %v16046_v49  ;;  %v13162_v38 = vcombine.low %v16291_v13, %v16185_v29  ;;  %v16297_v16 = vld [vmem:[#allocation2 + $0x6c] sm:$0xf]  ;;  %v2992_v13 = vld [vmem:[#allocation2 + $0x48] sm:$0xf] }
  0xc4   : > { %v3045_v58 = vshll.u32 %v2979_v11, 16  ;;  %v3052_v52 = vrot.slane %v3050_v22, 4  ;;  %v3055_v46 = vrot.slane %v3053_v17, 5  ;;  %v3059_v34 = vshll.u32 %v2981_v57, 16  ;;  %v16327_v17 = vld [vmem:[#allocation2 + $0x34] sm:$0xf] }
  0xc5   : > { %v3063_v7 = vshrl.u32 %v2981_v57, 16  ;;  %v13163_v63 = vcombine.low %v16297_v16, %v16190_v33  ;;  %v13214_v15 = vcombine.low %v16257_v60, %v16270_v41  ;;  %v3032_v49 = vor.u32 %v3031_v55, %v3028_v6  ;;  %v2982_v41 = vld [vmem:[#allocation2 + $0x20] sm:$0x1] }
  0xc6   : > { %14431 = vmatmul.mubr.msk.bf16.gmra.mxu0 %vm1656_vm14, %v13212_v43  ;;  %v3042_v43 = vor.u32 %v3041_v5, %v16285_v47  ;;  %v16314_v11 = vsel %vm16076_vm10, %v2315_v19, %v2316_v26  ;;  %v16318_v57 = vsel %vm16076_vm10, %v13201_v21, %v2320_v40  ;;  %v16322_v60 = vsel %vm16076_vm10, %v2322_v45, %v2323_v2  ;;  %v16329_v45 = vld [vmem:[#allocation2 + $0x78] sm:$0xf] }
  0xc7   : > { %14434 = vmatprep.mubr.msk.bf16.mxu0 %vm1656_vm14, %v13213_v32  ;;  %v16310_v32 = vsel %vm16076_vm10, %v13200_v31, %v2313_v51  ;;  %v3047_v37 = vrot.slane %v3045_v58, 5  ;;  %v3074_v53 = vshrl.u32 %v2983_v25, 16  ;;  %v3083_v51 = vshll.u32 %v2984_v59, 16  ;;  %v2986_v31 = vld [vmem:[#allocation2 + $0x30] sm:$0xf] }
  0xc8   : > { %v3056_v6 = vor.u32 %v3055_v46, %v3052_v52  ;;  %v16325_v22 = vrot.slane %v3059_v34, 5  ;;  %v3065_v19 = vrot.slane %v3063_v7, 4  ;;  %v3087_v26 = vshrl.u32 %v2984_v59, 16  ;;  %v2985_v58 = vld [vmem:[#allocation2 + $0x2c] sm:$0x1] }
  0xc9   : > { %v3033_v40 = vrot.slane %v3032_v49, 4  ;;  %v3043_v21 = vrot.slane %v3042_v43, 4  ;;  %v3076_v55 = vrot.slane %v3074_v53, 4  ;;  %v13164_v5 = vcombine.low %v16329_v45, %v16203_v8  ;;  %v2989_v53 = vld [vmem:[#allocation2 + $0x3c] sm:$0xf] }
  0xca   : > { %14389 = vmatmul.mubr.msk.bf16.gmra.mxu1 %vm1656_vm14, %v13159_v39  ;;  %v3077_v39 = vshll.u32 %v2983_v25, 16  ;;  %v16333_v25 = vrot.slane %v3083_v51, 5  ;;  %v3089_v52 = vrot.slane %v3087_v26, 4  ;;  %v13217_v59 = vcombine.low %v16310_v32, %v16314_v11  ;;  %v15426_v8 = vld [vmem:[#allocation2 + $0x84] sm:$0xf] }
  0xcb   : > { %14392 = vmatprep.mubr.msk.bf16.mxu1 %vm1656_vm14, %v13160_v23  ;;  %v3069_v23 = vshll.u32 %v2982_v41, 16  ;;  %v3098_v46 = vshrl.u32 %v2986_v31, 16  ;;  %v3101_v34 = vshll.u32 %v2986_v31, 16  ;;  %v3107_v7 = vshll.u32 %v16327_v17, 16  ;;  %v15427_v45 = vld [vmem:[#allocation2 + $0x88] sm:$0xf] }
  0xcc   : > { %v3079_v2 = vrot.slane %v3077_v39, 5  ;;  %v13218_v49 = vcombine.low %v16318_v57, %v16322_v60  ;;  %v16345_v43 = vrot.slane %v3056_v6, 4  ;;  %v3066_v41 = vor.u32 %v3065_v19, %v16325_v22 }
  0xcd   : > { %v3038_v32 = vsel %vm15671_vm15, %v3033_v40, %v16285_v47  ;;  %v3048_v11 = vsel %vm15671_vm15, %v3043_v21, %v3047_v37  ;;  %v3093_v0 = vshll.u32 %v2985_v58, 16  ;;  %v16357_v39 = vrot.slane %v3069_v23, 5  ;;  %v16364_v47 = vld [vmem:[#allocation2 + $0x38] sm:$0x1] }
  0xce   : > { %14435 = vmatmul.mubr.msk.bf16.gmra.mxu0 %vm1656_vm14, %v13214_v15  ;;  %v3111_v15 = vshrl.u32 %v16327_v17, 16  ;;  %v3080_v61 = vor.u32 %v3079_v2, %v3076_v55  ;;  %v3090_v51 = vor.u32 %v3089_v52, %v16333_v25  ;;  %v3100_v31 = vrot.slane %v3098_v46, 4  ;;  %v16374_v2 = vld [vmem:[#allocation2 + $0x44] sm:$0x1]  ;;  %v16377_v46 = vld [vmem:[#allocation2 + $0x4c] sm:$0xf] }
  0xcf   : > { %14438 = vmatprep.mubr.msk.bf16.mxu0 %vm1656_vm14, %v13215_v10  ;;  %v16354_v10 = vld [vmem:[#allocation2 + $0x40] sm:$0xf]  ;;  %v3103_v6 = vrot.slane %v3101_v34, 5  ;;  %v16366_v37 = vrot.slane %v3107_v7, 5  ;;  %v3122_v26 = vshrl.u32 %v2989_v53, 16  ;;  %v3125_v40 = vshll.u32 %v2989_v53, 16 }
  0xd0   : > { %v3113_v19 = vrot.slane %v3111_v15, 4  ;;  %v16368_v21 = vcombine.low %v3038_v32, %v3048_v11  ;;  %v3067_v55 = vrot.slane %v3066_v41, 4  ;;  %v3131_v29 = vshll.u32 %v16354_v10, 16 }
  0xd1   : > { %v3095_v23 = vrot.slane %v3093_v0, 5  ;;  %v3124_v58 = vrot.slane %v3122_v26, 4  ;;  %v3127_v52 = vrot.slane %v3125_v40, 5  ;;  %v3091_v34 = vrot.slane %v3090_v51, 4  ;;  %v2995_v26 = vld [vmem:[#allocation2 + $0x54] sm:$0xf] }
  0xd2   : > { %14393 = vmatmul.mubr.msk.bf16.gmra.mxu1 %vm1656_vm14, %v13161_v27  ;;  %v3062_v27 = vsel %vm15671_vm15, %v16345_v43, %v16325_v22  ;;  %v3117_v7 = vshll.u32 %v16364_v47, 16  ;;  %v16380_v15 = vrot.slane %v3131_v29, 5  ;;  %v3135_v53 = vshrl.u32 %v16354_v10, 16  ;;  %v16405_v40 = vld [vmem:[#allocation2 + $0x58] sm:$0xf] }
  0xd3   : > { %14396 = vmatprep.mubr.msk.bf16.mxu1 %vm1656_vm14, %v13162_v38  ;;  %v3081_v38 = vrot.slane %v3080_v61, 4  ;;  %v3104_v22 = vor.u32 %v3103_v6, %v3100_v31  ;;  %v3114_v43 = vor.u32 %v3113_v19, %v16366_v37  ;;  %v3146_v41 = vshrl.u32 %v2992_v13, 16  ;;  %v16411_v29 = vld [vmem:[#allocation2 + $0x50] sm:$0x1] }
  0xd4   : > { %v3149_v32 = vshll.u32 %v2992_v13, 16  ;;  %v3072_v11 = vsel %vm15671_vm15, %v3067_v55, %v16357_v39  ;;  %v3137_v61 = vrot.slane %v3135_v53, 4  ;;  %v3141_v0 = vshll.u32 %v16374_v2, 16  ;;  %v15428_v53 = vld [vmem:[#allocation2 + $0x90] sm:$0xf] }
  0xd5   : > { %v3155_v51 = vshll.u32 %v16377_v46, 16  ;;  %v3086_v9 = vsel %vm15671_vm15, %v3081_v38, %v16333_v25  ;;  %v3128_v28 = vor.u32 %v3127_v52, %v3124_v58  ;;  %v3119_v39 = vrot.slane %v3117_v7, 5 }
  0xd6   : > { %14439 = vmatmul.mubr.msk.bf16.gmra.mxu0 %vm1656_vm14, %v13216_v36  ;;  %v3148_v36 = vrot.slane %v3146_v41, 4  ;;  %v3151_v31 = vrot.slane %v3149_v32, 5  ;;  %v3138_v6 = vor.u32 %v3137_v61, %v16380_v15  ;;  %v3159_v19 = vshrl.u32 %v16377_v46, 16 }
  0xd7   : > { %14442 = vmatprep.mubr.msk.bf16.mxu0 %vm1656_vm14, %v13217_v59  ;;  %v3096_v59 = vsel %vm15671_vm15, %v3091_v34, %v3095_v23  ;;  %v3105_v25 = vrot.slane %v3104_v22, 4  ;;  %v3115_v55 = vrot.slane %v3114_v43, 4  ;;  %v3170_v33 = vshrl.u32 %v2995_v26, 16  ;;  %v15429_v22 = vld [vmem:[#allocation2 + $0x94] sm:$0xf] }
  0xd8   : > { %v3173_v16 = vshll.u32 %v2995_v26, 16  ;;  %v3152_v13 = vor.u32 %v3151_v31, %v3148_v36  ;;  %v16413_v38 = vrot.slane %v3155_v51, 5  ;;  %v3161_v23 = vrot.slane %v3159_v19, 4  ;;  %v2998_v36 = vld [vmem:[#allocation2 + $0x60] sm:$0xf] }
  0xd9   : > { %v3129_v58 = vrot.slane %v3128_v28, 4  ;;  %v3139_v52 = vrot.slane %v3138_v6, 4  ;;  %v3179_v34 = vshll.u32 %v16405_v40, 16  ;;  %v3183_v7 = vshrl.u32 %v16405_v40, 16  ;;  %v16424_v28 = vld [vmem:[#allocation2 + $0x5c] sm:$0x1] }
  0xda   : > { %14397 = vmatmul.mubr.msk.bf16.gmra.mxu1 %vm1656_vm14, %v13163_v63  ;;  %v3143_v63 = vrot.slane %v3141_v0, 5  ;;  %v13166_v43 = vcombine.low %v15428_v53, %v15429_v22  ;;  %v3172_v41 = vrot.slane %v3170_v33, 4  ;;  %v3175_v32 = vrot.slane %v3173_v16, 5  ;;  %v16469_v53 = vld [vmem:[#allocation2 + $0x7c] sm:$0xf] }
  0xdb   : > { %14400 = vmatprep.mubr.msk.bf16.mxu1 %vm1656_vm14, %v13164_v5  ;;  %v13165_v5 = vcombine.low %v15426_v8, %v15427_v45  ;;  %v13270_v61 = vcombine.low %v3062_v27, %v3072_v11  ;;  %v4337_v0 = vsel %vm1705_vm0, %v16124_v1, 0  ;;  %v13271_v51 = vcombine.low %v3086_v9, %v3096_v59 }
  0xdc   : > { %v3165_v26 = vshll.u32 %v16411_v29, 16  ;;  %v3110_v31 = vsel %vm15671_vm15, %v3105_v25, %v16366_v37  ;;  %v3120_v57 = vsel %vm15671_vm15, %v3115_v55, %v3119_v39  ;;  %v16433_v60 = vrot.slane %v3152_v13, 4  ;;  %v3001_v37 = vld [vmem:[#allocation2 + $0x6c] sm:$0xf]  ;;  %v16447_v25 = vld [vmem:[#allocation2 + $0x70] sm:$0xf] }
  0xdd   : > { %v3162_v1 = vor.u32 %v3161_v23, %v16413_v38  ;;  %v3134_v27 = vsel %vm15671_vm15, %v3129_v58, %v16380_v15  ;;  %v16443_v11 = vrot.slane %v3179_v34, 5  ;;  %v3185_v9 = vrot.slane %v3183_v7, 4  ;;  %v16464_v58 = vld [vmem:[#allocation2 + $0x68] sm:$0x1]  ;;  %v3004_v34 = vld [vmem:[#allocation2 + $0x78] sm:$0xf] }
  0xde   : > { %14443 = vmatmul.mubr.msk.bf16.gmra.mxu0 %vm1656_vm14, %v13218_v49  ;;  %v16436_v49 = vld [vmem:[#allocation2 + $0x64] sm:$0xf]  ;;  %v3176_v59 = vor.u32 %v3175_v32, %v3172_v41  ;;  %v3189_v39 = vshll.u32 %v16424_v28, 16  ;;  %v3194_v6 = vshrl.u32 %v2998_v36, 16  ;;  %v3197_v19 = vshll.u32 %v2998_v36, 16 }
  0xdf   : > { %14482 = vmatprep.mubr.msk.bf16.mxu0 %vm1656_vm14, %v16368_v21  ;;  %v3144_v21 = vsel %vm15671_vm15, %v3139_v52, %v3143_v63  ;;  %v16450_v55 = vcombine.low %v3110_v31, %v3120_v57  ;;  %v16452_v15 = vrot.slane %v3165_v26, 5  ;;  %v3203_v33 = vshll.u32 %v16436_v49, 16  ;;  %v16478_v26 = vld [vmem:[%s22370_s2 + $0x10] sm:$0x3]  ;;  %v16483_v57 = vld [vmem:[#allocation2 + $0x74] sm:$0x1] }
  0xe0   : > { %v3207_v16 = vshrl.u32 %v16436_v49, 16  ;;  %v16456_v63 = vcombine.low %v3134_v27, %v3144_v21  ;;  %v3158_v13 = vsel %vm15671_vm15, %v16433_v60, %v16413_v38  ;;  %v16462_v23 = vrot.slane %v3162_v1, 4 }
  0xe1   : > { %v3218_v52 = vshrl.u32 %v3001_v37, 16  ;;  %v3186_v7 = vor.u32 %v3185_v9, %v16443_v11  ;;  %v3221_v8 = vshll.u32 %v3001_v37, 16  ;;  %v3227_v45 = vshll.u32 %v16447_v25, 16  ;;  %v16488_v37 = vld [vmem:[#allocation2 + $0x80] sm:$0x1] }
  0xe2   : > { %14401 = vmatmul.mubr.msk.bf16.gmra.mxu1 %vm1656_vm14, %v13165_v5  ;;  %v3231_v5 = vshrl.u32 %v16447_v25, 16  ;;  %v16471_v22 = vrot.slane %v3176_v59, 4  ;;  %v3196_v41 = vrot.slane %v3194_v6, 4  ;;  %v3199_v32 = vrot.slane %v3197_v19, 5 }
  0xe3   : > { %14404 = vmatprep.mubr.msk.bf16.mxu1 %vm1656_vm14, %v13166_v43  ;;  %v16473_v43 = vrot.slane %v3189_v39, 5  ;;  %v16481_v36 = vrot.slane %v3203_v33, 5  ;;  %v3209_v31 = vrot.slane %v3207_v16, 4  ;;  %v3220_v1 = vrot.slane %v3218_v52, 4 }
  0xe4   : > { %v3223_v27 = vrot.slane %v3221_v8, 5  ;;  %v16486_v21 = vrot.slane %v3227_v45, 5  ;;  %v3233_v9 = vrot.slane %v3231_v5, 4  ;;  %v3242_v59 = vshrl.u32 %v3004_v34, 16 }
  0xe5   : > { %v3245_v39 = vshll.u32 %v3004_v34, 16  ;;  %v3187_v6 = vrot.slane %v3186_v7, 4  ;;  %v3213_v19 = vshll.u32 %v16464_v58, 16  ;;  %v3251_v33 = vshll.u32 %v16469_v53, 16 }
  0xe6   : > { %14483 = vmatmul.mubr.msk.bf16.vlgmr.msra.gmra.mxu0 %vm1656_vm14, %v13270_v61  ;;  %v3168_v61 = vsel %vm15671_vm15, %v16462_v23, %v16452_v15  ;;  %v3244_v16 = vrot.slane %v3242_v59, 4  ;;  %v3255_v34 = vshrl.u32 %v16469_v53, 16  ;;  %v16503_v15 = vld [vmem:[#allocation2 + $0x88] sm:$0xf]  ;;  %v3210_v23 = vor.u32 %v3209_v31, %v16481_v36 }
  0xe7   : > { %14549 = vmatpush3.bf16.msra.mxu0 %v4337_v0  ;;  %14486 = vmatprep.mubr.msk.bf16.mxu0 %vm1656_vm14, %v13271_v51  ;;  %v3007_v0 = vld [vmem:[#allocation2 + $0x84] sm:$0xf]  ;;  %v3200_v51 = vor.u32 %v3199_v32, %v3196_v41  ;;  %v3247_v52 = vrot.slane %v3245_v39, 5  ;;  %v3224_v7 = vor.u32 %v3223_v27, %v3220_v1  ;;  %v3237_v8 = vshll.u32 %v16483_v57, 16  ;;  %v15064_v32 = vld [vmem:[#allocation2 + $0xc] sm:$0xff]  }
  0xe8   : > { %15041 = vmatprep.subr.msk.bf16.mxu0 %vm1705_vm0, %v16478_v26  ;;  %v16511_v62 = vrot.slane %v3251_v33, 5  ;;  %v3234_v18 = vor.u32 %v3233_v9, %v16486_v21  ;;  %v3257_v45 = vrot.slane %v3255_v34, 4  ;;  %v3266_v5 = vshrl.u32 %v3007_v0, 16  ;;  %v3010_v33 = vld [vmem:[#allocation2 + $0x90] sm:$0xf] }
  0xe9   : > { %v3182_v41 = vsel %vm15671_vm15, %v16471_v22, %v16443_v11  ;;  %v3261_v42 = vshll.u32 %v16488_v37, 16  ;;  %v3269_v20 = vshll.u32 %v3007_v0, 16  ;;  %v3192_v31 = vsel %vm15671_vm15, %v3187_v6, %v16473_v43 }
  0xea   : > { %14405 = vmatmul.mubr.msk.bf16.gmra.mxu1 %vm1656_vm14, %v13167_v48  ;;  %v3248_v48 = vor.u32 %v3247_v52, %v3244_v16  ;;  %v3201_v1 = vrot.slane %v3200_v51, 4  ;;  %v3215_v27 = vrot.slane %v3213_v19, 5  ;;  %v3258_v9 = vor.u32 %v3257_v45, %v16511_v62  ;;  %v16529_v51 = vld [vmem:[#allocation2 + $0x8c] sm:$0x1] }
  0xeb   : > { %14408 = vmatprep.mubr.msk.bf16.mxu1 %vm1656_vm14, %v13168_v44  ;;  %v3275_v44 = vshll.u32 %v16503_v15, 16  ;;  %v3211_v59 = vrot.slane %v3210_v23, 4  ;;  %v3268_v39 = vrot.slane %v3266_v5, 4  ;;  %v3271_v11 = vrot.slane %v3269_v20, 5  ;;  %v3013_v5 = vld [vmem:[#allocation2 + $0x9c] sm:$0xf] }
  0xec   : > { %v3279_v22 = vshrl.u32 %v16503_v15, 16  ;;  %v3225_v0 = vrot.slane %v3224_v7, 4  ;;  %v3235_v16 = vrot.slane %v3234_v18, 4  ;;  %v3239_v52 = vrot.slane %v3237_v8, 5  ;;  %v16542_v8 = vld [vmem:[#allocation2 + $0x94] sm:$0xf] }
  0xed   : > { %v3249_v43 = vrot.slane %v3248_v48, 4  ;;  %v3259_v6 = vrot.slane %v3258_v9, 4  ;;  %v3263_v19 = vrot.slane %v3261_v42, 5  ;;  %v16531_v34 = vrot.slane %v3275_v44, 5  ;;  %v16564_v44 = vld [vmem:[#allocation2 + $0x98] sm:$0x1] }
  0xee   : > { %14487 = vmatmul.mubr.msk.bf16.gmra.mxu0 %vm1656_vm14, %v16450_v55  ;;  %v3281_v55 = vrot.slane %v3279_v22, 4  ;;  %v22451_v23 = vcombine.low %v16126_v24, %v16133_v30  ;;  %v3272_v7 = vor.u32 %v3271_v11, %v3268_v39  ;;  %v3290_v18 = vshrl.u32 %v3010_v33, 16 }
  0xef   : > { %14490 = vmatprep.mubr.msk.bf16.mxu0 %vm1656_vm14, %v16456_v63  ;;  %v13274_v63 = vcombine.low %v3158_v13, %v3168_v61  ;;  %v13275_v48 = vcombine.low %v3182_v41, %v3192_v31  ;;  %v3206_v45 = vsel %vm15671_vm15, %v3201_v1, %v16481_v36  ;;  %v3216_v24 = vsel %vm15671_vm15, %v3211_v59, %v3215_v27  ;;  %v16559_v41 = vld [vmem:[#allocation2 + $0xa0] sm:$0xf]  ;;  %v15065_v36 = vld [vmem:[#allocation2 + $0x18] sm:$0xff]   ;;  %v15066_v31 = vld [vmem:[#allocation2 + $0x24] sm:$0xff]  }
  0xf0   : > { %v3293_v30 = vshll.u32 %v3010_v33, 16  ;;  %v3230_v38 = vsel %vm15671_vm15, %v3225_v0, %v16486_v21  ;;  %v3240_v60 = vsel %vm15671_vm15, %v3235_v16, %v3239_v52  ;;  %v3254_v13 = vsel %vm15671_vm15, %v3249_v43, %v16511_v62  ;;  %22452 = vst [vmem:[#allocation8_spill] sm:$0xff] %v16559_v41  ;;  %v3016_v59 = vld [vmem:[#allocation2 + $0xa8] sm:$0xf]  ;;  %v16572_v0 = vld [vmem:[#allocation2 + $0xac] sm:$0xf] }
  0xf1   : > { %v3285_v61 = vshll.u32 %v16529_v51, 16  ;;  %v3264_v42 = vsel %vm15671_vm15, %v3259_v6, %v3263_v19  ;;  %v3282_v20 = vor.u32 %v3281_v55, %v16531_v34  ;;  %v3299_v21 = vshll.u32 %v16542_v8, 16  ;;  %22453 = vst [vmem:[#allocation9_spill] sm:$0xff] %v16572_v0 }
  0xf2   : > { %14409 = vmatmul.mubr.msk.bf16.gmra.mxu1 %vm1656_vm14, %v22451_v23  ;;  %v3978_v62 = vsel %vm1705_vm0, %v16209_v54, 0  ;;  %v13276_v1 = vcombine.low %v3206_v45, %v3216_v24  ;;  %v3273_v27 = vrot.slane %v3272_v7, 4  ;;  %v3292_v9 = vrot.slane %v3290_v18, 4  ;;  %v3019_v24 = vld [vmem:[#allocation2 + $0xb4] sm:$0xf] }
  0xf3   : > { %14448 = vmatprep.mubr.msk.bf16.mxu1 %vm1656_vm14, %v15064_v32  ;;  %v3303_v32 = vshrl.u32 %v16542_v8, 16  ;;  %v3295_v39 = vrot.slane %v3293_v30, 5  ;;  %v3314_v11 = vshrl.u32 %v3013_v5, 16  ;;  %v3317_v22 = vshll.u32 %v3013_v5, 16  ;;  %v16596_v5 = vld [vmem:[#allocation2 + $0xa4] sm:$0x1] }
  0xf4   : > { %v3323_v33 = vshll.u32 %v16559_v41, 16  ;;  %v13277_v16 = vcombine.low %v3230_v38, %v3240_v60  ;;  %v16575_v52 = vcombine.low %v3254_v13, %v3264_v42  ;;  %v3287_v54 = vrot.slane %v3285_v61, 5  ;;  %v16594_v61 = vld [vmem:[#allocation2 + $0xb8] sm:$0xf]  ;;  %22456 = vst [vmem:[#allocation12_spill] sm:$0xff] %v16596_v5 }
  0xf5   : > { %v3327_v43 = vshrl.u32 %v16559_v41, 16  ;;  %v3283_v6 = vrot.slane %v3282_v20, 4  ;;  %v16578_v19 = vrot.slane %v3299_v21, 5  ;;  %v3305_v55 = vrot.slane %v3303_v32, 4  ;;  %22455 = vst [vmem:[#allocation11_spill] sm:$0xff] %v16594_v61  ;;  %v15067_v21 = vld [vmem:[#allocation2 + $0x30] sm:$0xff]  }
  0xf6   : > { %14491 = vmatmul.mubr.msk.bf16.gmra.mxu0 %vm1656_vm14, %v13274_v63  ;;  %v3338_v23 = vshrl.u32 %v3016_v59, 16  ;;  %v16583_v63 = vld [vmem:[%s22370_s2 + $0xe] sm:$0x3]  ;;  %v3278_v7 = vsel %vm15671_vm15, %v3273_v27, %v16531_v34  ;;  %v3309_v18 = vshll.u32 %v16564_v44, 16  ;;  %v3347_v45 = vshll.u32 %v16572_v0, 16 }
  0xf7   : > { %14494 = vmatprep.mubr.msk.bf16.mxu0 %vm1656_vm14, %v13275_v48  ;;  %22454 = vst [vmem:[#allocation10_spill] sm:$0xff] %v16583_v63  ;;  %v3341_v48 = vshll.u32 %v3016_v59, 16  ;;  %v3296_v30 = vor.u32 %v3295_v39, %v3292_v9  ;;  %v3316_v38 = vrot.slane %v3314_v11, 4  ;;  %v3319_v60 = vrot.slane %v3317_v22, 5  ;;  %v15068_v59 = vld [vmem:[#allocation2 + $0x3c] sm:$0xff]  }
  0xf8   : > { %v16592_v13 = vrot.slane %v3323_v33, 5  ;;  %v3340_v34 = vrot.slane %v3338_v23, 4  ;;  %v3351_v20 = vshrl.u32 %v16572_v0, 16  ;;  %v3288_v32 = vsel %vm15671_vm15, %v3283_v6, %v3287_v54  ;;  %v514_v0 = vld [vmem:[%s15630_s24 + $0xf8] sm:$0xff] }
  0xf9   : > { %v3343_v42 = vrot.slane %v3341_v48, 5  ;;  %v3362_v27 = vshrl.u32 %v3019_v24, 16  ;;  %v3365_v9 = vshll.u32 %v3019_v24, 16  ;;  %v3306_v39 = vor.u32 %v3305_v55, %v16578_v19  ;;  %v631_v24 = vld [vmem:[#allocation2 + $0xc8] sm:$0x1] }
  0xfa   : > { %14449 = vmatmul.mubr.msk.bf16.vlgmr.msra.gmra.mxu1 %vm1656_vm14, %v15065_v36  ;;  %v3329_v36 = vrot.slane %v3327_v43, 4  ;;  %v16608_v11 = vrot.slane %v3309_v18, 5  ;;  %v3353_v22 = vrot.slane %v3351_v20, 4  ;;  %v3371_v33 = vshll.u32 %v16594_v61, 16  ;;  %v575_v43 = vld [vmem:[#allocation2 + $0xc0] sm:$0x1] }
  0xfb   : > { %14515 = vmatpush3.bf16.msra.mxu1 %v3978_v62  ;;  %14452 = vmatprep.mubr.msk.bf16.mxu1 %vm1656_vm14, %v15066_v31  ;;  %v16603_v62 = vld [vmem:[#allocation2 + $0xb0] sm:$0x1]  ;;  %v16605_v31 = vrot.slane %v3347_v45, 5  ;;  %v16612_v54 = vrot.slane %v3296_v30, 4  ;;  %v3320_v6 = vor.u32 %v3319_v60, %v3316_v38  ;;  %v3333_v23 = vshll.u32 %v16596_v5, 16  ;;  %v15069_v5 = vld [vmem:[#allocation2 + $0x48] sm:$0xff]  }
  0xfc   : > { %15040 = vmatprep.subr.msk.bf16.mxu1 %vm1705_vm0, %v16583_v63  ;;  %22457 = vst [vmem:[#allocation13_spill] sm:$0xff] %v16603_v62  ;;  %v3375_v48 = vshrl.u32 %v16594_v61, 16  ;;  %v513_v45 = vld [vmem:[%s15630_s24 + $0xf0] sm:$0xff]  ;;  %v13279_v55 = vcombine.low %v3278_v7, %v3288_v32  ;;  %v3330_v18 = vor.u32 %v3329_v36, %v16592_v13  ;;  %v3344_v20 = vor.u32 %v3343_v42, %v3340_v34  ;;  %v16625_v60 = vld [vmem:[#allocation2 + $0xbc] sm:$0x1] }
  0xfd   : > { %v3357_v63 = vshll.u32 %v16603_v62, 16  ;;  %v3364_v30 = vrot.slane %v3362_v27, 4  ;;  %v3367_v41 = vrot.slane %v3365_v9, 5  ;;  %v576_v38 = vsel %vm15581_vm5, 0, %v575_v43 }
  0xfe   : > { %14495 = vmatmul.mubr.msk.bf16.gmra.mxu0 %vm1656_vm14, %v13276_v1  ;;  %v3354_v1 = vor.u32 %v3353_v22, %v16605_v31  ;;  %v16627_v61 = vrot.slane %v3371_v33, 5  ;;  %577 = vst [vmem:[#allocation2 + $0xc0] sm:$0x1] %v576_v38  ;;  %v632_v7 = vsel %vm15587_vm8, 0, %v631_v24  ;;  %v13971_v36 = vpack.c.bf16 %v513_v45, %v513_v45 }
  0xff   : > { %14498 = vmatprep.mubr.msk.bf16.mxu0 %vm1656_vm14, %v13277_v16  ;;  %v3377_v16 = vrot.slane %v3375_v48, 4  ;;  %v3307_v34 = vrot.slane %v3306_v39, 4  ;;  %v3321_v42 = vrot.slane %v3320_v6, 4  ;;  %v3335_v32 = vrot.slane %v3333_v23, 5  ;;  %633 = vst [vmem:[#allocation2 + $0xc8] sm:$0x1] %v632_v7 }
 0x100   : > { %v13972_v27 = vpack.c.bf16 %v514_v0, %v514_v0  ;;  %v3331_v9 = vrot.slane %v3330_v18, 4  ;;  %v3359_v22 = vrot.slane %v3357_v63, 5  ;;  %v994_v43 = vshll.u32 %v13971_v36, 16  ;;  %v15070_v39 = vld [vmem:[#allocation2 + $0x54] sm:$0xff]  }
 0x101   : > { %v3345_v62 = vrot.slane %v3344_v20, 4  ;;  %v3368_v33 = vor.u32 %v3367_v41, %v3364_v30  ;;  %v3381_v48 = vshll.u32 %v16625_v60, 16  ;;  %v3355_v4 = vrot.slane %v3354_v1, 4  ;;  %v16652_v30 = vld [vmem:[#allocation2 + $0xc] sm:$0xe] }
 0x102   : > { %14453 = vmatmul.mubr.msk.bf16.gmra.mxu1 %vm1656_vm14, %v15067_v21  ;;  %v991_v21 = vshrl.u32 %v13971_v36, 16  ;;  %v999_v38 = vshrl.u32 %v13972_v27, 16  ;;  %v3378_v45 = vor.u32 %v3377_v16, %v16627_v61  ;;  %v3302_v0 = vsel %vm15671_vm15, %v16612_v54, %v16578_v19 }
 0x103   : > { %14456 = vmatprep.mubr.msk.bf16.mxu1 %vm1656_vm14, %v15068_v59  ;;  %v1002_v59 = vshll.u32 %v13972_v27, 16  ;;  %v3312_v41 = vsel %vm15671_vm15, %v3307_v34, %v16608_v11  ;;  %v3326_v6 = vsel %vm15671_vm15, %v3321_v42, %v16592_v13  ;;  %v3336_v23 = vsel %vm15671_vm15, %v3331_v9, %v3335_v32  ;;  %v3706_v34 = vld [vmem:[#allocation2 + $0x30] sm:$0xe]  ;;  %v3707_v42 = vld [vmem:[#allocation2 + $0x3c] sm:$0xe] }
 0x104   : > { %v993_v24 = vrot.slane %v991_v21, 7  ;;  %v1001_v63 = vrot.slane %v999_v38, 7  ;;  %v3350_v19 = vsel %vm15671_vm15, %v3345_v62, %v16605_v31  ;;  %v3369_v54 = vrot.slane %v3368_v33, 4  ;;  %v15071_v21 = vld [vmem:[#allocation2 + $0x60] sm:$0xff]  }
 0x105   : > { %v1163_v11 = vld [vmem:[#allocation2 + $0xc0] sm:$0xf]  ;;  %v3360_v13 = vsel %vm15671_vm15, %v3355_v4, %v3359_v22  ;;  %v3383_v16 = vrot.slane %v3381_v48, 5  ;;  %v13280_v62 = vcombine.low %v3302_v0, %v3312_v41  ;;  %v13281_v32 = vcombine.low %v3326_v6, %v3336_v23  ;;  %v3708_v22 = vld [vmem:[#allocation2 + $0x48] sm:$0xe] }
 0x106   : > { %14499 = vmatmul.mubr.msk.bf16.gmra.mxu0 %vm1656_vm14, %v16575_v52  ;;  %v996_v52 = vor.u32 %v994_v43, %v993_v24  ;;  %v997_v18 = vrot.slane %v993_v24, 4  ;;  %v1004_v20 = vor.u32 %v1002_v59, %v1001_v63  ;;  %v1006_v1 = vrot.slane %v1001_v63, 4  ;;  %v1167_v36 = vld [vmem:[#allocation2 + $0xc8] sm:$0x1]  ;;  %v3709_v0 = vld [vmem:[#allocation2 + $0x54] sm:$0xe] }
 0x107   : > { %14502 = vmatprep.mubr.msk.bf16.mxu0 %vm1656_vm14, %v13279_v55  ;;  %v3379_v55 = vrot.slane %v3378_v45, 4  ;;  %v13282_v4 = vcombine.low %v3350_v19, %v3360_v13  ;;  %v13301_v50 = vrot.slane %v16652_v30, 9  ;;  %v13304_v27 = vrot.slane %v3706_v34, 9  ;;  %v15072_v45 = vld [vmem:[#allocation2 + $0x6c] sm:$0xff]  }
 0x108   : > { %v1164_v7 = vsel %vm15652_vm12, %v996_v52, %v1163_v11  ;;  %v1005_v31 = vsel %vm15662_vm13, %v997_v18, %v1004_v20  ;;  %v3790_v9 = vrot.slane %v16327_v17, 5  ;;  %v3374_v43 = vsel %vm15671_vm15, %v3369_v54, %v16627_v61 }
 0x109   : > { %1165 = vst [vmem:[#allocation2 + $0xc0] sm:$0xf] %v1164_v7  ;;  %1166 = vst.msk [vmem:[#allocation2 + $0xc4] sm:$0xf] %vm515_vm1, %v1005_v31  ;;  %v3384_v33 = vsel %vm15671_vm15, %v3379_v55, %v3383_v16  ;;  %v3793_v48 = vrot.slane %v16364_v47, 5  ;;  %v13305_v38 = vrot.slane %v3707_v42, 9 }
 0x10a   : > { %14457 = vmatmul.mubr.msk.bf16.gmra.mxu1 %vm1656_vm14, %v15069_v5  ;;  %v1168_v5 = vsel %vm15581_vm5, %v1006_v1, %v1167_v36  ;;  %v16676_v24 = vsel %vm16076_vm10, %v13304_v27, %v3790_v9  ;;  %v3792_v17 = vrot.slane %v3790_v9, 4  ;;  %v3797_v59 = vrot.slane %v16354_v10, 5  ;;  %v3710_v55 = vld [vmem:[#allocation2 + $0x60] sm:$0xe]  ;;  %v15073_v27 = vld [vmem:[#allocation2 + $0x78] sm:$0xff]   ;;  %vm17729_vm1 = vmand %vm6652_vm7, %vm525_vm3 }
 0x10b   : > { %14460 = vmatprep.mubr.msk.bf16.mxu1 %vm1656_vm14, %v15070_v39  ;;  %1169 = vst [vmem:[#allocation2 + $0xc8] sm:$0x1] %v1168_v5  ;;  %v3800_v39 = vrot.slane %v16374_v2, 5  ;;  %v3769_v61 = vrot.slane %v16265_v35, 5  ;;  %v16684_v47 = vsel %vm1705_vm0, %v16478_v26, 0  ;;  %v13306_v41 = vrot.slane %v3708_v22, 9 }
 0x10c   : > { %v3804_v63 = vrot.slane %v16377_v46, 5  ;;  %v16689_v6 = vsel %vm16076_vm10, %v3792_v17, %v3793_v48  ;;  %v16693_v10 = vsel %vm16076_vm10, %v13305_v38, %v3797_v59  ;;  %v3799_v2 = vrot.slane %v3797_v59, 4  ;;  %v4541_v26 = vld [vmem:[#allocation2 + $0x3c] sm:$0xf] }
 0x10d   : > { %v3807_v23 = vrot.slane %v16411_v29, 5  ;;  %v13283_v52 = vcombine.low %v3374_v43, %v3384_v33  ;;  %v13307_v46 = vrot.slane %v3709_v0, 9  ;;  %v15074_v33 = vld [vmem:[#allocation2 + $0x84] sm:$0xff]   ;;  %v3814_v17 = vrot.slane %v16424_v28, 5  ;;  %v4539_v43 = vld [vmem:[#allocation2 + $0x34] sm:$0xf] }
 0x10e   : > { %14503 = vmatmul.mubr.msk.bf16.gmra.mxu0 %vm1656_vm14, %v13280_v62  ;;  %v3806_v19 = vrot.slane %v3804_v63, 4  ;;  %v16706_v29 = vsel %vm16076_vm10, %v3799_v2, %v3800_v39  ;;  %v16710_v13 = vsel %vm16076_vm10, %v13306_v41, %v3804_v63  ;;  %v3711_v62 = vld [vmem:[#allocation2 + $0x6c] sm:$0xe]  ;;  %v13308_v59 = vrot.slane %v3710_v55, 9  ;;  %v15080_v55 = vld [vmem:[#allocation2 + $0x18] sm:$0xff]  }
 0x10f   : > { %14506 = vmatprep.mubr.msk.bf16.mxu0 %vm1656_vm14, %v13281_v32  ;;  %v3811_v32 = vrot.slane %v16405_v40, 5  ;;  %v3818_v39 = vrot.slane %v16436_v49, 5  ;;  %v3821_v0 = vrot.slane %v16464_v58, 5  ;;  %v13309_v63 = vrot.slane %v3711_v62, 9  ;;  %v3714_v62 = vld [vmem:[#allocation2 + $0x90] sm:$0xe] }
 0x110   : > { %v3022_v18 = vld [vmem:[#allocation2 + $0xc0] sm:$0xf]  ;;  %v16700_v54 = vld [vmem:[#allocation2 + $0xc4] sm:$0xf]  ;;  %v16719_v42 = vsel %vm16076_vm10, %v3806_v19, %v3807_v23  ;;  %v3825_v2 = vrot.slane %v16447_v25, 5  ;;  %vm15483_vm3 = vmmov 0  }
 0x111   : > { %v3386_v1 = vshrl.u32 %v3022_v18, 16  ;;  %v3389_v11 = vshll.u32 %v3022_v18, 16  ;;  %v3395_v16 = vshll.u32 %v16700_v54, 16  ;;  %v3399_v7 = vshrl.u32 %v16700_v54, 16  ;;  %v3712_v23 = vld [vmem:[#allocation2 + $0x78] sm:$0xe] }
 0x112   : > { %14461 = vmatmul.mubr.msk.bf16.gmra.mxu1 %vm1656_vm14, %v15071_v21  ;;  %v16702_v20 = vld [vmem:[#allocation2 + $0xc8] sm:$0x1]  ;;  %v16727_v38 = vsel %vm16076_vm10, %v13307_v46, %v3811_v32  ;;  %v16743_v49 = vsel %vm16076_vm10, %v13308_v59, %v3818_v39  ;;  %v3820_v58 = vrot.slane %v3818_v39, 4  ;;  %v16750_v25 = vsel %vm16076_vm10, %v13309_v63, %v3825_v2 }
 0x113   : > { %14464 = vmatprep.mubr.msk.bf16.mxu1 %vm1656_vm14, %v15072_v45  ;;  %v3405_v36 = vshll.u32 %v16702_v20, 16  ;;  %v3388_v31 = vrot.slane %v3386_v1, 4  ;;  %v3391_v5 = vrot.slane %v3389_v11, 5  ;;  %v3397_v9 = vrot.slane %v3395_v16, 5  ;;  %v3713_v1 = vld [vmem:[#allocation2 + $0x84] sm:$0xe] }
 0x114   : > { %v3401_v22 = vrot.slane %v3399_v7, 4  ;;  %v3813_v45 = vrot.slane %v3811_v32, 4  ;;  %v3827_v19 = vrot.slane %v3825_v2, 4  ;;  %v3828_v46 = vrot.slane %v16483_v57, 5  ;;  %v3716_v2 = vld [vmem:[#allocation2 + $0xa8] sm:$0xe] }
 0x115   : > { %v3407_v21 = vrot.slane %v3405_v36, 5  ;;  %v3392_v48 = vor.u32 %v3391_v5, %v3388_v31  ;;  %v16757_v16 = vsel %vm16076_vm10, %v3820_v58, %v3821_v0  ;;  %v13310_v7 = vrot.slane %v3712_v23, 9 }
 0x116   : > { %14507 = vmatmul.mubr.msk.bf16.gmra.mxu0 %vm1656_vm14, %v13282_v4  ;;  %v3402_v40 = vor.u32 %v3401_v22, %v3397_v9  ;;  %v16735_v4 = vsel %vm16076_vm10, %v3813_v45, %v3814_v17  ;;  %v3832_v36 = vrot.slane %v16469_v53, 5  ;;  %v16764_v57 = vsel %vm16076_vm10, %v3827_v19, %v3828_v46  ;;  %v22459_v19 = vld [vmem:[#allocation12_spill] sm:$0xff] }
 0x117   : > { %14510 = vmatprep.mubr.msk.bf16.mxu0 %vm1656_vm14, %v13283_v52  ;;  %v3393_v41 = vrot.slane %v3392_v48, 4  ;;  %v3835_v32 = vrot.slane %v16488_v37, 5  ;;  %v15076_v48 = vld [vmem:[#allocation2 + $0x9c] sm:$0xff]   ;;  %v3839_v45 = vrot.slane %v16503_v15, 5  ;;  %v3842_v17 = vrot.slane %v16529_v51, 5 }
 0x118   : > { %v3403_v28 = vrot.slane %v3402_v40, 4  ;;  %v3834_v53 = vrot.slane %v3832_v36, 4  ;;  %v13312_v40 = vrot.slane %v3714_v62, 9  ;;  %v3846_v37 = vrot.slane %v16542_v8, 5 }
 0x119   : > { %v3398_v18 = vsel %vm15671_vm15, %v3393_v41, %v3397_v9  ;;  %v15075_v9 = vld [vmem:[#allocation2 + $0x90] sm:$0xff]   ;;  %v3849_v39 = vrot.slane %v16564_v44, 5  ;;  %v3841_v8 = vrot.slane %v3839_v45, 4  ;;  %v3856_v46 = vrot.slane %v22459_v19, 5 }
 0x11a   : > { %14465 = vmatmul.mubr.msk.bf16.gmra.mxu1 %vm1656_vm14, %v15073_v27  ;;  %v3408_v11 = vsel %vm15671_vm15, %v3403_v28, %v3407_v21  ;;  %v3715_v27 = vld [vmem:[#allocation2 + $0x9c] sm:$0xe]  ;;  %v16771_v21 = vsel %vm16076_vm10, %v13310_v7, %v3832_v36  ;;  %v16780_v59 = vsel %vm16076_vm10, %v3834_v53, %v3835_v32  ;;  %v22458_v41 = vld [vmem:[#allocation8_spill] sm:$0xff]  ;;  %v16792_v23 = vsel %vm16076_vm10, %v13312_v40, %v3846_v37 }
 0x11b   : > { %14468 = vmatprep.mubr.msk.bf16.mxu1 %vm1656_vm14, %v15074_v33  ;;  %v13284_v31 = vcombine.low %v3398_v18, %v3408_v11  ;;  %v13311_v33 = vrot.slane %v3713_v1, 9  ;;  %v13313_v0 = vrot.slane %v3715_v27, 9  ;;  %v3853_v63 = vrot.slane %v22458_v41, 5  ;;  %v3717_v28 = vld [vmem:[#allocation2 + $0xb4] sm:$0xe]  ;;  %v15081_v11 = vld [vmem:[#allocation2 + $0x24] sm:$0xff]  }
 0x11c   : > { %v3848_v44 = vrot.slane %v3846_v37, 4  ;;  %v578_v1 = vld [vmem:[#allocation2 + $0xcc] sm:$0x1]  ;;  %v13314_v7 = vrot.slane %v3716_v2, 9  ;;  %v22460_v36 = vld [vmem:[#allocation9_spill] sm:$0xff]  ;;  %v3870_v2 = vrot.slane %v16625_v60, 5 }
 0x11d   : > { %v16788_v51 = vsel %vm16076_vm10, %v13311_v33, %v3839_v45  ;;  %v16797_v58 = vsel %vm16076_vm10, %v13313_v0, %v3853_v63  ;;  %v3855_v18 = vrot.slane %v3853_v63, 4  ;;  %v3860_v62 = vrot.slane %v22460_v36, 5  ;;  %v3718_v27 = vld [vmem:[#allocation2 + $0xc0] sm:$0xe]  ;;  %v15077_v41 = vld [vmem:[#allocation2 + $0xa8] sm:$0xff]  }
 0x11e   : > { %14511 = vmatmul.mubr.msk.bf16.gmra.mxu0 %vm1656_vm14, %v13284_v31  ;;  %v22461_v31 = vld [vmem:[#allocation13_spill] sm:$0xff]  ;;  %v16811_v33 = vsel %vm16076_vm10, %v3848_v44, %v3849_v39  ;;  %v13315_v45 = vrot.slane %v3717_v28, 9  ;;  %v22462_v63 = vld [vmem:[#allocation11_spill] sm:$0xff]  ;;  %v13316_v28 = vrot.slane %v3718_v27, 9  ;;  %v3877_v36 = vrot.slane %v16702_v20, 5 }
 0x11f   : > { %14550 = vmatprep.mubr.msk.bf16.mxu0 %vm1656_vm14, %v15080_v55  ;;  %v16803_v55 = vsel %vm16076_vm10, %v3841_v8, %v3842_v17  ;;  %v3863_v32 = vrot.slane %v22461_v31, 5  ;;  %v16823_v37 = vsel %vm16076_vm10, %v13314_v7, %v3860_v62  ;;  %v3862_v0 = vrot.slane %v3860_v62, 4  ;;  %v15078_v44 = vld [vmem:[#allocation2 + $0xb4] sm:$0xff]   ;;  %v15431_v62 = vld [vmem:[#allocation2 + $0x1c] sm:$0xf] }
 0x120   : > { %v3867_v39 = vrot.slane %v22462_v63, 5  ;;  %v579_v8 = vsel %vm15581_vm5, 0, %v578_v1  ;;  %v3874_v7 = vrot.slane %v16700_v54, 5  ;;  %v3771_v60 = vrot.slane %v3769_v61, 4  ;;  %v15432_v63 = vld [vmem:[#allocation2 + $0x28] sm:$0xf]  ;;  %vm17735_vm5 = vmand %vm6652_vm7, %vm581_vm4 }
 0x121   : > { %580 = vst [vmem:[#allocation2 + $0xcc] sm:$0x1] %v579_v8  ;;  %v3776_v31 = vrot.slane %v15431_v62, 5  ;;  %v22464_v8 = vld [vmem:[#allocation10_spill] sm:$0xff]  ;;  %v4536_v27 = vld [vmem:[#allocation2 + $0x28] sm:$0xf] }
 0x122   : > { %14469 = vmatmul.mubr.msk.bf16.gmra.mxu1 %vm1656_vm14, %v15075_v9  ;;  %v15082_v9 = vld [vmem:[#allocation2 + $0x30] sm:$0xff]   ;;  %v16844_v1 = vsel %vm16076_vm10, %v13315_v45, %v3867_v39  ;;  %v16848_v54 = vsel %vm16076_vm10, %v13316_v28, %v3874_v7  ;;  %v3876_v20 = vrot.slane %v3874_v7, 4  ;;  %v3770_v45 = vsel %vm16076_vm10, %v13301_v50, %v3769_v61  ;;  %v3705_v28 = vld [vmem:[#allocation2 + $0x24] sm:$0xe]  ;;  %v16873_v50 = vpop.f32.mrf.mxu0 }
 0x123   : > { %14472 = vmatprep.mubr.msk.bf16.mxu1 %vm1656_vm14, %v15076_v48  ;;  %v16815_v48 = vsel %vm16076_vm10, %v3855_v18, %v3856_v46  ;;  %v15430_v18 = vld [vmem:[#allocation2 + $0x14] sm:$0x1]  ;;  %v16832_v46 = vsel %vm16076_vm10, %v3862_v0, %v3863_v32  ;;  %v15083_v32 = vld [vmem:[#allocation2 + $0x3c] sm:$0xff]   ;;  %v3778_v35 = vrot.slane %v3776_v31, 4  ;;  %v13303_v61 = vrot.slane %v3705_v28, 9 }
 0x124   : > { %v3772_v19 = vrot.slane %v15430_v18, 5  ;;  %v4533_v28 = vld [vmem:[#allocation2 + $0x1c] sm:$0xf]  ;;  %v5259_v17 = vld [vmem:[#allocation2 + $0x24] sm:$0xe]  ;;  %v4614_v53 = vshll.u32 %v4536_v27, 16 }
 0x125   : > { %v5331_v22 = vrot.slane %v4536_v27, 5  ;;  %vm5767_vm7 = vcmask 64512  }
 0x126   : > { %14551 = vmatmul.mubr.msk.bf16.vlgmr.msra.gmra.mxu0 %vm1656_vm14, %v15081_v11  ;;  %v3869_v11 = vrot.slane %v3867_v39, 4  ;;  %v3773_v0 = vsel %vm16076_vm10, %v3771_v60, %v3772_v19  ;;  %v3783_v39 = vrot.slane %v15432_v63, 5  ;;  %v15434_v60 = vld [vmem:[#allocation2 + $0x2c] sm:$0x1]  ;;  %v15086_v63 = vld [vmem:[#allocation2 + $0x60] sm:$0xff]  }
 0x127   : > { %14617 = vmatpush3.bf16.msra.mxu0 %v16684_v47  ;;  %14554 = vmatprep.mubr.msk.bf16.mxu0 %vm1656_vm14, %v15082_v9  ;;  %v16860_v9 = vsel %vm16076_vm10, %v3876_v20, %v3877_v36  ;;  %v13318_v18 = vcombine.low %v3770_v45, %v3773_v0  ;;  %v15433_v36 = vld [vmem:[#allocation2 + $0x20] sm:$0x1]  ;;  %v15085_v45 = vld [vmem:[#allocation2 + $0x54] sm:$0xff]  }
 0x128   : > { %v16853_v47 = vsel %vm16076_vm10, %v3869_v11, %v3870_v2  ;;  %v15084_v2 = vld [vmem:[#allocation2 + $0x48] sm:$0xff]   ;;  %v3779_v30 = vrot.slane %v15433_v36, 5  ;;  %v3785_v19 = vrot.slane %v3783_v39, 4  ;;  %v3786_v11 = vrot.slane %v15434_v60, 5 }
 0x129   : > { %v3784_v0 = vsel %vm16076_vm10, %v13303_v61, %v3783_v39  ;;  %v5063_v39 = vsel %vm1705_vm0, %v22464_v8, 0  ;;  %v4535_v61 = vld [vmem:[#allocation2 + $0x24] sm:$0xf] }
 0x12a   : > { %14473 = vmatmul.mubr.msk.bf16.gmra.mxu1 %vm1656_vm14, %v15077_v41  ;;  %v3704_v41 = vld [vmem:[#allocation2 + $0x18] sm:$0xe]  ;;  %v3780_v62 = vsel %vm16076_vm10, %v3778_v35, %v3779_v30  ;;  %v4605_v8 = vshrl.u32 %v4535_v61, 16  ;;  %v4608_v40 = vshll.u32 %v4535_v61, 16 }
 0x12b   : > { %14476 = vmatprep.mubr.msk.bf16.mxu1 %vm1656_vm14, %v15078_v44  ;;  %v15079_v44 = vld [vmem:[#allocation2 + $0xc0] sm:$0xff]   ;;  %v13302_v7 = vrot.slane %v3704_v41, 9  ;;  %v3787_v41 = vsel %vm16076_vm10, %v3785_v19, %v3786_v11  ;;  %v5258_v35 = vld [vmem:[#allocation2 + $0x18] sm:$0xe]  ;;  %v4590_v19 = vshll.u32 %v4533_v28, 16  ;;  %v4594_v11 = vshrl.u32 %v4533_v28, 16 }
 0x12c   : > { %v13320_v36 = vcombine.low %v3784_v0, %v3787_v41  ;;  %v15087_v0 = vld [vmem:[#allocation2 + $0x6c] sm:$0xff]   ;;  %v4607_v52 = vrot.slane %v4605_v8, 4  ;;  %v4642_v8 = vshrl.u32 %v4539_v43, 16 }
 0x12d   : > { %v3777_v20 = vsel %vm16076_vm10, %v13302_v7, %v3776_v31  ;;  %v4534_v7 = vld [vmem:[#allocation2 + $0x20] sm:$0x1]  ;;  %v16898_v15 = vrot.slane %v4590_v19, 5  ;;  %v13417_v19 = vrot.slane %v5259_v17, 9  ;;  %v15089_v17 = vld [vmem:[#allocation2 + $0x84] sm:$0xff]  }
 0x12e   : > { %14555 = vmatmul.mubr.msk.bf16.gmra.mxu0 %vm1656_vm14, %v15083_v32  ;;  %v16882_v32 = vpop.f32.mrf.mxu0 }
 0x12f   : > { %14558 = vmatprep.mubr.msk.bf16.mxu0 %vm1656_vm14, %v15084_v2  ;;  %v4532_v2 = vld [vmem:[#allocation2 + $0x18] sm:$0xf] }
 0x130   : > { %v16889_v31 = vpop.f32.mrf.mxu0  ;;  %v4581_v30 = vshrl.u32 %v4532_v2, 16  ;;  %v4584_v60 = vshll.u32 %v4532_v2, 16 }
 0x131   : > { %22463 = vst [vmem:[#allocation8_spill] sm:$0xff] %v16889_v31 }
 0x132   : > { %14477 = vmatmul.mubr.msk.bf16.gmra.mxu1 %vm1656_vm14, %v15079_v44  ;;  %v13319_v44 = vcombine.low %v3777_v20, %v3780_v62  ;;  %v13416_v20 = vrot.slane %v5258_v35, 9  ;;  %v16896_v41 = vpop.f32.mrf.mxu0  ;;  %v4583_v2 = vrot.slane %v4581_v30, 4  ;;  %v4586_v3 = vrot.slane %v4584_v60, 5  ;;  %v4537_v35 = vld [vmem:[#allocation2 + $0x2c] sm:$0x1] }
 0x133   : > { %14516 = vmatprep.mubr.msk.bf16.mxu1 %vm1656_vm14, %v13318_v18  ;;  %v5324_v18 = vrot.slane %v4533_v28, 5  ;;  %22465 = vst [vmem:[#allocation12_spill] sm:$0xff] %v16896_v41  ;;  %v4618_v28 = vshrl.u32 %v4536_v27, 16  ;;  %v4600_v30 = vshll.u32 %v4534_v7, 16  ;;  %v4538_v60 = vld [vmem:[#allocation2 + $0x30] sm:$0xf] }
 0x134   : > { %v16909_v61 = vpop.f32.mrf.mxu0  ;;  %v4587_v5 = vor.u32 %v4586_v3, %v4583_v2  ;;  %v5334_v27 = vrot.slane %v4537_v35, 5  ;;  %v4632_v34 = vshll.u32 %v4538_v60, 16  ;;  %v4638_v2 = vshll.u32 %v4539_v43, 16  ;;  %v15090_v3 = vld [vmem:[#allocation2 + $0x90] sm:$0xff]  }
 0x135   : > { %v5326_v62 = vrot.slane %v5324_v18, 4  ;;  %22466 = vst [vmem:[#allocation9_spill] sm:$0xff] %v16909_v61  ;;  %v16938_v61 = vld [vmem:[#allocation2 + $0x40] sm:$0xf]  ;;  %v4644_v41 = vrot.slane %v4642_v8, 4 }
 0x136   : > { %14559 = vmatmul.mubr.msk.bf16.gmra.mxu0 %vm1656_vm14, %v15085_v45  ;;  %v5327_v45 = vrot.slane %v4534_v7, 5  ;;  %v4629_v7 = vshrl.u32 %v4538_v60, 16  ;;  %v4540_v60 = vld [vmem:[#allocation2 + $0x38] sm:$0x1] }
 0x137   : > { %14562 = vmatprep.mubr.msk.bf16.mxu0 %vm1656_vm14, %v15086_v63  ;;  %v15088_v63 = vld [vmem:[#allocation2 + $0x78] sm:$0xff]  }
 0x13a   : > { %14517 = vmatmul.mubr.msk.bf16.vlgmr.msra.gmra.mxu1 %vm1656_vm14, %v13319_v44  ;;  %v4596_v44 = vrot.slane %v4594_v11, 4  ;;  %v4610_v11 = vrot.slane %v4608_v40, 5  ;;  %v16919_v40 = vpop.f32.mrf.mxu1 }
 0x13b   : > { %14583 = vmatpush3.bf16.msra.mxu1 %v5063_v39  ;;  %14520 = vmatprep.mubr.msk.bf16.mxu1 %vm1656_vm14, %v13320_v36  ;;  %v16902_v39 = vsel %vm16076_vm10, %v13416_v20, %v5324_v18  ;;  %v16906_v36 = vsel %vm16076_vm10, %v5326_v62, %v5327_v45  ;;  %v16912_v18 = vrot.slane %v4614_v53, 5  ;;  %v4620_v20 = vrot.slane %v4618_v28, 4  ;;  %22468 = vst [vmem:[#allocation13_spill] sm:$0xff] %v16919_v40  ;;  %v16929_v28 = vpop.f32.mrf.mxu0 }
 0x13c   : > { %v4597_v62 = vor.u32 %v4596_v44, %v16898_v15  ;;  %v5333_v45 = vrot.slane %v5331_v22, 4  ;;  %v16923_v53 = vrot.slane %v4600_v30, 5  ;;  %22470 = vst [vmem:[#allocation11_spill] sm:$0xff] %v16929_v28  ;;  %v4611_v44 = vor.u32 %v4610_v11, %v4607_v52 }
 0x13d   : > { %v5338_v30 = vrot.slane %v4539_v43, 5  ;;  %v4621_v56 = vor.u32 %v4620_v20, %v16912_v18  ;;  %v4624_v40 = vshll.u32 %v4537_v35, 16  ;;  %v4631_v28 = vrot.slane %v4629_v7, 4  ;;  %v16949_v35 = vpop.f32.mrf.mxu0 }
 0x13e   : > { %14563 = vmatmul.mubr.msk.bf16.gmra.mxu0 %vm1656_vm14, %v15087_v0  ;;  %v22467_v0 = vcombine.low %v16676_v24, %v16689_v6  ;;  %v16931_v24 = vrot.slane %v4587_v5, 4  ;;  %v16935_v6 = vsel %vm16076_vm10, %v13417_v19, %v5331_v22  ;;  %v16942_v5 = vsel %vm16076_vm10, %v5333_v45, %v5334_v27  ;;  %v16944_v19 = vpop.f32.mrf.mxu1  ;;  %22472 = vst [vmem:[#allocation14_spill] sm:$0xff] %v16949_v35 }
 0x13f   : > { %14566 = vmatprep.mubr.msk.bf16.mxu0 %vm1656_vm14, %v15088_v63  ;;  %v22469_v63 = vcombine.low %v16693_v10, %v16706_v29  ;;  %v4653_v10 = vshrl.u32 %v4541_v26, 16  ;;  %v4656_v29 = vshll.u32 %v4541_v26, 16  ;;  %v4634_v22 = vrot.slane %v4632_v34, 5  ;;  %22471 = vst [vmem:[#allocation10_spill] sm:$0xff] %v16944_v19  ;;  %v4544_v19 = vld [vmem:[#allocation2 + $0x48] sm:$0xf] }
 0x140   : > { %v5341_v11 = vrot.slane %v4540_v60, 5  ;;  %v16946_v43 = vrot.slane %v4638_v2, 5  ;;  %v4612_v20 = vrot.slane %v4611_v44, 4  ;;  %v5340_v26 = vrot.slane %v5338_v30, 4 }
 0x141   : > { %v4666_v27 = vshrl.u32 %v16938_v61, 16  ;;  %v4622_v34 = vrot.slane %v4621_v56, 4  ;;  %v4626_v45 = vrot.slane %v4624_v40, 5  ;;  %v4655_v7 = vrot.slane %v4653_v10, 4  ;;  %v16964_v56 = vpop.f32.mrf.mxu1  ;;  %v16979_v10 = vpop.f32.mrf.mxu0 }
 0x142   : > { %14521 = vmatmul.mubr.msk.bf16.gmra.mxu1 %vm1656_vm14, %v22467_v0  ;;  %v5260_v0 = vld [vmem:[#allocation2 + $0x30] sm:$0xe]  ;;  %v4593_v2 = vsel %vm15671_vm15, %v16931_v24, %v16898_v15  ;;  %v4635_v8 = vor.u32 %v4634_v22, %v4631_v28  ;;  %v4648_v44 = vshll.u32 %v4540_v60, 16  ;;  %v22473_v35 = vcombine.low %v16710_v13, %v16719_v42  ;;  %22474 = vst [vmem:[#allocation15_spill] sm:$0xff] %v16964_v56  ;;  %v4543_v28 = vld [vmem:[#allocation2 + $0x44] sm:$0x1] }
 0x143   : > { %14524 = vmatprep.mubr.msk.bf16.mxu1 %vm1656_vm14, %v22469_v63  ;;  %v4598_v63 = vrot.slane %v4597_v62, 4  ;;  %v13418_v52 = vrot.slane %v5260_v0, 9  ;;  %v4662_v62 = vshll.u32 %v16938_v61, 16  ;;  %v4658_v0 = vrot.slane %v4656_v29, 5  ;;  %v5261_v24 = vld [vmem:[#allocation2 + $0x3c] sm:$0xe] }
 0x144   : > { %v5345_v60 = vrot.slane %v16938_v61, 5  ;;  %v22475_v13 = vcombine.low %v16727_v38, %v16735_v4  ;;  %v15091_v42 = vld [vmem:[#allocation2 + $0x9c] sm:$0xff]   ;;  %22476 = vst [vmem:[#allocation16_spill] sm:$0xff] %v16979_v10  ;;  %v4668_v29 = vrot.slane %v4666_v27, 4  ;;  %v4545_v61 = vld [vmem:[#allocation2 + $0x4c] sm:$0xf]  ;;  %v4627_v38 = vsel %vm15671_vm15, %v4622_v34, %v4626_v45  ;;  %v17001_v34 = vpop.f32.mrf.mxu0 }
 0x145   : > { %v4603_v40 = vsel %vm15671_vm15, %v4598_v63, %v16923_v53  ;;  %v16971_v15 = vsel %vm16076_vm10, %v13418_v52, %v5338_v30  ;;  %v4617_v53 = vsel %vm15671_vm15, %v4612_v20, %v16912_v18  ;;  %v16986_v30 = vsel %vm16076_vm10, %v5340_v26, %v5341_v11  ;;  %v15092_v63 = vld [vmem:[#allocation2 + $0xa8] sm:$0xff]   ;;  %v16996_v11 = vpop.f32.mrf.mxu1  ;;  %v15093_v10 = vld [vmem:[#allocation2 + $0xb4] sm:$0xff]  }
 0x146   : > { %14567 = vmatmul.mubr.msk.bf16.gmra.mxu0 %vm1656_vm14, %v15089_v17  ;;  %v4659_v4 = vor.u32 %v4658_v0, %v4655_v7  ;;  %v4677_v22 = vshrl.u32 %v4544_v19, 16  ;;  %v4680_v52 = vshll.u32 %v4544_v19, 16  ;;  %v13419_v18 = vrot.slane %v5261_v24, 9  ;;  %v5262_v17 = vld [vmem:[#allocation2 + $0x48] sm:$0xe]  ;;  %22477 = vst [vmem:[#allocation17_spill] sm:$0xff] %v16996_v11 }
 0x147   : > { %14570 = vmatprep.mubr.msk.bf16.mxu0 %vm1656_vm14, %v15090_v3  ;;  %v4645_v3 = vor.u32 %v4644_v41, %v16946_v43  ;;  %v16988_v41 = vrot.slane %v4662_v62, 5  ;;  %v5348_v20 = vrot.slane %v4543_v28, 5  ;;  %v5347_v62 = vrot.slane %v5345_v60, 4 }
 0x148   : > { %v4686_v27 = vshll.u32 %v4545_v61, 16  ;;  %v4690_v56 = vshrl.u32 %v4545_v61, 16  ;;  %v17003_v45 = vcombine.low %v4593_v2, %v4603_v40  ;;  %v4672_v7 = vshll.u32 %v4543_v28, 16  ;;  %v17025_v28 = vpop.f32.mrf.mxu1 }
 0x149   : > { %v16998_v26 = vrot.slane %v4645_v3, 4  ;;  %v4669_v19 = vor.u32 %v4668_v29, %v16988_v41  ;;  %v5352_v0 = vrot.slane %v4545_v61, 5  ;;  %v13420_v3 = vrot.slane %v5262_v17, 9  ;;  %22479 = vst [vmem:[#allocation18_spill] sm:$0xff] %v17025_v28  ;;  %v4548_v61 = vld [vmem:[#allocation2 + $0x58] sm:$0xf] }
 0x14a   : > { %14525 = vmatmul.mubr.msk.bf16.gmra.mxu1 %vm1656_vm14, %v22473_v35  ;;  %v16992_v35 = vrot.slane %v4635_v8, 4  ;;  %v17007_v8 = vrot.slane %v4659_v4, 4  ;;  %v4679_v24 = vrot.slane %v4677_v22, 4  ;;  %v4682_v11 = vrot.slane %v4680_v52, 5 }
 0x14b   : > { %14528 = vmatprep.mubr.msk.bf16.mxu1 %vm1656_vm14, %v22475_v13  ;;  %v16994_v13 = vrot.slane %v4648_v44, 5  ;;  %v4546_v44 = vld [vmem:[#allocation2 + $0x50] sm:$0x1]  ;;  %v17009_v31 = vcombine.low %v4617_v53, %v4627_v38  ;;  %v17019_v40 = vsel %vm16076_vm10, %v13419_v18, %v5345_v60  ;;  %v22478_v17 = vcombine.low %v16743_v49, %v16757_v16  ;;  %v17041_v16 = vpop.f32.mrf.mxu0 }
 0x14c   : > { %v4641_v2 = vsel %vm15671_vm15, %v16992_v35, %v16946_v43  ;;  %v17033_v29 = vsel %vm16076_vm10, %v5347_v62, %v5348_v20  ;;  %v17035_v43 = vrot.slane %v4686_v27, 5  ;;  %v4692_v60 = vrot.slane %v4690_v56, 4  ;;  %22481 = vst [vmem:[#allocation19_spill] sm:$0xff] %v17041_v16  ;;  %v4550_v35 = vld [vmem:[#allocation2 + $0x60] sm:$0xf] }
 0x14d   : > { %v4651_v53 = vsel %vm15671_vm15, %v16998_v26, %v16994_v13  ;;  %v22480_v49 = vcombine.low %v16750_v25, %v16764_v57  ;;  %v4670_v38 = vrot.slane %v4669_v19, 4  ;;  %v4674_v4 = vrot.slane %v4672_v7, 5  ;;  %v15094_v13 = vld [vmem:[#allocation2 + $0xc0] sm:$0xff]   ;;  %v17051_v20 = vld [vmem:[#allocation2 + $0x5c] sm:$0x1] }
 0x14e   : > { %14571 = vmatmul.mubr.msk.bf16.gmra.mxu0 %vm1656_vm14, %v15091_v42  ;;  %v5354_v22 = vrot.slane %v5352_v0, 4  ;;  %v5355_v52 = vrot.slane %v4546_v44, 5  ;;  %v4665_v56 = vsel %vm15671_vm15, %v17007_v8, %v16988_v41  ;;  %v17049_v18 = vsel %vm16076_vm10, %v13420_v3, %v5352_v0  ;;  %v17053_v26 = vld [vmem:[#allocation2 + $0x64] sm:$0xf]  ;;  %v5263_v62 = vld [vmem:[#allocation2 + $0x54] sm:$0xe] }
 0x14f   : > { %14574 = vmatprep.mubr.msk.bf16.mxu0 %vm1656_vm14, %v15092_v63  ;;  %v4547_v63 = vld [vmem:[#allocation2 + $0x54] sm:$0xf]  ;;  %v4683_v25 = vor.u32 %v4682_v11, %v4679_v24  ;;  %v4696_v57 = vshll.u32 %v4546_v44, 16  ;;  %v4710_v7 = vshll.u32 %v4548_v61, 16  ;;  %v4693_v42 = vor.u32 %v4692_v60, %v17035_v43  ;;  %v17059_v11 = vpop.f32.mrf.mxu0 }
 0x150   : > { %v4701_v27 = vshrl.u32 %v4547_v63, 16  ;;  %v4704_v19 = vshll.u32 %v4547_v63, 16  ;;  %v5359_v41 = vrot.slane %v4548_v61, 5  ;;  %v4725_v8 = vshrl.u32 %v4550_v35, 16  ;;  %22483 = vst [vmem:[#allocation21_spill] sm:$0xff] %v17059_v11 }
 0x151   : > { %v4728_v28 = vshll.u32 %v4550_v35, 16  ;;  %v4675_v0 = vsel %vm15671_vm15, %v4670_v38, %v4674_v4  ;;  %v17065_v44 = vsel %vm16076_vm10, %v5354_v22, %v5355_v52  ;;  %v4734_v3 = vshll.u32 %v17053_v26, 16 }
 0x152   : > { %14529 = vmatmul.mubr.msk.bf16.gmra.mxu1 %vm1656_vm14, %v22478_v17  ;;  %v4714_v17 = vshrl.u32 %v4548_v61, 16  ;;  %v4738_v24 = vshrl.u32 %v17053_v26, 16  ;;  %v17070_v60 = vrot.slane %v4683_v25, 4  ;;  %v17072_v61 = vrot.slane %v4696_v57, 5 }
 0x153   : > { %14532 = vmatprep.mubr.msk.bf16.mxu1 %vm1656_vm14, %v22480_v49  ;;  %v17055_v49 = vpop.f32.mrf.mxu1  ;;  %v5362_v63 = vrot.slane %v17051_v20, 5  ;;  %v4703_v35 = vrot.slane %v4701_v27, 4  ;;  %v17075_v38 = vrot.slane %v4710_v7, 5  ;;  %v22484_v22 = vcombine.low %v16771_v21, %v16780_v59  ;;  %v17087_v27 = vpop.f32.mrf.mxu0  ;;  %v4552_v59 = vld [vmem:[#allocation2 + $0x68] sm:$0x1] }
 0x154   : > { %22482 = vst [vmem:[#allocation20_spill] sm:$0xff] %v17055_v49  ;;  %v4706_v49 = vrot.slane %v4704_v19, 5  ;;  %v4716_v4 = vrot.slane %v4714_v17, 4  ;;  %v5361_v25 = vrot.slane %v5359_v41, 4  ;;  %v4727_v11 = vrot.slane %v4725_v8, 4  ;;  %22487 = vst [vmem:[#allocation23_spill] sm:$0xff] %v17087_v27 }
 0x155   : > { %v17081_v52 = vpop.f32.mrf.mxu1  ;;  %v4730_v57 = vrot.slane %v4728_v28, 5  ;;  %v15095_v19 = vld [vmem:[#allocation2 + $0xcc] sm:$0xff]   ;;  %v17089_v7 = vcombine.low %v4641_v2, %v4651_v53  ;;  %v17093_v17 = vrot.slane %v4734_v3, 5  ;;  %v4689_v53 = vsel %vm15671_vm15, %v17070_v60, %v17035_v43  ;;  %v17119_v43 = vld [vmem:[#allocation2 + $0x74] sm:$0x1] }
 0x156   : > { %14575 = vmatmul.mubr.msk.bf16.gmra.mxu0 %vm1656_vm14, %v15093_v10  ;;  %v13421_v10 = vrot.slane %v5263_v62, 9  ;;  %22485 = vst [vmem:[#allocation22_spill] sm:$0xff] %v17081_v52  ;;  %v22486_v62 = vcombine.low %v16788_v51, %v16803_v55  ;;  %v4720_v55 = vshll.u32 %v17051_v20, 16  ;;  %v4553_v2 = vld [vmem:[#allocation2 + $0x6c] sm:$0xf]  ;;  %v4707_v8 = vor.u32 %v4706_v49, %v4703_v35 }
 0x157   : > { %14578 = vmatprep.mubr.msk.bf16.mxu0 %vm1656_vm14, %v15094_v13  ;;  %v4694_v13 = vrot.slane %v4693_v42, 4  ;;  %v4740_v42 = vrot.slane %v4738_v24, 4  ;;  %v4717_v3 = vor.u32 %v4716_v4, %v17075_v38  ;;  %v4554_v24 = vld [vmem:[#allocation2 + $0x70] sm:$0xf]  ;;  %v17117_v20 = vsel %vm16076_vm10, %v5361_v25, %v5362_v63  ;;  %v5265_v60 = vld [vmem:[#allocation2 + $0x6c] sm:$0xe] }
 0x158   : > { %v17101_v51 = vsel %vm16076_vm10, %v13421_v10, %v5359_v41  ;;  %v4731_v10 = vor.u32 %v4730_v57, %v4727_v11  ;;  %v4744_v28 = vshll.u32 %v4552_v59, 16  ;;  %v5373_v35 = vrot.slane %v4554_v24, 5 }
 0x159   : > { %v4699_v41 = vsel %vm15671_vm15, %v4694_v13, %v17072_v61  ;;  %v4749_v4 = vshrl.u32 %v4553_v2, 16  ;;  %v4752_v21 = vshll.u32 %v4553_v2, 16  ;;  %v22490_v61 = vcombine.low %v16902_v39, %v16906_v36 }
 0x15a   : > { %14533 = vmatmul.mubr.msk.bf16.gmra.mxu1 %vm1656_vm14, %v22484_v22  ;;  %v17095_v22 = vcombine.low %v4665_v56, %v4675_v0  ;;  %v5264_v56 = vld [vmem:[#allocation2 + $0x60] sm:$0xe]  ;;  %v5366_v0 = vrot.slane %v17053_v26, 5  ;;  %v4741_v26 = vor.u32 %v4740_v42, %v17093_v17  ;;  %v4722_v63 = vrot.slane %v4720_v55, 5 }
 0x15b   : > { %14536 = vmatprep.mubr.msk.bf16.mxu1 %vm1656_vm14, %v22486_v62  ;;  %v17110_v62 = vpop.f32.mrf.mxu1  ;;  %v13422_v11 = vrot.slane %v5264_v56, 9  ;;  %v4758_v13 = vshll.u32 %v4554_v24, 16  ;;  %v4762_v25 = vshrl.u32 %v4554_v24, 16  ;;  %v4718_v52 = vrot.slane %v4717_v3, 4 }
 0x15c   : > { %22488 = vst [vmem:[#allocation24_spill] sm:$0xff] %v17110_v62  ;;  %v4708_v62 = vrot.slane %v4707_v8, 4  ;;  %v22492_v42 = vcombine.low %v16792_v23, %v16811_v33  ;;  %v4732_v39 = vrot.slane %v4731_v10, 4  ;;  %v4746_v36 = vrot.slane %v4744_v28, 5 }
 0x15d   : > { %v17135_v2 = vpop.f32.mrf.mxu1  ;;  %v5376_v55 = vrot.slane %v17119_v43, 5  ;;  %v22494_v56 = vcombine.low %v16797_v58, %v16815_v48  ;;  %v5375_v3 = vrot.slane %v5373_v35, 4  ;;  %v4751_v24 = vrot.slane %v4749_v4, 4 }
 0x15e   : > { %v17121_v49 = vpop.f32.mrf.mxu0  ;;  %14579 = vmatmul.mubr.msk.bf16.gmra.mxu0 %vm1656_vm14, %v15095_v19  ;;  %v5368_v19 = vrot.slane %v5366_v0, 4  ;;  %22493 = vst [vmem:[#allocation27_spill] sm:$0xff] %v17135_v2  ;;  %v4754_v23 = vrot.slane %v4752_v21, 5  ;;  %v17144_v33 = vcombine.low %v4689_v53, %v4699_v41  ;;  %v17148_v28 = vrot.slane %v4758_v13, 5  ;;  %v5266_v2 = vld [vmem:[#allocation2 + $0x78] sm:$0xe] }
 0x15f   : > { %22489 = vst [vmem:[#allocation25_spill] sm:$0xff] %v17121_v49  ;;  %14618 = vmatprep.mubr.msk.bf16.mxu0 %vm1656_vm14, %v22490_v61  ;;  %v5369_v49 = vrot.slane %v4552_v59, 5  ;;  %v13423_v61 = vrot.slane %v5265_v60, 9  ;;  %v4742_v59 = vrot.slane %v4741_v26, 4  ;;  %v4764_v60 = vrot.slane %v4762_v25, 4  ;;  %v17163_v26 = vpop.f32.mrf.mxu1 }
 0x160   : > { %v17129_v57 = vpop.f32.mrf.mxu0  ;;  %v4713_v58 = vsel %vm15671_vm15, %v4708_v62, %v17075_v38  ;;  %v17157_v48 = vsel %vm16076_vm10, %v13422_v11, %v5366_v0  ;;  %v4556_v41 = vld [vmem:[#allocation2 + $0x78] sm:$0xf]  ;;  %22497 = vst [vmem:[#allocation30_spill] sm:$0xff] %v17163_v26  ;;  %v4723_v4 = vsel %vm15671_vm15, %v4718_v52, %v4722_v63  ;;  %v4737_v13 = vsel %vm15671_vm15, %v4732_v39, %v17093_v17  ;;  %v17175_v62 = vld [vmem:[#allocation2 + $0x80] sm:$0x1] }
 0x161   : > { %22491 = vst [vmem:[#allocation26_spill] sm:$0xff] %v17129_v57  ;;  %v17161_v21 = vsel %vm16076_vm10, %v5368_v19, %v5369_v49  ;;  %v17172_v38 = vsel %vm16076_vm10, %v13423_v61, %v5373_v35  ;;  %v4768_v0 = vshll.u32 %v17119_v43, 16  ;;  %v22498_v11 = vcombine.low %v16935_v6, %v16942_v5  ;;  %v4559_v39 = vld [vmem:[#allocation2 + $0x84] sm:$0xf] }
 0x162   : > { %14537 = vmatmul.mubr.msk.bf16.gmra.mxu1 %vm1656_vm14, %v22492_v42  ;;  %v17142_v8 = vpop.f32.mrf.mxu0  ;;  %v4557_v42 = vld [vmem:[#allocation2 + $0x7c] sm:$0xf]  ;;  %v4747_v52 = vsel %vm15671_vm15, %v4742_v59, %v4746_v36  ;;  %v17187_v17 = vsel %vm16076_vm10, %v5375_v3, %v5376_v55  ;;  %v4755_v35 = vor.u32 %v4754_v23, %v4751_v24  ;;  %v13424_v63 = vrot.slane %v5266_v2, 9  ;;  %v17199_v59 = vld [vmem:[#allocation2 + $0x88] sm:$0xf] }
 0x163   : > { %14540 = vmatprep.mubr.msk.bf16.mxu1 %vm1656_vm14, %v22494_v56  ;;  %22495 = vst [vmem:[#allocation28_spill] sm:$0xff] %v17142_v8  ;;  %v5380_v53 = vrot.slane %v4557_v42, 5  ;;  %v22499_v43 = vcombine.low %v16971_v15, %v16986_v30  ;;  %v4765_v6 = vor.u32 %v4764_v60, %v17148_v28  ;;  %v4773_v5 = vshrl.u32 %v4556_v41, 16  ;;  %v17205_v30 = vpop.f32.mrf.mxu1 }
 0x164   : > { %v17150_v57 = vpop.f32.mrf.mxu0  ;;  %v4776_v19 = vshll.u32 %v4556_v41, 16  ;;  %v5383_v55 = vrot.slane %v17175_v62, 5  ;;  %v4782_v56 = vshll.u32 %v4557_v42, 16  ;;  %v4786_v2 = vshrl.u32 %v4557_v42, 16  ;;  %22501 = vst [vmem:[#allocation31_spill] sm:$0xff] %v17205_v30 }
 0x165   : > { %22496 = vst [vmem:[#allocation29_spill] sm:$0xff] %v17150_v57  ;;  %v5382_v61 = vrot.slane %v5380_v53, 4  ;;  %v22500_v15 = vcombine.low %v16823_v37, %v16832_v46  ;;  %v17207_v3 = vcombine.low %v4713_v58, %v4723_v4  ;;  %v17209_v24 = vcombine.low %v4737_v13, %v4747_v52  ;;  %v17215_v41 = vld [vmem:[#allocation2 + $0x94] sm:$0xf] }
 0x166   : > { %v17177_v49 = vpop.f32.mrf.mxu0  ;;  %14619 = vmatmul.mubr.msk.bf16.vlgmr.msra.gmra.mxu0 %vm1656_vm14, %v22498_v11  ;;  %v17213_v60 = vrot.slane %v4768_v0, 5  ;;  %v22502_v42 = vcombine.low %v16844_v1, %v16853_v47  ;;  %v17223_v46 = vrot.slane %v4755_v35, 4  ;;  %v17227_v58 = vsel %vm16076_vm10, %v13424_v63, %v5380_v53  ;;  %v4562_v11 = vld [vmem:[#allocation2 + $0x90] sm:$0xf]  ;;  %v17241_v63 = vpop.f32.mrf.mxu1 }
 0x167   : > { %14622 = vmatprep.mubr.msk.bf16.mxu0 %vm1656_vm14, %v22499_v43  ;;  %v4797_v4 = vshrl.u32 %v4559_v39, 16  ;;  %v4800_v13 = vshll.u32 %v4559_v39, 16  ;;  %v4775_v0 = vrot.slane %v4773_v5, 4  ;;  %v4778_v52 = vrot.slane %v4776_v19, 5  ;;  %22503 = vst [vmem:[#allocation32_spill] sm:$0xff] %v17241_v63 }
 0x168   : > { %v17196_v36 = vpop.f32.mrf.mxu0  ;;  %v4806_v43 = vshll.u32 %v17199_v59, 16  ;;  %v17233_v47 = vrot.slane %v4765_v6, 4  ;;  %v17237_v35 = vsel %vm16076_vm10, %v5382_v61, %v5383_v55  ;;  %v4788_v53 = vrot.slane %v4786_v2, 4  ;;  %v5267_v39 = vld [vmem:[#allocation2 + $0x84] sm:$0xe] }
 0x169   : > { %v4821_v5 = vshrl.u32 %v4562_v11, 16  ;;  %v4824_v19 = vshll.u32 %v4562_v11, 16  ;;  %v4830_v23 = vshll.u32 %v17215_v41, 16  ;;  %v4834_v25 = vshrl.u32 %v17215_v41, 16 }
 0x16a   : > { %14541 = vmatmul.mubr.msk.bf16.gmra.mxu1 %vm1656_vm14, %v22500_v15  ;;  %v17221_v37 = vpop.f32.mrf.mxu0  ;;  %v4810_v15 = vshrl.u32 %v17199_v59, 16  ;;  %v22504_v6 = vcombine.low %v17019_v40, %v17033_v29  ;;  %v5387_v55 = vrot.slane %v17199_v59, 5  ;;  %v4802_v2 = vrot.slane %v4800_v13, 5  ;;  %v4561_v40 = vld [vmem:[#allocation2 + $0x8c] sm:$0x1] }
 0x16b   : > { %14544 = vmatprep.mubr.msk.bf16.mxu1 %vm1656_vm14, %v22502_v42  ;;  %v17239_v42 = vrot.slane %v4782_v56, 5  ;;  %v4799_v56 = vrot.slane %v4797_v4, 4  ;;  %v22505_v11 = vcombine.low %v17049_v18, %v17065_v44  ;;  %v4779_v63 = vor.u32 %v4778_v52, %v4775_v0  ;;  %v17272_v13 = vld [vmem:[#allocation2 + $0x98] sm:$0x1] }
 0x16c   : > { %v17231_v1 = vpop.f32.mrf.mxu0  ;;  %v4792_v30 = vshll.u32 %v17175_v62, 16  ;;  %v17261_v29 = vrot.slane %v4806_v43, 5  ;;  %v4771_v59 = vsel %vm15671_vm15, %v17233_v47, %v17213_v60  ;;  %v13425_v44 = vrot.slane %v5267_v39, 9  ;;  %v4565_v47 = vld [vmem:[#allocation2 + $0x9c] sm:$0xf] }
 0x16d   : > { %v4789_v18 = vor.u32 %v4788_v53, %v17239_v42  ;;  %v22507_v0 = vcombine.low %v16848_v54, %v16860_v9  ;;  %v4823_v52 = vrot.slane %v4821_v5, 4  ;;  %v4826_v43 = vrot.slane %v4824_v19, 5  ;;  %v17294_v5 = vld [vmem:[#allocation2 + $0xa0] sm:$0xf] }
 0x16e   : > { %v17245_v10 = vpop.f32.mrf.mxu0  ;;  %14623 = vmatmul.mubr.msk.bf16.gmra.mxu0 %vm1656_vm14, %v22504_v6  ;;  %v4812_v6 = vrot.slane %v4810_v15, 4  ;;  %v17280_v15 = vrot.slane %v4830_v23, 5  ;;  %v4836_v60 = vrot.slane %v4834_v25, 4  ;;  %v5389_v39 = vrot.slane %v5387_v55, 4 }
 0x16f   : > { %14626 = vmatprep.mubr.msk.bf16.mxu0 %vm1656_vm14, %v22505_v11  ;;  %v5390_v11 = vrot.slane %v4561_v40, 5  ;;  %v4803_v4 = vor.u32 %v4802_v2, %v4799_v56  ;;  %v4816_v61 = vshll.u32 %v4561_v40, 16  ;;  %v17288_v54 = vrot.slane %v4779_v63, 4  ;;  %v5269_v2 = vld [vmem:[#allocation2 + $0x9c] sm:$0xe] }
 0x170   : > { %v17263_v26 = vpop.f32.mrf.mxu0  ;;  %v17290_v9 = vrot.slane %v4792_v30, 5  ;;  %v4813_v23 = vor.u32 %v4812_v6, %v17261_v29  ;;  %v5394_v25 = vrot.slane %v17215_v41, 5  ;;  %v17300_v19 = vsel %vm16076_vm10, %v13425_v44, %v5387_v55 }
 0x171   : > { %v4840_v56 = vshll.u32 %v17272_v13, 16  ;;  %v4845_v40 = vshrl.u32 %v4565_v47, 16  ;;  %v4848_v63 = vshll.u32 %v4565_v47, 16  ;;  %v17305_v30 = vrot.slane %v4789_v18, 4 }
 0x172   : > { %v17274_v62 = vpop.f32.mrf.mxu1  ;;  %14545 = vmatmul.mubr.msk.bf16.gmra.mxu1 %vm1656_vm14, %v22507_v0  ;;  %v17284_v53 = vpop.f32.mrf.mxu0  ;;  %v4827_v6 = vor.u32 %v4826_v43, %v4823_v52  ;;  %v4837_v41 = vor.u32 %v4836_v60, %v17280_v15  ;;  %v5401_v8 = vrot.slane %v17294_v5, 5  ;;  %v22511_v55 = vcombine.low %v17101_v51, %v17117_v20 }
 0x173   : > { %22506 = vst [vmem:[#allocation33_spill] sm:$0xff] %v17274_v62  ;;  %14584 = vmatprep.mubr.msk.bf16.mxu1 %vm1656_vm14, %v17003_v45  ;;  %v5268_v62 = vld [vmem:[#allocation2 + $0x90] sm:$0xe]  ;;  %v17319_v44 = vsel %vm16076_vm10, %v5389_v39, %v5390_v11  ;;  %v4804_v18 = vrot.slane %v4803_v4, 4  ;;  %v4818_v47 = vrot.slane %v4816_v61, 5  ;;  %v22513_v60 = vcombine.low %v17157_v48, %v17161_v21 }
 0x174   : > { %v17286_v57 = vpop.f32.mrf.mxu1  ;;  %v17296_v45 = vpop.f32.mrf.mxu0  ;;  %v13426_v52 = vrot.slane %v5268_v62, 9  ;;  %v5397_v51 = vrot.slane %v17272_v13, 5  ;;  %v13427_v20 = vrot.slane %v5269_v2, 9  ;;  %v4842_v16 = vrot.slane %v4840_v56, 5 }
 0x175   : > { %22508 = vst [vmem:[#allocation34_spill] sm:$0xff] %v17286_v57  ;;  %v17308_v57 = vld [vmem:[#allocation2 + $0xa4] sm:$0x1]  ;;  %v4847_v4 = vrot.slane %v4845_v40, 4  ;;  %v4850_v61 = vrot.slane %v4848_v63, 5  ;;  %v4828_v11 = vrot.slane %v4827_v6, 4  ;;  %v22514_v56 = vsel %vm15671_vm15, %v17223_v46, %v17148_v28 }
 0x176   : > { %v17303_v0 = vpop.f32.mrf.mxu1  ;;  %v17311_v27 = vpop.f32.mrf.mxu0  ;;  %14627 = vmatmul.mubr.msk.bf16.gmra.mxu0 %vm1656_vm14, %v22511_v55  ;;  %v5404_v39 = vrot.slane %v17308_v57, 5  ;;  %v4838_v48 = vrot.slane %v4837_v41, 4  ;;  %v5403_v21 = vrot.slane %v5401_v8, 4  ;;  %v17343_v2 = vcombine.low %v22514_v56, %v4771_v59  ;;  %v17354_v63 = vld [vmem:[#allocation2 + $0xac] sm:$0xf] }
 0x177   : > { %22509 = vst [vmem:[#allocation35_spill] sm:$0xff] %v17303_v0  ;;  %22510 = vst [vmem:[#allocation36_spill] sm:$0xff] %v17311_v27  ;;  %14630 = vmatprep.mubr.msk.bf16.mxu0 %vm1656_vm14, %v22513_v60  ;;  %v4814_v0 = vrot.slane %v4813_v23, 4  ;;  %v5396_v27 = vrot.slane %v5394_v25, 4  ;;  %v4854_v23 = vshll.u32 %v17294_v5, 16  ;;  %v4795_v40 = vsel %vm15671_vm15, %v17305_v30, %v17290_v9 }
 0x178   : > { %v17321_v43 = vpop.f32.mrf.mxu1  ;;  %v17328_v55 = vpop.f32.mrf.mxu0  ;;  %v13442_v28 = vcombine.low %v17300_v19, %v17319_v44  ;;  %v4809_v46 = vsel %vm15671_vm15, %v4804_v18, %v17261_v29  ;;  %v5270_v59 = vld [vmem:[#allocation2 + $0xa8] sm:$0xe]  ;;  %v17376_v29 = vsel %vm16076_vm10, %v13427_v20, %v5401_v8  ;;  %v4851_v18 = vor.u32 %v4850_v61, %v4847_v4  ;;  %v634_v61 = vld [vmem:[#allocation2 + $0xd4] sm:$0x1] }
 0x179   : > { %22512 = vst [vmem:[#allocation37_spill] sm:$0xff] %v17321_v43  ;;  %v4568_v9 = vld [vmem:[#allocation2 + $0xa8] sm:$0xf]  ;;  %v17372_v41 = vsel %vm16076_vm10, %v5396_v27, %v5397_v51  ;;  %v4833_v60 = vsel %vm15671_vm15, %v4828_v11, %v17280_v15  ;;  %v4843_v56 = vsel %vm15671_vm15, %v4838_v48, %v4842_v16  ;;  %v17389_v27 = vrot.slane %v4854_v23, 5 }
 0x17a   : > { %v14382_v62 = vpop.f32.mrf.mxu1  ;;  %14585 = vmatmul.mubr.msk.bf16.vlgmr.msra.gmra.mxu1 %vm1656_vm14, %v17009_v31  ;;  %v17336_v13 = vpop.f32.mrf.mxu0  ;;  %v4785_v31 = vsel %vm15671_vm15, %v17288_v54, %v17239_v42  ;;  %v17363_v42 = vsel %vm16076_vm10, %v13426_v52, %v5394_v25  ;;  %v5408_v54 = vrot.slane %v17354_v63, 5  ;;  %v17378_v25 = vld [vmem:[#allocation2 + $0xb0] sm:$0x1]  ;;  %v22515_v8 = vcombine.low %v17172_v38, %v17187_v17 }
 0x17b   : > { %14588 = vmatprep.mubr.msk.bf16.mxu1 %vm1656_vm14, %v17089_v7  ;;  %v4858_v7 = vshrl.u32 %v17294_v5, 16  ;;  %v4819_v5 = vsel %vm15671_vm15, %v4814_v0, %v4818_v47  ;;  %v17387_v0 = vsel %vm16076_vm10, %v5403_v21, %v5404_v39  ;;  %v13428_v20 = vrot.slane %v5270_v59, 9 }
 0x17c   : > { %v2035_v6 = vpop.f32.mrf.mxu1  ;;  %v17366_v30 = vpop.f32.mrf.mxu0  ;;  %v4869_v4 = vshrl.u32 %v4568_v9, 16  ;;  %v4872_v15 = vshll.u32 %v4568_v9, 16  ;;  %v22516_v16 = vcombine.low %v17227_v58, %v17237_v35  ;;  %v17401_v39 = vcombine.low %v4785_v31, %v4795_v40 }
 0x17d   : > { %v4860_v51 = vrot.slane %v4858_v7, 4  ;;  %v13443_v48 = vcombine.low %v17363_v42, %v17372_v41  ;;  %v5410_v21 = vrot.slane %v5408_v54, 4  ;;  %v5411_v38 = vrot.slane %v17378_v25, 5 }
 0x17e   : > { %v14383_v52 = vpop.f32.mrf.mxu1  ;;  %v17391_v47 = vpop.f32.mrf.mxu0  ;;  %14631 = vmatmul.mubr.msk.bf16.gmra.mxu0 %vm1656_vm14, %v22515_v8  ;;  %v17408_v23 = vcombine.low %v4809_v46, %v4819_v5  ;;  %v17410_v7 = vrot.slane %v4851_v18, 4  ;;  %v4864_v59 = vshll.u32 %v17308_v57, 16  ;;  %v4878_v58 = vshll.u32 %v17354_v63, 16 }
 0x17f   : > { %14634 = vmatprep.mubr.msk.bf16.mxu0 %vm1656_vm14, %v22516_v16  ;;  %v17416_v31 = vcombine.low %v4833_v60, %v4843_v56  ;;  %v4882_v42 = vshrl.u32 %v17354_v63, 16  ;;  %v635_v46 = vsel %vm15587_vm8, 0, %v634_v61  ;;  %v4861_v5 = vor.u32 %v4860_v51, %v17389_v27  ;;  %v22518_v56 = vld [vmem:[#allocation8_spill] sm:$0xff] }
 0x180   : > { %v2038_v11 = vpop.f32.mrf.mxu1  ;;  %v17406_v17 = vpop.f32.mrf.mxu0  ;;  %v4871_v41 = vrot.slane %v4869_v4, 4  ;;  %v4874_v18 = vrot.slane %v4872_v15, 5  ;;  %636 = vst [vmem:[#allocation2 + $0xd4] sm:$0x1] %v635_v46  ;;  %v2044_v60 = vadd.f32 %v14382_v62, %v16873_v50  ;;  %v2036_v63 = vadd.f32 %v2035_v6, %v16882_v32  ;;  %v22519_v16 = vld [vmem:[#allocation12_spill] sm:$0xff]  ;;  %v22520_v32 = vld [vmem:[#allocation9_spill] sm:$0xff] }
 0x181   : > { %v2047_v8 = vadd.f32 %v14383_v52, %v22518_v56  ;;  %v2039_v51 = vadd.f32 %v2038_v11, %v22519_v16  ;;  %v17448_v50 = vrot.slane %v4878_v58, 5  ;;  %v22521_v6 = vld [vmem:[#allocation11_spill] sm:$0xff]  ;;  %v4884_v15 = vrot.slane %v4882_v42, 4  ;;  %v17453_v11 = vld [vmem:[#allocation2 + $0xb8] sm:$0xf]  ;;  %v22522_v56 = vld [vmem:[#allocation14_spill] sm:$0xff] }
 0x182   : > { %v14386_v35 = vpop.f32.mrf.mxu1  ;;  %14589 = vmatmul.mubr.msk.bf16.gmra.mxu1 %vm1656_vm14, %v17095_v22  ;;  %v17425_v57 = vpop.f32.mrf.mxu0  ;;  %v17430_v22 = vsel %vm16076_vm10, %v13428_v20, %v5408_v54  ;;  %v17446_v20 = vrot.slane %v4864_v59, 5  ;;  %v17461_v59 = vrot.slane %v4861_v5, 4  ;;  %v5415_v42 = vrot.slane %v17453_v11, 5  ;;  %v17468_v16 = vld [vmem:[#allocation2 + $0xbc] sm:$0x1]  ;;  %v22523_v5 = vld [vmem:[#allocation16_spill] sm:$0xff] }
 0x183   : > { %14592 = vmatprep.mubr.msk.bf16.mxu1 %vm1656_vm14, %v17144_v33  ;;  %v17437_v33 = vsel %vm16076_vm10, %v5410_v21, %v5411_v38  ;;  %v2060_v62 = vadd.f32 %v14386_v35, %v22520_v32  ;;  %v4888_v21 = vshll.u32 %v17378_v25, 16  ;;  %v5271_v38 = vld [vmem:[#allocation2 + $0xb4] sm:$0xe]  ;;  %v4875_v35 = vor.u32 %v4874_v18, %v4871_v41  ;;  %v4574_v54 = vld [vmem:[#allocation2 + $0xc0] sm:$0xf] }
 0x184   : > { %v2051_v61 = vpop.f32.mrf.mxu1  ;;  %v17440_v9 = vpop.f32.mrf.mxu0  ;;  %v13445_v58 = vcombine.low %v17430_v22, %v17437_v33  ;;  %v4571_v32 = vld [vmem:[#allocation2 + $0xb4] sm:$0xf]  ;;  %v17473_v19 = vadd.f32 %v17177_v49, %v2044_v60  ;;  %v17476_v44 = vadd.f32 %v17196_v36, %v2036_v63  ;;  %v13429_v18 = vrot.slane %v5271_v38, 9  ;;  %v5272_v60 = vld [vmem:[#allocation2 + $0xc0] sm:$0xe] }
 0x185   : > { %v2052_v52 = vadd.f32 %v2051_v61, %v22521_v6  ;;  %v17470_v6 = vld [vmem:[#allocation2 + $0xc4] sm:$0xf]  ;;  %v17486_v33 = vadd.f32 %v17231_v1, %v2039_v51  ;;  %v4885_v49 = vor.u32 %v4884_v15, %v17448_v50  ;;  %v17491_v36 = vrot.slane %v4888_v21, 5 }
 0x186   : > { %v14387_v4 = vpop.f32.mrf.mxu1  ;;  %v17455_v46 = vpop.f32.mrf.mxu0  ;;  %14635 = vmatmul.mubr.msk.bf16.gmra.mxu0 %vm1656_vm14, %v13442_v28  ;;  %v17479_v28 = vadd.f32 %v17221_v37, %v2047_v8  ;;  %v17493_v37 = vld [vmem:[#allocation2 + $0xc8] sm:$0x1]  ;;  %v17496_v63 = vadd.f32 %v17245_v10, %v2060_v62  ;;  %v4893_v15 = vshrl.u32 %v4571_v32, 16  ;;  %v4896_v21 = vshll.u32 %v4571_v32, 16 }
 0x187   : > { %v2063_v25 = vadd.f32 %v14387_v4, %v22522_v56  ;;  %14638 = vmatprep.mubr.msk.bf16.mxu0 %vm1656_vm14, %v13443_v48  ;;  %v5422_v48 = vrot.slane %v17470_v6, 5  ;;  %22525 = vst [vmem:[#allocation8_spill] sm:$0xff] %v17486_v33  ;;  %v17499_v8 = vadd.f32 %v17263_v26, %v2052_v52  ;;  %v17507_v56 = vrot.slane %v4875_v35, 4 }
 0x188   : > { %v2054_v61 = vpop.f32.mrf.mxu1  ;;  %v17482_v41 = vpop.f32.mrf.mxu0  ;;  %v17519_v40 = vrot.slane %v4885_v49, 4  ;;  %v5416_v35 = vsel %vm16076_vm10, %v13429_v18, %v5415_v42  ;;  %v17534_v43 = vrot.slane %v4893_v15, 4  ;;  %v4906_v49 = vshrl.u32 %v17453_v11, 16 }
 0x189   : > { %v2055_v22 = vadd.f32 %v2054_v61, %v22523_v5  ;;  %22524 = vst [vmem:[#allocation4_spill] sm:$0xff] %v17482_v41  ;;  %v5417_v61 = vrot.slane %v5415_v42, 4  ;;  %v17510_v10 = vadd.f32 %v17284_v53, %v2063_v25  ;;  %v5424_v5 = vrot.slane %v5422_v48, 4  ;;  %v22529_v25 = vld [vmem:[#allocation36_spill] sm:$0xff] }
 0x18a   : > { %v14390_v4 = vpop.f32.mrf.mxu1  ;;  %14593 = vmatmul.mubr.msk.bf16.gmra.mxu1 %vm1656_vm14, %v17207_v3  ;;  %v17504_v51 = vpop.f32.mrf.mxu0  ;;  %v5418_v3 = vrot.slane %v17468_v16, 5  ;;  %v4902_v53 = vshll.u32 %v17453_v11, 16  ;;  %vm7831_vm8 = vcmask 1043456  }
 0x18b   : > { %v2076_v1 = vadd.f32 %v14390_v4, %v17001_v34  ;;  %14596 = vmatprep.mubr.msk.bf16.mxu1 %vm1656_vm14, %v17209_v24  ;;  %v17513_v26 = vadd.f32 %v17296_v45, %v2055_v22  ;;  %v22527_v34 = vld [vmem:[#allocation19_spill] sm:$0xff]  ;;  %v13430_v24 = vrot.slane %v5272_v60, 9  ;;  %v5425_v4 = vrot.slane %v17493_v37, 5  ;;  %v22530_v22 = vld [vmem:[#allocation21_spill] sm:$0xff] }
 0x18c   : > { %v2067_v38 = vpop.f32.mrf.mxu1  ;;  %v17516_v52 = vpop.f32.mrf.mxu0  ;;  %v22531_v60 = vcombine.low %v17376_v29, %v17387_v0  ;;  %v22532_v0 = vld [vmem:[#allocation23_spill] sm:$0xff] }
 0x18d   : > { %22526 = vst [vmem:[#allocation12_spill] sm:$0xff] %v17513_v26  ;;  %v2068_v62 = vadd.f32 %v2067_v38, %v22527_v34  ;;  %22528 = vst [vmem:[#allocation9_spill] sm:$0xff] %v17516_v52  ;;  %v17525_v45 = vadd.f32 %v22529_v25, %v2076_v1  ;;  %v17537_v52 = vld [vmem:[#allocation2 + $0xd0] sm:$0xf]  ;;  %v5419_v1 = vsel %vm16076_vm10, %v5417_v61, %v5418_v3  ;;  %v4920_v25 = vshll.u32 %v4574_v54, 16 }
 0x18e   : > { %v14391_v32 = vpop.f32.mrf.mxu1  ;;  %v17528_v34 = vpop.f32.mrf.mxu0  ;;  %14639 = vmatmul.mubr.msk.bf16.gmra.mxu0 %vm1656_vm14, %v22531_v60  ;;  %v5429_v29 = vrot.slane %v17537_v52, 5  ;;  %v5423_v11 = vsel %vm16076_vm10, %v13430_v24, %v5422_v48  ;;  %v17560_v61 = vrot.slane %v4902_v53, 5  ;;  %v4930_v48 = vshrl.u32 %v17470_v6, 16  ;;  %v22534_v24 = vld [vmem:[#allocation25_spill] sm:$0xff] }
 0x18f   : > { %v2079_v38 = vadd.f32 %v14391_v32, %v22530_v22  ;;  %v17540_v42 = vadd.f32 %v17328_v55, %v2068_v62  ;;  %14642 = vmatprep.mubr.msk.bf16.mxu0 %vm1656_vm14, %v13445_v58  ;;  %v4917_v32 = vshrl.u32 %v4574_v54, 16  ;;  %v5426_v55 = vsel %vm16076_vm10, %v5424_v5, %v5425_v4  ;;  %v17553_v62 = vld [vmem:[#allocation2 + $0xd4] sm:$0x1]  ;;  %v5273_v58 = vld [vmem:[#allocation2 + $0xcc] sm:$0xe] }
 0x190   : > { %v2070_v18 = vpop.f32.mrf.mxu1  ;;  %v17547_v22 = vpop.f32.mrf.mxu0  ;;  %v4898_v54 = vrot.slane %v4896_v21, 5  ;;  %v4908_v4 = vrot.slane %v4906_v49, 4  ;;  %v13447_v21 = vcombine.low %v5423_v11, %v5426_v55  ;;  %v13431_v53 = vrot.slane %v5273_v58, 9 }
 0x191   : > { %v2071_v15 = vadd.f32 %v2070_v18, %v22532_v0  ;;  %22533 = vst [vmem:[#allocation11_spill] sm:$0xff] %v17547_v22  ;;  %v17556_v60 = vadd.f32 %v17336_v13, %v2079_v38  ;;  %v4926_v18 = vshll.u32 %v17470_v6, 16  ;;  %v13446_v13 = vcombine.low %v5416_v35, %v5419_v1  ;;  %v22535_v22 = vld [vmem:[#allocation26_spill] sm:$0xff] }
 0x192   : > { %v14394_v3 = vpop.f32.mrf.mxu1  ;;  %14597 = vmatmul.mubr.msk.bf16.gmra.mxu1 %vm1656_vm14, %v17343_v2  ;;  %v17567_v5 = vpop.f32.mrf.mxu0  ;;  %v5431_v26 = vrot.slane %v5429_v29, 4  ;;  %v5432_v33 = vrot.slane %v17553_v62, 5  ;;  %v4881_v49 = vsel %vm15671_vm15, %v17507_v56, %v17448_v50  ;;  %v4899_v56 = vor.u32 %v4898_v54, %v17534_v43 }
 0x193   : > { %v2092_v0 = vadd.f32 %v14394_v3, %v22534_v24  ;;  %14600 = vmatprep.mubr.msk.bf16.mxu1 %vm1656_vm14, %v17401_v39  ;;  %v17570_v38 = vadd.f32 %v17366_v30, %v2071_v15  ;;  %v4919_v3 = vrot.slane %v4917_v32, 4  ;;  %v4922_v24 = vrot.slane %v4920_v25, 5 }
 0x194   : > { %v2083_v2 = vpop.f32.mrf.mxu1  ;;  %v17574_v41 = vpop.f32.mrf.mxu0  ;;  %v4867_v30 = vsel %vm15671_vm15, %v17461_v59, %v17446_v20  ;;  %v17587_v1 = vrot.slane %v4926_v18, 5  ;;  %v4932_v15 = vrot.slane %v4930_v48, 4  ;;  %v4912_v20 = vshll.u32 %v17468_v16, 16  ;;  %v4577_v59 = vld [vmem:[#allocation2 + $0xcc] sm:$0xf] }
 0x195   : > { %v2084_v6 = vadd.f32 %v2083_v2, %v22535_v22  ;;  %22536 = vst [vmem:[#allocation14_spill] sm:$0xff] %v17574_v41  ;;  %v17577_v39 = vadd.f32 %v17391_v47, %v2092_v0  ;;  %v22537_v22 = vld [vmem:[#allocation28_spill] sm:$0xff]  ;;  %v4891_v47 = vsel %vm15671_vm15, %v17519_v40, %v17491_v36  ;;  %v4909_v55 = vor.u32 %v4908_v4, %v17560_v61  ;;  %v22538_v36 = vld [vmem:[#allocation29_spill] sm:$0xff] }
 0x196   : > { %v14395_v35 = vpop.f32.mrf.mxu1  ;;  %v17590_v25 = vpop.f32.mrf.mxu0  ;;  %14643 = vmatmul.mubr.msk.bf16.gmra.mxu0 %vm1656_vm14, %v13446_v13  ;;  %v5430_v58 = vsel %vm16076_vm10, %v13431_v53, %v5429_v29  ;;  %v5433_v40 = vsel %vm16076_vm10, %v5431_v26, %v5432_v33  ;;  %v4923_v48 = vor.u32 %v4922_v24, %v4919_v3  ;;  %v4933_v54 = vor.u32 %v4932_v15, %v17587_v1  ;;  %v22539_v26 = vld [vmem:[#allocation13_spill] sm:$0xff] }
 0x197   : > { %v2095_v32 = vadd.f32 %v14395_v35, %v22537_v22  ;;  %v17599_v11 = vadd.f32 %v17406_v17, %v2084_v6  ;;  %14646 = vmatprep.mubr.msk.bf16.mxu0 %vm1656_vm14, %v13447_v21  ;;  %v4936_v17 = vshll.u32 %v17493_v37, 16  ;;  %v4941_v29 = vshrl.u32 %v4577_v59, 16 }
 0x198   : > { %v2086_v50 = vpop.f32.mrf.mxu1  ;;  %v17609_v16 = vpop.f32.mrf.mxu0  ;;  %v4944_v13 = vshll.u32 %v4577_v59, 16  ;;  %v4950_v33 = vshll.u32 %v17537_v52, 16  ;;  %v13448_v37 = vcombine.low %v5430_v58, %v5433_v40  ;;  %v22540_v53 = vsel %vm15671_vm15, %v17410_v7, %v17389_v27  ;;  %v22542_v58 = vld [vmem:[#allocation15_spill] sm:$0xff] }
 0x199   : > { %v2087_v18 = vadd.f32 %v2086_v50, %v22538_v36  ;;  %v17613_v0 = vadd.f32 %v17425_v57, %v2095_v32  ;;  %v4954_v57 = vshrl.u32 %v17537_v52, 16  ;;  %v13395_v6 = vcombine.low %v22540_v53, %v4867_v30 }
 0x19a   : > { %v14398_v43 = vpop.f32.mrf.mxu1  ;;  %14601 = vmatmul.mubr.msk.bf16.gmra.mxu1 %vm1656_vm14, %v17408_v23  ;;  %v17622_v2 = vpop.f32.mrf.mxu0  ;;  %v13396_v3 = vcombine.low %v4881_v49, %v4891_v47  ;;  %v4900_v24 = vrot.slane %v4899_v56, 4  ;;  %v4910_v35 = vrot.slane %v4909_v55, 4  ;;  %v4934_v32 = vrot.slane %v4933_v54, 4 }
 0x19b   : > { %v2108_v4 = vadd.f32 %v14398_v43, %v22539_v26  ;;  %14604 = vmatprep.mubr.msk.bf16.mxu1 %vm1656_vm14, %v17416_v31  ;;  %v17626_v21 = vadd.f32 %v17440_v9, %v2087_v18  ;;  %v4914_v31 = vrot.slane %v4912_v20, 5  ;;  %v4924_v9 = vrot.slane %v4923_v48, 4 }
 0x19c   : > { %v17628_v23 = vpop.f32.mrf.mxu1  ;;  %v17635_v15 = vpop.f32.mrf.mxu0  ;;  %v4938_v59 = vrot.slane %v4936_v17, 5  ;;  %v4943_v50 = vrot.slane %v4941_v29, 4  ;;  %v4946_v27 = vrot.slane %v4944_v13, 5  ;;  %v4952_v7 = vrot.slane %v4950_v33, 5  ;;  %v22543_v17 = vld [vmem:[#allocation18_spill] sm:$0xff] }
 0x19d   : > { %22541 = vst [vmem:[#allocation16_spill] sm:$0xff] %v17635_v15  ;;  %v17638_v22 = vadd.f32 %v17455_v46, %v2108_v4  ;;  %v4956_v30 = vrot.slane %v4954_v57, 4  ;;  %v4905_v56 = vsel %vm15671_vm15, %v4900_v24, %v17560_v61  ;;  %v4915_v55 = vsel %vm15671_vm15, %v4910_v35, %v4914_v31  ;;  %v22545_v57 = vld [vmem:[#allocation22_spill] sm:$0xff]  ;;  %v6681_v15 = vld [vmem:[#allocation3 + $0x54] sm:$0x1] }
 0x19e   : > { %v14399_v52 = vpop.f32.mrf.mxu1  ;;  %v14444_v36 = vpop.f32.mrf.mxu0  ;;  %14647 = vmatmul.mubr.msk.bf16.gmra.mxu0 %vm1656_vm14, %v13448_v37  ;;  %v4929_v18 = vsel %vm15671_vm15, %v4924_v9, %v17587_v1  ;;  %v4939_v48 = vsel %vm15671_vm15, %v4934_v32, %v4938_v59  ;;  %v4947_v43 = vor.u32 %v4946_v27, %v4943_v50  ;;  %v4960_v29 = vshll.u32 %v17553_v62, 16  ;;  %v22548_v27 = vld [vmem:[#allocation30_spill] sm:$0xff] }
 0x19f   : > { %v2111_v40 = vadd.f32 %v14399_v52, %v22542_v58  ;;  %v4957_v54 = vor.u32 %v4956_v30, %v4952_v7  ;;  %v13397_v4 = vcombine.low %v4905_v56, %v4915_v55  ;;  %v13398_v37 = vcombine.low %v4929_v18, %v4939_v48  ;;  %v22549_v18 = vld [vmem:[#allocation31_spill] sm:$0xff] }
 0x1a0   : > { %v17642_v49 = vpop.f32.mrf.mxu1  ;;  %v2572_v47 = vpop.f32.mrf.mxu0 }
 0x1a1   : > { %v17645_v20 = vadd.f32 %v17504_v51, %v2111_v40  ;;  %v4958_v24 = vrot.slane %v4957_v54, 4 }
 0x1a2   : > { %v14402_v46 = vpop.f32.mrf.mxu1  ;;  %14605 = vmatmul.mubr.msk.bf16.gmra.mxu1 %vm1656_vm14, %v13395_v6  ;;  %v14445_v13 = vpop.f32.mrf.mxu0  ;;  %v4948_v6 = vrot.slane %v4947_v43, 4 }
 0x1a3   : > { %v2124_v51 = vadd.f32 %v14402_v46, %v22543_v17  ;;  %14608 = vmatprep.mubr.msk.bf16.mxu1 %vm1656_vm14, %v13396_v3  ;;  %v4962_v3 = vrot.slane %v4960_v29, 5 }
 0x1a4   : > { %v17661_v61 = vpop.f32.mrf.mxu1  ;;  %v17663_v33 = vpop.f32.mrf.mxu0  ;;  %v4953_v59 = vsel %vm15671_vm15, %v4948_v6, %v4952_v7 }
 0x1a5   : > { %22544 = vst [vmem:[#allocation19_spill] sm:$0xff] %v17663_v33  ;;  %v17666_v26 = vadd.f32 %v17528_v34, %v2124_v51  ;;  %v22547_v34 = vld [vmem:[#allocation27_spill] sm:$0xff]  ;;  %v4963_v50 = vsel %vm15671_vm15, %v4958_v24, %v4962_v3 }
 0x1a6   : > { %v14403_v1 = vpop.f32.mrf.mxu1  ;;  %v14484_v35 = vpop.f32.mrf.mxu0  ;;  %v13399_v55 = vcombine.low %v4953_v59, %v4963_v50  ;;  %v22553_v3 = vld [vmem:[#allocation35_spill] sm:$0xff] }
 0x1a7   : > { %v2127_v53 = vadd.f32 %v14403_v1, %v22545_v57  ;;  %v22551_v1 = vld [vmem:[#allocation33_spill] sm:$0xff]  ;;  %v22552_v57 = vld [vmem:[#allocation34_spill] sm:$0xff]  ;;  %v6733_v33 = vld [vmem:[#allocation3 + $0x50] sm:$0x1] }
 0x1a8   : > { %v17669_v31 = vpop.f32.mrf.mxu1  ;;  %v3544_v62 = vpop.f32.mrf.mxu0 }
 0x1a9   : > { %22546 = vst [vmem:[#allocation36_spill] sm:$0xff] %v17669_v31  ;;  %v17672_v52 = vadd.f32 %v17567_v5, %v2127_v53 }
 0x1aa   : > { %v14406_v9 = vpop.f32.mrf.mxu1  ;;  %14609 = vmatmul.mubr.msk.bf16.gmra.mxu1 %vm1656_vm14, %v13397_v4  ;;  %v14485_v58 = vpop.f32.mrf.mxu0 }
 0x1ab   : > { %v2140_v32 = vadd.f32 %v14406_v9, %v22547_v34  ;;  %14612 = vmatprep.mubr.msk.bf16.mxu1 %vm1656_vm14, %v13398_v37 }
 0x1ac   : > { %v2131_v40 = vpop.f32.mrf.mxu1  ;;  %v17682_v46 = vpop.f32.mrf.mxu0 }
 0x1ad   : > { %v2132_v30 = vadd.f32 %v2131_v40, %v22548_v27  ;;  %v17685_v5 = vadd.f32 %v17590_v25, %v2140_v32 }
 0x1ae   : > { %v14407_v56 = vpop.f32.mrf.mxu1  ;;  %v14488_v17 = vpop.f32.mrf.mxu0 }
 0x1af   : > { %v2143_v48 = vadd.f32 %v14407_v56, %v22549_v18  ;;  %v17689_v51 = vadd.f32 %v17609_v16, %v2132_v30 }
 0x1b0   : > { %v17691_v7 = vpop.f32.mrf.mxu1  ;;  %v3560_v43 = vpop.f32.mrf.mxu0 }
 0x1b1   : > { %22550 = vst [vmem:[#allocation21_spill] sm:$0xff] %v17691_v7  ;;  %v17694_v54 = vadd.f32 %v17622_v2, %v2143_v48 }
 0x1b2   : > { %v14410_v29 = vpop.f32.mrf.mxu1  ;;  %14613 = vmatmul.mubr.msk.bf16.gmra.mxu1 %vm1656_vm14, %v13399_v55  ;;  %v14489_v4 = vpop.f32.mrf.mxu0 }
 0x1b3   : > { %v2156_v25 = vadd.f32 %v14410_v29, %v22551_v1 }
 0x1b4   : > { %v2147_v37 = vpop.f32.mrf.mxu1  ;;  %v17699_v6 = vpop.f32.mrf.mxu0 }
 0x1b5   : > { %v2148_v53 = vadd.f32 %v2147_v37, %v22552_v57  ;;  %v17701_v24 = vadd.f32 %v14444_v36, %v2156_v25 }
 0x1b6   : > { %v14411_v16 = vpop.f32.mrf.mxu1  ;;  %v14492_v34 = vpop.f32.mrf.mxu0 }
 0x1b7   : > { %v2159_v9 = vadd.f32 %v14411_v16, %v22553_v3  ;;  %v17704_v32 = vadd.f32 %v2572_v47, %v2148_v53  ;;  %v6663_v53 = vld [vmem:[#allocation3 + $0xc] sm:$0x1] }
 0x1b8   : > { %v17706_v2 = vpop.f32.mrf.mxu1  ;;  %v3576_v59 = vpop.f32.mrf.mxu0  ;;  %v6664_v3 = vsel %vm17729_vm1, 0, %v6663_v53  ;;  %v6672_v53 = vld [vmem:[#allocation3 + $0x30] sm:$0x1] }
 0x1b9   : > { %22554 = vst [vmem:[#allocation23_spill] sm:$0xff] %v17706_v2  ;;  %v17708_v50 = vadd.f32 %v14445_v13, %v2159_v9  ;;  %6665 = vst [vmem:[#allocation3 + $0xc] sm:$0x1] %v6664_v3 }
 0x1ba   : > { %v14450_v40 = vpop.f32.mrf.mxu1  ;;  %v14493_v30 = vpop.f32.mrf.mxu0 }
 0x1bb   : > { %v2947_v27 = vadd.f32 %v14450_v40, %v17473_v19 }
 0x1bc   : > { %v2818_v56 = vpop.f32.mrf.mxu1  ;;  %v17712_v36 = vpop.f32.mrf.mxu0 }
 0x1bd   : > { %v2945_v55 = vadd.f32 %v2818_v56, %v17476_v44  ;;  %v17714_v18 = vadd.f32 %v14484_v35, %v2947_v27  ;;  %v22555_v44 = vmov 0  ;;  %v6666_v35 = vld [vmem:[#allocation3 + $0x18] sm:$0x1]  ;;  %v6721_v56 = vld [vmem:[#allocation3 + $0x20] sm:$0x1] }
 0x1be   : > { %v14451_v48 = vpop.f32.mrf.mxu1  ;;  %v17717_v29 = vpop.f32.mrf.mxu0  ;;  %v22556_v44 = vsel %vm17729_vm1, 4294967295, %v22555_v44 }
 0x1bf   : > { %v2948_v47 = vadd.f32 %v14451_v48, %v17479_v28  ;;  %v17719_v1 = vadd.f32 %v3544_v62, %v2945_v55  ;;  %22557 = vst [vmem:[#allocation25_spill] sm:$0xff] %v22556_v44  ;;  %v22558_v28 = vmov 0  ;;  %v6722_v55 = vsel %vm17735_vm5, 0, %v6721_v56 }
 0x1c0   : > { %v17721_v13 = vpop.f32.mrf.mxu1  ;;  %v17723_v25 = vpop.f32.mrf.mxu0  ;;  %v22559_v28 = vsel %vm17735_vm5, 4294967295, %v22558_v28  ;;  %6723 = vst [vmem:[#allocation3 + $0x20] sm:$0x1] %v6722_v55 }
 0x1c1   : > { %v17725_v19 = vadd.f32 %v14485_v58, %v2948_v47  ;;  %22560 = vst [vmem:[#allocation26_spill] sm:$0xff] %v22559_v28  ;;  %v6667_v58 = vsel %vm17729_vm1, 0, %v6666_v35 }
 0x1c2   : > { %v14454_v37 = vpop.f32.mrf.mxu1  ;;  %v17740_v57 = vpop.f32.mrf.mxu0  ;;  %6668 = vst [vmem:[#allocation3 + $0x18] sm:$0x1] %v6667_v58 }
 0x1c3   : > { %v2951_v62 = vadd.f32 %v14454_v37, %v17496_v63 }
 0x1c4   : > { %v2834_v16 = vpop.f32.mrf.mxu1  ;;  %v17747_v40 = vpop.f32.mrf.mxu0 }
 0x1c5   : > { %v2949_v9 = vadd.f32 %v2834_v16, %v17499_v8  ;;  %v17749_v27 = vadd.f32 %v14488_v17, %v2951_v62  ;;  %v6718_v62 = vld [vmem:[#allocation3 + $0x14] sm:$0x1] }
 0x1c6   : > { %v14455_v63 = vpop.f32.mrf.mxu1  ;;  %v17754_v47 = vpop.f32.mrf.mxu0 }
 0x1c7   : > { %v2952_v48 = vadd.f32 %v14455_v63, %v17510_v10  ;;  %v17756_v37 = vadd.f32 %v3560_v43, %v2949_v9  ;;  %v6719_v10 = vsel %vm17735_vm5, 0, %v6718_v62  ;;  %v6673_v43 = vsel %vm17729_vm1, 0, %v6672_v53 }
 0x1c8   : > { %v17758_v35 = vpop.f32.mrf.mxu1  ;;  %v17760_v8 = vpop.f32.mrf.mxu0  ;;  %6720 = vst [vmem:[#allocation3 + $0x14] sm:$0x1] %v6719_v10  ;;  %6674 = vst [vmem:[#allocation3 + $0x30] sm:$0x1] %v6673_v43 }
 0x1c9   : > { %v17762_v58 = vadd.f32 %v14489_v4, %v2952_v48  ;;  %v6669_v48 = vld [vmem:[#allocation3 + $0x24] sm:$0x1] }
 0x1ca   : > { %v14458_v17 = vpop.f32.mrf.mxu1  ;;  %v17765_v3 = vpop.f32.mrf.mxu0  ;;  %v6670_v53 = vsel %vm17729_vm1, 0, %v6669_v48 }
 0x1cb   : > { %v2955_v16 = vadd.f32 %v14458_v17, %v17525_v45  ;;  %v6727_v45 = vld [vmem:[#allocation3 + $0x38] sm:$0x1]  ;;  %6671 = vst [vmem:[#allocation3 + $0x24] sm:$0x1] %v6670_v53 }
 0x1cc   : > { %v2850_v9 = vpop.f32.mrf.mxu1  ;;  %v17772_v4 = vpop.f32.mrf.mxu0  ;;  %v6728_v10 = vsel %vm17735_vm5, 0, %v6727_v45 }
 0x1cd   : > { %v2953_v56 = vadd.f32 %v2850_v9, %v17540_v42  ;;  %22561 = vst [vmem:[#allocation28_spill] sm:$0xff] %v17772_v4  ;;  %v17774_v63 = vadd.f32 %v14492_v34, %v2955_v16  ;;  %6729 = vst [vmem:[#allocation3 + $0x38] sm:$0x1] %v6728_v10  ;;  %v6678_v9 = vld [vmem:[#allocation3 + $0x48] sm:$0x1] }
 0x1ce   : > { %v14459_v55 = vpop.f32.mrf.mxu1  ;;  %v17777_v14 = vpop.f32.mrf.mxu0  ;;  %v6679_v48 = vsel %vm17729_vm1, 0, %v6678_v9  ;;  %v22563_v10 = vld [vmem:[#allocation10_spill] sm:$0xff]  ;;  %v6760_v4 = vld [vmem:[#allocation3 + $0xbc] sm:$0x1] }
 0x1cf   : > { %v2956_v17 = vadd.f32 %v14459_v55, %v17556_v60  ;;  %v17779_v62 = vadd.f32 %v3576_v59, %v2953_v56  ;;  %v6724_v60 = vld [vmem:[#allocation3 + $0x2c] sm:$0x1]  ;;  %6680 = vst [vmem:[#allocation3 + $0x48] sm:$0x1] %v6679_v48  ;;  %v6730_v48 = vld [vmem:[#allocation3 + $0x44] sm:$0x1] }
 0x1d0   : > { %v17785_v42 = vpop.f32.mrf.mxu1  ;;  %v17787_v34 = vpop.f32.mrf.mxu0  ;;  %v6725_v55 = vsel %vm17735_vm5, 0, %v6724_v60 }
 0x1d1   : > { %v17789_v16 = vadd.f32 %v14493_v30, %v2956_v17  ;;  %6726 = vst [vmem:[#allocation3 + $0x2c] sm:$0x1] %v6725_v55 }
 0x1d2   : > { %v14462_v43 = vpop.f32.mrf.mxu1  ;;  %v17792_v56 = vpop.f32.mrf.mxu0 }
 0x1d3   : > { %v2959_v59 = vadd.f32 %v14462_v43, %v17577_v39  ;;  %v2100_v39 = vadd.f32 %v17628_v23, %v22563_v10 }
 0x1d4   : > { %v2866_v45 = vpop.f32.mrf.mxu1  ;;  %v17799_v30 = vpop.f32.mrf.mxu0 }
 0x1d5   : > { %v2957_v53 = vadd.f32 %v2866_v45, %v17599_v11  ;;  %22562 = vst [vmem:[#allocation29_spill] sm:$0xff] %v17799_v30  ;;  %v17802_v17 = vadd.f32 %v17717_v29, %v2959_v59  ;;  %v6676_v11 = vsel %vm17729_vm1, 0, %v6675_v12  ;;  %v6734_v29 = vsel %vm17735_vm5, 0, %v6733_v33  ;;  %v6684_v45 = vld [vmem:[#allocation3 + $0x60] sm:$0x1]  ;;  %v22565_v33 = vld [vmem:[#allocation4_spill] sm:$0xff] }
 0x1d6   : > { %v14463_v43 = vpop.f32.mrf.mxu1  ;;  %v17807_v2 = vpop.f32.mrf.mxu0  ;;  %6677 = vst [vmem:[#allocation3 + $0x3c] sm:$0x1] %v6676_v11  ;;  %6735 = vst [vmem:[#allocation3 + $0x50] sm:$0x1] %v6734_v29  ;;  %v22396_v11 = vmov 0.0  }
 0x1d7   : > { %v2960_v60 = vadd.f32 %v14463_v43, %v17613_v0  ;;  %v17810_v9 = vadd.f32 %v17723_v25, %v2957_v53  ;;  %v17826_v25 = vld [vmem:[%s22378_s10] sm:$0xff]  ;;  %v2603_v53 = vadd.f32 %v22565_v33, %v2100_v39  ;;  %v6731_v43 = vsel %vm17735_vm5, 0, %v6730_v48  ;;  %14650 = vmatprep.subr.mxu1 %v22396_v11 }
 0x1d8   : > { %v17816_v59 = vpop.f32.mrf.mxu1  ;;  %v17818_v23 = vpop.f32.mrf.mxu0  ;;  %22564 = vst [vmem:[#allocation13_spill] sm:$0xff] %v17826_v25  ;;  %6732 = vst [vmem:[#allocation3 + $0x44] sm:$0x1] %v6731_v43  ;;  %14651 = vmatpush3.msra.mxu1 %v17826_v25  ;;  %v6739_v30 = vld [vmem:[#allocation3 + $0x68] sm:$0x1] }
 0x1d9   : > { %v17821_v55 = vadd.f32 %v17740_v57, %v2960_v60  ;;  %v6685_v57 = vsel %vm17729_vm1, 0, %v6684_v45  ;;  %14655 = vmatprep.subr.mxu1 %v22396_v11 }
 0x1da   : > { %v14466_v0 = vpop.f32.mrf.mxu1  ;;  %v17830_v10 = vpop.f32.mrf.mxu0  ;;  %6686 = vst [vmem:[#allocation3 + $0x60] sm:$0x1] %v6685_v57 }
 0x1db   : > { %v2963_v12 = vadd.f32 %v14466_v0, %v17638_v22  ;;  %v22567_v0 = vld [vmem:[#allocation20_spill] sm:$0xff] }
 0x1dc   : > { %v2882_v60 = vpop.f32.mrf.mxu1  ;;  %v17838_v22 = vpop.f32.mrf.mxu0  ;;  %v2116_v48 = vadd.f32 %v17661_v61, %v22567_v0  ;;  %v6736_v0 = vld [vmem:[#allocation3 + $0x5c] sm:$0x1] }
 0x1dd   : > { %v2961_v29 = vadd.f32 %v2882_v60, %v2603_v53  ;;  %22566 = vst [vmem:[#allocation15_spill] sm:$0xff] %v17838_v22  ;;  %v17841_v39 = vadd.f32 %v17754_v47, %v2963_v12  ;;  %v6682_v53 = vsel %vm17729_vm1, 0, %v6681_v15  ;;  %v6740_v47 = vsel %vm17735_vm5, 0, %v6739_v30 }
 0x1de   : > { %v14467_v33 = vpop.f32.mrf.mxu1  ;;  %v17847_v43 = vpop.f32.mrf.mxu0  ;;  %6683 = vst [vmem:[#allocation3 + $0x54] sm:$0x1] %v6682_v53  ;;  %6741 = vst [vmem:[#allocation3 + $0x68] sm:$0x1] %v6740_v47  ;;  %v6737_v30 = vsel %vm17735_vm5, 0, %v6736_v0 }
 0x1df   : > { %v2964_v45 = vadd.f32 %v14467_v33, %v17645_v20  ;;  %v17850_v57 = vadd.f32 %v17760_v8, %v2961_v29  ;;  %v6690_v33 = vld [vmem:[#allocation3 + $0x78] sm:$0x1]  ;;  %v22569_v29 = vld [vmem:[#allocation11_spill] sm:$0xff]  ;;  %6738 = vst [vmem:[#allocation3 + $0x5c] sm:$0x1] %v6737_v30 }
 0x1e0   : > { %v17856_v12 = vpop.f32.mrf.mxu1  ;;  %v17858_v61 = vpop.f32.mrf.mxu0  ;;  %v2607_v11 = vadd.f32 %v22569_v29, %v2116_v48  ;;  %v6691_v53 = vsel %vm17729_vm1, 0, %v6690_v33  ;;  %v6745_v48 = vld [vmem:[#allocation3 + $0x80] sm:$0x1] }
 0x1e1   : > { %22568 = vst [vmem:[#allocation18_spill] sm:$0xff] %v17850_v57  ;;  %v17861_v60 = vadd.f32 %v17765_v3, %v2964_v45  ;;  %6692 = vst [vmem:[#allocation3 + $0x78] sm:$0x1] %v6691_v53  ;;  %v6742_v53 = vld [vmem:[#allocation3 + $0x74] sm:$0x1] }
 0x1e2   : > { %v14470_v20 = vpop.f32.mrf.mxu1  ;;  %v17865_v15 = vpop.f32.mrf.mxu0 }
 0x1e3   : > { %v2967_v8 = vadd.f32 %v14470_v20, %v17666_v26  ;;  %v6687_v20 = vld [vmem:[#allocation3 + $0x6c] sm:$0x1] }
 0x1e4   : > { %v2898_v47 = vpop.f32.mrf.mxu1  ;;  %v17871_v45 = vpop.f32.mrf.mxu0  ;;  %v6688_v33 = vsel %vm17729_vm1, 0, %v6687_v20 }
 0x1e5   : > { %v2965_v3 = vadd.f32 %v2898_v47, %v2607_v11  ;;  %22570 = vst [vmem:[#allocation22_spill] sm:$0xff] %v17871_v45  ;;  %v17874_v25 = vadd.f32 %v17777_v14, %v2967_v8  ;;  %v6746_v11 = vsel %vm17735_vm5, 0, %v6745_v48  ;;  %6689 = vst [vmem:[#allocation3 + $0x6c] sm:$0x1] %v6688_v33  ;;  %v6696_v47 = vld [vmem:[#allocation3 + $0x90] sm:$0x1] }
 0x1e6   : > { %v14471_v26 = vpop.f32.mrf.mxu1  ;;  %v17877_v22 = vpop.f32.mrf.mxu0  ;;  %6747 = vst [vmem:[#allocation3 + $0x80] sm:$0x1] %v6746_v11  ;;  %v6697_v20 = vsel %vm17729_vm1, 0, %v6696_v47 }
 0x1e7   : > { %v2968_v29 = vadd.f32 %v14471_v26, %v17672_v52  ;;  %v17880_v0 = vadd.f32 %v17787_v34, %v2965_v3  ;;  %v6743_v26 = vsel %vm17735_vm5, 0, %v6742_v53  ;;  %6698 = vst [vmem:[#allocation3 + $0x90] sm:$0x1] %v6697_v20  ;;  %v6748_v20 = vld [vmem:[#allocation3 + $0x8c] sm:$0x1] }
 0x1e8   : > { %v17886_v30 = vpop.f32.mrf.mxu1  ;;  %v17888_v14 = vpop.f32.mrf.mxu0  ;;  %6744 = vst [vmem:[#allocation3 + $0x74] sm:$0x1] %v6743_v26 }
 0x1e9   : > { %22571 = vst [vmem:[#allocation27_spill] sm:$0xff] %v17880_v0  ;;  %22572 = vst [vmem:[#allocation30_spill] sm:$0xff] %v17886_v30  ;;  %v17891_v8 = vadd.f32 %v17792_v56, %v2968_v29 }
 0x1ea   : > { %v14474_v52 = vpop.f32.mrf.mxu1  ;;  %v17894_v3 = vpop.f32.mrf.mxu0 }
 0x1eb   : > { %v2971_v34 = vadd.f32 %v14474_v52, %v17685_v5  ;;  %v6693_v5 = vld [vmem:[#allocation3 + $0x84] sm:$0x1]  ;;  %v6751_v52 = vld [vmem:[#allocation3 + $0x98] sm:$0x1] }
 0x1ec   : > { %v2914_v48 = vpop.f32.mrf.mxu1  ;;  %v17901_v56 = vpop.f32.mrf.mxu0  ;;  %v6694_v47 = vsel %vm17729_vm1, 0, %v6693_v5 }
 0x1ed   : > { %v2969_v33 = vadd.f32 %v2914_v48, %v17689_v51  ;;  %v17904_v29 = vadd.f32 %v17807_v2, %v2971_v34  ;;  %v6752_v51 = vsel %vm17735_vm5, 0, %v6751_v52  ;;  %6695 = vst [vmem:[#allocation3 + $0x84] sm:$0x1] %v6694_v47  ;;  %v6702_v48 = vld [vmem:[#allocation3 + $0xa8] sm:$0x1] }
 0x1ee   : > { %v14475_v11 = vpop.f32.mrf.mxu1  ;;  %v17907_v0 = vpop.f32.mrf.mxu0  ;;  %6753 = vst [vmem:[#allocation3 + $0x98] sm:$0x1] %v6752_v51  ;;  %v6703_v5 = vsel %vm17729_vm1, 0, %v6702_v48 }
 0x1ef   : > { %v2972_v45 = vadd.f32 %v14475_v11, %v17694_v54  ;;  %v17910_v53 = vadd.f32 %v17818_v23, %v2969_v33  ;;  %v6749_v11 = vsel %vm17735_vm5, 0, %v6748_v20  ;;  %6704 = vst [vmem:[#allocation3 + $0xa8] sm:$0x1] %v6703_v5  ;;  %v6754_v5 = vld [vmem:[#allocation3 + $0xa4] sm:$0x1] }
 0x1f0   : > { %v17916_v26 = vpop.f32.mrf.mxu1  ;;  %v17918_v2 = vpop.f32.mrf.mxu0  ;;  %6750 = vst [vmem:[#allocation3 + $0x8c] sm:$0x1] %v6749_v11 }
 0x1f1   : > { %22573 = vst [vmem:[#allocation31_spill] sm:$0xff] %v17910_v53  ;;  %22574 = vst [vmem:[#allocation33_spill] sm:$0xff] %v17916_v26  ;;  %v17921_v34 = vadd.f32 %v17830_v10, %v2972_v45  ;;  %v6699_v53 = vld [vmem:[#allocation3 + $0x9c] sm:$0x1] }
 0x1f2   : > { %v14478_v54 = vpop.f32.mrf.mxu1  ;;  %v14557_v33 = vpop.f32.mrf.mxu0  ;;  %v6700_v48 = vsel %vm17729_vm1, 0, %v6699_v53  ;;  %v6755_v53 = vsel %vm17735_vm5, 0, %v6754_v5 }
 0x1f3   : > { %v2975_v23 = vadd.f32 %v14478_v54, %v17701_v24  ;;  %v6757_v24 = vld [vmem:[#allocation3 + $0xb0] sm:$0x1]  ;;  %6701 = vst [vmem:[#allocation3 + $0x9c] sm:$0x1] %v6700_v48  ;;  %6756 = vst [vmem:[#allocation3 + $0xa4] sm:$0x1] %v6755_v53 }
 0x1f4   : > { %v2930_v52 = vpop.f32.mrf.mxu1  ;;  %v17929_v51 = vpop.f32.mrf.mxu0 }
 0x1f5   : > { %v2973_v47 = vadd.f32 %v2930_v52, %v17704_v32  ;;  %v17932_v10 = vadd.f32 %v17847_v43, %v2975_v23  ;;  %v6758_v32 = vsel %vm17735_vm5, 0, %v6757_v24  ;;  %v6708_v52 = vld [vmem:[#allocation3 + $0xc0] sm:$0x1] }
 0x1f6   : > { %v14479_v45 = vpop.f32.mrf.mxu1  ;;  %v14560_v26 = vpop.f32.mrf.mxu0  ;;  %6759 = vst [vmem:[#allocation3 + $0xb0] sm:$0x1] %v6758_v32 }
 0x1f7   : > { %v2976_v54 = vadd.f32 %v14479_v45, %v17708_v50  ;;  %v17936_v20 = vadd.f32 %v17858_v61, %v2973_v47  ;;  %v6709_v45 = vsel %vm17729_vm1, 0, %v6708_v52 }
 0x1f8   : > { %v17942_v11 = vpop.f32.mrf.mxu1  ;;  %v17944_v43 = vpop.f32.mrf.mxu0  ;;  %6710 = vst [vmem:[#allocation3 + $0xc0] sm:$0x1] %v6709_v45 }
 0x1f9   : > { %22575 = vst [vmem:[#allocation34_spill] sm:$0xff] %v17936_v20  ;;  %22576 = vst [vmem:[#allocation35_spill] sm:$0xff] %v17942_v11  ;;  %v17947_v23 = vadd.f32 %v17865_v15, %v2976_v54  ;;  %v6705_v20 = vld [vmem:[#allocation3 + $0xb4] sm:$0x1] }
 0x1fa   : > { %v14518_v50 = vpop.f32.mrf.mxu1  ;;  %v14561_v47 = vpop.f32.mrf.mxu0  ;;  %v6706_v52 = vsel %vm17729_vm1, 0, %v6705_v20 }
 0x1fb   : > { %v4143_v61 = vadd.f32 %v14518_v50, %v17714_v18  ;;  %v6763_v18 = vld [vmem:[#allocation3 + $0xc8] sm:$0x1]  ;;  %6707 = vst [vmem:[#allocation3 + $0xb4] sm:$0x1] %v6706_v52 }
 0x1fc   : > { %v4014_v24 = vpop.f32.mrf.mxu1  ;;  %v17955_v32 = vpop.f32.mrf.mxu0 }
 0x1fd   : > { %v4141_v48 = vadd.f32 %v4014_v24, %v17719_v1  ;;  %v17958_v15 = vadd.f32 %v17877_v22, %v4143_v61  ;;  %v6764_v1 = vsel %vm17735_vm5, 0, %v6763_v18 }
 0x1fe   : > { %v14519_v54 = vpop.f32.mrf.mxu1  ;;  %v14564_v11 = vpop.f32.mrf.mxu0  ;;  %6765 = vst [vmem:[#allocation3 + $0xc8] sm:$0x1] %v6764_v1 }
 0x1ff   : > { %v4144_v50 = vadd.f32 %v14519_v54, %v17725_v19  ;;  %v17962_v5 = vadd.f32 %v17888_v14, %v4141_v48 }
 0x200   : > { %v17968_v53 = vpop.f32.mrf.mxu1  ;;  %v17970_v22 = vpop.f32.mrf.mxu0 }
 0x201   : > { %v17973_v61 = vadd.f32 %v17894_v3, %v4144_v50 }
 0x202   : > { %v14522_v19 = vpop.f32.mrf.mxu1  ;;  %v14565_v14 = vpop.f32.mrf.mxu0 }
 0x203   : > { %v4147_v45 = vadd.f32 %v14522_v19, %v17749_v27 }
 0x204   : > { %v17976_v24 = vpop.f32.mrf.mxu1  ;;  %v17978_v48 = vpop.f32.mrf.mxu0 }
 0x205   : > { %22577 = vst [vmem:[#allocation10_spill] sm:$0xff] %v17978_v48  ;;  %v17981_v20 = vadd.f32 %v17907_v0, %v4147_v45 }
 0x206   : > { %v14523_v54 = vpop.f32.mrf.mxu1  ;;  %v14568_v52 = vpop.f32.mrf.mxu0 }
 0x207   : > { %v4148_v18 = vadd.f32 %v14523_v54, %v17762_v58 }
 0x208   : > { %v17984_v1 = vpop.f32.mrf.mxu1  ;;  %v17986_v44 = vpop.f32.mrf.mxu0 }
 0x209   : > { %22578 = vst [vmem:[#allocation4_spill] sm:$0xff] %v17986_v44  ;;  %v17988_v3 = vadd.f32 %v14557_v33, %v4148_v18  ;;  %v22581_v18 = vmov 0.0  }
 0x20a   : > { %v14526_v50 = vpop.f32.mrf.mxu1  ;;  %v14569_v19 = vpop.f32.mrf.mxu0  ;;  %14652 = vmatprep.mubr.msk.f32.mxu1 %vm15483_vm3, %v22581_v18 }
 0x20b   : > { %v4151_v27 = vadd.f32 %v14526_v50, %v17774_v63  ;;  %v6761_v63 = vsel %vm17735_vm5, 0, %v6760_v4 }
 0x20c   : > { %v17991_v7 = vpop.f32.mrf.mxu1  ;;  %v17993_v30 = vpop.f32.mrf.mxu0  ;;  %6762 = vst [vmem:[#allocation3 + $0xbc] sm:$0x1] %v6761_v63 }
 0x20d   : > { %22579 = vst [vmem:[#allocation20_spill] sm:$0xff] %v17993_v30  ;;  %v17995_v0 = vadd.f32 %v14560_v26, %v4151_v27 }
 0x20e   : > { %v14527_v45 = vpop.f32.mrf.mxu1  ;;  %v14572_v54 = vpop.f32.mrf.mxu0 }
 0x20f   : > { %v4152_v58 = vadd.f32 %v14527_v45, %v17789_v16 }
 0x210   : > { %v17998_v41 = vpop.f32.mrf.mxu1  ;;  %v18000_v44 = vpop.f32.mrf.mxu0 }
 0x211   : > { %22580 = vst [vmem:[#allocation11_spill] sm:$0xff] %v18000_v44  ;;  %v18002_v33 = vadd.f32 %v14561_v47, %v4152_v58 }
 0x212   : > { %v14530_v26 = vpop.f32.mrf.mxu1  ;;  %v14573_v16 = vpop.f32.mrf.mxu0 }
 0x213   : > { %v4155_v50 = vadd.f32 %v14530_v26, %v17802_v17 }
 0x214   : > { %v18009_v27 = vpop.f32.mrf.mxu1  ;;  %v18011_v45 = vpop.f32.mrf.mxu0 }
 0x215   : > { %22582 = vst [vmem:[#allocation38_spill] sm:$0xff] %v18011_v45  ;;  %v18013_v30 = vadd.f32 %v14564_v11, %v4155_v50 }
 0x216   : > { %v14531_v47 = vpop.f32.mrf.mxu1  ;;  %v14576_v28 = vpop.f32.mrf.mxu0 }
 0x217   : > { %v4156_v58 = vadd.f32 %v14531_v47, %v17821_v55 }
 0x218   : > { %v18016_v4 = vpop.f32.mrf.mxu1  ;;  %v18018_v44 = vpop.f32.mrf.mxu0 }
 0x219   : > { %22583 = vst [vmem:[#allocation39_spill] sm:$0xff] %v18018_v44  ;;  %v18020_v18 = vadd.f32 %v14565_v14, %v4156_v58 }
 0x21a   : > { %v14534_v63 = vpop.f32.mrf.mxu1  ;;  %v14577_v26 = vpop.f32.mrf.mxu0 }
 0x21b   : > { %22584 = vst [vmem:[#allocation40_spill] sm:$0xff] %v18020_v18  ;;  %v4159_v17 = vadd.f32 %v14534_v63, %v17841_v39 }
 0x21c   : > { %v18023_v48 = vpop.f32.mrf.mxu1  ;;  %v18025_v57 = vpop.f32.mrf.mxu0 }
 0x21d   : > { %22585 = vst [vmem:[#allocation41_spill] sm:$0xff] %v18025_v57  ;;  %v18027_v11 = vadd.f32 %v14568_v52, %v4159_v17 }
 0x21e   : > { %v14535_v50 = vpop.f32.mrf.mxu1  ;;  %v14580_v47 = vpop.f32.mrf.mxu0 }
 0x21f   : > { %22586 = vst [vmem:[#allocation42_spill] sm:$0xff] %v18027_v11  ;;  %v4160_v55 = vadd.f32 %v14535_v50, %v17861_v60 }
 0x220   : > { %v18030_v45 = vpop.f32.mrf.mxu1  ;;  %v18032_v31 = vpop.f32.mrf.mxu0 }
 0x221   : > { %22587 = vst [vmem:[#allocation43_spill] sm:$0xff] %v18032_v31  ;;  %v18034_v14 = vadd.f32 %v14569_v19, %v4160_v55 }
 0x222   : > { %v14538_v58 = vpop.f32.mrf.mxu1  ;;  %v14581_v63 = vpop.f32.mrf.mxu0 }
 0x223   : > { %22588 = vst [vmem:[#allocation44_spill] sm:$0xff] %v18034_v14  ;;  %v4163_v39 = vadd.f32 %v14538_v58, %v17874_v25 }
 0x224   : > { %v18037_v44 = vpop.f32.mrf.mxu1  ;;  %v18039_v18 = vpop.f32.mrf.mxu0 }
 0x225   : > { %22589 = vst [vmem:[#allocation45_spill] sm:$0xff] %v18037_v44  ;;  %22590 = vst [vmem:[#allocation46_spill] sm:$0xff] %v18039_v18  ;;  %v18041_v52 = vadd.f32 %v14572_v54, %v4163_v39 }
 0x226   : > { %v14539_v17 = vpop.f32.mrf.mxu1  ;;  %v14620_v50 = vpop.f32.mrf.mxu0 }
 0x227   : > { %22591 = vst [vmem:[#allocation47_spill] sm:$0xff] %v18041_v52  ;;  %v4164_v60 = vadd.f32 %v14539_v17, %v17891_v8 }
 0x228   : > { %v18044_v57 = vpop.f32.mrf.mxu1  ;;  %v5569_v11 = vpop.f32.mrf.mxu0 }
 0x229   : > { %v18046_v31 = vadd.f32 %v14573_v16, %v4164_v60 }
 0x22a   : > { %v14542_v19 = vpop.f32.mrf.mxu1  ;;  %v14621_v25 = vpop.f32.mrf.mxu0 }
 0x22b   : > { %22592 = vst [vmem:[#allocation48_spill] sm:$0xff] %v18046_v31  ;;  %v4167_v55 = vadd.f32 %v14542_v19, %v17904_v29  ;;  %v22596_v31 = vld [vmem:[#allocation8_spill] sm:$0xff] }
 0x22c   : > { %v18049_v58 = vpop.f32.mrf.mxu1  ;;  %v5572_v14 = vpop.f32.mrf.mxu0 }
 0x22d   : > { %v18051_v44 = vadd.f32 %v14576_v28, %v4167_v55  ;;  %v2946_v28 = vadd.f32 %v17721_v13, %v22596_v31 }
 0x22e   : > { %v14543_v54 = vpop.f32.mrf.mxu1  ;;  %v18054_v18 = vpop.f32.mrf.mxu0 }
 0x22f   : > { %22593 = vst [vmem:[#allocation49_spill] sm:$0xff] %v18051_v44  ;;  %v4168_v39 = vadd.f32 %v14543_v54, %v17921_v34 }
 0x230   : > { %v18056_v8 = vpop.f32.mrf.mxu1  ;;  %v5585_v17 = vpop.f32.mrf.mxu0 }
 0x231   : > { %22594 = vst [vmem:[#allocation50_spill] sm:$0xff] %v18056_v8  ;;  %v18058_v52 = vadd.f32 %v14577_v26, %v4168_v39 }
 0x232   : > { %v14546_v16 = vpop.f32.mrf.mxu1  ;;  %v18061_v29 = vpop.f32.mrf.mxu0 }
 0x233   : > { %22595 = vst [vmem:[#allocation51_spill] sm:$0xff] %v18058_v52  ;;  %v4171_v60 = vadd.f32 %v14546_v16, %v17932_v10  ;;  %v3672_v10 = vadd.f32 %v17682_v46, %v2946_v28 }
 0x234   : > { %v18063_v19 = vpop.f32.mrf.mxu1  ;;  %v18067_v55 = vpop.f32.mrf.mxu0 }
 0x235   : > { %v18069_v34 = vadd.f32 %v14580_v47, %v4171_v60  ;;  %v4142_v31 = vadd.f32 %v17968_v53, %v3672_v10  ;;  %v22600_v47 = vld [vmem:[#allocation12_spill] sm:$0xff] }
 0x236   : > { %v14547_v54 = vpop.f32.mrf.mxu1  ;;  %v18072_v8 = vpop.f32.mrf.mxu0  ;;  %v2950_v60 = vadd.f32 %v17758_v35, %v22600_v47 }
 0x237   : > { %22597 = vst [vmem:[#allocation8_spill] sm:$0xff] %v18069_v34  ;;  %v4172_v44 = vadd.f32 %v14547_v54, %v17947_v23  ;;  %v4501_v53 = vadd.f32 %v17901_v56, %v4142_v31 }
 0x238   : > { %v18074_v26 = vpop.f32.mrf.mxu1  ;;  %v18077_v39 = vpop.f32.mrf.mxu0  ;;  %v3676_v35 = vadd.f32 %v17699_v6, %v2950_v60 }
 0x239   : > { %22598 = vst [vmem:[#allocation52_spill] sm:$0xff] %v18074_v26  ;;  %v18079_v16 = vadd.f32 %v14581_v63, %v4172_v44  ;;  %v4145_v44 = vadd.f32 %v17976_v24, %v17756_v37 }
 0x23a   : > { %v14586_v52 = vpop.f32.mrf.mxu1  ;;  %v18082_v13 = vpop.f32.mrf.mxu0  ;;  %v4146_v37 = vadd.f32 %v17984_v1, %v3676_v35 }
 0x23b   : > { %22599 = vst [vmem:[#allocation53_spill] sm:$0xff] %v18079_v16  ;;  %v5228_v23 = vadd.f32 %v14586_v52, %v17958_v15  ;;  %v18100_v15 = vld [vmem:[%s22371_s3] ss:$0 sm:$0xff]  ;;  %v4504_v6 = vadd.f32 %v17918_v2, %v4145_v44  ;;  %v4149_v2 = vadd.f32 %v17991_v7, %v17779_v62 }
 0x23c   : > { %v5099_v34 = vpop.f32.mrf.mxu1  ;;  %v18088_v26 = vpop.f32.mrf.mxu0 }
 0x23d   : > { %v5226_v54 = vadd.f32 %v5099_v34, %v17962_v5  ;;  %v5698_v16 = vadd.f32 %v14620_v50, %v5228_v23  ;;  %v2954_v50 = vadd.f32 %v17785_v42, %v17570_v38  ;;  %v4505_v42 = vadd.f32 %v17929_v51, %v4146_v37 }
 0x23e   : > { %v14587_v46 = vpop.f32.mrf.mxu1  ;;  %v18094_v10 = vpop.f32.mrf.mxu0 }
 0x23f   : > { %v5696_v63 = vadd.f32 %v5569_v11, %v5226_v54  ;;  %v5229_v28 = vadd.f32 %v14587_v46, %v17973_v61  ;;  %v18114_v60 = vadd.f32 %v18100_v15, %v5698_v16 }
 0x240   : > { %v5102_v47 = vpop.f32.mrf.mxu1  ;;  %v18102_v52 = vpop.f32.mrf.mxu0 }
 0x241   : > { %v5227_v5 = vadd.f32 %v5102_v47, %v4501_v53  ;;  %v18106_v61 = vadd.f32 %v18100_v15, %v5696_v63  ;;  %v5699_v24 = vadd.f32 %v14621_v25, %v5229_v28  ;;  %v3680_v28 = vadd.f32 %v17712_v36, %v2954_v50 }
 0x242   : > { %v14590_v56 = vpop.f32.mrf.mxu1  ;;  %v18109_v34 = vpop.f32.mrf.mxu0  ;;  %v5771_v53 = vsel %vm5767_vm7, %v18114_v60, 0.0 }
 0x243   : > { %v5697_v11 = vadd.f32 %v5572_v14, %v5227_v5  ;;  %v5232_v23 = vadd.f32 %v14590_v56, %v17981_v20  ;;  %v5768_v14 = vsel %vm5767_vm7, %v18106_v61, 0.0  ;;  %v18128_v16 = vadd.f32 %v18100_v15, %v5699_v24 }
 0x244   : > { %v5115_v31 = vpop.f32.mrf.mxu1  ;;  %v18120_v25 = vpop.f32.mrf.mxu0 }
 0x245   : > { %v18117_v1 = vadd.f32 %v18100_v15, %v5697_v11  ;;  %v5230_v54 = vadd.f32 %v5115_v31, %v4504_v6  ;;  %v5702_v51 = vadd.f32 %v18054_v18, %v5232_v23  ;;  %v5773_v36 = vsel %vm5767_vm7, %v18128_v16, 0.0 }
 0x246   : > { %v14591_v38 = vpop.f32.mrf.mxu1  ;;  %v18133_v63 = vpop.f32.mrf.mxu0  ;;  %v4508_v11 = vadd.f32 %v17944_v43, %v4149_v2  ;;  %v2958_v6 = vadd.f32 %v17816_v59, %v17626_v21  ;;  %v22601_v2 = vld [vmem:[#allocation17_spill] sm:$0xff]  ;;  %v4153_v21 = vadd.f32 %v18009_v27, %v17810_v9 }
 0x247   : > { %v5769_v46 = vsel %vm5767_vm7, %v18117_v1, 0.0  ;;  %v5700_v44 = vadd.f32 %v5585_v17, %v5230_v54  ;;  %v5233_v20 = vadd.f32 %v14591_v38, %v17988_v3  ;;  %v4150_v17 = vadd.f32 %v17998_v41, %v3680_v28 }
 0x248   : > { %v5770_v7 = vadd.f32 %v5769_v46, %v5768_v14  ;;  %v5118_v62 = vpop.f32.mrf.mxu1  ;;  %v18142_v5 = vpop.f32.mrf.mxu0  ;;  %v18156_v23 = vadd.f32 %v18100_v15, %v5702_v51  ;;  %v2103_v14 = vadd.f32 %v17642_v49, %v22601_v2  ;;  %v3684_v49 = vadd.f32 %v17747_v40, %v2958_v6  ;;  %v22602_v51 = vld [vmem:[#allocation9_spill] sm:$0xff] }
 0x249   : > { %v18140_v35 = vadd.f32 %v18100_v15, %v5700_v44  ;;  %v5231_v47 = vadd.f32 %v5118_v62, %v4505_v42  ;;  %v5703_v56 = vadd.f32 %v18061_v29, %v5233_v20  ;;  %v4509_v38 = vadd.f32 %v17955_v32, %v4150_v17 }
 0x24a   : > { %v5772_v3 = vadd.f32 %v5771_v53, %v5770_v7  ;;  %v14594_v37 = vpop.f32.mrf.mxu1  ;;  %v18150_v18 = vpop.f32.mrf.mxu0  ;;  %v5779_v32 = vsel %vm5767_vm7, %v18156_v23, 0.0 }
 0x24b   : > { %v5701_v24 = vadd.f32 %v18067_v55, %v5231_v47  ;;  %v5236_v31 = vadd.f32 %v14594_v37, %v17995_v0  ;;  %v5775_v54 = vsel %vm5767_vm7, %v18140_v35, 0.0  ;;  %v18171_v42 = vadd.f32 %v18100_v15, %v5703_v56 }
 0x24c   : > { %v5774_v50 = vadd.f32 %v5773_v36, %v5772_v3  ;;  %v5131_v41 = vpop.f32.mrf.mxu1  ;;  %v18163_v43 = vpop.f32.mrf.mxu0  ;;  %v2604_v47 = vadd.f32 %v22602_v51, %v2103_v14  ;;  %v4512_v36 = vadd.f32 %v17970_v22, %v4153_v21  ;;  %v22605_v22 = vld [vmem:[#allocation18_spill] sm:$0xff] }
 0x24d   : > { %v18161_v29 = vadd.f32 %v18100_v15, %v5701_v24  ;;  %v5234_v55 = vadd.f32 %v5131_v41, %v4508_v11  ;;  %v5706_v9 = vadd.f32 %v18072_v8, %v5236_v31  ;;  %v5781_v40 = vsel %vm5767_vm7, %v18171_v42, 0.0  ;;  %v22603_v41 = vld [vmem:[#allocation24_spill] sm:$0xff]  ;;  %v22606_v14 = vld [vmem:[#allocation10_spill] sm:$0xff] }
 0x24e   : > { %v5776_v59 = vadd.f32 %v5775_v54, %v5774_v50  ;;  %v14595_v0 = vpop.f32.mrf.mxu1  ;;  %v18177_v28 = vpop.f32.mrf.mxu0  ;;  %v2962_v56 = vadd.f32 %v17856_v12, %v2604_v47  ;;  %v4157_v12 = vadd.f32 %v18023_v48, %v22605_v22  ;;  %v22609_v51 = vld [vmem:[#allocation14_spill] sm:$0xff] }
 0x24f   : > { %v5777_v46 = vsel %vm5767_vm7, %v18161_v29, 0.0  ;;  %v5704_v44 = vadd.f32 %v18077_v39, %v5234_v55  ;;  %v5237_v20 = vadd.f32 %v14595_v0, %v18002_v33  ;;  %v4154_v39 = vadd.f32 %v18016_v4, %v3684_v49 }
 0x250   : > { %v5778_v7 = vadd.f32 %v5777_v46, %v5776_v59  ;;  %v5134_v27 = vpop.f32.mrf.mxu1  ;;  %v18188_v3 = vpop.f32.mrf.mxu0  ;;  %v18197_v24 = vadd.f32 %v18100_v15, %v5706_v9  ;;  %v22607_v46 = vld [vmem:[#allocation40_spill] sm:$0xff] }
 0x251   : > { %v18184_v62 = vadd.f32 %v18100_v15, %v5704_v44  ;;  %v5235_v53 = vadd.f32 %v5134_v27, %v4509_v38  ;;  %v5707_v8 = vadd.f32 %v18082_v13, %v5237_v20  ;;  %v4513_v21 = vadd.f32 %v22606_v14, %v4154_v39  ;;  %v22608_v20 = vld [vmem:[#allocation28_spill] sm:$0xff] }
 0x252   : > { %v5780_v33 = vadd.f32 %v5779_v32, %v5778_v7  ;;  %v14598_v17 = vpop.f32.mrf.mxu1  ;;  %v18210_v59 = vpop.f32.mrf.mxu0  ;;  %v3688_v49 = vadd.f32 %v22608_v20, %v2962_v56  ;;  %v5787_v9 = vsel %vm5767_vm7, %v18197_v24, 0.0  ;;  %v22611_v56 = vld [vmem:[#allocation30_spill] sm:$0xff] }
 0x253   : > { %v5705_v37 = vadd.f32 %v18088_v26, %v5235_v53  ;;  %v5783_v6 = vsel %vm5767_vm7, %v18184_v62, 0.0  ;;  %v5240_v31 = vadd.f32 %v14598_v17, %v18013_v30  ;;  %v22604_v26 = vld [vmem:[#allocation36_spill] sm:$0xff]  ;;  %v18213_v0 = vadd.f32 %v18100_v15, %v5707_v8 }
 0x254   : > { %v5782_v11 = vadd.f32 %v5781_v40, %v5780_v33  ;;  %v5147_v4 = vpop.f32.mrf.mxu1  ;;  %v2119_v54 = vadd.f32 %v22604_v26, %v22603_v41  ;;  %v4158_v39 = vadd.f32 %v18030_v45, %v3688_v49  ;;  %v18228_v17 = vpop.f32.mrf.mxu0 }
 0x255   : > { %v18202_v50 = vadd.f32 %v18100_v15, %v5705_v37  ;;  %v5238_v13 = vadd.f32 %v5147_v4, %v4512_v36  ;;  %v5710_v27 = vadd.f32 %v18094_v10, %v5240_v31  ;;  %v5789_v40 = vsel %vm5767_vm7, %v18213_v0, 0.0  ;;  %v22610_v10 = vld [vmem:[#allocation4_spill] sm:$0xff] }
 0x256   : > { %v5784_v55 = vadd.f32 %v5783_v6, %v5782_v11  ;;  %v14599_v2 = vpop.f32.mrf.mxu1  ;;  %v2608_v47 = vadd.f32 %v22609_v51, %v2119_v54  ;;  %v4516_v36 = vadd.f32 %v22610_v10, %v4157_v12  ;;  %v22612_v6 = vld [vmem:[#allocation42_spill] sm:$0xff]  ;;  %v22613_v54 = vld [vmem:[#allocation32_spill] sm:$0xff]  ;;  %v22615_v12 = vld [vmem:[#allocation27_spill] sm:$0xff] }
 0x257   : > { %v5785_v38 = vsel %vm5767_vm7, %v18202_v50, 0.0  ;;  %v5708_v30 = vadd.f32 %v18102_v52, %v5238_v13  ;;  %v5241_v44 = vadd.f32 %v14599_v2, %v22607_v46  ;;  %v18238_v45 = vadd.f32 %v18100_v15, %v5710_v27  ;;  %v18250_v46 = vpop.f32.mrf.mxu0 }
 0x258   : > { %v5786_v7 = vadd.f32 %v5785_v38, %v5784_v55  ;;  %v5150_v48 = vpop.f32.mrf.mxu1  ;;  %v2966_v11 = vadd.f32 %v22611_v56, %v2608_v47  ;;  %v22616_v55 = vld [vmem:[#allocation45_spill] sm:$0xff]  ;;  %v22617_v38 = vld [vmem:[#allocation20_spill] sm:$0xff] }
 0x259   : > { %v18224_v32 = vadd.f32 %v18100_v15, %v5708_v30  ;;  %v5239_v53 = vadd.f32 %v5150_v48, %v4513_v21  ;;  %v5711_v8 = vadd.f32 %v18109_v34, %v5241_v44  ;;  %v4161_v2 = vadd.f32 %v22616_v55, %v22615_v12  ;;  %v22624_v55 = vld [vmem:[#allocation37_spill] sm:$0xff] }
 0x25a   : > { %v5788_v52 = vadd.f32 %v5787_v9, %v5786_v7  ;;  %v14602_v33 = vpop.f32.mrf.mxu1  ;;  %v4517_v30 = vadd.f32 %v22617_v38, %v4158_v39  ;;  %v22618_v7 = vld [vmem:[#allocation44_spill] sm:$0xff]  ;;  %v22619_v9 = vld [vmem:[#allocation29_spill] sm:$0xff]  ;;  %v5795_v39 = vsel %vm5767_vm7, %v18238_v45, 0.0 }
 0x25b   : > { %v5709_v37 = vadd.f32 %v18120_v25, %v5239_v53  ;;  %v5244_v31 = vadd.f32 %v14602_v33, %v22612_v6  ;;  %v5791_v41 = vsel %vm5767_vm7, %v18224_v32, 0.0  ;;  %v22614_v25 = vld [vmem:[#allocation21_spill] sm:$0xff]  ;;  %v18253_v44 = vadd.f32 %v18100_v15, %v5711_v8 }
 0x25c   : > { %v5790_v4 = vadd.f32 %v5789_v40, %v5788_v52  ;;  %v5163_v13 = vpop.f32.mrf.mxu1  ;;  %v2135_v22 = vadd.f32 %v22614_v25, %v22613_v54  ;;  %v3692_v27 = vadd.f32 %v22619_v9, %v2966_v11  ;;  %v22620_v40 = vld [vmem:[#allocation16_spill] sm:$0xff] }
 0x25d   : > { %v18243_v26 = vadd.f32 %v18100_v15, %v5709_v37  ;;  %v5242_v34 = vadd.f32 %v5163_v13, %v4516_v36  ;;  %v5714_v51 = vadd.f32 %v18133_v63, %v5244_v31  ;;  %v5665_v36 = vpop.f32.mrf.mxu0  ;;  %v5797_v56 = vsel %vm5767_vm7, %v18253_v44, 0.0  ;;  %v22622_v31 = vld [vmem:[#allocation33_spill] sm:$0xff] }
 0x25e   : > { %v5792_v14 = vadd.f32 %v5791_v41, %v5790_v4  ;;  %v14603_v21 = vpop.f32.mrf.mxu1  ;;  %v2612_v8 = vadd.f32 %v22620_v40, %v2135_v22  ;;  %v4162_v37 = vadd.f32 %v18044_v57, %v3692_v27  ;;  %v22621_v4 = vld [vmem:[#allocation11_spill] sm:$0xff] }
 0x25f   : > { %v5793_v20 = vsel %vm5767_vm7, %v18243_v26, 0.0  ;;  %v5712_v49 = vadd.f32 %v18142_v5, %v5242_v34  ;;  %v5245_v48 = vadd.f32 %v14603_v21, %v22618_v7  ;;  %v4520_v6 = vadd.f32 %v22621_v4, %v4161_v2  ;;  %v22623_v22 = vld [vmem:[#allocation47_spill] sm:$0xff]  ;;  %v14645_v7 = vpop.f32.mrf.mxu0 }
 0x260   : > { %v5794_v53 = vadd.f32 %v5793_v20, %v5792_v14  ;;  %v5166_v47 = vpop.f32.mrf.mxu1  ;;  %v2970_v13 = vadd.f32 %v22622_v31, %v2612_v8  ;;  %v18275_v41 = vadd.f32 %v18100_v15, %v5714_v51  ;;  %v22626_v2 = vld [vmem:[#allocation31_spill] sm:$0xff]  ;;  %v22627_v20 = vld [vmem:[#allocation38_spill] sm:$0xff] }
 0x261   : > { %v18264_v52 = vadd.f32 %v18100_v15, %v5712_v49  ;;  %v5243_v33 = vadd.f32 %v5166_v47, %v4517_v30  ;;  %v5715_v63 = vadd.f32 %v18150_v18, %v5245_v48  ;;  %v4165_v21 = vadd.f32 %v18049_v58, %v22626_v2  ;;  %v22629_v47 = vld [vmem:[#allocation15_spill] sm:$0xff] }
 0x262   : > { %v5796_v5 = vadd.f32 %v5795_v39, %v5794_v53  ;;  %v14606_v10 = vpop.f32.mrf.mxu1  ;;  %v4521_v49 = vadd.f32 %v22627_v20, %v4162_v37  ;;  %v22628_v53 = vld [vmem:[#allocation48_spill] sm:$0xff]  ;;  %v3696_v39 = vadd.f32 %v22629_v47, %v2970_v13  ;;  %v5803_v58 = vsel %vm5767_vm7, %v18275_v41, 0.0 }
 0x263   : > { %v5713_v11 = vadd.f32 %v18163_v43, %v5243_v33  ;;  %v5799_v57 = vsel %vm5767_vm7, %v18264_v52, 0.0  ;;  %v5248_v12 = vadd.f32 %v14606_v10, %v22623_v22  ;;  %v22625_v43 = vld [vmem:[#allocation23_spill] sm:$0xff]  ;;  %v18289_v48 = vadd.f32 %v18100_v15, %v5715_v63  ;;  %v22631_v63 = vld [vmem:[#allocation50_spill] sm:$0xff] }
 0x264   : > { %v5798_v34 = vadd.f32 %v5797_v56, %v5796_v5  ;;  %v5179_v54 = vpop.f32.mrf.mxu1  ;;  %v2151_v14 = vadd.f32 %v22625_v43, %v22624_v55  ;;  %v22630_v10 = vld [vmem:[#allocation19_spill] sm:$0xff] }
 0x265   : > { %v18280_v25 = vadd.f32 %v18100_v15, %v5713_v11  ;;  %v5246_v18 = vadd.f32 %v5179_v54, %v4520_v6  ;;  %v5718_v8 = vadd.f32 %v18177_v28, %v5248_v12  ;;  %v4166_v11 = vadd.f32 %v22631_v63, %v3696_v39  ;;  %v5668_v6 = vpop.f32.mrf.mxu0  ;;  %v22632_v54 = vld [vmem:[#allocation39_spill] sm:$0xff] }
 0x266   : > { %v5800_v38 = vadd.f32 %v5799_v57, %v5798_v34  ;;  %v14607_v30 = vpop.f32.mrf.mxu1  ;;  %v2616_v56 = vadd.f32 %v22630_v10, %v2151_v14  ;;  %v5805_v31 = vsel %vm5767_vm7, %v18289_v48, 0.0  ;;  %v4524_v28 = vadd.f32 %v22632_v54, %v4165_v21  ;;  %v22633_v57 = vld [vmem:[#allocation35_spill] sm:$0xff] }
 0x267   : > { %v5801_v9 = vsel %vm5767_vm7, %v18280_v25, 0.0  ;;  %v5716_v27 = vadd.f32 %v18188_v3, %v5246_v18  ;;  %v5249_v51 = vadd.f32 %v14607_v30, %v22628_v53  ;;  %v22634_v18 = vld [vmem:[#allocation49_spill] sm:$0xff]  ;;  %v18312_v14 = vadd.f32 %v18100_v15, %v5718_v8  ;;  %v22635_v30 = vld [vmem:[#allocation34_spill] sm:$0xff]  ;;  %v22637_v39 = vld [vmem:[#allocation51_spill] sm:$0xff] }
 0x268   : > { %v5802_v33 = vadd.f32 %v5801_v9, %v5800_v38  ;;  %v5182_v40 = vpop.f32.mrf.mxu1  ;;  %v2974_v22 = vadd.f32 %v22633_v57, %v2616_v56 }
 0x269   : > { %v18300_v37 = vadd.f32 %v18100_v15, %v5716_v27  ;;  %v5247_v5 = vadd.f32 %v5182_v40, %v4521_v49  ;;  %v5719_v13 = vadd.f32 %v18210_v59, %v5249_v51  ;;  %v22636_v49 = vld [vmem:[#allocation41_spill] sm:$0xff]  ;;  %v14648_v27 = vpop.f32.mrf.mxu0  ;;  %v22638_v40 = vld [vmem:[#allocation22_spill] sm:$0xff]  ;;  %v5811_v10 = vsel %vm5767_vm7, %v18312_v14, 0.0 }
 0x26a   : > { %v5804_v3 = vadd.f32 %v5803_v58, %v5802_v33  ;;  %v14610_v4 = vpop.f32.mrf.mxu1  ;;  %v4525_v9 = vadd.f32 %v22636_v49, %v4166_v11  ;;  %v3700_v58 = vadd.f32 %v22638_v40, %v2974_v22  ;;  %v22639_v11 = vld [vmem:[#allocation52_spill] sm:$0xff] }
 0x26b   : > { %v5717_v34 = vadd.f32 %v18228_v17, %v5247_v5  ;;  %v5252_v55 = vadd.f32 %v14610_v4, %v22634_v18  ;;  %v5807_v2 = vsel %vm5767_vm7, %v18300_v37, 0.0  ;;  %v4169_v17 = vadd.f32 %v18063_v19, %v22635_v30 }
 0x26c   : > { %v5806_v12 = vadd.f32 %v5805_v31, %v5804_v3  ;;  %v5195_v43 = vpop.f32.mrf.mxu1  ;;  %v18323_v53 = vadd.f32 %v18100_v15, %v5719_v13  ;;  %v4170_v3 = vadd.f32 %v22639_v11, %v3700_v58 }
 0x26d   : > { %v18317_v38 = vadd.f32 %v18100_v15, %v5717_v34  ;;  %v5250_v59 = vadd.f32 %v5195_v43, %v4524_v28  ;;  %v5722_v5 = vadd.f32 %v18250_v46, %v5252_v55  ;;  %v22640_v28 = vld [vmem:[#allocation43_spill] sm:$0xff]  ;;  %v22641_v43 = vld [vmem:[#allocation8_spill] sm:$0xff] }
 0x26e   : > { %v5808_v21 = vadd.f32 %v5807_v2, %v5806_v12  ;;  %v14611_v20 = vpop.f32.mrf.mxu1  ;;  %v5813_v13 = vsel %vm5767_vm7, %v18323_v53, 0.0  ;;  %v4528_v46 = vadd.f32 %v22640_v28, %v4169_v17 }
 0x26f   : > { %v5809_v51 = vsel %vm5767_vm7, %v18317_v38, 0.0  ;;  %v5720_v47 = vadd.f32 %v5665_v36, %v5250_v59  ;;  %v5253_v33 = vadd.f32 %v14611_v20, %v22637_v39  ;;  %v5681_v36 = vpop.f32.mrf.mxu0  ;;  %v18340_v57 = vadd.f32 %v18100_v15, %v5722_v5 }
 0x270   : > { %v5810_v8 = vadd.f32 %v5809_v51, %v5808_v21  ;;  %v5198_v19 = vpop.f32.mrf.mxu1  ;;  %v22643_v51 = vld [vmem:[#allocation53_spill] sm:$0xff] }
 0x271   : > { %v18333_v56 = vadd.f32 %v18100_v15, %v5720_v47  ;;  %v5251_v63 = vadd.f32 %v5198_v19, %v4525_v9  ;;  %v5723_v34 = vadd.f32 %v14645_v7, %v5253_v33  ;;  %v14649_v21 = vpop.f32.mrf.mxu0  ;;  %v5819_v40 = vsel %vm5767_vm7, %v18340_v57, 0.0 }
 0x272   : > { %v5812_v4 = vadd.f32 %v5811_v10, %v5810_v8  ;;  %v14614_v31 = vpop.f32.mrf.mxu1 }
 0x273   : > { %v5721_v54 = vadd.f32 %v5668_v6, %v5251_v63  ;;  %v5815_v18 = vsel %vm5767_vm7, %v18333_v56, 0.0  ;;  %v5256_v2 = vadd.f32 %v14614_v31, %v22641_v43  ;;  %v22642_v6 = vld [vmem:[#allocation46_spill] sm:$0xff]  ;;  %v18350_v17 = vadd.f32 %v18100_v15, %v5723_v34  ;;  %v5684_v10 = vpop.f32.mrf.mxu0 }
 0x274   : > { %v5814_v22 = vadd.f32 %v5813_v13, %v5812_v4  ;;  %v5211_v12 = vpop.f32.mrf.mxu1  ;;  %v4529_v20 = vadd.f32 %v22642_v6, %v4170_v3  ;;  %v22644_v6 = vmov 0.0  }
 0x275   : > { %v18345_v55 = vadd.f32 %v18100_v15, %v5721_v54  ;;  %v5254_v59 = vadd.f32 %v5211_v12, %v4528_v46  ;;  %v5726_v58 = vadd.f32 %v14648_v27, %v5256_v2  ;;  %v5821_v63 = vsel %vm5767_vm7, %v18350_v17, 0.0 }
 0x276   : > { %v5816_v30 = vadd.f32 %v5815_v18, %v5814_v22  ;;  %v14615_v7 = vpop.f32.mrf.mxu1 }
 0x277   : > { %v5817_v49 = vsel %vm5767_vm7, %v18345_v55, 0.0  ;;  %v5724_v9 = vadd.f32 %v5681_v36, %v5254_v59  ;;  %v5257_v47 = vadd.f32 %v14615_v7, %v22643_v51  ;;  %v18363_v31 = vadd.f32 %v18100_v15, %v5726_v58 }
 0x278   : > { %v5818_v39 = vadd.f32 %v5817_v49, %v5816_v30  ;;  %v5214_v33 = vpop.f32.mrf.mxu1  ;;  %v5986_v51 = vlaneseq }
 0x279   : > { %v18358_v8 = vadd.f32 %v18100_v15, %v5724_v9  ;;  %v5255_v5 = vadd.f32 %v5214_v33, %v4529_v20  ;;  %v5727_v11 = vadd.f32 %v14649_v21, %v5257_v47  ;;  %v5827_v46 = vsel %vm5767_vm7, %v18363_v31, 0.0  ;;  %v22645_v9 = vld [vmem:[#allocation13_spill] sm:$0xff] }
 0x27a   : > { %v5820_v19 = vadd.f32 %v5819_v40, %v5818_v39  ;;  %v5987_v39 = vshrl.u32 %v5986_v51, 7 }
 0x27b   : > { %v5725_v3 = vadd.f32 %v5684_v10, %v5255_v5  ;;  %v5823_v36 = vsel %vm5767_vm7, %v18358_v8, 0.0  ;;  %v18371_v34 = vadd.f32 %v18100_v15, %v5727_v11 }
 0x27c   : > { %v5822_v4 = vadd.f32 %v5821_v63, %v5820_v19  ;;  %v18394_v58 = vsub.s32 0, %v5987_v39 }
 0x27d   : > { %v18368_v27 = vadd.f32 %v18100_v15, %v5725_v3  ;;  %v5829_v12 = vsel %vm5767_vm7, %v18371_v34, 0.0  ;;  %v18382_v15 = vld [vmem:[%s22379_s11] sm:$0xff] }
 0x27e   : > { %v5824_v13 = vadd.f32 %v5823_v36, %v5822_v4  ;;  %22646 = vst [vmem:[#allocation12_spill] sm:$0xff] %v18394_v58 }
 0x27f   : > { %v5825_v54 = vsel %vm5767_vm7, %v18368_v27, 0.0 }
 0x280   : > { %v5826_v28 = vadd.f32 %v5825_v54, %v5824_v13 }
 0x282   : > { %v5828_v22 = vadd.f32 %v5827_v46, %v5826_v28 }
 0x284   : > { %v5830_v18 = vadd.f32 %v5829_v12, %v5828_v22 }
 0x286   : > { %v5831_v43 = vrot.slane %v5830_v18, 4 }
 0x288   : > { %v5832_v2 = vadd.f32 %v5831_v43, %v5830_v18 }
 0x28a   : > { %v5833_v59 = vrot.slane %v5832_v2, 2 }
 0x28c   : > { %v5834_v30 = vadd.f32 %v5833_v59, %v5832_v2 }
 0x28e   : > { %v5835_v21 = vrot.slane %v5834_v30, 1 }
 0x290   : > { %v5836_v7 = vadd.f32 %v5835_v21, %v5834_v30 }
 0x292   : > { %14653 = vmatmul.mubr.msk.f32.vlgmr.msra.gmra.mxu1 %vm5767_vm7, %v5836_v7 }
 0x293   : > { %14656 = vmatpush3.msra.mxu1 %v18382_v15  ;;  %14657 = vmatprep.mubr.msk.f32.mxu1 %vm15483_vm3, %v22644_v6 }
 0x294   : > { %14660 = vmatprep.subr.mxu1 %v22644_v6 }
 0x352   : > { %v5907_v20 = vpop.f32.mrf.mxu1 }
 0x353   : > { %14658 = vmatmul.mubr.msk.f32.vlgmr.msra.gmra.mxu1 %vm5767_vm7, %v5907_v20 }
 0x354   : > { %v14654_v49 = vpop.f32.mrf.mxu1  ;;  %14661 = vmatpush3.msra.mxu1 %v22645_v9  ;;  %14662 = vmatprep.mubr.msk.f32.mxu1 %vm15483_vm3, %v22644_v6 }
 0x355   : > { %14665 = vmatprep.subr.mxu1 %v22644_v6 }
 0x413   : > { %v5981_v47 = vpop.f32.mrf.mxu1 }
 0x414   : > { %v5985_v40 = vmul.f32 0.00390625, %v5981_v47 }
 0x415   : > { %v14659_v33 = vpop.f32.mrf.mxu1 }
 0x416   : > { %v18397_v5 = vrot.slane %v5985_v40, %v18394_v58 }
 0x418   : > { %v18401_v19 = vsub.f32 %v18106_v61, %v18397_v5  ;;  %v18405_v10 = vsub.f32 %v18117_v1, %v18397_v5  ;;  %v18409_v63 = vsub.f32 %v18114_v60, %v18397_v5  ;;  %v18413_v11 = vsub.f32 %v18128_v16, %v18397_v5 }
 0x419   : > { %v18421_v61 = vsub.f32 %v18140_v35, %v18397_v5  ;;  %v18427_v60 = vsub.f32 %v18161_v29, %v18397_v5  ;;  %v18435_v28 = vsub.f32 %v18156_v23, %v18397_v5  ;;  %v18442_v29 = vsub.f32 %v18171_v42, %v18397_v5 }
 0x41a   : > { %v6022_v3 = vmul.f32 %v18401_v19, %v18401_v19  ;;  %v6023_v4 = vmul.f32 %v18405_v10, %v18405_v10  ;;  %v6024_v1 = vmul.f32 %v18409_v63, %v18409_v63  ;;  %v6025_v16 = vmul.f32 %v18413_v11, %v18413_v11 }
 0x41b   : > { %v6026_v35 = vmul.f32 %v18421_v61, %v18421_v61  ;;  %v6027_v12 = vmul.f32 %v18427_v60, %v18427_v60  ;;  %v18449_v23 = vsub.f32 %v18184_v62, %v18397_v5  ;;  %v6028_v2 = vmul.f32 %v18435_v28, %v18435_v28 }
 0x41c   : > { %v6054_v36 = vsel %vm5767_vm7, %v6022_v3, 0.0  ;;  %v6055_v13 = vsel %vm5767_vm7, %v6023_v4, 0.0  ;;  %v6057_v46 = vsel %vm5767_vm7, %v6024_v1, 0.0  ;;  %v6059_v18 = vsel %vm5767_vm7, %v6025_v16, 0.0 }
 0x41d   : > { %v6056_v54 = vadd.f32 %v6055_v13, %v6054_v36  ;;  %v6061_v59 = vsel %vm5767_vm7, %v6026_v35, 0.0  ;;  %v18456_v42 = vsub.f32 %v18202_v50, %v18397_v5  ;;  %v6029_v21 = vmul.f32 %v18442_v29, %v18442_v29 }
 0x41e   : > { %v6063_v7 = vsel %vm5767_vm7, %v6027_v12, 0.0  ;;  %v18463_v62 = vsub.f32 %v18197_v24, %v18397_v5  ;;  %v6030_v49 = vmul.f32 %v18449_v23, %v18449_v23  ;;  %v6065_v9 = vsel %vm5767_vm7, %v6028_v2, 0.0 }
 0x41f   : > { %v6058_v22 = vadd.f32 %v6057_v46, %v6056_v54  ;;  %v18470_v50 = vsub.f32 %v18213_v0, %v18397_v5  ;;  %v6031_v47 = vmul.f32 %v18456_v42, %v18456_v42  ;;  %v6067_v39 = vsel %vm5767_vm7, %v6029_v21, 0.0 }
 0x420   : > { %v18477_v24 = vsub.f32 %v18224_v32, %v18397_v5  ;;  %v6032_v40 = vmul.f32 %v18463_v62, %v18463_v62  ;;  %v6069_v3 = vsel %vm5767_vm7, %v6030_v49, 0.0  ;;  %v18484_v0 = vsub.f32 %v18243_v26, %v18397_v5 }
 0x421   : > { %v6060_v43 = vadd.f32 %v6059_v18, %v6058_v22  ;;  %v6033_v1 = vmul.f32 %v18470_v50, %v18470_v50  ;;  %v6071_v16 = vsel %vm5767_vm7, %v6031_v47, 0.0  ;;  %v18491_v32 = vsub.f32 %v18238_v45, %v18397_v5 }
 0x422   : > { %v6034_v13 = vmul.f32 %v18477_v24, %v18477_v24  ;;  %v6073_v54 = vsel %vm5767_vm7, %v6032_v40, 0.0  ;;  %v18498_v26 = vsub.f32 %v18253_v44, %v18397_v5  ;;  %v6035_v46 = vmul.f32 %v18484_v0, %v18484_v0 }
 0x423   : > { %v6062_v30 = vadd.f32 %v6061_v59, %v6060_v43  ;;  %v6075_v22 = vsel %vm5767_vm7, %v6033_v1, 0.0  ;;  %v18505_v45 = vsub.f32 %v18264_v52, %v18397_v5  ;;  %v6036_v18 = vmul.f32 %v18491_v32, %v18491_v32 }
 0x424   : > { %v6077_v43 = vsel %vm5767_vm7, %v6034_v13, 0.0  ;;  %v18512_v44 = vsub.f32 %v18280_v25, %v18397_v5  ;;  %v6037_v59 = vmul.f32 %v18498_v26, %v18498_v26  ;;  %v18519_v52 = vsub.f32 %v18275_v41, %v18397_v5 }
 0x425   : > { %v6064_v20 = vadd.f32 %v6063_v7, %v6062_v30  ;;  %v6079_v30 = vsel %vm5767_vm7, %v6035_v46, 0.0  ;;  %v6038_v7 = vmul.f32 %v18505_v45, %v18505_v45  ;;  %v18526_v25 = vsub.f32 %v18289_v48, %v18397_v5 }
 0x426   : > { %v18533_v41 = vsub.f32 %v18300_v37, %v18397_v5  ;;  %v18540_v48 = vsub.f32 %v18317_v38, %v18397_v5  ;;  %v18547_v37 = vsub.f32 %v18312_v14, %v18397_v5  ;;  %v18554_v38 = vsub.f32 %v18323_v53, %v18397_v5 }
 0x427   : > { %v6066_v51 = vadd.f32 %v6065_v9, %v6064_v20  ;;  %v6081_v20 = vsel %vm5767_vm7, %v6036_v18, 0.0  ;;  %v6039_v9 = vmul.f32 %v18512_v44, %v18512_v44  ;;  %v18561_v14 = vsub.f32 %v18333_v56, %v18397_v5 }
 0x428   : > { %v18568_v53 = vsub.f32 %v18345_v55, %v18397_v5  ;;  %v18575_v56 = vsub.f32 %v18340_v57, %v18397_v5  ;;  %v18582_v55 = vsub.f32 %v18350_v17, %v18397_v5  ;;  %v18589_v57 = vsub.f32 %v18358_v8, %v18397_v5 }
 0x429   : > { %v6068_v33 = vadd.f32 %v6067_v39, %v6066_v51  ;;  %v6083_v51 = vsel %vm5767_vm7, %v6037_v59, 0.0  ;;  %v6040_v39 = vmul.f32 %v18519_v52, %v18519_v52  ;;  %v18596_v17 = vsub.f32 %v18368_v27, %v18397_v5 }
 0x42a   : > { %v18603_v8 = vsub.f32 %v18363_v31, %v18397_v5  ;;  %v18610_v27 = vsub.f32 %v18371_v34, %v18397_v5 }
 0x42b   : > { %v6070_v4 = vadd.f32 %v6069_v3, %v6068_v33  ;;  %v6085_v33 = vsel %vm5767_vm7, %v6038_v7, 0.0  ;;  %v6041_v3 = vmul.f32 %v18526_v25, %v18526_v25 }
 0x42c   : > { %v6052_v31 = vmul.f32 %v18603_v8, %v18603_v8 }
 0x42d   : > { %v6072_v36 = vadd.f32 %v6071_v16, %v6070_v4  ;;  %v6087_v4 = vsel %vm5767_vm7, %v6039_v9, 0.0  ;;  %v6042_v16 = vmul.f32 %v18533_v41, %v18533_v41 }
 0x42e   : > { %v6113_v34 = vsel %vm5767_vm7, %v6052_v31, 0.0 }
 0x42f   : > { %v6074_v35 = vadd.f32 %v6073_v54, %v6072_v36  ;;  %v6089_v36 = vsel %vm5767_vm7, %v6040_v39, 0.0  ;;  %v6043_v54 = vmul.f32 %v18540_v48, %v18540_v48 }
 0x431   : > { %v6076_v12 = vadd.f32 %v6075_v22, %v6074_v35  ;;  %v6091_v35 = vsel %vm5767_vm7, %v6041_v3, 0.0  ;;  %v6044_v22 = vmul.f32 %v18547_v37, %v18547_v37 }
 0x433   : > { %v6078_v2 = vadd.f32 %v6077_v43, %v6076_v12  ;;  %v6093_v12 = vsel %vm5767_vm7, %v6042_v16, 0.0  ;;  %v6045_v43 = vmul.f32 %v18554_v38, %v18554_v38 }
 0x435   : > { %v6080_v21 = vadd.f32 %v6079_v30, %v6078_v2  ;;  %v6095_v2 = vsel %vm5767_vm7, %v6043_v54, 0.0  ;;  %v6046_v30 = vmul.f32 %v18561_v14, %v18561_v14 }
 0x437   : > { %v6082_v49 = vadd.f32 %v6081_v20, %v6080_v21  ;;  %v6097_v21 = vsel %vm5767_vm7, %v6044_v22, 0.0  ;;  %v6047_v20 = vmul.f32 %v18568_v53, %v18568_v53  ;;  %v6053_v22 = vmul.f32 %v18610_v27, %v18610_v27 }
 0x439   : > { %v6084_v47 = vadd.f32 %v6083_v51, %v6082_v49  ;;  %v6099_v49 = vsel %vm5767_vm7, %v6045_v43, 0.0  ;;  %v6048_v51 = vmul.f32 %v18575_v56, %v18575_v56  ;;  %v6115_v43 = vsel %vm5767_vm7, %v6053_v22, 0.0 }
 0x43b   : > { %v6086_v40 = vadd.f32 %v6085_v33, %v6084_v47  ;;  %v6101_v47 = vsel %vm5767_vm7, %v6046_v30, 0.0  ;;  %v6049_v33 = vmul.f32 %v18582_v55, %v18582_v55 }
 0x43d   : > { %v6088_v1 = vadd.f32 %v6087_v4, %v6086_v40  ;;  %v6103_v40 = vsel %vm5767_vm7, %v6047_v20, 0.0  ;;  %v6050_v4 = vmul.f32 %v18589_v57, %v18589_v57 }
 0x43f   : > { %v6090_v13 = vadd.f32 %v6089_v36, %v6088_v1  ;;  %v6105_v1 = vsel %vm5767_vm7, %v6048_v51, 0.0  ;;  %v6051_v36 = vmul.f32 %v18596_v17, %v18596_v17 }
 0x441   : > { %v6092_v46 = vadd.f32 %v6091_v35, %v6090_v13  ;;  %v6107_v13 = vsel %vm5767_vm7, %v6049_v33, 0.0  ;;  %v6109_v35 = vsel %vm5767_vm7, %v6050_v4, 0.0  ;;  %v6660_v33 = vld [vmem:[#allocation3] sm:$0x1] }
 0x443   : > { %v6094_v18 = vadd.f32 %v6093_v12, %v6092_v46  ;;  %v6111_v12 = vsel %vm5767_vm7, %v6051_v36, 0.0 }
 0x445   : > { %v6096_v59 = vadd.f32 %v6095_v2, %v6094_v18 }
 0x447   : > { %v6098_v7 = vadd.f32 %v6097_v21, %v6096_v59 }
 0x449   : > { %v6100_v9 = vadd.f32 %v6099_v49, %v6098_v7 }
 0x44b   : > { %v6102_v39 = vadd.f32 %v6101_v47, %v6100_v9  ;;  %v7332_v47 = vld [vmem:[%s22374_s6] sm:$0xf] }
 0x44c   : > { %15043 = vmatprep.subr.msk.bf16.mxu0 %vm7831_vm8, %v7332_v47 }
 0x44d   : > { %v6104_v3 = vadd.f32 %v6103_v40, %v6102_v39  ;;  %v8125_v39 = vsel %vm7831_vm8, %v7332_v47, 0 }
 0x44e   : > { %14705 = vmatpush3.bf16.msra.mxu0 %v8125_v39 }
 0x44f   : > { %v6106_v16 = vadd.f32 %v6105_v1, %v6104_v3  ;;  %v18635_v3 = vld [vmem:[#allocation3 + $0x4] sm:$0xf] }
 0x451   : > { %v6108_v54 = vadd.f32 %v6107_v13, %v6106_v16 }
 0x453   : > { %v6110_v46 = vadd.f32 %v6109_v35, %v6108_v54 }
 0x455   : > { %v6112_v18 = vadd.f32 %v6111_v12, %v6110_v46 }
 0x457   : > { %v6114_v5 = vadd.f32 %v6113_v34, %v6112_v18  ;;  %v7363_v18 = vshrl.u32 %v18635_v3, 16 }
 0x459   : > { %v6116_v2 = vadd.f32 %v6115_v43, %v6114_v5 }
 0x45b   : > { %v6117_v59 = vrot.slane %v6116_v2, 4 }
 0x45d   : > { %v6118_v30 = vadd.f32 %v6117_v59, %v6116_v2 }
 0x45f   : > { %v6119_v21 = vrot.slane %v6118_v30, 2 }
 0x461   : > { %v6120_v7 = vadd.f32 %v6119_v21, %v6118_v30 }
 0x463   : > { %v6121_v20 = vrot.slane %v6120_v7, 1 }
 0x465   : > { %v6122_v49 = vadd.f32 %v6121_v20, %v6120_v7 }
 0x467   : > { %14663 = vmatmul.mubr.msk.f32.vlgmr.msra.gmra.mxu1 %vm5767_vm7, %v6122_v49 }
 0x468   : > { %14666 = vmatpush3.msra.mxu1 %v18382_v15  ;;  %14667 = vmatprep.mubr.msk.f32.mxu1 %vm15483_vm3, %v22644_v6  ;;  %v6661_v15 = vsel %vm17729_vm1, 0, %v6660_v33 }
 0x469   : > { %6662 = vst [vmem:[#allocation3] sm:$0x1] %v6661_v15 }
 0x470   : > { %v7300_v4 = vld [vmem:[#allocation3] sm:$0xf] }
 0x471   : > { %v13570_v1 = vcombine.low %v7300_v4, %v18635_v3  ;;  %v7350_v35 = vshrl.u32 %v7300_v4, 16  ;;  %v7353_v22 = vshll.u32 %v7300_v4, 16 }
 0x473   : > { %14706 = vmatprep.mubr.msk.bf16.mxu0 %vm5767_vm7, %v13570_v1  ;;  %v18640_v12 = vrot.slane %v7350_v35, 4  ;;  %v18646_v2 = vrot.slane %v7353_v22, 5 }
 0x527   : > { %v6192_v9 = vpop.f32.mrf.mxu1 }
 0x528   : > { %14668 = vmatmul.mubr.msk.f32.vlgmr.msra.gmra.mxu1 %vm5767_vm7, %v6192_v9 }
 0x529   : > { %v14664_v51 = vpop.f32.mrf.mxu1 }
 0x5e8   : > { %v6265_v16 = vpop.f32.mrf.mxu1 }
 0x5e9   : > { %v6269_v36 = vmul.f32 0.00390625, %v6265_v16 }
 0x5ea   : > { %v14669_v13 = vpop.f32.mrf.mxu1 }
 0x5eb   : > { %v6270_v54 = vadd.f32 1e-05, %v6269_v36 }
 0x5ed   : > { %15144 = vrsqrt.f32 %v6270_v54 }
 0x5fa   : > { %v15145_v31 = vpop.eup %15144 }
 0x5fb   : > { %v6275_v46 = vrot.slane %v15145_v31, %v18394_v58 }
 0x5fd   : > { %v6276_v34 = vmul.f32 %v6275_v46, %v18401_v19  ;;  %v6277_v5 = vmul.f32 %v6275_v46, %v18405_v10  ;;  %v6278_v43 = vmul.f32 %v6275_v46, %v18409_v63  ;;  %v6279_v59 = vmul.f32 %v6275_v46, %v18413_v11 }
 0x5fe   : > { %v6280_v30 = vmul.f32 %v6275_v46, %v18421_v61  ;;  %v6281_v21 = vmul.f32 %v6275_v46, %v18427_v60  ;;  %v6282_v7 = vmul.f32 %v6275_v46, %v18435_v28  ;;  %v6283_v20 = vmul.f32 %v6275_v46, %v18442_v29  ;;  %v18663_v60 = vld [vmem:[%s22372_s4] ss:$0 sm:$0xff] }
 0x5ff   : > { %v6284_v49 = vmul.f32 %v6275_v46, %v18449_v23  ;;  %v6285_v19 = vmul.f32 %v6275_v46, %v18456_v42  ;;  %v6286_v10 = vmul.f32 %v6275_v46, %v18463_v62  ;;  %v6304_v63 = vmul.f32 %v6275_v46, %v18589_v57 }
 0x600   : > { %v6305_v9 = vmul.f32 %v6275_v46, %v18596_v17  ;;  %v6306_v11 = vmul.f32 %v6275_v46, %v18603_v8  ;;  %v6307_v61 = vmul.f32 %v6275_v46, %v18610_v27  ;;  %v6287_v28 = vmul.f32 %v6275_v46, %v18470_v50 }
 0x601   : > { %v6288_v29 = vmul.f32 %v6275_v46, %v18477_v24  ;;  %v6289_v23 = vmul.f32 %v6275_v46, %v18484_v0  ;;  %v6290_v42 = vmul.f32 %v6275_v46, %v18491_v32  ;;  %v6291_v62 = vmul.f32 %v6275_v46, %v18498_v26 }
 0x602   : > { %v6292_v57 = vmul.f32 %v6275_v46, %v18505_v45  ;;  %v6293_v17 = vmul.f32 %v6275_v46, %v18512_v44  ;;  %v6294_v8 = vmul.f32 %v6275_v46, %v18519_v52  ;;  %v6295_v27 = vmul.f32 %v6275_v46, %v18526_v25 }
 0x603   : > { %v6296_v51 = vmul.f32 %v6275_v46, %v18533_v41  ;;  %v6297_v50 = vmul.f32 %v6275_v46, %v18540_v48  ;;  %v6298_v24 = vmul.f32 %v6275_v46, %v18547_v37  ;;  %v6343_v0 = vmul.f32 %v18663_v60, %v6304_v63  ;;  %v18688_v48 = vld [vmem:[%s22373_s5] ss:$0 sm:$0xff] }
 0x604   : > { %v6344_v32 = vmul.f32 %v18663_v60, %v6305_v9  ;;  %v6345_v26 = vmul.f32 %v18663_v60, %v6306_v11  ;;  %v6346_v45 = vmul.f32 %v18663_v60, %v6307_v61  ;;  %v6299_v44 = vmul.f32 %v6275_v46, %v18554_v38 }
 0x605   : > { %v6315_v52 = vmul.f32 %v18663_v60, %v6276_v34  ;;  %v6316_v25 = vmul.f32 %v18663_v60, %v6277_v5  ;;  %v6317_v41 = vmul.f32 %v18663_v60, %v6278_v43  ;;  %v6300_v37 = vmul.f32 %v6275_v46, %v18561_v14 }
 0x606   : > { %v6301_v47 = vmul.f32 %v6275_v46, %v18568_v53  ;;  %v18693_v39 = vmul.f32 %v6275_v46, %v18575_v56  ;;  %v6318_v38 = vmul.f32 %v18663_v60, %v6279_v59  ;;  %v18697_v33 = vmul.f32 %v6275_v46, %v18582_v55 }
 0x607   : > { %v6319_v15 = vmul.f32 %v18663_v60, %v6280_v30  ;;  %v6320_v4 = vmul.f32 %v18663_v60, %v6281_v21  ;;  %v6321_v1 = vmul.f32 %v18663_v60, %v6282_v7  ;;  %v6322_v16 = vmul.f32 %v18663_v60, %v6283_v20 }
 0x608   : > { %v6323_v14 = vmul.f32 %v18663_v60, %v6284_v49  ;;  %v6324_v53 = vmul.f32 %v18663_v60, %v6285_v19  ;;  %v6325_v56 = vmul.f32 %v18663_v60, %v6286_v10  ;;  %v6326_v36 = vmul.f32 %v18663_v60, %v6287_v28 }
 0x609   : > { %v18708_v13 = vadd.f32 %v18688_v48, %v6315_v52  ;;  %v18711_v55 = vadd.f32 %v18688_v48, %v6316_v25  ;;  %v18714_v54 = vadd.f32 %v18688_v48, %v6317_v41  ;;  %v6327_v31 = vmul.f32 %v18663_v60, %v6288_v29 }
 0x60a   : > { %v6328_v35 = vmul.f32 %v18663_v60, %v6289_v23  ;;  %v6329_v46 = vmul.f32 %v18663_v60, %v6290_v42  ;;  %v18720_v22 = vadd.f32 %v18688_v48, %v6318_v38  ;;  %v6330_v34 = vmul.f32 %v18663_v60, %v6291_v62 }
 0x60b   : > { %v6331_v5 = vmul.f32 %v18663_v60, %v6292_v57  ;;  %v18725_v43 = vadd.f32 %v18688_v48, %v6319_v15  ;;  %v18728_v59 = vadd.f32 %v18688_v48, %v6320_v4  ;;  %v18731_v30 = vadd.f32 %v18688_v48, %v6343_v0 }
 0x60c   : > { %v18734_v21 = vadd.f32 %v18688_v48, %v6344_v32  ;;  %v18737_v7 = vadd.f32 %v18688_v48, %v6345_v26  ;;  %v18740_v20 = vadd.f32 %v18688_v48, %v6346_v45  ;;  %v18743_v49 = vadd.f32 %v18688_v48, %v6321_v1 }
 0x60d   : > { %22648 = vst [vmem:[#allocation17_spill] sm:$0xff] %v18731_v30  ;;  %v13472_v19 = vmul.f32 -1.442695, %v18708_v13  ;;  %v13473_v10 = vmul.f32 -1.442695, %v18711_v55  ;;  %v6332_v9 = vmul.f32 %v18663_v60, %v6293_v17  ;;  %v6333_v11 = vmul.f32 %v18663_v60, %v6294_v8 }
 0x60e   : > { %22649 = vst [vmem:[#allocation9_spill] sm:$0xff] %v18734_v21  ;;  %22650 = vst [vmem:[#allocation24_spill] sm:$0xff] %v18737_v7  ;;  %v13474_v63 = vmul.f32 -1.442695, %v18714_v54  ;;  %v18751_v61 = vadd.f32 %v18688_v48, %v6322_v16  ;;  %v13475_v28 = vmul.f32 -1.442695, %v18720_v22  ;;  %v6334_v29 = vmul.f32 %v18663_v60, %v6295_v27 }
 0x60f   : > { %22651 = vst [vmem:[#allocation36_spill] sm:$0xff] %v18740_v20  ;;  %v18756_v23 = vadd.f32 %v18688_v48, %v6323_v14  ;;  %v13476_v42 = vmul.f32 -1.442695, %v18725_v43  ;;  %15146 = vpow2.f32 %v13472_v19  ;;  %v6335_v62 = vmul.f32 %v18663_v60, %v6296_v51 }
 0x610   : > { %v18761_v57 = vadd.f32 %v18688_v48, %v6324_v53  ;;  %v13477_v17 = vmul.f32 -1.442695, %v18728_v59  ;;  %15148 = vpow2.f32 %v13473_v10  ;;  %v6336_v8 = vmul.f32 %v18663_v60, %v6297_v50  ;;  %v13537_v53 = vld [vmem:[%s22374_s6 + $0x4] sm:$0xf]  ;;  %v18819_v10 = vld [vmem:[%s22374_s6 + $0x8] sm:$0xf] }
 0x611   : > { %v18766_v0 = vadd.f32 %v18688_v48, %v6325_v56  ;;  %v13478_v27 = vmul.f32 -1.442695, %v18743_v49  ;;  %15150 = vpow2.f32 %v13474_v63  ;;  %v6337_v32 = vmul.f32 %v18663_v60, %v6298_v24  ;;  %15042 = vmatprep.subr.msk.bf16.mxu1 %vm7831_vm8, %v13537_v53 }
 0x612   : > { %v18771_v26 = vadd.f32 %v18688_v48, %v6326_v36  ;;  %v13479_v51 = vmul.f32 -1.442695, %v18751_v61  ;;  %15152 = vpow2.f32 %v13475_v28  ;;  %v6338_v45 = vmul.f32 %v18663_v60, %v6299_v44 }
 0x613   : > { %v18776_v52 = vadd.f32 %v18688_v48, %v6327_v31  ;;  %v13480_v50 = vmul.f32 -1.442695, %v18756_v23  ;;  %15154 = vpow2.f32 %v13476_v42  ;;  %v6339_v25 = vmul.f32 %v18663_v60, %v6300_v37  ;;  %v6715_v31 = vld [vmem:[#allocation3 + $0x8] sm:$0x1] }
 0x614   : > { %v18781_v41 = vadd.f32 %v18688_v48, %v6328_v35  ;;  %v13481_v24 = vmul.f32 -1.442695, %v18761_v57  ;;  %15156 = vpow2.f32 %v13477_v17  ;;  %v6340_v38 = vmul.f32 %v18663_v60, %v6301_v47 }
 0x615   : > { %v18786_v15 = vadd.f32 %v18688_v48, %v6329_v46  ;;  %v13482_v44 = vmul.f32 -1.442695, %v18766_v0  ;;  %15158 = vpow2.f32 %v13478_v27  ;;  %v18790_v4 = vadd.f32 %v18688_v48, %v6330_v34 }
 0x616   : > { %v18793_v1 = vadd.f32 %v18688_v48, %v6331_v5  ;;  %v13483_v37 = vmul.f32 -1.442695, %v18771_v26  ;;  %15160 = vpow2.f32 %v13479_v51  ;;  %v18797_v16 = vadd.f32 %v18688_v48, %v6332_v9 }
 0x617   : > { %v18800_v47 = vadd.f32 %v18688_v48, %v6333_v11  ;;  %v13484_v14 = vmul.f32 -1.442695, %v18776_v52  ;;  %15162 = vpow2.f32 %v13480_v50  ;;  %v13485_v56 = vmul.f32 -1.442695, %v18781_v41 }
 0x618   : > { %15164 = vpow2.f32 %v13481_v24  ;;  %v7833_v36 = vsel %vm7831_vm8, %v13537_v53, 0  ;;  %v7359_v35 = vshll.u32 %v18635_v3, 16  ;;  %v18811_v46 = vadd.f32 %v18688_v48, %v6334_v29 }
 0x619   : > { %v13486_v34 = vmul.f32 -1.442695, %v18786_v15  ;;  %15166 = vpow2.f32 %v13482_v44  ;;  %14671 = vmatpush3.bf16.msra.mxu1 %v7833_v36  ;;  %v6716_v19 = vsel %vm17735_vm5, 0, %v6715_v31  ;;  %v13487_v63 = vmul.f32 -1.442695, %v18790_v4 }
 0x61a   : > { %15168 = vpow2.f32 %v13483_v37  ;;  %6717 = vst [vmem:[#allocation3 + $0x8] sm:$0x1] %v6716_v19  ;;  %v7361_v9 = vrot.slane %v7359_v35, 5  ;;  %v7365_v11 = vrot.slane %v7363_v18, 4  ;;  %15044 = vmatprep.subr.msk.bf16.mxu1 %vm7831_vm8, %v18819_v10  ;;  %v6341_v28 = vmul.f32 %v18663_v60, %v18693_v39 }
 0x61b   : > { %v18829_v29 = vadd.f32 %v18688_v48, %v6335_v62  ;;  %v13488_v42 = vmul.f32 -1.442695, %v18793_v1  ;;  %15170 = vpow2.f32 %v13484_v14  ;;  %v18835_v27 = vadd.f32 %v18688_v48, %v6336_v8 }
 0x61c   : > { %v18832_v17 = vpop.eup %15146  ;;  %v13489_v3 = vmul.f32 -1.442695, %v18797_v16  ;;  %15172 = vpow2.f32 %v13485_v56  ;;  %v7356_v18 = vor.u32 %v18646_v2, %v18640_v12  ;;  %v6342_v39 = vmul.f32 %v18663_v60, %v18697_v33 }
 0x61d   : > { %v18840_v51 = vpop.eup %15148  ;;  %v18845_v62 = vadd.f32 %v18688_v48, %v6337_v32  ;;  %v13490_v50 = vmul.f32 -1.442695, %v18800_v47  ;;  %15174 = vpow2.f32 %v13486_v34  ;;  %v18849_v8 = vadd.f32 %v18688_v48, %v6338_v45 }
 0x61e   : > { %v15151_v24 = vpop.eup %15150  ;;  %v13491_v44 = vmul.f32 -1.442695, %v18811_v46  ;;  %15176 = vpow2.f32 %v13487_v63  ;;  %v7366_v37 = vor.u32 %v7365_v11, %v7361_v9  ;;  %v18853_v2 = vadd.f32 %v18688_v48, %v6339_v25 }
 0x61f   : > { %v15153_v12 = vpop.eup %15152  ;;  %v13492_v60 = vmul.f32 -1.442695, %v18829_v29  ;;  %15178 = vpow2.f32 %v13488_v42  ;;  %v18857_v32 = vadd.f32 %v18688_v48, %v6340_v38  ;;  %v13493_v14 = vmul.f32 -1.442695, %v18835_v27 }
 0x620   : > { %v15155_v33 = vpop.eup %15154  ;;  %15180 = vpow2.f32 %v13489_v3  ;;  %v7357_v45 = vrot.slane %v7356_v18, 4  ;;  %v18861_v56 = vadd.f32 %v18688_v48, %v6341_v28  ;;  %v18864_v36 = vadd.f32 %v18688_v48, %v6342_v39 }
 0x621   : > { %v15157_v53 = vpop.eup %15156  ;;  %v13494_v25 = vmul.f32 -1.442695, %v18845_v62  ;;  %15182 = vpow2.f32 %v13490_v50  ;;  %v7333_v31 = vld [vmem:[#allocation3 + $0x8] sm:$0x1]  ;;  %v13495_v34 = vmul.f32 -1.442695, %v18849_v8 }
 0x622   : > { %22653 = vst [vmem:[#allocation18_spill] sm:$0xff] %v18864_v36  ;;  %v15159_v35 = vpop.eup %15158  ;;  %15184 = vpow2.f32 %v13491_v44  ;;  %v7367_v38 = vrot.slane %v7366_v37, 4  ;;  %v7369_v19 = vshll.u32 %v7333_v31, 16  ;;  %v13496_v11 = vmul.f32 -1.442695, %v18853_v2 }
 0x623   : > { %v15161_v63 = vpop.eup %15160  ;;  %15186 = vpow2.f32 %v13492_v60  ;;  %v13497_v28 = vmul.f32 -1.442695, %v18857_v32  ;;  %v7362_v3 = vsel %vm15671_vm15, %v7357_v45, %v7361_v9  ;;  %v13498_v50 = vmul.f32 -1.442695, %v18861_v56 }
 0x624   : > { %v15163_v42 = vpop.eup %15162  ;;  %15188 = vpow2.f32 %v13493_v14  ;;  %v7371_v18 = vrot.slane %v7369_v19, 5  ;;  %v13499_v44 = vmul.f32 -1.442695, %v18864_v36  ;;  %v13500_v31 = vmul.f32 -1.442695, %v18731_v30 }
 0x625   : > { %v15165_v39 = vpop.eup %15164  ;;  %15190 = vpow2.f32 %v13494_v25  ;;  %v13501_v9 = vmul.f32 -1.442695, %v18734_v21  ;;  %v13502_v19 = vmul.f32 -1.442695, %v18737_v7  ;;  %v6489_v21 = vadd.f32 1.0, %v15161_v63 }
 0x626   : > { %v15167_v58 = vpop.eup %15166  ;;  %15192 = vpow2.f32 %v13495_v34  ;;  %v7372_v37 = vsel %vm15671_vm15, %v7367_v38, %v7371_v18  ;;  %v13503_v34 = vmul.f32 -1.442695, %v18740_v20  ;;  %v6482_v18 = vadd.f32 1.0, %v18832_v17 }
 0x627   : > { %v15169_v60 = vpop.eup %15168  ;;  %15194 = vpow2.f32 %v13496_v11  ;;  %v13538_v14 = vcombine.low %v7362_v3, %v7372_v37  ;;  %v6483_v3 = vadd.f32 1.0, %v18840_v51  ;;  %v6490_v51 = vadd.f32 1.0, %v15163_v42 }
 0x628   : > { %v15171_v5 = vpop.eup %15170  ;;  %15196 = vpow2.f32 %v13497_v28  ;;  %v6484_v28 = vadd.f32 1.0, %v15151_v24  ;;  %v6491_v24 = vadd.f32 1.0, %v15165_v39  ;;  %v18885_v63 = vsel %vm7831_vm8, %v18819_v10, 0 }
 0x629   : > { %v15173_v45 = vpop.eup %15172  ;;  %15198 = vpow2.f32 %v13498_v50  ;;  %14672 = vmatprep.mubr.msk.bf16.mxu1 %vm5767_vm7, %v13538_v14  ;;  %v6485_v50 = vadd.f32 1.0, %v15153_v12  ;;  %v6486_v14 = vadd.f32 1.0, %v15155_v33  ;;  %22655 = vst [vmem:[#allocation10_spill] sm:$0xff] %v18885_v63 }
 0x62a   : > { %v15175_v25 = vpop.eup %15174  ;;  %15200 = vpow2.f32 %v13499_v44  ;;  %v6487_v44 = vadd.f32 1.0, %v15157_v53 }
 0x62b   : > { %v15177_v38 = vpop.eup %15176  ;;  %15202 = vpow2.f32 %v13500_v31  ;;  %v6488_v31 = vadd.f32 1.0, %v15159_v35 }
 0x62c   : > { %v15179_v11 = vpop.eup %15178  ;;  %15204 = vpow2.f32 %v13501_v9  ;;  %v6497_v39 = vadd.f32 1.0, %v15177_v38 }
 0x62d   : > { %v15181_v37 = vpop.eup %15180  ;;  %15206 = vpow2.f32 %v13502_v19 }
 0x62e   : > { %v15183_v6 = vpop.eup %15182  ;;  %15208 = vpow2.f32 %v13503_v34  ;;  %v6492_v34 = vadd.f32 1.0, %v15167_v58  ;;  %v6496_v58 = vadd.f32 1.0, %v15175_v25 }
 0x62f   : > { %v15185_v48 = vpop.eup %15184  ;;  %15210 = vrcp.f32 %v6482_v18  ;;  %v6493_v18 = vadd.f32 1.0, %v15169_v60  ;;  %v6499_v60 = vadd.f32 1.0, %v15181_v37 }
 0x630   : > { %v15187_v7 = vpop.eup %15186  ;;  %15212 = vrcp.f32 %v6483_v3  ;;  %v6494_v3 = vadd.f32 1.0, %v15171_v5  ;;  %v6500_v5 = vadd.f32 1.0, %v15183_v6 }
 0x631   : > { %v15189_v20 = vpop.eup %15188  ;;  %15214 = vrcp.f32 %v6484_v28  ;;  %v6495_v28 = vadd.f32 1.0, %v15173_v45 }
 0x632   : > { %v15191_v17 = vpop.eup %15190  ;;  %15216 = vrcp.f32 %v6485_v50  ;;  %v6498_v50 = vadd.f32 1.0, %v15179_v11 }
 0x633   : > { %v15193_v9 = vpop.eup %15192  ;;  %15218 = vrcp.f32 %v6486_v14  ;;  %v6501_v14 = vadd.f32 1.0, %v15185_v48 }
 0x634   : > { %v15195_v19 = vpop.eup %15194  ;;  %15220 = vrcp.f32 %v6487_v44  ;;  %v6502_v44 = vadd.f32 1.0, %v15187_v7  ;;  %v6505_v63 = vadd.f32 1.0, %v15193_v9 }
 0x635   : > { %v15197_v12 = vpop.eup %15196  ;;  %15222 = vrcp.f32 %v6488_v31  ;;  %v6503_v31 = vadd.f32 1.0, %v15189_v20  ;;  %v6506_v30 = vadd.f32 1.0, %v15195_v19 }
 0x636   : > { %v15199_v33 = vpop.eup %15198  ;;  %15224 = vrcp.f32 %v6489_v21  ;;  %v18893_v36 = vadd.f32 1.0, %v15197_v12 }
 0x637   : > { %v15201_v53 = vpop.eup %15200  ;;  %15226 = vrcp.f32 %v6490_v51  ;;  %v6504_v51 = vadd.f32 1.0, %v15191_v17  ;;  %v18896_v11 = vadd.f32 1.0, %v15199_v33 }
 0x638   : > { %v15203_v35 = vpop.eup %15202  ;;  %15228 = vrcp.f32 %v6491_v24  ;;  %v18891_v24 = vld [vmem:[%s476_s22] ss:$0 sm:$0xff]  ;;  %v18898_v6 = vadd.f32 1.0, %v15201_v53 }
 0x639   : > { %v15205_v42 = vpop.eup %15204  ;;  %15230 = vrcp.f32 %v6492_v34  ;;  %v18901_v48 = vadd.f32 1.0, %v15203_v35 }
 0x63a   : > { %v15207_v21 = vpop.eup %15206  ;;  %15232 = vrcp.f32 %v6493_v18  ;;  %v18903_v37 = vadd.f32 1.0, %v15205_v42 }
 0x63b   : > { %v15209_v45 = vpop.eup %15208  ;;  %15234 = vrcp.f32 %v6494_v3  ;;  %v18906_v19 = vadd.f32 1.0, %v15207_v21 }
 0x63c   : > { %v15211_v10 = vpop.eup %15210  ;;  %15236 = vrcp.f32 %v6495_v28  ;;  %v18910_v33 = vadd.f32 1.0, %v15209_v45 }
 0x63d   : > { %v15213_v25 = vpop.eup %15212  ;;  %v6578_v38 = vmul.f32 %v15211_v10, %v18708_v13  ;;  %15238 = vrcp.f32 %v6496_v58 }
 0x63e   : > { %v15215_v7 = vpop.eup %15214  ;;  %v6579_v20 = vmul.f32 %v15213_v25, %v18711_v55  ;;  %15240 = vrcp.f32 %v6497_v39 }
 0x63f   : > { %v15217_v17 = vpop.eup %15216  ;;  %v6617_v9 = vadd.f32 %v18891_v24, %v6578_v38  ;;  %v6580_v13 = vmul.f32 %v15215_v7, %v18714_v54  ;;  %15242 = vrcp.f32 %v6498_v50 }
 0x640   : > { %v15219_v12 = vpop.eup %15218  ;;  %v6618_v34 = vadd.f32 %v18891_v24, %v6579_v20  ;;  %v6581_v55 = vmul.f32 %v15217_v17, %v18720_v22  ;;  %15244 = vrcp.f32 %v6499_v60 }
 0x641   : > { %v15221_v18 = vpop.eup %15220  ;;  %v13973_v53 = vpack.c.bf16 %v6617_v9, %v6617_v9  ;;  %v6619_v3 = vadd.f32 %v18891_v24, %v6580_v13  ;;  %15246 = vrcp.f32 %v6500_v5  ;;  %v18915_v35 = vmul.f32 %v15219_v12, %v18725_v43 }
 0x642   : > { %v15223_v28 = vpop.eup %15222  ;;  %v13974_v42 = vpack.c.bf16 %v6618_v34, %v6618_v34  ;;  %v6620_v54 = vadd.f32 %v18891_v24, %v6581_v55  ;;  %15248 = vrcp.f32 %v6501_v14  ;;  %v18919_v58 = vmul.f32 %v15221_v18, %v18728_v59  ;;  %v7188_v14 = vld [vmem:[#allocation3 + $0xc] sm:$0xf]  ;;  %v7195_v18 = vld [vmem:[#allocation3 + $0x18] sm:$0xf] }
 0x643   : > { %v15225_v39 = vpop.eup %15224  ;;  %v6866_v50 = vshrl.u32 %v13973_v53, 16  ;;  %v6869_v22 = vshll.u32 %v13973_v53, 16  ;;  %v13975_v21 = vpack.c.bf16 %v6619_v3, %v6619_v3  ;;  %15250 = vrcp.f32 %v6502_v44 }
 0x644   : > { %v15227_v60 = vpop.eup %15226  ;;  %v6874_v45 = vshrl.u32 %v13974_v42, 16  ;;  %v6877_v10 = vshll.u32 %v13974_v42, 16  ;;  %v13976_v5 = vpack.c.bf16 %v6620_v54, %v6620_v54  ;;  %15252 = vrcp.f32 %v6503_v31 }
 0x645   : > { %v15229_v43 = vpop.eup %15228  ;;  %v6868_v25 = vrot.slane %v6866_v50, 7  ;;  %v6883_v38 = vshrl.u32 %v13975_v21, 16  ;;  %v6886_v7 = vshll.u32 %v13975_v21, 16  ;;  %15254 = vrcp.f32 %v6504_v51  ;;  %v7192_v51 = vld [vmem:[#allocation3 + $0x14] sm:$0x1] }
 0x646   : > { %v15231_v20 = vpop.eup %15230  ;;  %v6876_v17 = vrot.slane %v6874_v45, 7  ;;  %v6891_v44 = vshrl.u32 %v13976_v5, 16  ;;  %v6894_v9 = vshll.u32 %v13976_v5, 16  ;;  %15256 = vrcp.f32 %v6505_v63  ;;  %v7286_v45 = vld [vmem:[#allocation3 + $0xb4] sm:$0xf] }
 0x647   : > { %v15233_v13 = vpop.eup %15232  ;;  %v6871_v12 = vor.u32 %v6869_v22, %v6868_v25  ;;  %v6872_v31 = vrot.slane %v6868_v25, 4  ;;  %v6885_v34 = vrot.slane %v6883_v38, 7  ;;  %15258 = vrcp.f32 %v6506_v30 }
 0x648   : > { %v15235_v55 = vpop.eup %15234  ;;  %v6879_v53 = vor.u32 %v6877_v10, %v6876_v17  ;;  %v6881_v3 = vrot.slane %v6876_v17, 4  ;;  %v18927_v42 = vrot.slane %v6891_v44, 7  ;;  %15260 = vrcp.f32 %v18893_v36 }
 0x649   : > { %v15237_v54 = vpop.eup %15236  ;;  %v7189_v50 = vsel %vm18923_vm11, %v6871_v12, %v7188_v14  ;;  %v6888_v21 = vor.u32 %v6886_v7, %v6885_v34  ;;  %v6889_v63 = vrot.slane %v6885_v34, 4  ;;  %15262 = vrcp.f32 %v18896_v11 }
 0x64a   : > { %v15239_v22 = vpop.eup %15238  ;;  %v6880_v30 = vsel %vm15662_vm13, %v6872_v31, %v6879_v53  ;;  %7190 = vst [vmem:[#allocation3 + $0xc] sm:$0xf] %v7189_v50  ;;  %v6896_v10 = vor.u32 %v6894_v9, %v18927_v42  ;;  %15264 = vrcp.f32 %v18898_v6  ;;  %v7193_v11 = vsel %vm17729_vm1, %v6881_v3, %v7192_v51 }
 0x64b   : > { %v15241_v36 = vpop.eup %15240  ;;  %7191 = vst.msk [vmem:[#allocation3 + $0x10] sm:$0xf] %vm6649_vm6, %v6880_v30  ;;  %v7196_v25 = vsel %vm18923_vm11, %v6888_v21, %v7195_v18  ;;  %15266 = vrcp.f32 %v18901_v48  ;;  %v6584_v38 = vmul.f32 %v15223_v28, %v18743_v49  ;;  %v6585_v6 = vmul.f32 %v15225_v39, %v18751_v61  ;;  %7194 = vst [vmem:[#allocation3 + $0x14] sm:$0x1] %v7193_v11 }
 0x64c   : > { %v15243_v7 = vpop.eup %15242  ;;  %v6897_v14 = vsel %vm15662_vm13, %v6889_v63, %v6896_v10  ;;  %7197 = vst [vmem:[#allocation3 + $0x18] sm:$0xf] %v7196_v25  ;;  %15268 = vrcp.f32 %v18903_v37  ;;  %v6586_v17 = vmul.f32 %v15227_v60, %v18756_v23  ;;  %v6587_v48 = vmul.f32 %v15229_v43, %v18761_v57 }
 0x64d   : > { %v15245_v44 = vpop.eup %15244  ;;  %7198 = vst.msk [vmem:[#allocation3 + $0x1c] sm:$0xf] %vm6649_vm6, %v6897_v14  ;;  %15270 = vrcp.f32 %v18906_v19  ;;  %v6588_v49 = vmul.f32 %v15231_v20, %v18766_v0  ;;  %v6589_v28 = vmul.f32 %v15233_v13, %v18771_v26  ;;  %v6590_v37 = vmul.f32 %v15235_v55, %v18776_v52  ;;  %v13651_v14 = vld [vmem:[%s22374_s6 + $0xc] sm:$0xf] }
 0x64e   : > { %v15247_v9 = vpop.eup %15246  ;;  %15272 = vrcp.f32 %v18910_v33  ;;  %v6591_v61 = vmul.f32 %v15237_v54, %v18781_v41  ;;  %v6592_v23 = vmul.f32 %v15239_v22, %v18786_v15  ;;  %v6593_v60 = vmul.f32 %v15241_v36, %v18790_v4  ;;  %15045 = vmatprep.subr.msk.bf16.mxu0 %vm7831_vm8, %v13651_v14 }
 0x64f   : > { %v15249_v39 = vpop.eup %15248  ;;  %v6594_v19 = vmul.f32 %v15243_v7, %v18793_v1  ;;  %v6595_v57 = vmul.f32 %v15245_v44, %v18797_v16  ;;  %v6596_v0 = vmul.f32 %v15247_v9, %v18800_v47  ;;  %v6621_v33 = vadd.f32 %v18891_v24, %v18915_v35 }
 0x650   : > { %v15251_v43 = vpop.eup %15250  ;;  %v6597_v26 = vmul.f32 %v15249_v39, %v18811_v46  ;;  %v6622_v52 = vadd.f32 %v18891_v24, %v18919_v58  ;;  %v6623_v41 = vadd.f32 %v18891_v24, %v6584_v38  ;;  %v6624_v1 = vadd.f32 %v18891_v24, %v6585_v6  ;;  %v22665_v39 = vld [vmem:[#allocation17_spill] sm:$0xff] }
 0x651   : > { %v15253_v15 = vpop.eup %15252  ;;  %v18969_v20 = vld [vmem:[#allocation3 + $0xc] sm:$0xf]  ;;  %v6598_v4 = vmul.f32 %v15251_v43, %v18829_v29  ;;  %v6625_v16 = vadd.f32 %v18891_v24, %v6586_v17  ;;  %v6626_v47 = vadd.f32 %v18891_v24, %v6587_v48  ;;  %v6627_v58 = vadd.f32 %v18891_v24, %v6588_v49  ;;  %v22666_v43 = vld [vmem:[#allocation9_spill] sm:$0xff] }
 0x652   : > { %22659 = vst [vmem:[#allocation40_spill] sm:$0xff] %v18969_v20  ;;  %v15255_v46 = vpop.eup %15254  ;;  %v18975_v13 = vld [vmem:[#allocation3 + $0x10] sm:$0xf]  ;;  %v6599_v35 = vmul.f32 %v15253_v15, %v18835_v27  ;;  %v6628_v12 = vadd.f32 %v18891_v24, %v6589_v28  ;;  %v6629_v31 = vadd.f32 %v18891_v24, %v6590_v37  ;;  %v6630_v51 = vadd.f32 %v18891_v24, %v6591_v61  ;;  %v22664_v28 = vld [vmem:[#allocation18_spill] sm:$0xff] }
 0x653   : > { %22660 = vst [vmem:[#allocation28_spill] sm:$0xff] %v18975_v13  ;;  %v15257_v34 = vpop.eup %15256  ;;  %v13571_v29 = vcombine.low %v18969_v20, %v18975_v13  ;;  %v7304_v55 = vld [vmem:[#allocation3 + $0x18] sm:$0xf]  ;;  %v6600_v18 = vmul.f32 %v15255_v46, %v18845_v62  ;;  %v6631_v53 = vadd.f32 %v18891_v24, %v6592_v23  ;;  %v6632_v63 = vadd.f32 %v18891_v24, %v6593_v60  ;;  %v7262_v13 = vld [vmem:[#allocation3 + $0x8c] sm:$0x1] }
 0x654   : > { %v15259_v3 = vpop.eup %15258  ;;  %v18986_v54 = vld [vmem:[#allocation3 + $0x1c] sm:$0xf]  ;;  %v7398_v27 = vshrl.u32 %v7304_v55, 16  ;;  %v7401_v50 = vshll.u32 %v7304_v55, 16  ;;  %v6601_v21 = vmul.f32 %v15257_v34, %v18849_v8  ;;  %v6633_v36 = vadd.f32 %v18891_v24, %v6594_v19 }
 0x655   : > { %22661 = vst [vmem:[#allocation14_spill] sm:$0xff] %v18986_v54  ;;  %v15261_v22 = vpop.eup %15260  ;;  %14707 = vmatmul.mubr.msk.bf16.vlgmr.msra.gmra.mxu0 %vm5767_vm7, %v13571_v29  ;;  %v13572_v62 = vcombine.low %v7304_v55, %v18986_v54  ;;  %v6602_v10 = vmul.f32 %v15259_v3, %v18853_v2  ;;  %v6634_v7 = vadd.f32 %v18891_v24, %v6595_v57  ;;  %v22667_v34 = vld [vmem:[#allocation24_spill] sm:$0xff] }
 0x656   : > { %v15263_v25 = vpop.eup %15262  ;;  %v18995_v11 = vrot.slane %v7398_v27, 4  ;;  %v18997_v38 = vrot.slane %v7401_v50, 5  ;;  %v6603_v8 = vmul.f32 %v15261_v22, %v18857_v32  ;;  %v6635_v17 = vadd.f32 %v18891_v24, %v6596_v0  ;;  %v22668_v27 = vld [vmem:[#allocation36_spill] sm:$0xff] }
 0x657   : > { %v15265_v6 = vpop.eup %15264  ;;  %14710 = vmatprep.mubr.msk.bf16.mxu0 %vm5767_vm7, %v13572_v62  ;;  %v6604_v2 = vmul.f32 %v15263_v25, %v18861_v56  ;;  %v6636_v44 = vadd.f32 %v18891_v24, %v6597_v26  ;;  %v6637_v48 = vadd.f32 %v18891_v24, %v6598_v4  ;;  %v6638_v9 = vadd.f32 %v18891_v24, %v6599_v35 }
 0x658   : > { %22662 = vst [vmem:[#allocation4_spill] sm:$0xff] %v18995_v11  ;;  %22663 = vst [vmem:[#allocation30_spill] sm:$0xff] %v18997_v38  ;;  %v15267_v49 = vpop.eup %15266  ;;  %v6605_v32 = vmul.f32 %v15265_v6, %v22664_v28  ;;  %v6639_v37 = vadd.f32 %v18891_v24, %v6600_v18  ;;  %v6640_v61 = vadd.f32 %v18891_v24, %v6601_v21  ;;  %v7251_v38 = vld [vmem:[#allocation3 + $0x78] sm:$0xf] }
 0x659   : > { %v15269_v23 = vpop.eup %15268  ;;  %v6606_v56 = vmul.f32 %v15267_v49, %v22665_v39  ;;  %v6641_v60 = vadd.f32 %v18891_v24, %v6602_v10  ;;  %v6642_v19 = vadd.f32 %v18891_v24, %v6603_v8  ;;  %v6643_v57 = vadd.f32 %v18891_v24, %v6604_v2  ;;  %v7269_v11 = vld [vmem:[#allocation3 + $0x98] sm:$0x1] }
 0x65a   : > { %v15271_v0 = vpop.eup %15270  ;;  %v6607_v26 = vmul.f32 %v15269_v23, %v22666_v43  ;;  %v6644_v15 = vadd.f32 %v18891_v24, %v6605_v32  ;;  %v13977_v4 = vpack.c.bf16 %v6621_v33, %v6621_v33  ;;  %v13978_v46 = vpack.c.bf16 %v6622_v52, %v6622_v52 }
 0x65b   : > { %v15273_v35 = vpop.eup %15272  ;;  %v6608_v29 = vmul.f32 %v15271_v0, %v22667_v34  ;;  %v6645_v55 = vadd.f32 %v18891_v24, %v6606_v56  ;;  %v13979_v18 = vpack.c.bf16 %v6623_v41, %v6623_v41  ;;  %v13980_v3 = vpack.c.bf16 %v6624_v1, %v6624_v1 }
 0x65c   : > { %v6609_v50 = vmul.f32 %v15273_v35, %v22668_v27  ;;  %v6646_v21 = vadd.f32 %v18891_v24, %v6607_v26  ;;  %v13981_v22 = vpack.c.bf16 %v6625_v16, %v6625_v16  ;;  %v13982_v62 = vpack.c.bf16 %v6626_v47, %v6626_v47 }
 0x65d   : > { %v6647_v10 = vadd.f32 %v18891_v24, %v6608_v29  ;;  %v19025_v25 = vpack.c.bf16 %v6627_v58, %v6627_v58  ;;  %v19027_v8 = vpack.c.bf16 %v6628_v12, %v6628_v12  ;;  %v19029_v33 = vpack.c.bf16 %v6629_v31, %v6629_v31 }
 0x65e   : > { %v6648_v52 = vadd.f32 %v18891_v24, %v6609_v50  ;;  %v19032_v14 = vpack.c.bf16 %v6630_v51, %v6630_v51  ;;  %v19034_v41 = vpack.c.bf16 %v6631_v53, %v6631_v53  ;;  %v19036_v1 = vpack.c.bf16 %v6632_v63, %v6632_v63 }
 0x65f   : > { %v19038_v6 = vpack.c.bf16 %v6633_v36, %v6633_v36  ;;  %v19040_v16 = vpack.c.bf16 %v6634_v7, %v6634_v7  ;;  %v19042_v47 = vpack.c.bf16 %v6635_v17, %v6635_v17  ;;  %v19044_v58 = vpack.c.bf16 %v6636_v44, %v6636_v44 }
 0x660   : > { %v19046_v12 = vpack.c.bf16 %v6637_v48, %v6637_v48  ;;  %v19048_v31 = vpack.c.bf16 %v6638_v9, %v6638_v9  ;;  %v19050_v2 = vpack.c.bf16 %v6639_v37, %v6639_v37  ;;  %v19052_v24 = vpack.c.bf16 %v6640_v61, %v6640_v61 }
 0x661   : > { %v19054_v51 = vpack.c.bf16 %v6641_v60, %v6641_v60  ;;  %v19056_v53 = vpack.c.bf16 %v6642_v19, %v6642_v19  ;;  %v19058_v63 = vpack.c.bf16 %v6643_v57, %v6643_v57  ;;  %v19060_v36 = vpack.c.bf16 %v6644_v15, %v6644_v15 }
 0x662   : > { %v19062_v7 = vpack.c.bf16 %v6645_v55, %v6645_v55  ;;  %v19064_v17 = vpack.c.bf16 %v6646_v21, %v6646_v21  ;;  %v19066_v44 = vpack.c.bf16 %v6647_v10, %v6647_v10  ;;  %v19068_v48 = vpack.c.bf16 %v6648_v52, %v6648_v52 }
 0x663   : > { %v6900_v49 = vshrl.u32 %v13977_v4, 16  ;;  %v6903_v28 = vshll.u32 %v13977_v4, 16  ;;  %v6908_v32 = vshrl.u32 %v13978_v46, 16  ;;  %v6911_v9 = vshll.u32 %v13978_v46, 16 }
 0x664   : > { %v6917_v37 = vshrl.u32 %v13979_v18, 16  ;;  %v6920_v61 = vshll.u32 %v13979_v18, 16  ;;  %v6925_v23 = vshrl.u32 %v13980_v3, 16  ;;  %v6928_v39 = vshll.u32 %v13980_v3, 16  ;;  %v7244_v3 = vld [vmem:[#allocation3 + $0x6c] sm:$0xf] }
 0x665   : > { %v6902_v56 = vrot.slane %v6900_v49, 7  ;;  %v19070_v60 = vrot.slane %v6908_v32, 7  ;;  %v6934_v19 = vshrl.u32 %v13981_v22, 16  ;;  %v6937_v57 = vshll.u32 %v13981_v22, 16 }
 0x666   : > { %v6919_v0 = vrot.slane %v6917_v37, 7  ;;  %v19072_v43 = vrot.slane %v6925_v23, 7  ;;  %v6942_v26 = vshrl.u32 %v13982_v62, 16  ;;  %v6945_v15 = vshll.u32 %v13982_v62, 16  ;;  %v7234_v37 = vld [vmem:[#allocation3 + $0x5c] sm:$0x1] }
 0x667   : > { %v19074_v35 = vor.u32 %v6903_v28, %v6902_v56  ;;  %v6906_v34 = vrot.slane %v6902_v56, 4  ;;  %v6913_v4 = vor.u32 %v6911_v9, %v19070_v60  ;;  %v6936_v50 = vrot.slane %v6934_v19, 7 }
 0x668   : > { %v19078_v29 = vor.u32 %v6920_v61, %v6919_v0  ;;  %v6923_v55 = vrot.slane %v6919_v0, 4  ;;  %v6930_v18 = vor.u32 %v6928_v39, %v19072_v43  ;;  %v19084_v21 = vrot.slane %v6942_v26, 7 }
 0x669   : > { %v6914_v27 = vsel %vm15662_vm13, %v6906_v34, %v6913_v4  ;;  %v6951_v22 = vshrl.u32 %v19025_v25, 16  ;;  %v6954_v10 = vshll.u32 %v19025_v25, 16  ;;  %v6959_v52 = vshrl.u32 %v19027_v8, 16  ;;  %v7237_v34 = vld [vmem:[#allocation3 + $0x60] sm:$0xf] }
 0x66a   : > { %v6931_v62 = vsel %vm15662_vm13, %v6923_v55, %v6930_v18  ;;  %v6962_v49 = vshll.u32 %v19027_v8, 16  ;;  %7205 = vst.msk [vmem:[#allocation3 + $0x28] sm:$0xf] %vm6649_vm6, %v6914_v27  ;;  %v19093_v28 = vor.u32 %v6937_v57, %v6936_v50  ;;  %v6940_v32 = vrot.slane %v6936_v50, 4 }
 0x66b   : > { %v6947_v9 = vor.u32 %v6945_v15, %v19084_v21  ;;  %7212 = vst.msk [vmem:[#allocation3 + $0x34] sm:$0xf] %vm6649_vm6, %v6931_v62  ;;  %v6953_v61 = vrot.slane %v6951_v22, 7  ;;  %v19098_v23 = vrot.slane %v6959_v52, 7  ;;  %v6968_v25 = vshrl.u32 %v19029_v33, 16 }
 0x66c   : > { %v6971_v39 = vshll.u32 %v19029_v33, 16  ;;  %v6976_v56 = vshrl.u32 %v19032_v14, 16  ;;  %v6979_v19 = vshll.u32 %v19032_v14, 16  ;;  %v6985_v57 = vshrl.u32 %v19034_v41, 16 }
 0x66d   : > { %v6948_v8 = vsel %vm15662_vm13, %v6940_v32, %v6947_v9  ;;  %v19107_v0 = vor.u32 %v6954_v10, %v6953_v61  ;;  %v6957_v26 = vrot.slane %v6953_v61, 4  ;;  %v6964_v15 = vor.u32 %v6962_v49, %v19098_v23  ;;  %v7230_v49 = vld [vmem:[#allocation3 + $0x54] sm:$0xf] }
 0x66e   : > { %7219 = vst.msk [vmem:[#allocation3 + $0x40] sm:$0xf] %vm6649_vm6, %v6948_v8  ;;  %v6970_v4 = vrot.slane %v6968_v25, 7  ;;  %v19112_v33 = vrot.slane %v6976_v56, 7  ;;  %v6987_v55 = vrot.slane %v6985_v57, 7  ;;  %v6988_v18 = vshll.u32 %v19034_v41, 16 }
 0x66f   : > { %v6965_v14 = vsel %vm15662_vm13, %v6957_v26, %v6964_v15  ;;  %v6993_v27 = vshrl.u32 %v19036_v1, 16  ;;  %v6996_v50 = vshll.u32 %v19036_v1, 16  ;;  %v7002_v22 = vshrl.u32 %v19038_v6, 16 }
 0x670   : > { %v19120_v62 = vor.u32 %v6971_v39, %v6970_v4  ;;  %v6974_v10 = vrot.slane %v6970_v4, 4  ;;  %v6981_v52 = vor.u32 %v6979_v19, %v19112_v33  ;;  %7226 = vst.msk [vmem:[#allocation3 + $0x4c] sm:$0xf] %vm6649_vm6, %v6965_v14  ;;  %v19125_v32 = vor.u32 %v6988_v18, %v6987_v55 }
 0x671   : > { %v6991_v41 = vrot.slane %v6987_v55, 4  ;;  %v19127_v9 = vrot.slane %v6993_v27, 7  ;;  %v7004_v61 = vrot.slane %v7002_v22, 7  ;;  %v7005_v25 = vshll.u32 %v19038_v6, 16  ;;  %v7220_v22 = vld [vmem:[#allocation3 + $0x44] sm:$0x1] }
 0x672   : > { %v6982_v1 = vsel %vm15662_vm13, %v6974_v10, %v6981_v52  ;;  %v7010_v39 = vshrl.u32 %v19040_v16, 16  ;;  %v7013_v8 = vshll.u32 %v19040_v16, 16  ;;  %v7019_v26 = vshrl.u32 %v19042_v47, 16 }
 0x673   : > { %v6998_v56 = vor.u32 %v6996_v50, %v19127_v9  ;;  %v7008_v57 = vrot.slane %v7004_v61, 4  ;;  %7233 = vst.msk [vmem:[#allocation3 + $0x58] sm:$0xf] %vm6649_vm6, %v6982_v1  ;;  %v19138_v15 = vor.u32 %v7005_v25, %v7004_v61  ;;  %v7022_v55 = vshll.u32 %v19042_v47, 16 }
 0x674   : > { %v19140_v4 = vrot.slane %v7010_v39, 7  ;;  %v7027_v6 = vshrl.u32 %v19044_v58, 16  ;;  %v7021_v18 = vrot.slane %v7019_v26, 7  ;;  %v7030_v14 = vshll.u32 %v19044_v58, 16  ;;  %v7216_v39 = vld [vmem:[#allocation3 + $0x3c] sm:$0xf] }
 0x675   : > { %v6999_v16 = vsel %vm15662_vm13, %v6991_v41, %v6998_v56  ;;  %v7036_v27 = vshrl.u32 %v19046_v12, 16  ;;  %v7039_v52 = vshll.u32 %v19046_v12, 16  ;;  %v7044_v41 = vshrl.u32 %v19048_v31, 16 }
 0x676   : > { %v7015_v50 = vor.u32 %v7013_v8, %v19140_v4  ;;  %v19150_v10 = vrot.slane %v7027_v6, 7  ;;  %7240 = vst.msk [vmem:[#allocation3 + $0x64] sm:$0xf] %vm6649_vm6, %v6999_v16  ;;  %v19154_v47 = vor.u32 %v7022_v55, %v7021_v18  ;;  %v7025_v61 = vrot.slane %v7021_v18, 4 }
 0x677   : > { %v7038_v1 = vrot.slane %v7036_v27, 7  ;;  %v7047_v8 = vshll.u32 %v19048_v31, 16  ;;  %v19164_v26 = vrot.slane %v7044_v41, 7  ;;  %v7053_v55 = vshrl.u32 %v19050_v2, 16 }
 0x678   : > { %v7016_v58 = vsel %vm15662_vm13, %v7008_v57, %v7015_v50  ;;  %v7032_v25 = vor.u32 %v7030_v14, %v19150_v10  ;;  %v7056_v57 = vshll.u32 %v19050_v2, 16  ;;  %v7061_v16 = vshrl.u32 %v19052_v24, 16  ;;  %v7206_v14 = vld [vmem:[#allocation3 + $0x2c] sm:$0x1] }
 0x679   : > { %v19162_v56 = vor.u32 %v7039_v52, %v7038_v1  ;;  %v7042_v12 = vrot.slane %v7038_v1, 4  ;;  %7247 = vst.msk [vmem:[#allocation3 + $0x70] sm:$0xf] %vm6649_vm6, %v7016_v58  ;;  %v7064_v18 = vshll.u32 %v19052_v24, 16  ;;  %v7049_v31 = vor.u32 %v7047_v8, %v19164_v26 }
 0x67a   : > { %v7033_v6 = vsel %vm15662_vm13, %v7025_v61, %v7032_v25  ;;  %v7055_v27 = vrot.slane %v7053_v55, 7  ;;  %v7070_v50 = vshrl.u32 %v19054_v51, 16  ;;  %v19177_v52 = vrot.slane %v7061_v16, 7  ;;  %v7202_v55 = vld [vmem:[#allocation3 + $0x24] sm:$0xf] }
 0x67b   : > { %7254 = vst.msk [vmem:[#allocation3 + $0x7c] sm:$0xf] %vm6649_vm6, %v7033_v6  ;;  %v7073_v1 = vshll.u32 %v19054_v51, 16  ;;  %v7078_v61 = vshrl.u32 %v19056_v53, 16  ;;  %v7081_v2 = vshll.u32 %v19056_v53, 16  ;;  %v7050_v24 = vsel %vm15662_vm13, %v7042_v12, %v7049_v31 }
 0x67c   : > { %v19184_v41 = vor.u32 %v7056_v57, %v7055_v27  ;;  %v7059_v58 = vrot.slane %v7055_v27, 4  ;;  %v7072_v25 = vrot.slane %v7070_v50, 7  ;;  %v7066_v8 = vor.u32 %v7064_v18, %v19177_v52  ;;  %7261 = vst.msk [vmem:[#allocation3 + $0x88] sm:$0xf] %vm6649_vm6, %v7050_v24 }
 0x67d   : > { %v19188_v6 = vrot.slane %v7078_v61, 7  ;;  %v7087_v16 = vshrl.u32 %v19058_v63, 16  ;;  %v7090_v30 = vshll.u32 %v19058_v63, 16  ;;  %v7095_v12 = vshrl.u32 %v19060_v36, 16  ;;  %v7199_v63 = vld [vmem:[#allocation3 + $0x20] sm:$0x1] }
 0x67e   : > { %v19192_v51 = vor.u32 %v7073_v1, %v7072_v25  ;;  %v7076_v53 = vrot.slane %v7072_v25, 4  ;;  %v7067_v57 = vsel %vm15662_vm13, %v7059_v58, %v7066_v8  ;;  %v7098_v61 = vshll.u32 %v19060_v36, 16  ;;  %v7209_v25 = vld [vmem:[#allocation3 + $0x30] sm:$0xf] }
 0x67f   : > { %v7083_v18 = vor.u32 %v7081_v2, %v19188_v6  ;;  %v7089_v27 = vrot.slane %v7087_v16, 7  ;;  %v19200_v50 = vrot.slane %v7095_v12, 7  ;;  %v7104_v1 = vshrl.u32 %v19062_v7, 16  ;;  %7268 = vst.msk [vmem:[#allocation3 + $0x94] sm:$0xf] %vm6649_vm6, %v7067_v57 }
 0x680   : > { %v7107_v24 = vshll.u32 %v19062_v7, 16  ;;  %v7112_v16 = vshrl.u32 %v19064_v17, 16  ;;  %v7115_v7 = vshll.u32 %v19064_v17, 16  ;;  %v7213_v57 = vld [vmem:[#allocation3 + $0x38] sm:$0x1]  ;;  %v7132_v12 = vshll.u32 %v19068_v48, 16 }
 0x681   : > { %v7084_v2 = vsel %vm15662_vm13, %v7076_v53, %v7083_v18  ;;  %v19208_v58 = vor.u32 %v7090_v30, %v7089_v27  ;;  %v7093_v8 = vrot.slane %v7089_v27, 4  ;;  %v7100_v36 = vor.u32 %v7098_v61, %v19200_v50  ;;  %v7223_v27 = vld [vmem:[#allocation3 + $0x48] sm:$0xf]  ;;  %v7227_v61 = vld [vmem:[#allocation3 + $0x50] sm:$0x1] }
 0x682   : > { %v7106_v31 = vrot.slane %v7104_v1, 7  ;;  %7275 = vst.msk [vmem:[#allocation3 + $0xa0] sm:$0xf] %vm6649_vm6, %v7084_v2  ;;  %v19215_v19 = vrot.slane %v7112_v16, 7  ;;  %v7121_v30 = vshrl.u32 %v19066_v44, 16  ;;  %v7124_v53 = vshll.u32 %v19066_v44, 16 }
 0x683   : > { %v7129_v18 = vshrl.u32 %v19068_v48, 16  ;;  %v7101_v1 = vsel %vm15662_vm13, %v7093_v8, %v7100_v36  ;;  %v7241_v16 = vld [vmem:[#allocation3 + $0x68] sm:$0x1]  ;;  %v7255_v8 = vld [vmem:[#allocation3 + $0x80] sm:$0x1]  ;;  %v22670_v44 = vrot.slane %v19070_v60, 4 }
 0x684   : > { %v19222_v17 = vor.u32 %v7107_v24, %v7106_v31  ;;  %v7110_v2 = vrot.slane %v7106_v31, 4  ;;  %v7117_v46 = vor.u32 %v7115_v7, %v19215_v19  ;;  %v7123_v5 = vrot.slane %v7121_v30, 7  ;;  %7282 = vst.msk [vmem:[#allocation3 + $0xac] sm:$0xf] %vm6649_vm6, %v7101_v1  ;;  %v7248_v24 = vld [vmem:[#allocation3 + $0x74] sm:$0x1] }
 0x685   : > { %v19227_v54 = vrot.slane %v7129_v18, 7  ;;  %v7258_v36 = vld [vmem:[#allocation3 + $0x84] sm:$0xf]  ;;  %v22669_v31 = vrot.slane %v18927_v42, 4  ;;  %v7203_v7 = vsel %vm18923_vm11, %v19074_v35, %v7202_v55  ;;  %v7207_v30 = vsel %vm17729_vm1, %v22670_v44, %v7206_v14  ;;  %v7265_v1 = vld [vmem:[#allocation3 + $0x90] sm:$0xf] }
 0x686   : > { %v7210_v18 = vsel %vm18923_vm11, %v19078_v29, %v7209_v25  ;;  %v7272_v42 = vld [vmem:[#allocation3 + $0x9c] sm:$0xf]  ;;  %v7127_v20 = vrot.slane %v7123_v5, 4  ;;  %7204 = vst [vmem:[#allocation3 + $0x24] sm:$0xf] %v7203_v7  ;;  %v22671_v29 = vrot.slane %v19072_v43, 4  ;;  %v7224_v43 = vsel %vm18923_vm11, %v19107_v0, %v7223_v27 }
 0x687   : > { %v7200_v48 = vsel %vm17729_vm1, %v22669_v31, %v7199_v63  ;;  %v7118_v63 = vsel %vm15662_vm13, %v7110_v2, %v7117_v46  ;;  %v19246_v31 = vor.u32 %v7124_v53, %v7123_v5  ;;  %v7134_v35 = vor.u32 %v7132_v12, %v19227_v54  ;;  %7208 = vst [vmem:[#allocation3 + $0x2c] sm:$0x1] %v7207_v30  ;;  %v7279_v60 = vld [vmem:[#allocation3 + $0xa8] sm:$0xf]  ;;  %v7283_v12 = vld [vmem:[#allocation3 + $0xb0] sm:$0x1] }
 0x688   : > { %7201 = vst [vmem:[#allocation3 + $0x20] sm:$0x1] %v7200_v48  ;;  %7211 = vst [vmem:[#allocation3 + $0x30] sm:$0xf] %v7210_v18  ;;  %v7136_v14 = vrot.slane %v19227_v54, 4  ;;  %v7214_v55 = vsel %vm17729_vm1, %v22671_v29, %v7213_v57  ;;  %v7217_v46 = vsel %vm18923_vm11, %v19093_v28, %v7216_v39  ;;  %v22672_v5 = vrot.slane %v19084_v21, 4 }
 0x689   : > { %7289 = vst.msk [vmem:[#allocation3 + $0xb8] sm:$0xf] %vm6649_vm6, %v7118_v63  ;;  %v7135_v54 = vsel %vm15662_vm13, %v7127_v20, %v7134_v35  ;;  %7215 = vst [vmem:[#allocation3 + $0x38] sm:$0x1] %v7214_v55  ;;  %v22673_v28 = vrot.slane %v19098_v23, 4  ;;  %v22674_v20 = vrot.slane %v19112_v33, 4  ;;  %v7238_v23 = vsel %vm18923_vm11, %v19125_v32, %v7237_v34 }
 0x68a   : > { %v7221_v25 = vsel %vm17729_vm1, %v22672_v5, %v7220_v22  ;;  %7218 = vst [vmem:[#allocation3 + $0x3c] sm:$0xf] %v7217_v46  ;;  %v7231_v22 = vsel %vm18923_vm11, %v19120_v62, %v7230_v49  ;;  %v7276_v39 = vld [vmem:[#allocation3 + $0xa4] sm:$0x1]  ;;  %v7293_v57 = vld [vmem:[#allocation3 + $0xc0] sm:$0xf]  ;;  %v7245_v49 = vsel %vm18923_vm11, %v19138_v15, %v7244_v3  ;;  %v7252_v32 = vsel %vm18923_vm11, %v19154_v47, %v7251_v38 }
 0x68b   : > { %7222 = vst [vmem:[#allocation3 + $0x44] sm:$0x1] %v7221_v25  ;;  %v7228_v21 = vsel %vm17729_vm1, %v22673_v28, %v7227_v61  ;;  %7225 = vst [vmem:[#allocation3 + $0x48] sm:$0xf] %v7224_v43  ;;  %v7235_v0 = vsel %vm17729_vm1, %v22674_v20, %v7234_v37  ;;  %v22675_v53 = vrot.slane %v19127_v9, 4  ;;  %v22676_v37 = vrot.slane %v19140_v4, 4 }
 0x68c   : > { %7229 = vst [vmem:[#allocation3 + $0x50] sm:$0x1] %v7228_v21  ;;  %7232 = vst [vmem:[#allocation3 + $0x54] sm:$0xf] %v7231_v22  ;;  %v7297_v27 = vld [vmem:[#allocation3 + $0xc8] sm:$0x1]  ;;  %v7259_v15 = vsel %vm18923_vm11, %v19162_v56, %v7258_v36  ;;  %v7273_v2 = vsel %vm18923_vm11, %v19192_v51, %v7272_v42  ;;  %v7287_v51 = vsel %vm18923_vm11, %v19222_v17, %v7286_v45 }
 0x68d   : > { %v7242_v62 = vsel %vm17729_vm1, %v22675_v53, %v7241_v16  ;;  %7296 = vst.msk [vmem:[#allocation3 + $0xc4] sm:$0xf] %vm6649_vm6, %v7135_v54  ;;  %v7290_v33 = vld [vmem:[#allocation3 + $0xbc] sm:$0x1]  ;;  %7236 = vst [vmem:[#allocation3 + $0x5c] sm:$0x1] %v7235_v0  ;;  %v7249_v34 = vsel %vm17729_vm1, %v22676_v37, %v7248_v24  ;;  %v7298_v44 = vsel %vm17729_vm1, %v7136_v14, %v7297_v27 }
 0x68e   : > { %7239 = vst [vmem:[#allocation3 + $0x60] sm:$0xf] %v7238_v23  ;;  %7243 = vst [vmem:[#allocation3 + $0x68] sm:$0x1] %v7242_v62  ;;  %v22677_v9 = vrot.slane %v19150_v10, 4  ;;  %v22678_v4 = vrot.slane %v19164_v26, 4  ;;  %v7266_v10 = vsel %vm18923_vm11, %v19184_v41, %v7265_v1 }
 0x68f   : > { %7246 = vst [vmem:[#allocation3 + $0x6c] sm:$0xf] %v7245_v49  ;;  %v19303_v61 = vld [vmem:[#allocation3 + $0x28] sm:$0xf]  ;;  %7250 = vst [vmem:[#allocation3 + $0x74] sm:$0x1] %v7249_v34 }
 0x690   : > { %v7256_v3 = vsel %vm17729_vm1, %v22677_v9, %v7255_v8  ;;  %7253 = vst [vmem:[#allocation3 + $0x78] sm:$0xf] %v7252_v32  ;;  %7260 = vst [vmem:[#allocation3 + $0x84] sm:$0xf] %v7259_v15  ;;  %v7263_v38 = vsel %vm17729_vm1, %v22678_v4, %v7262_v13  ;;  %v22679_v47 = vrot.slane %v19177_v52, 4  ;;  %v22680_v26 = vrot.slane %v19188_v6, 4 }
 0x691   : > { %7257 = vst [vmem:[#allocation3 + $0x80] sm:$0x1] %v7256_v3  ;;  %7264 = vst [vmem:[#allocation3 + $0x8c] sm:$0x1] %v7263_v38  ;;  %v7280_v52 = vsel %vm18923_vm11, %v19208_v58, %v7279_v60  ;;  %v22681_v41 = vrot.slane %v19200_v50, 4  ;;  %v22682_v6 = vrot.slane %v19215_v19, 4  ;;  %v7294_v50 = vsel %vm18923_vm11, %v19246_v31, %v7293_v57 }
 0x692   : > { %v7270_v56 = vsel %vm17729_vm1, %v22679_v47, %v7269_v11  ;;  %7267 = vst [vmem:[#allocation3 + $0x90] sm:$0xf] %v7266_v10  ;;  %7274 = vst [vmem:[#allocation3 + $0x9c] sm:$0xf] %v7273_v2  ;;  %v7277_v13 = vsel %vm17729_vm1, %v22680_v26, %v7276_v39  ;;  %v19333_v16 = vld [vmem:[#allocation3 + $0x14] sm:$0x1] }
 0x693   : > { %7271 = vst [vmem:[#allocation3 + $0x98] sm:$0x1] %v7270_v56  ;;  %v7284_v11 = vsel %vm17729_vm1, %v22681_v41, %v7283_v12  ;;  %7278 = vst [vmem:[#allocation3 + $0xa4] sm:$0x1] %v7277_v13  ;;  %v7291_v58 = vsel %vm17729_vm1, %v22682_v6, %v7290_v33  ;;  %v7306_v8 = vld [vmem:[#allocation3 + $0x24] sm:$0xf] }
 0x694   : > { %7281 = vst [vmem:[#allocation3 + $0xa8] sm:$0xf] %v7280_v52  ;;  %7285 = vst [vmem:[#allocation3 + $0xb0] sm:$0x1] %v7284_v11  ;;  %v7435_v17 = vshrl.u32 %v19303_v61, 16  ;;  %v7422_v24 = vshrl.u32 %v7306_v8, 16  ;;  %v13573_v19 = vcombine.low %v7306_v8, %v19303_v61 }
 0x695   : > { %7288 = vst [vmem:[#allocation3 + $0xb4] sm:$0xf] %v7287_v51  ;;  %7292 = vst [vmem:[#allocation3 + $0xbc] sm:$0x1] %v7291_v58  ;;  %v7425_v36 = vshll.u32 %v7306_v8, 16  ;;  %v22683_v48 = vld [vmem:[#allocation40_spill] sm:$0xff] }
 0x696   : > { %7295 = vst [vmem:[#allocation3 + $0xc0] sm:$0xf] %v7294_v50  ;;  %7299 = vst [vmem:[#allocation3 + $0xc8] sm:$0x1] %v7298_v44  ;;  %v7374_v7 = vshrl.u32 %v22683_v48, 16  ;;  %v7377_v59 = vshll.u32 %v22683_v48, 16  ;;  %14711 = vmatmul.mubr.msk.bf16.gmra.mxu0 %vm5767_vm7, %v13573_v19 }
 0x697   : > { %v19347_v30 = vld [vmem:[#allocation3 + $0x34] sm:$0xf]  ;;  %v22684_v18 = vld [vmem:[#allocation28_spill] sm:$0xff]  ;;  %v7393_v63 = vshll.u32 %v19333_v16, 16  ;;  %v7308_v31 = vld [vmem:[#allocation3 + $0x30] sm:$0xf] }
 0x698   : > { %v7383_v1 = vshll.u32 %v22684_v18, 16  ;;  %v7387_v42 = vshrl.u32 %v22684_v18, 16  ;;  %v7424_v35 = vrot.slane %v7422_v24, 4  ;;  %v7427_v60 = vrot.slane %v7425_v36, 5  ;;  %v19355_v12 = vld [vmem:[#allocation3 + $0x20] sm:$0x1] }
 0x699   : > { %v7376_v14 = vrot.slane %v7374_v7, 4  ;;  %v8348_v29 = vrot.slane %v19333_v16, 5  ;;  %v7379_v55 = vrot.slane %v7377_v59, 5  ;;  %v7395_v25 = vrot.slane %v7393_v63, 5  ;;  %v22685_v57 = vld [vmem:[#allocation4_spill] sm:$0xff]  ;;  %v22686_v45 = vld [vmem:[#allocation30_spill] sm:$0xff] }
 0x69a   : > { %v7385_v46 = vrot.slane %v7383_v1, 5  ;;  %v7389_v5 = vrot.slane %v7387_v42, 4  ;;  %v7446_v54 = vshrl.u32 %v7308_v31, 16  ;;  %v7449_v43 = vshll.u32 %v7308_v31, 16  ;;  %v22687_v0 = vld [vmem:[#allocation14_spill] sm:$0xff] }
 0x69b   : > { %v7459_v28 = vshrl.u32 %v19347_v30, 16  ;;  %v13574_v21 = vcombine.low %v7308_v31, %v19347_v30  ;;  %v7380_v22 = vor.u32 %v7379_v55, %v7376_v14  ;;  %v7404_v20 = vor.u32 %v22686_v45, %v22685_v57  ;;  %v7310_v53 = vld [vmem:[#allocation3 + $0x3c] sm:$0xf]  ;;  %v19362_v62 = vld [vmem:[#allocation3 + $0x40] sm:$0xf]  ;;  %v22690_v42 = vld [vmem:[#allocation10_spill] sm:$0xff] }
 0x69c   : > { %v7390_v39 = vor.u32 %v7389_v5, %v7385_v46  ;;  %v7407_v23 = vshll.u32 %v22687_v0, 16  ;;  %v7448_v49 = vrot.slane %v7446_v54, 4  ;;  %v7451_v27 = vrot.slane %v7449_v43, 5  ;;  %v19375_v41 = vld [vmem:[#allocation3 + $0x2c] sm:$0x1] }
 0x69d   : > { %14714 = vmatprep.mubr.msk.bf16.mxu0 %vm5767_vm7, %v13574_v21  ;;  %v22688_v33 = vshrl.u32 %v22687_v0, 16  ;;  %v7417_v34 = vshll.u32 %v19355_v12, 16  ;;  %v7381_v32 = vrot.slane %v7380_v22, 4  ;;  %v7405_v3 = vrot.slane %v7404_v20, 4  ;;  %v7312_v11 = vld [vmem:[#allocation3 + $0x48] sm:$0xf] }
 0x69e   : > { %v7391_v9 = vrot.slane %v7390_v39, 4  ;;  %v7409_v15 = vrot.slane %v7407_v23, 5  ;;  %v7470_v38 = vshrl.u32 %v7310_v53, 16  ;;  %v7473_v10 = vshll.u32 %v7310_v53, 16  ;;  %v19377_v51 = vld [vmem:[#allocation3 + $0x4c] sm:$0xf] }
 0x69f   : > { %v7413_v37 = vrot.slane %v22688_v33, 4  ;;  %v7419_v4 = vrot.slane %v7417_v34, 5  ;;  %v7483_v47 = vshrl.u32 %v19362_v62, 16  ;;  %v7386_v2 = vsel %vm15671_vm15, %v7381_v32, %v7385_v46  ;;  %v19384_v48 = vld [vmem:[%s22374_s6 + $0x10] sm:$0xf] }
 0x6a0   : > { %v7396_v26 = vsel %vm15671_vm15, %v7391_v9, %v7395_v25  ;;  %v7410_v13 = vsel %vm15671_vm15, %v7405_v3, %v7409_v15  ;;  %v7472_v58 = vrot.slane %v7470_v38, 4  ;;  %v7475_v50 = vrot.slane %v7473_v10, 5  ;;  %v7314_v14 = vld [vmem:[#allocation3 + $0x54] sm:$0xf]  ;;  %v19396_v54 = vld [vmem:[#allocation3 + $0x58] sm:$0xf] }
 0x6a1   : > { %v7414_v52 = vor.u32 %v7413_v37, %v7409_v15  ;;  %v13539_v6 = vcombine.low %v7386_v2, %v7396_v26  ;;  %v13575_v44 = vcombine.low %v7310_v53, %v19362_v62  ;;  %v7428_v24 = vor.u32 %v7427_v60, %v7424_v35  ;;  %v19394_v60 = vld [vmem:[#allocation3 + $0x38] sm:$0x1]  ;;  %v19407_v34 = vld [vmem:[#allocation3 + $0x44] sm:$0x1] }
 0x6a2   : > { %v7431_v36 = vshll.u32 %v19303_v61, 16  ;;  %v7437_v19 = vrot.slane %v7435_v17, 4  ;;  %v7441_v7 = vshll.u32 %v19375_v41, 16  ;;  %v7494_v59 = vshrl.u32 %v7312_v11, 16  ;;  %v19414_v10 = vld [vmem:[#allocation3 + $0x64] sm:$0xf] }
 0x6a3   : > { %v7415_v8 = vrot.slane %v7414_v52, 4  ;;  %14673 = vmatmul.mubr.msk.bf16.vlgmr.msra.gmra.mxu1 %vm5767_vm7, %v13539_v6  ;;  %14715 = vmatmul.mubr.msk.bf16.gmra.mxu0 %vm5767_vm7, %v13575_v44  ;;  %v7497_v18 = vshll.u32 %v7312_v11, 16  ;;  %v7507_v1 = vshrl.u32 %v19377_v51, 16  ;;  %v7429_v63 = vrot.slane %v7428_v24, 4 }
 0x6a4   : > { %14739 = vmatpush3.bf16.msra.mxu1 %v22690_v42  ;;  %v7433_v31 = vrot.slane %v7431_v36, 5  ;;  %v13576_v35 = vcombine.low %v7312_v11, %v19377_v51  ;;  %v7443_v46 = vrot.slane %v7441_v7, 5  ;;  %v7496_v5 = vrot.slane %v7494_v59, 4  ;;  %v19421_v11 = vld [vmem:[#allocation3 + $0x50] sm:$0x1] }
 0x6a5   : > { %v7420_v17 = vsel %vm15671_vm15, %v7415_v8, %v7419_v4  ;;  %v7499_v25 = vrot.slane %v7497_v18, 5  ;;  %15046 = vmatprep.subr.msk.bf16.mxu1 %vm7831_vm8, %v19384_v48  ;;  %v7452_v22 = vor.u32 %v7451_v27, %v7448_v49  ;;  %v7455_v39 = vshll.u32 %v19347_v30, 16  ;;  %v7316_v27 = vld [vmem:[#allocation3 + $0x60] sm:$0xf]  ;;  %v7318_v7 = vld [vmem:[#allocation3 + $0x6c] sm:$0xf] }
 0x6a6   : > { %v13540_v55 = vcombine.low %v7410_v13, %v7420_v17  ;;  %v7434_v43 = vsel %vm15671_vm15, %v7429_v63, %v7433_v31  ;;  %v7438_v21 = vor.u32 %v7437_v19, %v7433_v31  ;;  %14718 = vmatprep.mubr.msk.bf16.mxu0 %vm5767_vm7, %v13576_v35  ;;  %v7461_v57 = vrot.slane %v7459_v28, 4  ;;  %v19428_v17 = vld [vmem:[#allocation3 + $0x70] sm:$0xf] }
 0x6a7   : > { %v7465_v45 = vshll.u32 %v19394_v60, 16  ;;  %v7518_v20 = vshrl.u32 %v7314_v14, 16  ;;  %v7521_v0 = vshll.u32 %v7314_v14, 16  ;;  %v7453_v53 = vrot.slane %v7452_v22, 4 }
 0x6a8   : > { %14676 = vmatprep.mubr.msk.bf16.mxu1 %vm5767_vm7, %v13540_v55  ;;  %v7439_v23 = vrot.slane %v7438_v21, 4  ;;  %v7457_v33 = vrot.slane %v7455_v39, 5  ;;  %v7531_v37 = vshrl.u32 %v19396_v54, 16  ;;  %v13577_v49 = vcombine.low %v7314_v14, %v19396_v54 }
 0x6a9   : > { %v7467_v32 = vrot.slane %v7465_v45, 5  ;;  %v7520_v9 = vrot.slane %v7518_v20, 4  ;;  %v7523_v3 = vrot.slane %v7521_v0, 5  ;;  %v7476_v38 = vor.u32 %v7475_v50, %v7472_v58 }
 0x6aa   : > { %v7444_v28 = vsel %vm15671_vm15, %v7439_v23, %v7443_v46  ;;  %v7458_v15 = vsel %vm15671_vm15, %v7453_v53, %v7457_v33  ;;  %v7462_v4 = vor.u32 %v7461_v57, %v7457_v33  ;;  %v7479_v26 = vshll.u32 %v19362_v62, 16  ;;  %v19439_v57 = vld [vmem:[#allocation3 + $0x5c] sm:$0x1]  ;;  %v7320_v53 = vld [vmem:[#allocation3 + $0x78] sm:$0xf] }
 0x6ab   : > { %v13541_v2 = vcombine.low %v7434_v43, %v7444_v28  ;;  %14719 = vmatmul.mubr.msk.bf16.gmra.mxu0 %vm5767_vm7, %v13577_v49  ;;  %v7485_v13 = vrot.slane %v7483_v47, 4  ;;  %v7489_v52 = vshll.u32 %v19407_v34, 16  ;;  %v7477_v44 = vrot.slane %v7476_v38, 4 }
 0x6ac   : > { %v7463_v6 = vrot.slane %v7462_v4, 4  ;;  %v7542_v8 = vshrl.u32 %v7316_v27, 16  ;;  %v7545_v24 = vshll.u32 %v7316_v27, 16  ;;  %v7481_v58 = vrot.slane %v7479_v26, 5 }
 0x6ad   : > { %14677 = vmatmul.mubr.msk.bf16.gmra.mxu1 %vm5767_vm7, %v13541_v2  ;;  %v7491_v50 = vrot.slane %v7489_v52, 5  ;;  %v7555_v36 = vshrl.u32 %v19414_v10, 16  ;;  %v13578_v19 = vcombine.low %v7316_v27, %v19414_v10  ;;  %v7500_v42 = vor.u32 %v7499_v25, %v7496_v5  ;;  %v19446_v27 = vld [vmem:[#allocation3 + $0x7c] sm:$0xf]  ;;  %v19453_v52 = vld [vmem:[#allocation3 + $0x88] sm:$0xf] }
 0x6ae   : > { %v7468_v47 = vsel %vm15671_vm15, %v7463_v6, %v7467_v32  ;;  %v7544_v59 = vrot.slane %v7542_v8, 4  ;;  %v7547_v18 = vrot.slane %v7545_v24, 5  ;;  %v7482_v31 = vsel %vm15671_vm15, %v7477_v44, %v7481_v58 }
 0x6af   : > { %v13542_v63 = vcombine.low %v7458_v15, %v7468_v47  ;;  %v7486_v35 = vor.u32 %v7485_v13, %v7481_v58  ;;  %14722 = vmatprep.mubr.msk.bf16.mxu0 %vm5767_vm7, %v13578_v19  ;;  %v7503_v14 = vshll.u32 %v19377_v51, 16  ;;  %v7501_v55 = vrot.slane %v7500_v42, 4  ;;  %v19451_v13 = vld [vmem:[#allocation3 + $0x68] sm:$0x1]  ;;  %v7322_v58 = vld [vmem:[#allocation3 + $0x84] sm:$0xf] }
 0x6b0   : > { %v7509_v46 = vrot.slane %v7507_v1, 4  ;;  %v7513_v43 = vshll.u32 %v19421_v11, 16  ;;  %v7566_v21 = vshrl.u32 %v7318_v7, 16  ;;  %v7569_v22 = vshll.u32 %v7318_v7, 16 }
 0x6b1   : > { %14680 = vmatprep.mubr.msk.bf16.mxu1 %vm5767_vm7, %v13542_v63  ;;  %v7487_v5 = vrot.slane %v7486_v35, 4  ;;  %v7505_v25 = vrot.slane %v7503_v14, 5  ;;  %v7579_v39 = vshrl.u32 %v19428_v17, 16  ;;  %v13579_v0 = vcombine.low %v7318_v7, %v19428_v17 }
 0x6b2   : > { %v7515_v45 = vrot.slane %v7513_v43, 5  ;;  %v7568_v20 = vrot.slane %v7566_v21, 4  ;;  %v7524_v23 = vor.u32 %v7523_v3, %v7520_v9  ;;  %v7571_v49 = vrot.slane %v7569_v22, 5  ;;  %v19470_v22 = vld [vmem:[#allocation3 + $0x94] sm:$0xf] }
 0x6b3   : > { %v7492_v1 = vsel %vm15671_vm15, %v7487_v5, %v7491_v50  ;;  %v7506_v33 = vsel %vm15671_vm15, %v7501_v55, %v7505_v25  ;;  %v7510_v32 = vor.u32 %v7509_v46, %v7505_v25  ;;  %14723 = vmatmul.mubr.msk.bf16.gmra.mxu0 %vm5767_vm7, %v13579_v0  ;;  %v7527_v4 = vshll.u32 %v19396_v54, 16  ;;  %v19465_v55 = vld [vmem:[#allocation3 + $0x74] sm:$0x1]  ;;  %v7324_v25 = vld [vmem:[#allocation3 + $0x90] sm:$0xf] }
 0x6b4   : > { %v13543_v28 = vcombine.low %v7482_v31, %v7492_v1  ;;  %v7525_v15 = vrot.slane %v7524_v23, 4  ;;  %v7533_v38 = vrot.slane %v7531_v37, 4  ;;  %v7537_v9 = vshll.u32 %v19439_v57, 16 }
 0x6b5   : > { %v7511_v2 = vrot.slane %v7510_v32, 4  ;;  %v7590_v3 = vshrl.u32 %v7320_v53, 16  ;;  %v7593_v26 = vshll.u32 %v7320_v53, 16  ;;  %v7529_v6 = vrot.slane %v7527_v4, 5 }
 0x6b6   : > { %14681 = vmatmul.mubr.msk.bf16.gmra.mxu1 %vm5767_vm7, %v13543_v28  ;;  %v7603_v44 = vshrl.u32 %v19446_v27, 16  ;;  %v13580_v8 = vcombine.low %v7320_v53, %v19446_v27  ;;  %v7548_v24 = vor.u32 %v7547_v18, %v7544_v59  ;;  %v7539_v50 = vrot.slane %v7537_v9, 5 }
 0x6b7   : > { %v7516_v37 = vsel %vm15671_vm15, %v7511_v2, %v7515_v45  ;;  %v7592_v19 = vrot.slane %v7590_v3, 4  ;;  %v7595_v7 = vrot.slane %v7593_v26, 5  ;;  %v7530_v42 = vsel %vm15671_vm15, %v7525_v15, %v7529_v6 }
 0x6b8   : > { %v13544_v47 = vcombine.low %v7506_v33, %v7516_v37  ;;  %v7534_v63 = vor.u32 %v7533_v38, %v7529_v6  ;;  %14726 = vmatprep.mubr.msk.bf16.mxu0 %vm5767_vm7, %v13580_v8  ;;  %v7549_v31 = vrot.slane %v7548_v24, 4  ;;  %v7551_v35 = vshll.u32 %v19414_v10, 16  ;;  %v19482_v8 = vld [vmem:[#allocation3 + $0x80] sm:$0x1] }
 0x6b9   : > { %v7557_v14 = vrot.slane %v7555_v36, 4  ;;  %v7561_v59 = vshll.u32 %v19451_v13, 16  ;;  %v7614_v18 = vshrl.u32 %v7322_v58, 16  ;;  %v7617_v43 = vshll.u32 %v7322_v58, 16 }
 0x6ba   : > { %14684 = vmatprep.mubr.msk.bf16.mxu1 %vm5767_vm7, %v13544_v47  ;;  %v7535_v46 = vrot.slane %v7534_v63, 4  ;;  %v7627_v21 = vshrl.u32 %v19453_v52, 16  ;;  %v13581_v5 = vcombine.low %v7322_v58, %v19453_v52  ;;  %v7553_v45 = vrot.slane %v7551_v35, 5  ;;  %v7326_v47 = vld [vmem:[#allocation3 + $0x9c] sm:$0xf] }
 0x6bb   : > { %v7563_v0 = vrot.slane %v7561_v59, 5  ;;  %v7616_v23 = vrot.slane %v7614_v18, 4  ;;  %v7572_v36 = vor.u32 %v7571_v49, %v7568_v20  ;;  %v7619_v1 = vrot.slane %v7617_v43, 5 }
 0x6bc   : > { %v7540_v53 = vsel %vm15671_vm15, %v7535_v46, %v7539_v50  ;;  %14727 = vmatmul.mubr.msk.bf16.gmra.mxu0 %vm5767_vm7, %v13581_v5  ;;  %v7575_v33 = vshll.u32 %v19428_v17, 16  ;;  %v7581_v32 = vrot.slane %v7579_v39, 4  ;;  %v7554_v15 = vsel %vm15671_vm15, %v7549_v31, %v7553_v45 }
 0x6bd   : > { %v13545_v28 = vcombine.low %v7530_v42, %v7540_v53  ;;  %v7558_v4 = vor.u32 %v7557_v14, %v7553_v45  ;;  %v7573_v38 = vrot.slane %v7572_v36, 4  ;;  %v7585_v9 = vshll.u32 %v19465_v55, 16  ;;  %v19486_v42 = vld [vmem:[#allocation3 + $0xa0] sm:$0xf]  ;;  %v19498_v53 = vld [vmem:[#allocation3 + $0x8c] sm:$0x1] }
 0x6be   : > { %v7577_v2 = vrot.slane %v7575_v33, 5  ;;  %v7638_v3 = vshrl.u32 %v7324_v25, 16  ;;  %v7641_v20 = vshll.u32 %v7324_v25, 16  ;;  %v7651_v26 = vshrl.u32 %v19470_v22, 16 }
 0x6bf   : > { %14685 = vmatmul.mubr.msk.bf16.gmra.mxu1 %vm5767_vm7, %v13545_v28  ;;  %v7559_v49 = vrot.slane %v7558_v4, 4  ;;  %v13582_v6 = vcombine.low %v7324_v25, %v19470_v22  ;;  %v7596_v39 = vor.u32 %v7595_v7, %v7592_v19  ;;  %v7587_v37 = vrot.slane %v7585_v9, 5 }
 0x6c0   : > { %v7578_v24 = vsel %vm15671_vm15, %v7573_v38, %v7577_v2  ;;  %v7582_v58 = vor.u32 %v7581_v32, %v7577_v2  ;;  %v7640_v50 = vrot.slane %v7638_v3, 4  ;;  %v7643_v31 = vrot.slane %v7641_v20, 5  ;;  %v7328_v32 = vld [vmem:[#allocation3 + $0xa8] sm:$0xf]  ;;  %v19502_v38 = vld [vmem:[#allocation3 + $0xac] sm:$0xf] }
 0x6c1   : > { %v7564_v63 = vsel %vm15671_vm15, %v7559_v49, %v7563_v0  ;;  %14730 = vmatprep.mubr.msk.bf16.mxu0 %vm5767_vm7, %v13582_v6  ;;  %v7597_v35 = vrot.slane %v7596_v39, 4  ;;  %v7599_v14 = vshll.u32 %v19446_v27, 16  ;;  %v7605_v7 = vrot.slane %v7603_v44, 4 }
 0x6c2   : > { %v13546_v59 = vcombine.low %v7554_v15, %v7564_v63  ;;  %v7583_v19 = vrot.slane %v7582_v58, 4  ;;  %v7609_v18 = vshll.u32 %v19482_v8, 16  ;;  %v7662_v43 = vshrl.u32 %v7326_v47, 16  ;;  %v7330_v63 = vld [vmem:[#allocation3 + $0xb4] sm:$0xf] }
 0x6c3   : > { %v7601_v46 = vrot.slane %v7599_v14, 5  ;;  %v7665_v5 = vshll.u32 %v7326_v47, 16  ;;  %v7675_v25 = vshrl.u32 %v19486_v42, 16  ;;  %v13583_v36 = vcombine.low %v7326_v47, %v19486_v42 }
 0x6c4   : > { %14688 = vmatprep.mubr.msk.bf16.mxu1 %vm5767_vm7, %v13546_v59  ;;  %v7588_v45 = vsel %vm15671_vm15, %v7583_v19, %v7587_v37  ;;  %v7611_v0 = vrot.slane %v7609_v18, 5  ;;  %v7620_v33 = vor.u32 %v7619_v1, %v7616_v23  ;;  %v7664_v4 = vrot.slane %v7662_v43, 4  ;;  %v19510_v37 = vld [vmem:[#allocation3 + $0x98] sm:$0x1] }
 0x6c5   : > { %v13547_v44 = vcombine.low %v7578_v24, %v7588_v45  ;;  %v7602_v28 = vsel %vm15671_vm15, %v7597_v35, %v7601_v46  ;;  %v7606_v15 = vor.u32 %v7605_v7, %v7601_v46  ;;  %v7667_v2 = vrot.slane %v7665_v5, 5  ;;  %14731 = vmatmul.mubr.msk.bf16.gmra.mxu0 %vm5767_vm7, %v13583_v36  ;;  %v19514_v19 = vld [vmem:[#allocation3 + $0xb8] sm:$0xf] }
 0x6c6   : > { %v7621_v9 = vrot.slane %v7620_v33, 4  ;;  %v7623_v3 = vshll.u32 %v19453_v52, 16  ;;  %v7629_v20 = vrot.slane %v7627_v21, 4  ;;  %v7633_v23 = vshll.u32 %v19498_v53, 16 }
 0x6c7   : > { %14689 = vmatmul.mubr.msk.bf16.gmra.mxu1 %vm5767_vm7, %v13547_v44  ;;  %v7607_v49 = vrot.slane %v7606_v15, 4  ;;  %v7686_v1 = vshrl.u32 %v7328_v32, 16  ;;  %v7689_v6 = vshll.u32 %v7328_v32, 16  ;;  %v7699_v24 = vshrl.u32 %v19502_v38, 16 }
 0x6c8   : > { %v7625_v39 = vrot.slane %v7623_v3, 5  ;;  %v13584_v58 = vcombine.low %v7328_v32, %v19502_v38  ;;  %v7644_v47 = vor.u32 %v7643_v31, %v7640_v50  ;;  %v7635_v21 = vrot.slane %v7633_v23, 5 }
 0x6c9   : > { %v7612_v35 = vsel %vm15671_vm15, %v7607_v49, %v7611_v0  ;;  %v7688_v14 = vrot.slane %v7686_v1, 4  ;;  %v7691_v59 = vrot.slane %v7689_v6, 5  ;;  %v7647_v5 = vshll.u32 %v19470_v22, 16  ;;  %v19530_v6 = vld [vmem:[#allocation3 + $0xb0] sm:$0x1] }
 0x6ca   : > { %v13548_v7 = vcombine.low %v7602_v28, %v7612_v35  ;;  %v7626_v18 = vsel %vm15671_vm15, %v7621_v9, %v7625_v39  ;;  %v7630_v46 = vor.u32 %v7629_v20, %v7625_v39  ;;  %14734 = vmatprep.mubr.msk.bf16.mxu0 %vm5767_vm7, %v13584_v58  ;;  %v7645_v43 = vrot.slane %v7644_v47, 4  ;;  %v19524_v9 = vld [vmem:[#allocation3 + $0xa4] sm:$0x1]  ;;  %v15112_v20 = vld [vmem:[#allocation3 + $0xc] sm:$0xff]  }
 0x6cb   : > { %v7653_v50 = vrot.slane %v7651_v26, 4  ;;  %v7657_v31 = vshll.u32 %v19510_v37, 16  ;;  %v7710_v45 = vshrl.u32 %v7330_v63, 16  ;;  %v7713_v36 = vshll.u32 %v7330_v63, 16 }
 0x6cc   : > { %14692 = vmatprep.mubr.msk.bf16.mxu1 %vm5767_vm7, %v13548_v7  ;;  %v7631_v0 = vrot.slane %v7630_v46, 4  ;;  %v7723_v33 = vshrl.u32 %v19514_v19, 16  ;;  %v13585_v32 = vcombine.low %v7330_v63, %v19514_v19  ;;  %v7649_v44 = vrot.slane %v7647_v5, 5 }
 0x6cd   : > { %v7659_v28 = vrot.slane %v7657_v31, 5  ;;  %v7712_v15 = vrot.slane %v7710_v45, 4  ;;  %v7668_v3 = vor.u32 %v7667_v2, %v7664_v4  ;;  %v7715_v49 = vrot.slane %v7713_v36, 5  ;;  %v19550_v45 = vld [vmem:[#allocation3 + $0xbc] sm:$0x1] }
 0x6ce   : > { %v7636_v26 = vsel %vm15671_vm15, %v7631_v0, %v7635_v21  ;;  %14735 = vmatmul.mubr.msk.bf16.gmra.mxu0 %vm5767_vm7, %v13585_v32  ;;  %v7671_v23 = vshll.u32 %v19486_v42, 16  ;;  %v7677_v1 = vrot.slane %v7675_v25, 4  ;;  %v7650_v58 = vsel %vm15671_vm15, %v7645_v43, %v7649_v44  ;;  %v19540_v25 = vld [vmem:[%s22374_s6 + $0x14] sm:$0xf]  ;;  %v15435_v43 = vld [vmem:[%s22374_s6 + $0xc] sm:$0xf] }
 0x6cf   : > { %v13549_v39 = vcombine.low %v7626_v18, %v7636_v26  ;;  %v7654_v47 = vor.u32 %v7653_v50, %v7649_v44  ;;  %v7669_v63 = vrot.slane %v7668_v3, 4  ;;  %14774 = vmatprep.mubr.msk.bf16.mxu0 %vm5767_vm7, %v15112_v20  ;;  %v7681_v2 = vshll.u32 %v19524_v9, 16  ;;  %v8288_v44 = vld [vmem:[#allocation3] sm:$0xe]  ;;  %v15113_v26 = vld [vmem:[#allocation3 + $0x18] sm:$0xff]  }
 0x6d0   : > { %v7673_v4 = vrot.slane %v7671_v23, 5  ;;  %v7692_v35 = vor.u32 %v7691_v59, %v7688_v14  ;;  %v7695_v21 = vshll.u32 %v19502_v38, 16  ;;  %v7701_v18 = vrot.slane %v7699_v24, 4 }
 0x6d1   : > { %14693 = vmatmul.mubr.msk.bf16.gmra.mxu1 %vm5767_vm7, %v13549_v39  ;;  %v7655_v7 = vrot.slane %v7654_v47, 4  ;;  %v7705_v46 = vshll.u32 %v19530_v6, 16  ;;  %v8905_v5 = vsel %vm7831_vm8, %v15435_v43, 0  ;;  %v7683_v50 = vrot.slane %v7681_v2, 5  ;;  %v15436_v2 = vld [vmem:[#allocation3 + $0x4] sm:$0xf] }
 0x6d2   : > { %v7674_v14 = vsel %vm15671_vm15, %v7669_v63, %v7673_v4  ;;  %v7678_v59 = vor.u32 %v7677_v1, %v7673_v4  ;;  %v7693_v31 = vrot.slane %v7692_v35, 4  ;;  %14773 = vmatpush3.bf16.msra.mxu0 %v8905_v5  ;;  %v7697_v0 = vrot.slane %v7695_v21, 5  ;;  %v15114_v4 = vld [vmem:[#allocation3 + $0x24] sm:$0xff]   ;;  %v8290_v5 = vld [vmem:[#allocation3 + $0x18] sm:$0xe] }
 0x6d3   : > { %v7660_v24 = vsel %vm15671_vm15, %v7655_v7, %v7659_v28  ;;  %v7707_v36 = vrot.slane %v7705_v46, 5  ;;  %v7716_v32 = vor.u32 %v7715_v49, %v7712_v15  ;;  %15047 = vmatprep.subr.msk.bf16.mxu0 %vm7831_vm8, %v19540_v25  ;;  %v7719_v23 = vshll.u32 %v19514_v19, 16 }
 0x6d4   : > { %v13550_v3 = vcombine.low %v7650_v58, %v7660_v24  ;;  %v7679_v20 = vrot.slane %v7678_v59, 4  ;;  %v7725_v1 = vrot.slane %v7723_v33, 4  ;;  %v7698_v39 = vsel %vm15671_vm15, %v7693_v31, %v7697_v0  ;;  %v8289_v33 = vld [vmem:[#allocation3 + $0xc] sm:$0xe] }
 0x6d5   : > { %v7702_v47 = vor.u32 %v7701_v18, %v7697_v0  ;;  %v7717_v63 = vrot.slane %v7716_v32, 4  ;;  %v7729_v28 = vshll.u32 %v19550_v45, 16  ;;  %v7721_v49 = vrot.slane %v7719_v23, 5  ;;  %v15437_v18 = vld [vmem:[#allocation3 + $0x8] sm:$0x1] }
 0x6d6   : > { %14696 = vmatprep.mubr.msk.bf16.mxu1 %vm5767_vm7, %v13550_v3  ;;  %v7684_v15 = vsel %vm15671_vm15, %v7679_v20, %v7683_v50  ;;  %14775 = vmatmul.mubr.msk.bf16.vlgmr.msra.gmra.mxu0 %vm5767_vm7, %v15113_v26  ;;  %v13602_v58 = vrot.slane %v8288_v44, 9  ;;  %v8338_v35 = vrot.slane %v15436_v2, 5  ;;  %v8341_v43 = vrot.slane %v15437_v18, 5  ;;  %v15438_v44 = vld [vmem:[#allocation3 + $0x10] sm:$0xf]  ;;  %v15116_v18 = vld [vmem:[#allocation3 + $0x3c] sm:$0xff]  }
 0x6d7   : > { %v13551_v21 = vcombine.low %v7674_v14, %v7684_v15  ;;  %v7703_v7 = vrot.slane %v7702_v47, 4  ;;  %v7731_v46 = vrot.slane %v7729_v28, 5  ;;  %14778 = vmatprep.mubr.msk.bf16.mxu0 %vm5767_vm7, %v15114_v4  ;;  %v7722_v59 = vsel %vm15671_vm15, %v7717_v63, %v7721_v49  ;;  %v8291_v26 = vld [vmem:[#allocation3 + $0x24] sm:$0xe]  ;;  %v15439_v15 = vld [vmem:[#allocation3 + $0x1c] sm:$0xf] }
 0x6d8   : > { %v7726_v31 = vor.u32 %v7725_v1, %v7721_v49  ;;  %v8339_v24 = vsel %vm16076_vm10, %v13602_v58, %v8338_v35  ;;  %v8340_v0 = vrot.slane %v8338_v35, 4  ;;  %v13603_v32 = vrot.slane %v8289_v33, 9  ;;  %v15115_v58 = vld [vmem:[#allocation3 + $0x30] sm:$0xff]  }
 0x6d9   : > { %14697 = vmatmul.mubr.msk.bf16.gmra.mxu1 %vm5767_vm7, %v13551_v21  ;;  %v7708_v14 = vsel %vm15671_vm15, %v7703_v7, %v7707_v36  ;;  %v8345_v3 = vrot.slane %v15438_v44, 5  ;;  %v19574_v20 = vsel %vm7831_vm8, %v19384_v48, 0  ;;  %v13604_v63 = vrot.slane %v8290_v5, 9  ;;  %v8292_v33 = vld [vmem:[#allocation3 + $0x30] sm:$0xe] }
 0x6da   : > { %v13552_v23 = vcombine.low %v7698_v39, %v7708_v14  ;;  %v7727_v47 = vrot.slane %v7726_v31, 4  ;;  %v8342_v1 = vsel %vm16076_vm10, %v8340_v0, %v8341_v43  ;;  %v8352_v49 = vrot.slane %v15439_v15, 5  ;;  %v8293_v5 = vld [vmem:[#allocation3 + $0x3c] sm:$0xe]  ;;  %v8294_v14 = vld [vmem:[#allocation3 + $0x48] sm:$0xe] }
 0x6db   : > { %v13619_v28 = vcombine.low %v8339_v24, %v8342_v1  ;;  %v19580_v4 = vsel %vm16076_vm10, %v13603_v32, %v8345_v3  ;;  %v8347_v36 = vrot.slane %v8345_v3, 4  ;;  %v8355_v39 = vrot.slane %v19355_v12, 5 }
 0x6dc   : > { %14700 = vmatprep.mubr.msk.bf16.mxu1 %vm5767_vm7, %v13552_v23  ;;  %v7732_v48 = vsel %vm15671_vm15, %v7727_v47, %v7731_v46  ;;  %v13605_v2 = vrot.slane %v8291_v26, 9  ;;  %v8359_v35 = vrot.slane %v19303_v61, 5  ;;  %v19595_v43 = vsel %vm16076_vm10, %v13604_v63, %v8352_v49  ;;  %v8295_v26 = vld [vmem:[#allocation3 + $0x54] sm:$0xe] }
 0x6dd   : > { %v13553_v21 = vcombine.low %v7722_v59, %v7732_v48  ;;  %v19591_v7 = vsel %vm16076_vm10, %v8347_v36, %v8348_v29  ;;  %v8354_v46 = vrot.slane %v8352_v49, 4  ;;  %v8362_v29 = vrot.slane %v19375_v41, 5 }
 0x6de   : > { %14779 = vmatmul.mubr.msk.bf16.gmra.mxu0 %vm5767_vm7, %v15115_v58  ;;  %v13620_v61 = vcombine.low %v19580_v4, %v19591_v7  ;;  %v19602_v12 = vsel %vm16076_vm10, %v13605_v2, %v8359_v35  ;;  %v8361_v16 = vrot.slane %v8359_v35, 4  ;;  %v13606_v31 = vrot.slane %v8292_v33, 9  ;;  %v15117_v58 = vld [vmem:[#allocation3 + $0x48] sm:$0xff]   ;;  %v15118_v33 = vld [vmem:[#allocation3 + $0x54] sm:$0xff]  }
 0x6df   : > { %14782 = vmatprep.mubr.msk.bf16.mxu0 %vm5767_vm7, %v15116_v18  ;;  %v8356_v59 = vsel %vm16076_vm10, %v8354_v46, %v8355_v39  ;;  %v8366_v24 = vrot.slane %v19347_v30, 5  ;;  %v8369_v0 = vrot.slane %v19394_v60, 5  ;;  %v13607_v3 = vrot.slane %v8293_v5, 9  ;;  %v8297_v35 = vld [vmem:[#allocation3 + $0x6c] sm:$0xe] }
 0x6e0   : > { %v13621_v32 = vcombine.low %v19595_v43, %v8356_v59  ;;  %v19613_v44 = vsel %vm16076_vm10, %v8361_v16, %v8362_v29  ;;  %v8373_v41 = vrot.slane %v19362_v62, 5  ;;  %v8376_v47 = vrot.slane %v19407_v34, 5  ;;  %v8296_v34 = vld [vmem:[#allocation3 + $0x60] sm:$0xe]  ;;  %v8298_v16 = vld [vmem:[#allocation3 + $0x78] sm:$0xe] }
 0x6e1   : > { %14701 = vmatmul.mubr.msk.bf16.gmra.mxu1 %vm5767_vm7, %v13553_v21  ;;  %v13622_v23 = vcombine.low %v19602_v12, %v19613_v44  ;;  %v19621_v30 = vsel %vm16076_vm10, %v13606_v31, %v8366_v24  ;;  %v8368_v60 = vrot.slane %v8366_v24, 4  ;;  %v13608_v63 = vrot.slane %v8294_v14, 9  ;;  %v8299_v24 = vld [vmem:[#allocation3 + $0x84] sm:$0xe] }
 0x6e2   : > { %14740 = vmatprep.mubr.msk.bf16.mxu1 %vm5767_vm7, %v13619_v28  ;;  %v19627_v1 = vsel %vm16076_vm10, %v13607_v3, %v8373_v41  ;;  %v8375_v62 = vrot.slane %v8373_v41, 4  ;;  %v8380_v4 = vrot.slane %v19377_v51, 5  ;;  %v8383_v15 = vrot.slane %v19421_v11, 5  ;;  %v19678_v3 = vld [vmem:[%s22374_s6 + $0x18] sm:$0xf] }
 0x6e3   : > { %v19632_v36 = vsel %vm16076_vm10, %v8368_v60, %v8369_v0  ;;  %v13609_v49 = vrot.slane %v8295_v26, 9  ;;  %v8387_v48 = vrot.slane %v19396_v54, 5  ;;  %v8390_v7 = vrot.slane %v19439_v57, 5 }
 0x6e4   : > { %v13623_v28 = vcombine.low %v19621_v30, %v19632_v36  ;;  %v19640_v39 = vsel %vm16076_vm10, %v8375_v62, %v8376_v47  ;;  %v19644_v51 = vsel %vm16076_vm10, %v13608_v63, %v8380_v4  ;;  %v8382_v2 = vrot.slane %v8380_v4, 4  ;;  %v8300_v63 = vld [vmem:[#allocation3 + $0x90] sm:$0xe]  ;;  %v19858_v30 = vld [vmem:[#allocation3 + $0x40] sm:$0xf] }
 0x6e5   : > { %v13624_v11 = vcombine.low %v19627_v1, %v19640_v39  ;;  %v19650_v54 = vsel %vm16076_vm10, %v13609_v49, %v8387_v48  ;;  %v8389_v21 = vrot.slane %v8387_v48, 4  ;;  %v13610_v43 = vrot.slane %v8296_v34, 9  ;;  %v19704_v49 = vld [vmem:[#allocation3 + $0x10] sm:$0xf] }
 0x6e6   : > { %14783 = vmatmul.mubr.msk.bf16.gmra.mxu0 %vm5767_vm7, %v15117_v58  ;;  %v19656_v18 = vsel %vm16076_vm10, %v8382_v2, %v8383_v15  ;;  %v8394_v46 = vrot.slane %v19414_v10, 5  ;;  %v8397_v5 = vrot.slane %v19451_v13, 5  ;;  %v13611_v59 = vrot.slane %v8297_v35, 9  ;;  %v8301_v15 = vld [vmem:[#allocation3 + $0x9c] sm:$0xe]  ;;  %v15120_v35 = vld [vmem:[#allocation3 + $0x6c] sm:$0xff]  }
 0x6e7   : > { %14786 = vmatprep.mubr.msk.bf16.mxu0 %vm5767_vm7, %v15118_v33  ;;  %v13625_v29 = vcombine.low %v19644_v51, %v19656_v18  ;;  %v19665_v57 = vsel %vm16076_vm10, %v8389_v21, %v8390_v7  ;;  %v8401_v31 = vrot.slane %v19428_v17, 5  ;;  %v8404_v14 = vrot.slane %v19465_v55, 5  ;;  %v19715_v2 = vld [vmem:[#allocation3 + $0x14] sm:$0x1] }
 0x6e8   : > { %v13626_v0 = vcombine.low %v19650_v54, %v19665_v57  ;;  %v19672_v10 = vsel %vm16076_vm10, %v13610_v43, %v8394_v46  ;;  %v8396_v13 = vrot.slane %v8394_v46, 4  ;;  %v13612_v26 = vrot.slane %v8298_v16, 9  ;;  %v9826_v46 = vld [vmem:[#allocation3 + $0xc] sm:$0xe] }
 0x6e9   : > { %14741 = vmatmul.mubr.msk.bf16.vlgmr.msra.gmra.mxu1 %vm5767_vm7, %v13620_v61  ;;  %v19683_v17 = vsel %vm16076_vm10, %v13611_v59, %v8401_v31  ;;  %v8403_v41 = vrot.slane %v8401_v31, 4  ;;  %v8408_v60 = vrot.slane %v19446_v27, 5  ;;  %v8411_v47 = vrot.slane %v19482_v8, 5  ;;  %v8302_v31 = vld [vmem:[#allocation3 + $0xa8] sm:$0xe] }
 0x6ea   : > { %14807 = vmatpush3.bf16.msra.mxu1 %v19574_v20  ;;  %14744 = vmatprep.mubr.msk.bf16.mxu1 %vm5767_vm7, %v13621_v32  ;;  %v19690_v55 = vsel %vm16076_vm10, %v8396_v13, %v8397_v5  ;;  %v13613_v62 = vrot.slane %v8299_v24, 9  ;;  %v8415_v61 = vrot.slane %v19453_v52, 5  ;;  %v15119_v52 = vld [vmem:[#allocation3 + $0x60] sm:$0xff]   ;;  %v8418_v58 = vrot.slane %v19498_v53, 5 }
 0x6eb   : > { %v13627_v4 = vcombine.low %v19672_v10, %v19690_v55  ;;  %v19698_v27 = vsel %vm16076_vm10, %v8403_v41, %v8404_v14  ;;  %v19702_v20 = vsel %vm16076_vm10, %v13612_v26, %v8408_v60  ;;  %v8410_v32 = vrot.slane %v8408_v60, 4  ;;  %15048 = vmatprep.subr.msk.bf16.mxu1 %vm7831_vm8, %v19678_v3  ;;  %v19739_v14 = vld [vmem:[#allocation3 + $0x1c] sm:$0xf]  ;;  %v9827_v41 = vld [vmem:[#allocation3 + $0x18] sm:$0xe] }
 0x6ec   : > { %v13628_v8 = vcombine.low %v19683_v17, %v19698_v27  ;;  %v19712_v48 = vsel %vm16076_vm10, %v13613_v62, %v8415_v61  ;;  %v8417_v34 = vrot.slane %v8415_v61, 4  ;;  %v13614_v21 = vrot.slane %v8300_v63, 9  ;;  %v19746_v62 = vld [vmem:[#allocation3 + $0x20] sm:$0x1] }
 0x6ed   : > { %v19719_v33 = vsel %vm16076_vm10, %v8410_v32, %v8411_v47  ;;  %v8422_v7 = vrot.slane %v19470_v22, 5  ;;  %v8425_v43 = vrot.slane %v19510_v37, 5  ;;  %v13615_v16 = vrot.slane %v8301_v15, 9  ;;  %v15127_v17 = vld [vmem:[#allocation3 + $0xc0] sm:$0xff]  }
 0x6ee   : > { %14787 = vmatmul.mubr.msk.bf16.gmra.mxu0 %vm5767_vm7, %v15119_v52  ;;  %v13629_v5 = vcombine.low %v19702_v20, %v19719_v33  ;;  %v19728_v53 = vsel %vm16076_vm10, %v8417_v34, %v8418_v58  ;;  %v8429_v59 = vrot.slane %v19486_v42, 5  ;;  %v8432_v13 = vrot.slane %v19524_v9, 5  ;;  %v8303_v52 = vld [vmem:[#allocation3 + $0xb4] sm:$0xe]  ;;  %v19772_v34 = vld [vmem:[#allocation3 + $0x28] sm:$0xf] }
 0x6ef   : > { %14790 = vmatprep.mubr.msk.bf16.mxu0 %vm5767_vm7, %v15120_v35  ;;  %v13630_v22 = vcombine.low %v19712_v48, %v19728_v53  ;;  %v19736_v37 = vsel %vm16076_vm10, %v13614_v21, %v8422_v7  ;;  %v8424_v24 = vrot.slane %v8422_v7, 4  ;;  %v13717_v60 = vrot.slane %v9826_v46, 9  ;;  %v13799_v35 = vld [vmem:[%s22374_s6 + $0x1c] sm:$0xf]  ;;  %v15121_v21 = vld [vmem:[#allocation3 + $0x78] sm:$0xff]  }
 0x6f0   : > { %v19743_v26 = vsel %vm16076_vm10, %v13615_v16, %v8429_v59  ;;  %v8431_v42 = vrot.slane %v8429_v59, 4  ;;  %v9892_v47 = vrot.slane %v19704_v49, 5  ;;  %v9895_v61 = vrot.slane %v19715_v2, 5  ;;  %v9828_v59 = vld [vmem:[#allocation3 + $0x24] sm:$0xe] }
 0x6f1   : > { %14745 = vmatmul.mubr.msk.bf16.gmra.mxu1 %vm5767_vm7, %v13622_v23  ;;  %v19754_v9 = vsel %vm16076_vm10, %v8424_v24, %v8425_v43  ;;  %v13616_v63 = vrot.slane %v8302_v31, 9  ;;  %v8436_v32 = vrot.slane %v19502_v38, 5  ;;  %v19774_v38 = vld [vmem:[#allocation3 + $0x2c] sm:$0x1]  ;;  %v8439_v58 = vrot.slane %v19530_v6, 5  ;;  %v15122_v31 = vld [vmem:[#allocation3 + $0x84] sm:$0xff]  }
 0x6f2   : > { %14748 = vmatprep.mubr.msk.bf16.mxu1 %vm5767_vm7, %v13623_v28  ;;  %v13631_v15 = vcombine.low %v19736_v37, %v19754_v9  ;;  %v19766_v12 = vsel %vm16076_vm10, %v8431_v42, %v8432_v13  ;;  %v19770_v44 = vsel %vm16076_vm10, %v13717_v60, %v9892_v47  ;;  %v9894_v23 = vrot.slane %v9892_v47, 4  ;;  %v9100_v60 = vld [vmem:[#allocation3 + $0xc] sm:$0xf]  ;;  %v9115_v37 = vld [vmem:[#allocation3 + $0x48] sm:$0xf] }
 0x6f3   : > { %v19780_v36 = vsel %vm16076_vm10, %v13616_v63, %v8436_v32  ;;  %v8438_v28 = vrot.slane %v8436_v32, 4  ;;  %v10101_v43 = vsel %vm7831_vm8, %v19540_v25, 0  ;;  %v13718_v46 = vrot.slane %v9827_v41, 9 }
 0x6f4   : > { %v19788_v7 = vsel %vm16076_vm10, %v9894_v23, %v9895_v61  ;;  %v9899_v16 = vrot.slane %v19739_v14, 5  ;;  %14841 = vmatpush3.bf16.msra.mxu0 %v10101_v43  ;;  %v9902_v13 = vrot.slane %v19746_v62, 5  ;;  %v13617_v42 = vrot.slane %v8303_v52, 9 }
 0x6f5   : > { %v13734_v6 = vcombine.low %v19770_v44, %v19788_v7  ;;  %v19797_v24 = vsel %vm16076_vm10, %v8438_v28, %v8439_v58  ;;  %v8443_v61 = vrot.slane %v19514_v19, 5  ;;  %15049 = vmatprep.subr.msk.bf16.mxu0 %vm7831_vm8, %v13799_v35  ;;  %v8446_v63 = vrot.slane %v19550_v45, 5  ;;  %v19821_v35 = vld [vmem:[#allocation3 + $0x34] sm:$0xf]  ;;  %v9106_v45 = vld [vmem:[#allocation3 + $0x24] sm:$0xf] }
 0x6f6   : > { %14791 = vmatmul.mubr.msk.bf16.gmra.mxu0 %vm5767_vm7, %v15121_v21  ;;  %v19805_v41 = vsel %vm16076_vm10, %v13718_v46, %v9899_v16  ;;  %v9901_v47 = vrot.slane %v9899_v16, 4  ;;  %v13719_v32 = vrot.slane %v9828_v59, 9  ;;  %v9906_v23 = vrot.slane %v19772_v34, 5  ;;  %v9829_v59 = vld [vmem:[#allocation3 + $0x30] sm:$0xe] }
 0x6f7   : > { %14794 = vmatprep.mubr.msk.bf16.mxu0 %vm5767_vm7, %v15122_v31  ;;  %v9909_v52 = vrot.slane %v19774_v38, 5  ;;  %v19819_v58 = vsel %vm16076_vm10, %v13617_v42, %v8443_v61  ;;  %v8445_v19 = vrot.slane %v8443_v61, 4  ;;  %v9149_v21 = vshrl.u32 %v9100_v60, 16 }
 0x6f8   : > { %v19815_v28 = vsel %vm16076_vm10, %v9901_v47, %v9902_v13  ;;  %v19831_v43 = vsel %vm16076_vm10, %v13719_v32, %v9906_v23  ;;  %v9908_v46 = vrot.slane %v9906_v23, 4  ;;  %v9152_v16 = vshll.u32 %v9100_v60, 16  ;;  %v19843_v13 = vld [vmem:[#allocation3 + $0x38] sm:$0x1]  ;;  %v15123_v47 = vld [vmem:[#allocation3 + $0x90] sm:$0xff]   ;;  %v15124_v23 = vld [vmem:[#allocation3 + $0x9c] sm:$0xff]  }
 0x6f9   : > { %14749 = vmatmul.mubr.msk.bf16.gmra.mxu1 %vm5767_vm7, %v13624_v11  ;;  %v19839_v1 = vsel %vm16076_vm10, %v8445_v19, %v8446_v63  ;;  %v9151_v39 = vrot.slane %v9149_v21, 4  ;;  %v9158_v11 = vshll.u32 %v19704_v49, 16  ;;  %v9162_v31 = vshrl.u32 %v19704_v49, 16 }
 0x6fa   : > { %14752 = vmatprep.mubr.msk.bf16.mxu1 %vm5767_vm7, %v13625_v29  ;;  %v19849_v60 = vsel %vm16076_vm10, %v9908_v46, %v9909_v52  ;;  %v9154_v51 = vrot.slane %v9152_v16, 5  ;;  %v9168_v18 = vshll.u32 %v19715_v2, 16  ;;  %v9103_v29 = vld [vmem:[#allocation3 + $0x18] sm:$0xf]  ;;  %v13720_v49 = vrot.slane %v9829_v59, 9 }
 0x6fb   : > { %v9160_v63 = vrot.slane %v9158_v11, 5  ;;  %v9164_v32 = vrot.slane %v9162_v31, 4  ;;  %v9913_v42 = vrot.slane %v19821_v35, 5  ;;  %v9916_v25 = vrot.slane %v19843_v13, 5 }
 0x6fc   : > { %v9155_v19 = vor.u32 %v9154_v51, %v9151_v39  ;;  %v9170_v21 = vrot.slane %v9168_v18, 5  ;;  %v9173_v46 = vshrl.u32 %v9103_v29, 16  ;;  %v9176_v2 = vshll.u32 %v9103_v29, 16  ;;  %v19866_v51 = vld [vmem:[#allocation3 + $0x44] sm:$0x1] }
 0x6fd   : > { %v9165_v52 = vor.u32 %v9164_v32, %v9160_v63  ;;  %v9182_v16 = vshll.u32 %v19739_v14, 16  ;;  %v19863_v59 = vsel %vm16076_vm10, %v13720_v49, %v9913_v42  ;;  %v9915_v39 = vrot.slane %v9913_v42, 4  ;;  %v9830_v18 = vld [vmem:[#allocation3 + $0x3c] sm:$0xe] }
 0x6fe   : > { %14795 = vmatmul.mubr.msk.bf16.gmra.mxu0 %vm5767_vm7, %v15123_v47  ;;  %v9156_v11 = vrot.slane %v9155_v19, 4  ;;  %v9186_v31 = vshrl.u32 %v19739_v14, 16  ;;  %v9175_v32 = vrot.slane %v9173_v46, 4  ;;  %v9178_v29 = vrot.slane %v9176_v2, 5  ;;  %v15125_v19 = vld [vmem:[#allocation3 + $0xa8] sm:$0xff]  }
 0x6ff   : > { %14798 = vmatprep.mubr.msk.bf16.mxu0 %vm5767_vm7, %v15124_v23  ;;  %v9166_v47 = vrot.slane %v9165_v52, 4  ;;  %v9184_v61 = vrot.slane %v9182_v16, 5  ;;  %v19876_v42 = vsel %vm16076_vm10, %v9915_v39, %v9916_v25  ;;  %v9192_v23 = vshll.u32 %v19746_v62, 16  ;;  %v9831_v16 = vld [vmem:[#allocation3 + $0x48] sm:$0xe] }
 0x700   : > { %v9161_v49 = vsel %vm15671_vm15, %v9156_v11, %v9160_v63  ;;  %v9188_v14 = vrot.slane %v9186_v31, 4  ;;  %v13737_v57 = vcombine.low %v19863_v59, %v19876_v42  ;;  %v13721_v63 = vrot.slane %v9830_v18, 9  ;;  %v15126_v11 = vld [vmem:[#allocation3 + $0xb4] sm:$0xff]  }
 0x701   : > { %14753 = vmatmul.mubr.msk.bf16.gmra.mxu1 %vm5767_vm7, %v13626_v0  ;;  %v9171_v54 = vsel %vm15671_vm15, %v9166_v47, %v9170_v21  ;;  %v9179_v0 = vor.u32 %v9178_v29, %v9175_v32  ;;  %v9194_v46 = vrot.slane %v9192_v23, 5  ;;  %v9920_v62 = vrot.slane %v19858_v30, 5  ;;  %v19895_v21 = vld [vmem:[#allocation3 + $0x4c] sm:$0xf]  ;;  %v19901_v32 = vld [vmem:[#allocation3 + $0x50] sm:$0x1] }
 0x702   : > { %14756 = vmatprep.mubr.msk.bf16.mxu1 %vm5767_vm7, %v13627_v4  ;;  %v19887_v52 = vcombine.low %v9161_v49, %v9171_v54  ;;  %v9189_v25 = vor.u32 %v9188_v14, %v9184_v61  ;;  %v9923_v10 = vrot.slane %v19866_v51, 5  ;;  %v19893_v55 = vsel %vm7831_vm8, %v19678_v3, 0  ;;  %v9109_v29 = vld [vmem:[#allocation3 + $0x30] sm:$0xf] }
 0x703   : > { %v9180_v2 = vrot.slane %v9179_v0, 4  ;;  %v9197_v4 = vshrl.u32 %v9106_v45, 16  ;;  %v19899_v31 = vsel %vm16076_vm10, %v13721_v63, %v9920_v62  ;;  %v9922_v18 = vrot.slane %v9920_v62, 4 }
 0x704   : > { %v9190_v39 = vrot.slane %v9189_v25, 4  ;;  %v9200_v47 = vshll.u32 %v9106_v45, 16  ;;  %v9206_v14 = vshll.u32 %v19772_v34, 16  ;;  %v9210_v23 = vshrl.u32 %v19772_v34, 16 }
 0x705   : > { %v9185_v3 = vsel %vm15671_vm15, %v9180_v2, %v9184_v61  ;;  %v9199_v49 = vrot.slane %v9197_v4, 4  ;;  %v19913_v45 = vsel %vm16076_vm10, %v9922_v18, %v9923_v10  ;;  %v9216_v63 = vshll.u32 %v19774_v38, 16  ;;  %v19930_v18 = vld [vmem:[#allocation3 + $0x58] sm:$0xf] }
 0x706   : > { %14799 = vmatmul.mubr.msk.bf16.gmra.mxu0 %vm5767_vm7, %v15125_v19  ;;  %v9195_v54 = vsel %vm15671_vm15, %v9190_v39, %v9194_v46  ;;  %v9202_v0 = vrot.slane %v9200_v47, 5  ;;  %v13738_v61 = vcombine.low %v19899_v31, %v19913_v45  ;;  %v9208_v25 = vrot.slane %v9206_v14, 5 }
 0x707   : > { %14802 = vmatprep.mubr.msk.bf16.mxu0 %vm5767_vm7, %v15126_v11  ;;  %v19916_v19 = vcombine.low %v9185_v3, %v9195_v54  ;;  %v9212_v62 = vrot.slane %v9210_v23, 4  ;;  %v9218_v46 = vrot.slane %v9216_v63, 5  ;;  %v13722_v2 = vrot.slane %v9831_v16, 9  ;;  %v9112_v63 = vld [vmem:[#allocation3 + $0x3c] sm:$0xf] }
 0x708   : > { %v9203_v34 = vor.u32 %v9202_v0, %v9199_v49  ;;  %v9927_v10 = vrot.slane %v19895_v21, 5  ;;  %v9930_v4 = vrot.slane %v19901_v32, 5  ;;  %v9221_v11 = vshrl.u32 %v9109_v29, 16  ;;  %v9832_v49 = vld [vmem:[#allocation3 + $0x54] sm:$0xe] }
 0x709   : > { %14757 = vmatmul.mubr.msk.bf16.gmra.mxu1 %vm5767_vm7, %v13628_v8  ;;  %v9213_v38 = vor.u32 %v9212_v62, %v9208_v25  ;;  %v9224_v39 = vshll.u32 %v9109_v29, 16  ;;  %v9230_v47 = vshll.u32 %v19821_v35, 16  ;;  %v9240_v54 = vshll.u32 %v19843_v13, 16  ;;  %v19945_v0 = vld [vmem:[#allocation3 + $0x5c] sm:$0x1] }
 0x70a   : > { %14760 = vmatprep.mubr.msk.bf16.mxu1 %vm5767_vm7, %v13629_v5  ;;  %v9204_v27 = vrot.slane %v9203_v34, 4  ;;  %v19934_v8 = vsel %vm16076_vm10, %v13722_v2, %v9927_v10  ;;  %v9929_v16 = vrot.slane %v9927_v10, 4  ;;  %v9223_v20 = vrot.slane %v9221_v11, 4 }
 0x70b   : > { %v9214_v3 = vrot.slane %v9213_v38, 4  ;;  %v9226_v33 = vrot.slane %v9224_v39, 5  ;;  %v9234_v5 = vshrl.u32 %v19821_v35, 16  ;;  %v9232_v23 = vrot.slane %v9230_v47, 5 }
 0x70c   : > { %v9209_v29 = vsel %vm15671_vm15, %v9204_v27, %v9208_v25  ;;  %v19942_v14 = vsel %vm16076_vm10, %v9929_v16, %v9930_v4  ;;  %v9242_v13 = vrot.slane %v9240_v54, 5  ;;  %v13723_v10 = vrot.slane %v9832_v49, 9  ;;  %v9833_v16 = vld [vmem:[#allocation3 + $0x60] sm:$0xe] }
 0x70d   : > { %v9219_v62 = vsel %vm15671_vm15, %v9214_v3, %v9218_v46  ;;  %v13739_v35 = vcombine.low %v19934_v8, %v19942_v14  ;;  %v9227_v34 = vor.u32 %v9226_v33, %v9223_v20  ;;  %v9236_v25 = vrot.slane %v9234_v5, 4  ;;  %v19978_v3 = vld [vmem:[#allocation3 + $0x68] sm:$0x1] }
 0x70e   : > { %14803 = vmatmul.mubr.msk.bf16.gmra.mxu0 %vm5767_vm7, %v15127_v17  ;;  %v19956_v2 = vcombine.low %v9209_v29, %v9219_v62  ;;  %v9934_v38 = vrot.slane %v19930_v18, 5  ;;  %v9937_v46 = vrot.slane %v19945_v0, 5  ;;  %v9245_v39 = vshrl.u32 %v9112_v63, 16  ;;  %v19960_v17 = vld [vmem:[#allocation3 + $0x64] sm:$0xf] }
 0x70f   : > { %14842 = vmatprep.mubr.msk.bf16.mxu0 %vm5767_vm7, %v13734_v6  ;;  %v9228_v4 = vrot.slane %v9227_v34, 4  ;;  %v9237_v11 = vor.u32 %v9236_v25, %v9232_v23  ;;  %v9248_v6 = vshll.u32 %v9112_v63, 16  ;;  %v9254_v27 = vshll.u32 %v19858_v30, 16 }
 0x710   : > { %v19968_v44 = vsel %vm16076_vm10, %v13723_v10, %v9934_v38  ;;  %v9936_v7 = vrot.slane %v9934_v38, 4  ;;  %v9247_v53 = vrot.slane %v9245_v39, 4  ;;  %v9264_v49 = vshll.u32 %v19866_v51, 16 }
 0x711   : > { %14761 = vmatmul.mubr.msk.bf16.gmra.mxu1 %vm5767_vm7, %v13630_v22  ;;  %v9233_v47 = vsel %vm15671_vm15, %v9228_v4, %v9232_v23  ;;  %v9238_v48 = vrot.slane %v9237_v11, 4  ;;  %v9258_v22 = vshrl.u32 %v19858_v30, 16  ;;  %v9250_v33 = vrot.slane %v9248_v6, 5 }
 0x712   : > { %14764 = vmatprep.mubr.msk.bf16.mxu1 %vm5767_vm7, %v13631_v15  ;;  %v19982_v20 = vsel %vm16076_vm10, %v9936_v7, %v9937_v46  ;;  %v9256_v5 = vrot.slane %v9254_v27, 5  ;;  %v13724_v23 = vrot.slane %v9833_v16, 9  ;;  %v9266_v63 = vrot.slane %v9264_v49, 5  ;;  %v9834_v16 = vld [vmem:[#allocation3 + $0x6c] sm:$0xe] }
 0x713   : > { %v9243_v9 = vsel %vm15671_vm15, %v9238_v48, %v9242_v13  ;;  %v13740_v15 = vcombine.low %v19968_v44, %v19982_v20  ;;  %v9260_v29 = vrot.slane %v9258_v22, 4  ;;  %v9251_v54 = vor.u32 %v9250_v33, %v9247_v53  ;;  %v20020_v22 = vld [vmem:[#allocation3 + $0x74] sm:$0x1] }
 0x714   : > { %v19989_v30 = vcombine.low %v9233_v47, %v9243_v9  ;;  %v9941_v62 = vrot.slane %v19960_v17, 5  ;;  %v22692_v34 = vcombine.low %v19805_v41, %v19815_v28  ;;  %v9944_v25 = vrot.slane %v19978_v3, 5  ;;  %v20006_v28 = vld [vmem:[#allocation3 + $0x70] sm:$0xf]  ;;  %v9118_v33 = vld [vmem:[#allocation3 + $0x54] sm:$0xf] }
 0x715   : > { %v9261_v51 = vor.u32 %v9260_v29, %v9256_v5  ;;  %v9269_v13 = vshrl.u32 %v9115_v37, 16  ;;  %v9272_v10 = vshll.u32 %v9115_v37, 16  ;;  %v22693_v38 = vcombine.low %v19831_v43, %v19849_v60 }
 0x716   : > { %14843 = vmatmul.mubr.msk.bf16.vlgmr.msra.gmra.mxu0 %vm5767_vm7, %v22692_v34  ;;  %v9252_v4 = vrot.slane %v9251_v54, 4  ;;  %v20003_v11 = vsel %vm16076_vm10, %v13724_v23, %v9941_v62  ;;  %v9943_v46 = vrot.slane %v9941_v62, 4  ;;  %v9278_v41 = vshll.u32 %v19895_v21, 16  ;;  %v20034_v62 = vld [vmem:[#allocation3 + $0x7c] sm:$0xf] }
 0x717   : > { %14846 = vmatprep.mubr.msk.bf16.mxu0 %vm5767_vm7, %v22693_v38  ;;  %v9262_v39 = vrot.slane %v9261_v51, 4  ;;  %v9271_v7 = vrot.slane %v9269_v13, 4  ;;  %v9274_v6 = vrot.slane %v9272_v10, 5  ;;  %v9282_v27 = vshrl.u32 %v19895_v21, 16  ;;  %v9835_v13 = vld [vmem:[#allocation3 + $0x78] sm:$0xe] }
 0x718   : > { %v22694_v43 = vcombine.low %v19743_v26, %v19766_v12  ;;  %v9257_v60 = vsel %vm15671_vm15, %v9252_v4, %v9256_v5  ;;  %v20017_v47 = vsel %vm16076_vm10, %v9943_v46, %v9944_v25  ;;  %v9280_v48 = vrot.slane %v9278_v41, 5  ;;  %v20048_v41 = vld [vmem:[#allocation3 + $0x80] sm:$0x1] }
 0x719   : > { %v9288_v53 = vshll.u32 %v19901_v32, 16  ;;  %v22695_v21 = vcombine.low %v19780_v36, %v19797_v24  ;;  %v9267_v26 = vsel %vm15671_vm15, %v9262_v39, %v9266_v63  ;;  %v13741_v12 = vcombine.low %v20003_v11, %v20017_v47  ;;  %v20156_v47 = vld [vmem:[#allocation3 + $0xa0] sm:$0xf] }
 0x71a   : > { %14765 = vmatmul.mubr.msk.bf16.gmra.mxu1 %vm5767_vm7, %v22694_v43  ;;  %v9275_v5 = vor.u32 %v9274_v6, %v9271_v7  ;;  %v9284_v49 = vrot.slane %v9282_v27, 4  ;;  %v20030_v37 = vcombine.low %v9257_v60, %v9267_v26  ;;  %v13725_v32 = vrot.slane %v9834_v16, 9  ;;  %v9121_v7 = vld [vmem:[#allocation3 + $0x60] sm:$0xf] }
 0x71b   : > { %14768 = vmatprep.mubr.msk.bf16.mxu1 %vm5767_vm7, %v22695_v21  ;;  %v9290_v9 = vrot.slane %v9288_v53, 5  ;;  %v9948_v29 = vrot.slane %v20006_v28, 5  ;;  %v9951_v36 = vrot.slane %v20020_v22, 5  ;;  %v9293_v24 = vshrl.u32 %v9118_v33, 16 }
 0x71c   : > { %v9276_v23 = vrot.slane %v9275_v5, 4  ;;  %v9285_v54 = vor.u32 %v9284_v49, %v9280_v48  ;;  %v9296_v51 = vshll.u32 %v9118_v33, 16  ;;  %v9302_v25 = vshll.u32 %v19930_v18, 16  ;;  %v20078_v5 = vld [vmem:[#allocation3 + $0x88] sm:$0xf] }
 0x71d   : > { %v20038_v63 = vsel %vm16076_vm10, %v13725_v32, %v9948_v29  ;;  %v9950_v34 = vrot.slane %v9948_v29, 4  ;;  %v9295_v4 = vrot.slane %v9293_v24, 4  ;;  %v9306_v46 = vshrl.u32 %v19930_v18, 16  ;;  %v9836_v29 = vld [vmem:[#allocation3 + $0x84] sm:$0xe] }
 0x71e   : > { %14847 = vmatmul.mubr.msk.bf16.gmra.mxu0 %vm5767_vm7, %v13737_v57  ;;  %v9281_v10 = vsel %vm15671_vm15, %v9276_v23, %v9280_v48  ;;  %v9286_v38 = vrot.slane %v9285_v54, 4  ;;  %v9298_v59 = vrot.slane %v9296_v51, 5  ;;  %v9304_v42 = vrot.slane %v9302_v25, 5  ;;  %v9124_v51 = vld [vmem:[#allocation3 + $0x6c] sm:$0xf] }
 0x71f   : > { %14850 = vmatprep.mubr.msk.bf16.mxu0 %vm5767_vm7, %v13738_v61  ;;  %v20056_v39 = vsel %vm16076_vm10, %v9950_v34, %v9951_v36  ;;  %v9312_v57 = vshll.u32 %v19945_v0, 16  ;;  %v9308_v27 = vrot.slane %v9306_v46, 4  ;;  %v13726_v16 = vrot.slane %v9835_v13, 9  ;;  %v20088_v34 = vld [vmem:[#allocation3 + $0x8c] sm:$0x1] }
 0x720   : > { %v9291_v6 = vsel %vm15671_vm15, %v9286_v38, %v9290_v9  ;;  %v13742_v18 = vcombine.low %v20038_v63, %v20056_v39  ;;  %v22696_v31 = vcombine.low %v19819_v58, %v19839_v1  ;;  %v9299_v61 = vor.u32 %v9298_v59, %v9295_v4 }
 0x721   : > { %v20067_v45 = vcombine.low %v9281_v10, %v9291_v6  ;;  %v9314_v43 = vrot.slane %v9312_v57, 5  ;;  %v9955_v0 = vrot.slane %v20034_v62, 5  ;;  %v9309_v60 = vor.u32 %v9308_v27, %v9304_v42  ;;  %v20111_v57 = vld [vmem:[%s22374_s6 + $0x20] sm:$0xf]  ;;  %v9837_v6 = vld [vmem:[#allocation3 + $0x90] sm:$0xe] }
 0x722   : > { %14769 = vmatmul.mubr.msk.bf16.gmra.mxu1 %vm5767_vm7, %v22696_v31  ;;  %v9958_v48 = vrot.slane %v20048_v41, 5  ;;  %v9317_v53 = vshrl.u32 %v9121_v7, 16  ;;  %v9320_v33 = vshll.u32 %v9121_v7, 16  ;;  %v9300_v21 = vrot.slane %v9299_v61, 4  ;;  %v20126_v61 = vld [vmem:[#allocation3 + $0x98] sm:$0x1] }
 0x723   : > { %14808 = vmatprep.mubr.msk.bf16.mxu1 %vm5767_vm7, %v19887_v52  ;;  %v20075_v58 = vsel %vm16076_vm10, %v13726_v16, %v9955_v0  ;;  %v9957_v1 = vrot.slane %v9955_v0, 4  ;;  %v9326_v26 = vshll.u32 %v19960_v17, 16  ;;  %v9310_v49 = vrot.slane %v9309_v60, 4 }
 0x724   : > { %v9319_v9 = vrot.slane %v9317_v53, 4  ;;  %v9322_v32 = vrot.slane %v9320_v33, 5  ;;  %v9330_v52 = vshrl.u32 %v19960_v17, 16  ;;  %v9305_v23 = vsel %vm15671_vm15, %v9300_v21, %v9304_v42  ;;  %v20106_v42 = vld [vmem:[#allocation3 + $0x94] sm:$0xf] }
 0x725   : > { %v20085_v54 = vsel %vm16076_vm10, %v9957_v1, %v9958_v48  ;;  %v9328_v36 = vrot.slane %v9326_v26, 5  ;;  %v9336_v24 = vshll.u32 %v19978_v3, 16  ;;  %v9315_v17 = vsel %vm15671_vm15, %v9310_v49, %v9314_v43  ;;  %v9127_v48 = vld [vmem:[#allocation3 + $0x78] sm:$0xf] }
 0x726   : > { %14851 = vmatmul.mubr.msk.bf16.gmra.mxu0 %vm5767_vm7, %v13739_v35  ;;  %v13743_v25 = vcombine.low %v20075_v58, %v20085_v54  ;;  %v9323_v13 = vor.u32 %v9322_v32, %v9319_v9  ;;  %v9332_v10 = vrot.slane %v9330_v52, 4  ;;  %v20102_v3 = vcombine.low %v9305_v23, %v9315_v17  ;;  %v9133_v54 = vld [vmem:[#allocation3 + $0x90] sm:$0xf] }
 0x727   : > { %14854 = vmatprep.mubr.msk.bf16.mxu0 %vm5767_vm7, %v13740_v15  ;;  %v9338_v38 = vrot.slane %v9336_v24, 5  ;;  %v13727_v4 = vrot.slane %v9836_v29, 9  ;;  %v9962_v8 = vrot.slane %v20078_v5, 5  ;;  %v9965_v46 = vrot.slane %v20088_v34, 5 }
 0x728   : > { %v9324_v14 = vrot.slane %v9323_v13, 4  ;;  %v9333_v35 = vor.u32 %v9332_v10, %v9328_v36  ;;  %v9341_v59 = vshrl.u32 %v9124_v51, 16  ;;  %v9344_v15 = vshll.u32 %v9124_v51, 16  ;;  %v9838_v13 = vld [vmem:[#allocation3 + $0x9c] sm:$0xe] }
 0x729   : > { %v20117_v44 = vsel %vm16076_vm10, %v13727_v4, %v9962_v8  ;;  %v9964_v20 = vrot.slane %v9962_v8, 4  ;;  %v9350_v7 = vshll.u32 %v20006_v28, 16  ;;  %v13728_v33 = vrot.slane %v9837_v6, 9  ;;  %v9130_v4 = vld [vmem:[#allocation3 + $0x84] sm:$0xf] }
 0x72a   : > { %14809 = vmatmul.mubr.msk.bf16.vlgmr.msra.gmra.mxu1 %vm5767_vm7, %v19916_v19  ;;  %v9329_v27 = vsel %vm15671_vm15, %v9324_v14, %v9328_v36  ;;  %v9334_v16 = vrot.slane %v9333_v35, 4  ;;  %v9343_v31 = vrot.slane %v9341_v59, 4  ;;  %v9354_v19 = vshrl.u32 %v20006_v28, 16 }
 0x72b   : > { %14875 = vmatpush3.bf16.msra.mxu1 %v19893_v55  ;;  %14812 = vmatprep.mubr.msk.bf16.mxu1 %vm5767_vm7, %v19956_v2  ;;  %v20130_v43 = vsel %vm16076_vm10, %v9964_v20, %v9965_v46  ;;  %v9346_v0 = vrot.slane %v9344_v15, 5  ;;  %v9352_v60 = vrot.slane %v9350_v7, 5  ;;  %v9360_v55 = vshll.u32 %v20020_v22, 16 }
 0x72c   : > { %15050 = vmatprep.subr.msk.bf16.mxu1 %vm7831_vm8, %v20111_v57  ;;  %v9339_v2 = vsel %vm15671_vm15, %v9334_v16, %v9338_v38  ;;  %v13744_v28 = vcombine.low %v20117_v44, %v20130_v43  ;;  %v9356_v53 = vrot.slane %v9354_v19, 4  ;;  %v9969_v49 = vrot.slane %v20106_v42, 5  ;;  %v20168_v38 = vld [vmem:[#allocation3 + $0xa4] sm:$0x1]  ;;  %v9839_v19 = vld [vmem:[#allocation3 + $0xa8] sm:$0xe] }
 0x72d   : > { %v20139_v21 = vcombine.low %v9329_v27, %v9339_v2  ;;  %v9347_v1 = vor.u32 %v9346_v0, %v9343_v31  ;;  %v9362_v26 = vrot.slane %v9360_v55, 5  ;;  %v9972_v9 = vrot.slane %v20126_v61, 5 }
 0x72e   : > { %14855 = vmatmul.mubr.msk.bf16.gmra.mxu0 %vm5767_vm7, %v13741_v12  ;;  %v9357_v22 = vor.u32 %v9356_v53, %v9352_v60  ;;  %v9365_v32 = vshrl.u32 %v9127_v48, 16  ;;  %v9368_v52 = vshll.u32 %v9127_v48, 16  ;;  %v20153_v23 = vsel %vm16076_vm10, %v13728_v33, %v9969_v49  ;;  %v20192_v48 = vld [vmem:[#allocation3 + $0xb0] sm:$0x1] }
 0x72f   : > { %14858 = vmatprep.mubr.msk.bf16.mxu0 %vm5767_vm7, %v13742_v18  ;;  %v9348_v29 = vrot.slane %v9347_v1, 4  ;;  %v9971_v36 = vrot.slane %v9969_v49, 4  ;;  %v9374_v11 = vshll.u32 %v20034_v62, 16  ;;  %v9378_v17 = vshrl.u32 %v20034_v62, 16 }
 0x730   : > { %v9358_v12 = vrot.slane %v9357_v22, 4  ;;  %v9367_v24 = vrot.slane %v9365_v32, 4  ;;  %v9370_v51 = vrot.slane %v9368_v52, 5  ;;  %v9384_v10 = vshll.u32 %v20048_v41, 16 }
 0x731   : > { %v9353_v63 = vsel %vm15671_vm15, %v9348_v29, %v9352_v60  ;;  %v20165_v39 = vsel %vm16076_vm10, %v9971_v36, %v9972_v9  ;;  %v9376_v18 = vrot.slane %v9374_v11, 5  ;;  %v9380_v14 = vrot.slane %v9378_v17, 4 }
 0x732   : > { %14813 = vmatmul.mubr.msk.bf16.gmra.mxu1 %vm5767_vm7, %v19989_v30  ;;  %v9363_v62 = vsel %vm15671_vm15, %v9358_v12, %v9362_v26  ;;  %v13745_v30 = vcombine.low %v20153_v23, %v20165_v39  ;;  %v9371_v8 = vor.u32 %v9370_v51, %v9367_v24  ;;  %v9386_v46 = vrot.slane %v9384_v10, 5  ;;  %v20211_v12 = vld [vmem:[#allocation3 + $0xb8] sm:$0xf] }
 0x733   : > { %14816 = vmatprep.mubr.msk.bf16.mxu1 %vm5767_vm7, %v20030_v37  ;;  %v20176_v35 = vcombine.low %v9353_v63, %v9363_v62  ;;  %v13729_v59 = vrot.slane %v9838_v13, 9  ;;  %v9976_v41 = vrot.slane %v20156_v47, 5  ;;  %v9381_v20 = vor.u32 %v9380_v14, %v9376_v18  ;;  %v20180_v37 = vld [vmem:[#allocation3 + $0xac] sm:$0xf]  ;;  %v9136_v62 = vld [vmem:[#allocation3 + $0x9c] sm:$0xf] }
 0x734   : > { %v9372_v44 = vrot.slane %v9371_v8, 4  ;;  %v9979_v15 = vrot.slane %v20168_v38, 5  ;;  %v9389_v7 = vshrl.u32 %v9130_v4, 16  ;;  %v9392_v16 = vshll.u32 %v9130_v4, 16  ;;  %v20219_v4 = vld [vmem:[#allocation3 + $0xbc] sm:$0x1] }
 0x735   : > { %v9977_v6 = vsel %vm16076_vm10, %v13729_v59, %v9976_v41  ;;  %v9978_v27 = vrot.slane %v9976_v41, 4  ;;  %v9398_v31 = vshll.u32 %v20078_v5, 16  ;;  %v9382_v0 = vrot.slane %v9381_v20, 4 }
 0x736   : > { %14859 = vmatmul.mubr.msk.bf16.gmra.mxu0 %vm5767_vm7, %v13743_v25  ;;  %v9377_v43 = vsel %vm15671_vm15, %v9372_v44, %v9376_v18  ;;  %v9391_v60 = vrot.slane %v9389_v7, 4  ;;  %v9402_v55 = vshrl.u32 %v20078_v5, 16  ;;  %v9394_v53 = vrot.slane %v9392_v16, 5 }
 0x737   : > { %14862 = vmatprep.mubr.msk.bf16.mxu0 %vm5767_vm7, %v13744_v28  ;;  %v9980_v2 = vsel %vm16076_vm10, %v9978_v27, %v9979_v15  ;;  %v9400_v33 = vrot.slane %v9398_v31, 5  ;;  %v9408_v58 = vshll.u32 %v20088_v34, 16  ;;  %v9387_v25 = vsel %vm15671_vm15, %v9382_v0, %v9386_v46  ;;  %v20227_v27 = vld [vmem:[#allocation3 + $0xc4] sm:$0xf] }
 0x738   : > { %v13746_v1 = vcombine.low %v9977_v6, %v9980_v2  ;;  %v9404_v26 = vrot.slane %v9402_v55, 4  ;;  %v13730_v49 = vrot.slane %v9839_v19, 9  ;;  %v20202_v5 = vcombine.low %v9377_v43, %v9387_v25  ;;  %v9841_v43 = vld [vmem:[#allocation3 + $0xc0] sm:$0xe]  ;;  %v9139_v25 = vld [vmem:[#allocation3 + $0xa8] sm:$0xf] }
 0x739   : > { %v9395_v28 = vor.u32 %v9394_v53, %v9391_v60  ;;  %v9410_v22 = vrot.slane %v9408_v58, 5  ;;  %v9983_v9 = vrot.slane %v20180_v37, 5  ;;  %v9986_v32 = vrot.slane %v20192_v48, 5  ;;  %v20239_v53 = vld [vmem:[#allocation3 + $0xc8] sm:$0x1] }
 0x73a   : > { %14817 = vmatmul.mubr.msk.bf16.gmra.mxu1 %vm5767_vm7, %v20067_v45  ;;  %v9405_v34 = vor.u32 %v9404_v26, %v9400_v33  ;;  %v9413_v52 = vshrl.u32 %v9133_v54, 16  ;;  %v9416_v29 = vshll.u32 %v9133_v54, 16  ;;  %v9422_v45 = vshll.u32 %v20106_v42, 16 }
 0x73b   : > { %14820 = vmatprep.mubr.msk.bf16.mxu1 %vm5767_vm7, %v20102_v3  ;;  %v9396_v23 = vrot.slane %v9395_v28, 4  ;;  %v9984_v36 = vsel %vm16076_vm10, %v13730_v49, %v9983_v9  ;;  %v9985_v11 = vrot.slane %v9983_v9, 4  ;;  %v9426_v13 = vshrl.u32 %v20106_v42, 16  ;;  %v9840_v3 = vld [vmem:[#allocation3 + $0xb4] sm:$0xe] }
 0x73c   : > { %v9406_v24 = vrot.slane %v9405_v34, 4  ;;  %v9415_v51 = vrot.slane %v9413_v52, 4  ;;  %v9418_v17 = vrot.slane %v9416_v29, 5  ;;  %v9424_v18 = vrot.slane %v9422_v45, 5 }
 0x73d   : > { %v9401_v63 = vsel %vm15671_vm15, %v9396_v23, %v9400_v33  ;;  %v9987_v39 = vsel %vm16076_vm10, %v9985_v11, %v9986_v32  ;;  %v9432_v10 = vshll.u32 %v20126_v61, 16  ;;  %v9428_v46 = vrot.slane %v9426_v13, 4  ;;  %v10655_v13 = vld [vmem:[#allocation3 + $0x18] sm:$0xf] }
 0x73e   : > { %14863 = vmatmul.mubr.msk.bf16.gmra.mxu0 %vm5767_vm7, %v13745_v30  ;;  %v9411_v8 = vsel %vm15671_vm15, %v9406_v24, %v9410_v22  ;;  %v13747_v14 = vcombine.low %v9984_v36, %v9987_v39  ;;  %v9419_v42 = vor.u32 %v9418_v17, %v9415_v51  ;;  %v13731_v44 = vrot.slane %v9840_v3, 9 }
 0x73f   : > { %14866 = vmatprep.mubr.msk.bf16.mxu0 %vm5767_vm7, %v13746_v1  ;;  %v13695_v59 = vcombine.low %v9401_v63, %v9411_v8  ;;  %v9434_v41 = vrot.slane %v9432_v10, 5  ;;  %v9990_v20 = vrot.slane %v20211_v12, 5  ;;  %v9429_v61 = vor.u32 %v9428_v46, %v9424_v18  ;;  %v20261_v10 = vld [vmem:[#allocation3 + $0x1c] sm:$0xf]  ;;  %v9142_v46 = vld [vmem:[#allocation3 + $0xb4] sm:$0xf] }
 0x740   : > { %v9420_v15 = vrot.slane %v9419_v42, 4  ;;  %v9993_v7 = vrot.slane %v20219_v4, 5  ;;  %v9437_v6 = vshrl.u32 %v9136_v62, 16  ;;  %v9440_v31 = vshll.u32 %v9136_v62, 16  ;;  %v20263_v62 = vpop.f32.mrf.mxu0  ;;  %v20268_v42 = vld [vmem:[#allocation3 + $0x20] sm:$0x1] }
 0x741   : > { %v9991_v30 = vsel %vm16076_vm10, %v13731_v44, %v9990_v20  ;;  %v9992_v16 = vrot.slane %v9990_v20, 4  ;;  %v9446_v19 = vshll.u32 %v20156_v47, 16  ;;  %v9430_v60 = vrot.slane %v9429_v61, 4 }
 0x742   : > { %14821 = vmatmul.mubr.msk.bf16.gmra.mxu1 %vm5767_vm7, %v20139_v21  ;;  %v9425_v0 = vsel %vm15671_vm15, %v9420_v15, %v9424_v18  ;;  %v9439_v55 = vrot.slane %v9437_v6, 4  ;;  %v9450_v2 = vshrl.u32 %v20156_v47, 16  ;;  %v9442_v33 = vrot.slane %v9440_v31, 5 }
 0x743   : > { %14824 = vmatprep.mubr.msk.bf16.mxu1 %vm5767_vm7, %v20176_v35  ;;  %v9994_v21 = vsel %vm16076_vm10, %v9992_v16, %v9993_v7  ;;  %v9448_v58 = vrot.slane %v9446_v19, 5  ;;  %v9456_v54 = vshll.u32 %v20168_v38, 16  ;;  %v9435_v35 = vsel %vm15671_vm15, %v9430_v60, %v9434_v41  ;;  %v20273_v19 = vpop.f32.mrf.mxu0 }
 0x744   : > { %v13748_v1 = vcombine.low %v9991_v30, %v9994_v21  ;;  %v9452_v26 = vrot.slane %v9450_v2, 4  ;;  %v13732_v49 = vrot.slane %v9841_v43, 9  ;;  %v13696_v28 = vcombine.low %v9425_v0, %v9435_v35 }
 0x745   : > { %v9443_v22 = vor.u32 %v9442_v33, %v9439_v55  ;;  %v9458_v9 = vrot.slane %v9456_v54, 5  ;;  %v9997_v47 = vrot.slane %v20227_v27, 5  ;;  %v10000_v32 = vrot.slane %v20239_v53, 5 }
 0x746   : > { %14867 = vmatmul.mubr.msk.bf16.gmra.mxu0 %vm5767_vm7, %v13747_v14  ;;  %v9453_v34 = vor.u32 %v9452_v26, %v9448_v58  ;;  %v9461_v52 = vshrl.u32 %v9139_v25, 16  ;;  %v9464_v29 = vshll.u32 %v9139_v25, 16  ;;  %v9470_v11 = vshll.u32 %v20180_v37, 16  ;;  %v10658_v26 = vld [vmem:[#allocation3 + $0x24] sm:$0xf] }
 0x747   : > { %14870 = vmatprep.mubr.msk.bf16.mxu0 %vm5767_vm7, %v13748_v1  ;;  %v9444_v38 = vrot.slane %v9443_v22, 4  ;;  %v9998_v23 = vsel %vm16076_vm10, %v13732_v49, %v9997_v47  ;;  %v9999_v36 = vrot.slane %v9997_v47, 4  ;;  %v9474_v17 = vshrl.u32 %v20180_v37, 16 }
 0x748   : > { %v9454_v45 = vrot.slane %v9453_v34, 4  ;;  %v9463_v24 = vrot.slane %v9461_v52, 4  ;;  %v9466_v51 = vrot.slane %v9464_v29, 5  ;;  %v9472_v39 = vrot.slane %v9470_v11, 5  ;;  %v20284_v34 = vld [vmem:[#allocation3 + $0x28] sm:$0xf] }
 0x749   : > { %v9449_v3 = vsel %vm15671_vm15, %v9444_v38, %v9448_v58  ;;  %v10001_v63 = vsel %vm16076_vm10, %v9999_v36, %v10000_v32  ;;  %v9480_v18 = vshll.u32 %v20192_v48, 16  ;;  %v9476_v14 = vrot.slane %v9474_v17, 4  ;;  %v20286_v32 = vpop.f32.mrf.mxu0  ;;  %v20295_v11 = vld [vmem:[#allocation3 + $0x2c] sm:$0x1] }
 0x74a   : > { %14825 = vmatmul.mubr.msk.bf16.gmra.mxu1 %vm5767_vm7, %v20202_v5  ;;  %v9459_v37 = vsel %vm15671_vm15, %v9454_v45, %v9458_v9  ;;  %v13749_v8 = vcombine.low %v9998_v23, %v10001_v63  ;;  %v9467_v5 = vor.u32 %v9466_v51, %v9463_v24  ;;  %v10704_v20 = vshrl.u32 %v10655_v13, 16 }
 0x74b   : > { %14828 = vmatprep.mubr.msk.bf16.mxu1 %vm5767_vm7, %v13695_v59  ;;  %v13697_v41 = vcombine.low %v9449_v3, %v9459_v37  ;;  %v9482_v44 = vrot.slane %v9480_v18, 5  ;;  %v10707_v15 = vshll.u32 %v10655_v13, 16  ;;  %v9477_v61 = vor.u32 %v9476_v14, %v9472_v39  ;;  %v9145_v3 = vld [vmem:[#allocation3 + $0xc0] sm:$0xf] }
 0x74c   : > { %v9468_v48 = vrot.slane %v9467_v5, 4  ;;  %v10713_v7 = vshll.u32 %v20261_v10, 16  ;;  %v10717_v6 = vshrl.u32 %v20261_v10, 16  ;;  %v10706_v59 = vrot.slane %v10704_v20, 4  ;;  %v20302_v5 = vpop.f32.mrf.mxu0 }
 0x74d   : > { %v10709_v30 = vrot.slane %v10707_v15, 5  ;;  %v10723_v16 = vshll.u32 %v20268_v42, 16  ;;  %v9485_v31 = vshrl.u32 %v9142_v46, 16  ;;  %v9478_v0 = vrot.slane %v9477_v61, 4 }
 0x74e   : > { %14871 = vmatmul.mubr.msk.bf16.gmra.mxu0 %vm5767_vm7, %v13749_v8  ;;  %v9473_v43 = vsel %vm15671_vm15, %v9468_v48, %v9472_v39  ;;  %v10715_v60 = vrot.slane %v10713_v7, 5  ;;  %v10719_v55 = vrot.slane %v10717_v6, 4  ;;  %v9488_v58 = vshll.u32 %v9142_v46, 16 }
 0x74f   : > { %v10710_v2 = vor.u32 %v10709_v30, %v10706_v59  ;;  %v10725_v21 = vrot.slane %v10723_v16, 5  ;;  %v9487_v33 = vrot.slane %v9485_v31, 4  ;;  %v9483_v54 = vsel %vm15671_vm15, %v9478_v0, %v9482_v44  ;;  %v10661_v16 = vld [vmem:[#allocation3 + $0x30] sm:$0xf] }
 0x750   : > { %v10720_v25 = vor.u32 %v10719_v55, %v10715_v60  ;;  %v9494_v35 = vshll.u32 %v20211_v12, 16  ;;  %v9498_v1 = vshrl.u32 %v20211_v12, 16  ;;  %v13698_v49 = vcombine.low %v9473_v43, %v9483_v54  ;;  %v15440_v12 = vld [vmem:[%s22374_s6 + $0x1c] sm:$0xf]  ;;  %v20312_v55 = vld [vmem:[#allocation3 + $0x34] sm:$0xf] }
 0x751   : > { %v10711_v22 = vrot.slane %v10710_v2, 4  ;;  %v9490_v9 = vrot.slane %v9488_v58, 5  ;;  %v9504_v47 = vshll.u32 %v20219_v4, 16  ;;  %v10728_v45 = vshrl.u32 %v10658_v26, 16 }
 0x752   : > { %14829 = vmatmul.mubr.msk.bf16.gmra.mxu1 %vm5767_vm7, %v13696_v28  ;;  %v10721_v52 = vrot.slane %v10720_v25, 4  ;;  %v9496_v29 = vrot.slane %v9494_v35, 5  ;;  %v9500_v38 = vrot.slane %v9498_v1, 4  ;;  %v11186_v28 = vsel %vm7831_vm8, %v15440_v12, 0  ;;  %v20319_v1 = vld [vmem:[#allocation3 + $0x38] sm:$0x1] }
 0x753   : > { %14832 = vmatprep.mubr.msk.bf16.mxu1 %vm5767_vm7, %v13697_v41  ;;  %v10716_v23 = vsel %vm15671_vm15, %v10711_v22, %v10715_v60  ;;  %v9491_v36 = vor.u32 %v9490_v9, %v9487_v33  ;;  %v9506_v4 = vrot.slane %v9504_v47, 5  ;;  %14909 = vmatpush3.bf16.msra.mxu0 %v11186_v28  ;;  %v10731_v17 = vshll.u32 %v10658_v26, 16 }
 0x754   : > { %v10726_v24 = vsel %vm15671_vm15, %v10721_v52, %v10725_v21  ;;  %v9501_v51 = vor.u32 %v9500_v38, %v9496_v29  ;;  %v10737_v13 = vshll.u32 %v20284_v34, 16  ;;  %v22697_v63 = vmov 0.0  }
 0x755   : > { %14976 = vmatprep.subr.mxu0 %v22697_v63  ;;  %v13800_v39 = vcombine.low %v10716_v23, %v10726_v24  ;;  %v9492_v18 = vrot.slane %v9491_v36, 4  ;;  %v10730_v37 = vrot.slane %v10728_v45, 4  ;;  %v10741_v8 = vshrl.u32 %v20284_v34, 16  ;;  %v20328_v23 = vld [vmem:[#allocation3 + $0x40] sm:$0xf] }
 0x756   : > { %v9502_v14 = vrot.slane %v9501_v51, 4  ;;  %v10733_v46 = vrot.slane %v10731_v17, 5  ;;  %v10739_v41 = vrot.slane %v10737_v13, 5  ;;  %v10747_v44 = vshll.u32 %v20295_v11, 16  ;;  %v20314_v2 = vpop.f32.mrf.mxu0 }
 0x757   : > { %14910 = vmatprep.mubr.msk.bf16.mxu0 %vm5767_vm7, %v13800_v39  ;;  %v9497_v20 = vsel %vm15671_vm15, %v9492_v18, %v9496_v29  ;;  %v10743_v15 = vrot.slane %v10741_v8, 4  ;;  %v9509_v48 = vshrl.u32 %v9145_v3, 16  ;;  %v9512_v61 = vshll.u32 %v9145_v3, 16 }
 0x758   : > { %v9507_v7 = vsel %vm15671_vm15, %v9502_v14, %v9506_v4  ;;  %v10734_v6 = vor.u32 %v10733_v46, %v10730_v37  ;;  %v10749_v59 = vrot.slane %v10747_v44, 5  ;;  %v9518_v30 = vshll.u32 %v20227_v27, 16  ;;  %v20321_v22 = vpop.f32.mrf.mxu0  ;;  %v20339_v14 = vld [vmem:[#allocation3 + $0x44] sm:$0x1] }
 0x759   : > { %v13699_v31 = vcombine.low %v9497_v20, %v9507_v7  ;;  %v10744_v43 = vor.u32 %v10743_v15, %v10739_v41  ;;  %v9511_v0 = vrot.slane %v9509_v48, 4  ;;  %v9514_v60 = vrot.slane %v9512_v61, 5  ;;  %v10667_v48 = vld [vmem:[#allocation3 + $0x48] sm:$0xf] }
 0x75a   : > { %14833 = vmatmul.mubr.msk.bf16.gmra.mxu1 %vm5767_vm7, %v13698_v49  ;;  %v10735_v21 = vrot.slane %v10734_v6, 4  ;;  %v9520_v33 = vrot.slane %v9518_v30, 5  ;;  %v9522_v58 = vshrl.u32 %v20227_v27, 16  ;;  %v9528_v54 = vshll.u32 %v20239_v53, 16  ;;  %v10664_v27 = vld [vmem:[#allocation3 + $0x3c] sm:$0xf]  ;;  %v20330_v36 = vpop.f32.mrf.mxu0 }
 0x75b   : > { %14836 = vmatprep.mubr.msk.bf16.mxu1 %vm5767_vm7, %v13699_v31  ;;  %v10745_v25 = vrot.slane %v10744_v43, 4  ;;  %v9515_v35 = vor.u32 %v9514_v60, %v9511_v0  ;;  %v10752_v26 = vshrl.u32 %v10661_v16, 16  ;;  %v10755_v49 = vshll.u32 %v10661_v16, 16  ;;  %v20345_v30 = vld [vmem:[#allocation3 + $0x4c] sm:$0xf] }
 0x75c   : > { %v10740_v9 = vsel %vm15671_vm15, %v10735_v21, %v10739_v41  ;;  %v9524_v47 = vrot.slane %v9522_v58, 4  ;;  %v9530_v52 = vrot.slane %v9528_v54, 5  ;;  %v10761_v29 = vshll.u32 %v20312_v55, 16  ;;  %v20336_v18 = vpop.f32.mrf.mxu0  ;;  %v15128_v54 = vld [vmem:[#allocation3 + $0x18] sm:$0xff]  }
 0x75d   : > { %v10750_v53 = vsel %vm15671_vm15, %v10745_v25, %v10749_v59  ;;  %v9516_v38 = vrot.slane %v9515_v35, 4  ;;  %v10754_v12 = vrot.slane %v10752_v26, 4  ;;  %v10757_v28 = vrot.slane %v10755_v49, 5 }
 0x75e   : > { %v13801_v4 = vcombine.low %v10740_v9, %v10750_v53  ;;  %v9525_v45 = vor.u32 %v9524_v47, %v9520_v33  ;;  %v10763_v24 = vrot.slane %v10761_v29, 5  ;;  %v10765_v51 = vshrl.u32 %v20312_v55, 16  ;;  %v20355_v9 = vld [vmem:[#allocation3 + $0x50] sm:$0x1] }
 0x75f   : > { %v9521_v17 = vsel %vm15671_vm15, %v9516_v38, %v9520_v33  ;;  %v10758_v13 = vor.u32 %v10757_v28, %v10754_v12  ;;  %v10771_v3 = vshll.u32 %v20319_v1, 16  ;;  %v10776_v39 = vshrl.u32 %v10664_v27, 16 }
 0x760   : > { %14911 = vmatmul.mubr.msk.bf16.vlgmr.msra.gmra.mxu0 %vm5767_vm7, %v13801_v4  ;;  %v9526_v37 = vrot.slane %v9525_v45, 4  ;;  %v10767_v8 = vrot.slane %v10765_v51, 4  ;;  %v10779_v46 = vshll.u32 %v10664_v27, 16  ;;  %v10785_v41 = vshll.u32 %v20328_v23, 16 }
 0x761   : > { %v10759_v44 = vrot.slane %v10758_v13, 4  ;;  %v10778_v20 = vrot.slane %v10776_v39, 4  ;;  %v10789_v15 = vshrl.u32 %v20328_v23, 16  ;;  %v10773_v31 = vrot.slane %v10771_v3, 5 }
 0x762   : > { %v9531_v61 = vsel %vm15671_vm15, %v9526_v37, %v9530_v52  ;;  %v10768_v7 = vor.u32 %v10767_v8, %v10763_v24  ;;  %v10781_v6 = vrot.slane %v10779_v46, 5  ;;  %v10787_v59 = vrot.slane %v10785_v41, 5  ;;  %v10670_v8 = vld [vmem:[#allocation3 + $0x54] sm:$0xf]  ;;  %v20373_v46 = vld [vmem:[#allocation3 + $0x58] sm:$0xf] }
 0x763   : > { %v13700_v16 = vcombine.low %v9521_v17, %v9531_v61  ;;  %v10791_v43 = vrot.slane %v10789_v15, 4  ;;  %v10795_v0 = vshll.u32 %v20339_v14, 16  ;;  %v20348_v60 = vpop.f32.mrf.mxu1  ;;  %v20350_v21 = vpop.f32.mrf.mxu0  ;;  %v10764_v33 = vsel %vm15671_vm15, %v10759_v44, %v10763_v24  ;;  %v10673_v61 = vld [vmem:[#allocation3 + $0x60] sm:$0xf] }
 0x764   : > { %v10769_v58 = vrot.slane %v10768_v7, 4  ;;  %v10782_v25 = vor.u32 %v10781_v6, %v10778_v20  ;;  %v10800_v35 = vshrl.u32 %v10667_v48, 16  ;;  %v10803_v47 = vshll.u32 %v10667_v48, 16  ;;  %v20380_v48 = vld [vmem:[#allocation3 + $0x5c] sm:$0x1] }
 0x765   : > { %14837 = vmatmul.mubr.msk.bf16.gmra.mxu1 %vm5767_vm7, %v13700_v16  ;;  %v10792_v26 = vor.u32 %v10791_v43, %v10787_v59  ;;  %v10797_v49 = vrot.slane %v10795_v0, 5  ;;  %v10809_v52 = vshll.u32 %v20345_v30, 16  ;;  %v20358_v29 = vpop.f32.mrf.mxu1  ;;  %v20360_v27 = vpop.f32.mrf.mxu0  ;;  %v10813_v28 = vshrl.u32 %v20345_v30, 16  ;;  %v15129_v43 = vld [vmem:[#allocation3 + $0x24] sm:$0xff]  }
 0x766   : > { %v10774_v53 = vsel %vm15671_vm15, %v10769_v58, %v10773_v31  ;;  %14876 = vmatprep.mubr.msk.bf16.mxu1 %vm5767_vm7, %v15128_v54  ;;  %v10783_v38 = vrot.slane %v10782_v25, 4  ;;  %v10802_v12 = vrot.slane %v10800_v35, 4  ;;  %v10805_v24 = vrot.slane %v10803_v47, 5  ;;  %v20393_v47 = vld [vmem:[#allocation3 + $0x64] sm:$0xf] }
 0x767   : > { %v13802_v4 = vcombine.low %v10764_v33, %v10774_v53  ;;  %v10793_v45 = vrot.slane %v10792_v26, 4  ;;  %v10811_v51 = vrot.slane %v10809_v52, 5  ;;  %v20366_v17 = vpop.f32.mrf.mxu1  ;;  %v20368_v13 = vpop.f32.mrf.mxu0  ;;  %v10815_v39 = vrot.slane %v10813_v28, 4  ;;  %v15130_v33 = vld [vmem:[#allocation3 + $0x30] sm:$0xff]  }
 0x768   : > { %v10788_v3 = vsel %vm15671_vm15, %v10783_v38, %v10787_v59  ;;  %v10819_v37 = vshll.u32 %v20355_v9, 16  ;;  %v10806_v44 = vor.u32 %v10805_v24, %v10802_v12  ;;  %v11656_v20 = vsel %vm7831_vm8, %v20111_v57, 0 }
 0x769   : > { %14914 = vmatprep.mubr.msk.bf16.mxu0 %vm5767_vm7, %v13802_v4  ;;  %v10798_v41 = vsel %vm15671_vm15, %v10793_v45, %v10797_v49  ;;  %v7872_v15 = vpop.f32.mrf.mxu1  ;;  %v20382_v7 = vpop.f32.mrf.mxu0  ;;  %v10816_v59 = vor.u32 %v10815_v39, %v10811_v51  ;;  %v10824_v58 = vshrl.u32 %v10670_v8, 16  ;;  %v10827_v54 = vshll.u32 %v10670_v8, 16  ;;  %v20398_v4 = vld [vmem:[#allocation3 + $0x68] sm:$0x1] }
 0x76a   : > { %v13803_v6 = vcombine.low %v10788_v3, %v10798_v41  ;;  %v10821_v16 = vrot.slane %v10819_v37, 5  ;;  %v20385_v31 = vadd.f32 %v20302_v5, %v7872_v15  ;;  %v10807_v0 = vrot.slane %v10806_v44, 4 }
 0x76b   : > { %v10833_v25 = vshll.u32 %v20373_v46, 16  ;;  %v20388_v57 = vpop.f32.mrf.mxu0  ;;  %v10817_v35 = vrot.slane %v10816_v59, 4  ;;  %v10837_v26 = vshrl.u32 %v20373_v46, 16  ;;  %v10843_v49 = vshll.u32 %v20380_v48, 16 }
 0x76c   : > { %14915 = vmatmul.mubr.msk.bf16.gmra.mxu0 %vm5767_vm7, %v13803_v6  ;;  %v10848_v5 = vshrl.u32 %v10673_v61, 16  ;;  %v10812_v52 = vsel %vm15671_vm15, %v10807_v0, %v10811_v51  ;;  %v10826_v53 = vrot.slane %v10824_v58, 4  ;;  %v10829_v38 = vrot.slane %v10827_v54, 5  ;;  %v10676_v51 = vld [vmem:[#allocation3 + $0x6c] sm:$0xf] }
 0x76d   : > { %14877 = vmatmul.mubr.msk.bf16.vlgmr.msra.gmra.mxu1 %vm5767_vm7, %v15129_v43  ;;  %v10835_v12 = vrot.slane %v10833_v25, 5  ;;  %v14678_v28 = vpop.f32.mrf.mxu1  ;;  %v20400_v45 = vpop.f32.mrf.mxu0  ;;  %v10822_v24 = vsel %vm15671_vm15, %v10817_v35, %v10821_v16  ;;  %v10839_v3 = vrot.slane %v10837_v26, 4  ;;  %v10845_v39 = vrot.slane %v10843_v49, 5 }
 0x76e   : > { %14943 = vmatpush3.bf16.msra.mxu1 %v11656_v20  ;;  %14880 = vmatprep.mubr.msk.bf16.mxu1 %vm5767_vm7, %v15130_v33  ;;  %v20406_v37 = vadd.f32 %v20314_v2, %v14678_v28  ;;  %v13804_v8 = vcombine.low %v10812_v52, %v10822_v24  ;;  %v10830_v41 = vor.u32 %v10829_v38, %v10826_v53  ;;  %v10850_v44 = vrot.slane %v10848_v5, 4  ;;  %v20419_v52 = vld [vmem:[#allocation3 + $0x70] sm:$0xf]  ;;  %v15131_v38 = vld [vmem:[#allocation3 + $0x3c] sm:$0xff]  }
 0x76f   : > { %v10851_v15 = vshll.u32 %v10673_v61, 16  ;;  %v7885_v6 = vpop.f32.mrf.mxu1  ;;  %v20408_v59 = vpop.f32.mrf.mxu0  ;;  %v10840_v43 = vor.u32 %v10839_v3, %v10835_v12  ;;  %v10857_v0 = vshll.u32 %v20393_v47, 16  ;;  %v10861_v20 = vshrl.u32 %v20393_v47, 16  ;;  %v20426_v3 = vld [vmem:[#allocation3 + $0x74] sm:$0x1] }
 0x770   : > { %v10867_v16 = vshll.u32 %v20398_v4, 16  ;;  %14918 = vmatprep.mubr.msk.bf16.mxu0 %vm5767_vm7, %v13804_v8  ;;  %v10831_v33 = vrot.slane %v10830_v41, 4  ;;  %v20415_v58 = vadd.f32 %v20321_v22, %v7885_v6  ;;  %v10872_v25 = vshrl.u32 %v10676_v51, 16  ;;  %v10679_v41 = vld [vmem:[#allocation3 + $0x78] sm:$0xf] }
 0x771   : > { %v10853_v2 = vrot.slane %v10851_v15, 5  ;;  %v14679_v54 = vpop.f32.mrf.mxu1  ;;  %v20417_v61 = vpop.f32.mrf.mxu0  ;;  %v10841_v35 = vrot.slane %v10840_v43, 4  ;;  %v10859_v26 = vrot.slane %v10857_v0, 5  ;;  %v10863_v49 = vrot.slane %v10861_v20, 4  ;;  %v15132_v43 = vld [vmem:[#allocation3 + $0x48] sm:$0xff]  }
 0x772   : > { %22698 = vst [vmem:[#allocation42_spill] sm:$0xff] %v20415_v58  ;;  %v10869_v5 = vrot.slane %v10867_v16, 5  ;;  %v10836_v53 = vsel %vm15671_vm15, %v10831_v33, %v10835_v12  ;;  %v20424_v24 = vadd.f32 %v20330_v36, %v14679_v54  ;;  %v10874_v8 = vrot.slane %v10872_v25, 4 }
 0x773   : > { %v10854_v28 = vor.u32 %v10853_v2, %v10850_v44  ;;  %v7888_v22 = vpop.f32.mrf.mxu1  ;;  %v10846_v15 = vsel %vm15671_vm15, %v10841_v35, %v10845_v39  ;;  %v10864_v6 = vor.u32 %v10863_v49, %v10859_v26  ;;  %v10875_v20 = vshll.u32 %v10676_v51, 16  ;;  %v20433_v12 = vpop.f32.mrf.mxu0 }
 0x774   : > { %22699 = vst [vmem:[#allocation32_spill] sm:$0xff] %v20424_v24  ;;  %v20431_v0 = vadd.f32 %v20336_v18, %v7888_v22  ;;  %v13805_v44 = vcombine.low %v10836_v53, %v10846_v15  ;;  %v10881_v16 = vshll.u32 %v20419_v52, 16  ;;  %v10885_v33 = vshrl.u32 %v20419_v52, 16  ;;  %v20440_v18 = vld [vmem:[#allocation3 + $0x7c] sm:$0xf] }
 0x775   : > { %14881 = vmatmul.mubr.msk.bf16.gmra.mxu1 %vm5767_vm7, %v15131_v38  ;;  %v10855_v36 = vrot.slane %v10854_v28, 4  ;;  %v10865_v2 = vrot.slane %v10864_v6, 4  ;;  %v10877_v39 = vrot.slane %v10875_v20, 5  ;;  %v10891_v54 = vshll.u32 %v20426_v3, 16  ;;  %v20442_v35 = vpop.f32.mrf.mxu0  ;;  %v20450_v22 = vld [vmem:[#allocation3 + $0x80] sm:$0x1] }
 0x776   : > { %22700 = vst [vmem:[#allocation21_spill] sm:$0xff] %v20431_v0  ;;  %14884 = vmatprep.mubr.msk.bf16.mxu1 %vm5767_vm7, %v15132_v43  ;;  %v14682_v25 = vpop.f32.mrf.mxu1  ;;  %v10896_v51 = vshrl.u32 %v10679_v41, 16  ;;  %22701 = vst [vmem:[#allocation27_spill] sm:$0xff] %v20442_v35  ;;  %14919 = vmatmul.mubr.msk.bf16.gmra.mxu0 %vm5767_vm7, %v13805_v44  ;;  %v10883_v53 = vrot.slane %v10881_v16, 5  ;;  %v10887_v38 = vrot.slane %v10885_v33, 4  ;;  %v10899_v58 = vshll.u32 %v10679_v41, 16 }
 0x777   : > { %v10860_v49 = vsel %vm15671_vm15, %v10855_v36, %v10859_v26  ;;  %v20448_v28 = vadd.f32 %v20350_v21, %v14682_v25  ;;  %22703 = vst [vmem:[#allocation20_spill] sm:$0xff] %v20450_v22  ;;  %v10870_v15 = vsel %vm15671_vm15, %v10865_v2, %v10869_v5  ;;  %v10878_v6 = vor.u32 %v10877_v39, %v10874_v8  ;;  %v20454_v35 = vpop.f32.mrf.mxu0  ;;  %v10682_v36 = vld [vmem:[#allocation3 + $0x84] sm:$0xf]  ;;  %v15133_v39 = vld [vmem:[#allocation3 + $0x54] sm:$0xff]  }
 0x778   : > { %v10893_v43 = vrot.slane %v10891_v54, 5  ;;  %v10898_v20 = vrot.slane %v10896_v51, 4  ;;  %v7901_v0 = vpop.f32.mrf.mxu1  ;;  %v13806_v44 = vcombine.low %v10860_v49, %v10870_v15  ;;  %v10888_v24 = vor.u32 %v10887_v38, %v10883_v53  ;;  %v20468_v49 = vld [vmem:[#allocation3 + $0x88] sm:$0xf] }
 0x779   : > { %22702 = vst [vmem:[#allocation45_spill] sm:$0xff] %v20448_v28  ;;  %v10905_v26 = vshll.u32 %v20440_v18, 16  ;;  %v10879_v16 = vrot.slane %v10878_v6, 4  ;;  %v10909_v21 = vshrl.u32 %v20440_v18, 16  ;;  %v10915_v33 = vshll.u32 %v20450_v22, 16  ;;  %v20462_v8 = vpop.f32.mrf.mxu0  ;;  %22707 = vst [vmem:[#allocation11_spill] sm:$0xff] %v20468_v49 }
 0x77a   : > { %v20460_v25 = vadd.f32 %v20360_v27, %v7901_v0  ;;  %v14683_v5 = vpop.f32.mrf.mxu1  ;;  %22705 = vst [vmem:[#allocation29_spill] sm:$0xff] %v20462_v8  ;;  %14922 = vmatprep.mubr.msk.bf16.mxu0 %vm5767_vm7, %v13806_v44  ;;  %v10889_v2 = vrot.slane %v10888_v24, 4  ;;  %v10901_v54 = vrot.slane %v10899_v58, 5  ;;  %v15134_v0 = vld [vmem:[#allocation3 + $0x60] sm:$0xff]   ;;  %v10920_v8 = vshrl.u32 %v10682_v36, 16 }
 0x77b   : > { %v10907_v41 = vrot.slane %v10905_v26, 5  ;;  %v20466_v51 = vadd.f32 %v20368_v13, %v14683_v5  ;;  %v10884_v38 = vsel %vm15671_vm15, %v10879_v16, %v10883_v53  ;;  %v10911_v15 = vrot.slane %v10909_v21, 4  ;;  %v10685_v53 = vld [vmem:[#allocation3 + $0x90] sm:$0xf] }
 0x77c   : > { %22704 = vst [vmem:[#allocation44_spill] sm:$0xff] %v20460_v25  ;;  %v10917_v27 = vrot.slane %v10915_v33, 5  ;;  %v7904_v6 = vpop.f32.mrf.mxu1  ;;  %v20472_v25 = vld [vmem:[#allocation3 + $0x8c] sm:$0x1]  ;;  %v20474_v44 = vpop.f32.mrf.mxu0  ;;  %v10894_v58 = vsel %vm15671_vm15, %v10889_v2, %v10893_v43  ;;  %v10902_v13 = vor.u32 %v10901_v54, %v10898_v20  ;;  %v10923_v26 = vshll.u32 %v10682_v36, 16 }
 0x77d   : > { %22706 = vst [vmem:[#allocation16_spill] sm:$0xff] %v20466_v51  ;;  %22708 = vst [vmem:[#allocation33_spill] sm:$0xff] %v20472_v25  ;;  %14885 = vmatmul.mubr.msk.bf16.gmra.mxu1 %vm5767_vm7, %v15133_v39  ;;  %v20480_v24 = vadd.f32 %v20382_v7, %v7904_v6  ;;  %v13807_v16 = vcombine.low %v10884_v38, %v10894_v58  ;;  %v10912_v21 = vor.u32 %v10911_v15, %v10907_v41  ;;  %v20488_v7 = vld [vmem:[#allocation3 + $0x94] sm:$0xf] }
 0x77e   : > { %14888 = vmatprep.mubr.msk.bf16.mxu1 %vm5767_vm7, %v15134_v0  ;;  %v10922_v33 = vrot.slane %v10920_v8, 4  ;;  %v10929_v5 = vshll.u32 %v20468_v49, 16  ;;  %v20484_v51 = vpop.f32.mrf.mxu0  ;;  %v10903_v28 = vrot.slane %v10902_v13, 4  ;;  %v10925_v22 = vrot.slane %v10923_v26, 5  ;;  %v20498_v13 = vld [vmem:[#allocation3 + $0x98] sm:$0x1] }
 0x77f   : > { %22709 = vst [vmem:[#allocation47_spill] sm:$0xff] %v20480_v24  ;;  %22710 = vst [vmem:[#allocation37_spill] sm:$0xff] %v20484_v51  ;;  %v10933_v43 = vshrl.u32 %v20468_v49, 16  ;;  %v10939_v20 = vshll.u32 %v20472_v25, 16  ;;  %v14686_v2 = vpop.f32.mrf.mxu1  ;;  %14923 = vmatmul.mubr.msk.bf16.gmra.mxu0 %vm5767_vm7, %v13807_v16  ;;  %v10913_v36 = vrot.slane %v10912_v21, 4  ;;  %v10944_v8 = vshrl.u32 %v10685_v53, 16 }
 0x780   : > { %v10931_v39 = vrot.slane %v10929_v5, 5  ;;  %v20492_v54 = vadd.f32 %v20388_v57, %v14686_v2  ;;  %v20494_v38 = vpop.f32.mrf.mxu0  ;;  %v10908_v15 = vsel %vm15671_vm15, %v10903_v28, %v10907_v41  ;;  %v10926_v0 = vor.u32 %v10925_v22, %v10922_v33  ;;  %22712 = vst [vmem:[#allocation31_spill] sm:$0xff] %v20498_v13  ;;  %v15135_v25 = vld [vmem:[#allocation3 + $0x6c] sm:$0xff]   ;;  %v10688_v41 = vld [vmem:[#allocation3 + $0x9c] sm:$0xf] }
 0x781   : > { %v10935_v6 = vrot.slane %v10933_v43, 4  ;;  %v10941_v58 = vrot.slane %v10939_v20, 5  ;;  %v7917_v26 = vpop.f32.mrf.mxu1  ;;  %v10918_v16 = vsel %vm15671_vm15, %v10913_v36, %v10917_v27  ;;  %v10946_v21 = vrot.slane %v10944_v8, 4  ;;  %v15136_v49 = vld [vmem:[#allocation3 + $0x78] sm:$0xff]  }
 0x782   : > { %22711 = vst [vmem:[#allocation23_spill] sm:$0xff] %v20492_v54  ;;  %v10947_v5 = vshll.u32 %v10685_v53, 16  ;;  %v10953_v57 = vshll.u32 %v20488_v7, 16  ;;  %v20503_v2 = vpop.f32.mrf.mxu0  ;;  %v13808_v51 = vcombine.low %v10908_v15, %v10918_v16  ;;  %v10927_v54 = vrot.slane %v10926_v0, 4  ;;  %v20510_v53 = vld [vmem:[#allocation3 + $0xa0] sm:$0xf] }
 0x783   : > { %22713 = vst [vmem:[#allocation38_spill] sm:$0xff] %v20503_v2  ;;  %v10936_v24 = vor.u32 %v10935_v6, %v10931_v39  ;;  %v10957_v28 = vshrl.u32 %v20488_v7, 16  ;;  %v14687_v22 = vpop.f32.mrf.mxu1  ;;  %v10963_v20 = vshll.u32 %v20498_v13, 16  ;;  %v20508_v27 = vadd.f32 %v20400_v45, %v7917_v26  ;;  %v20523_v26 = vld [vmem:[#allocation3 + $0xa4] sm:$0x1]  ;;  %v15140_v13 = vld [vmem:[#allocation3 + $0xa8] sm:$0xff]  }
 0x784   : > { %v10949_v33 = vrot.slane %v10947_v5, 5  ;;  %v10955_v43 = vrot.slane %v10953_v57, 5  ;;  %14926 = vmatprep.mubr.msk.bf16.mxu0 %vm5767_vm7, %v13808_v51  ;;  %v10932_v36 = vsel %vm15671_vm15, %v10927_v54, %v10931_v39  ;;  %v20517_v0 = vadd.f32 %v20408_v59, %v14687_v22  ;;  %22717 = vst [vmem:[#allocation50_spill] sm:$0xff] %v20523_v26 }
 0x785   : > { %22714 = vst [vmem:[#allocation48_spill] sm:$0xff] %v20508_v27  ;;  %v10937_v8 = vrot.slane %v10936_v24, 4  ;;  %14889 = vmatmul.mubr.msk.bf16.gmra.mxu1 %vm5767_vm7, %v15135_v25  ;;  %v10959_v15 = vrot.slane %v10957_v28, 4  ;;  %v7920_v6 = vpop.f32.mrf.mxu1  ;;  %v10965_v5 = vrot.slane %v10963_v20, 5  ;;  %v10968_v51 = vshrl.u32 %v10688_v41, 16  ;;  %v20525_v57 = vpop.f32.mrf.mxu0 }
 0x786   : > { %22715 = vst [vmem:[#allocation15_spill] sm:$0xff] %v20517_v0  ;;  %v10950_v16 = vor.u32 %v10949_v33, %v10946_v21  ;;  %14892 = vmatprep.mubr.msk.bf16.mxu1 %vm5767_vm7, %v15136_v49  ;;  %v20521_v45 = vadd.f32 %v20417_v61, %v7920_v6  ;;  %v10971_v39 = vshll.u32 %v10688_v41, 16  ;;  %v10977_v59 = vshll.u32 %v20510_v53, 16  ;;  %v10691_v21 = vld [vmem:[#allocation3 + $0xa8] sm:$0xf] }
 0x787   : > { %v10942_v25 = vsel %vm15671_vm15, %v10937_v8, %v10941_v58  ;;  %v10960_v24 = vor.u32 %v10959_v15, %v10955_v43  ;;  %v14690_v54 = vpop.f32.mrf.mxu1  ;;  %v10970_v49 = vrot.slane %v10968_v51, 4  ;;  %v10981_v61 = vshrl.u32 %v20510_v53, 16  ;;  %v20531_v33 = vpop.f32.mrf.mxu0  ;;  %v20534_v0 = vld [vmem:[#allocation3 + $0xac] sm:$0xf] }
 0x788   : > { %22716 = vst [vmem:[#allocation19_spill] sm:$0xff] %v20521_v45  ;;  %v13809_v28 = vcombine.low %v10932_v36, %v10942_v25  ;;  %v10951_v22 = vrot.slane %v10950_v16, 4  ;;  %v10973_v6 = vrot.slane %v10971_v39, 5  ;;  %v10979_v2 = vrot.slane %v10977_v59, 5  ;;  %22718 = vst [vmem:[#allocation39_spill] sm:$0xff] %v20534_v0 }
 0x789   : > { %v10961_v20 = vrot.slane %v10960_v24, 4  ;;  %v10987_v45 = vshll.u32 %v20523_v26, 16  ;;  %v20536_v58 = vpop.f32.mrf.mxu1  ;;  %v10983_v36 = vrot.slane %v10981_v61, 4  ;;  %v20542_v8 = vadd.f32 %v20433_v12, %v14690_v54  ;;  %v20544_v16 = vpop.f32.mrf.mxu0  ;;  %v15137_v24 = vld [vmem:[#allocation3 + $0x84] sm:$0xff]   ;;  %v20548_v39 = vld [vmem:[#allocation3 + $0xb0] sm:$0x1] }
 0x78a   : > { %22719 = vst [vmem:[#allocation35_spill] sm:$0xff] %v20536_v58  ;;  %14927 = vmatmul.mubr.msk.bf16.gmra.mxu0 %vm5767_vm7, %v13809_v28  ;;  %v10956_v41 = vsel %vm15671_vm15, %v10951_v22, %v10955_v43  ;;  %v10992_v15 = vshrl.u32 %v10691_v21, 16  ;;  %v10974_v25 = vor.u32 %v10973_v6, %v10970_v49  ;;  %22721 = vst [vmem:[#allocation34_spill] sm:$0xff] %v20548_v39  ;;  %v10995_v59 = vshll.u32 %v10691_v21, 16  ;;  %v15138_v22 = vld [vmem:[#allocation3 + $0x90] sm:$0xff]  }
 0x78b   : > { %22720 = vst [vmem:[#allocation49_spill] sm:$0xff] %v20542_v8  ;;  %v10966_v51 = vsel %vm15671_vm15, %v10961_v20, %v10965_v5  ;;  %v14691_v58 = vpop.f32.mrf.mxu1  ;;  %v10984_v27 = vor.u32 %v10983_v36, %v10979_v2  ;;  %v11001_v43 = vshll.u32 %v20534_v0, 16  ;;  %v20551_v12 = vpop.f32.mrf.mxu0  ;;  %v10989_v61 = vrot.slane %v10987_v45, 5  ;;  %v10694_v20 = vld [vmem:[#allocation3 + $0xb4] sm:$0xf] }
 0x78c   : > { %v13810_v28 = vcombine.low %v10956_v41, %v10966_v51  ;;  %v10994_v26 = vrot.slane %v10992_v15, 4  ;;  %22722 = vst [vmem:[#allocation41_spill] sm:$0xff] %v20551_v12  ;;  %v10975_v54 = vrot.slane %v10974_v25, 4  ;;  %v10997_v8 = vrot.slane %v10995_v59, 5  ;;  %v20563_v45 = vld [vmem:[#allocation3 + $0xb8] sm:$0xf] }
 0x78d   : > { %14893 = vmatmul.mubr.msk.bf16.gmra.mxu1 %vm5767_vm7, %v15137_v24  ;;  %v11005_v5 = vshrl.u32 %v20534_v0, 16  ;;  %v20555_v49 = vpop.f32.mrf.mxu1  ;;  %v10985_v21 = vrot.slane %v10984_v27, 4  ;;  %v11003_v6 = vrot.slane %v11001_v43, 5  ;;  %v11011_v41 = vshll.u32 %v20548_v39, 16  ;;  %22725 = vst [vmem:[#allocation52_spill] sm:$0xff] %v20563_v45 }
 0x78e   : > { %22723 = vst [vmem:[#allocation51_spill] sm:$0xff] %v20555_v49  ;;  %14930 = vmatprep.mubr.msk.bf16.mxu0 %vm5767_vm7, %v13810_v28  ;;  %14896 = vmatprep.mubr.msk.bf16.mxu1 %vm5767_vm7, %v15138_v22  ;;  %v20561_v36 = vadd.f32 %v20454_v35, %v14691_v58  ;;  %v20565_v15 = vpop.f32.mrf.mxu0  ;;  %v10980_v51 = vsel %vm15671_vm15, %v10975_v54, %v10979_v2  ;;  %v11016_v59 = vshrl.u32 %v10694_v20, 16  ;;  %v11019_v28 = vshll.u32 %v10694_v20, 16  ;;  %v20573_v58 = vld [vmem:[#allocation3 + $0xbc] sm:$0x1] }
 0x78f   : > { %v10998_v25 = vor.u32 %v10997_v8, %v10994_v26  ;;  %v11007_v24 = vrot.slane %v11005_v5, 4  ;;  %v10990_v27 = vsel %vm15671_vm15, %v10985_v21, %v10989_v61  ;;  %22726 = vst [vmem:[#allocation43_spill] sm:$0xff] %v20573_v58  ;;  %v10697_v39 = vld [vmem:[#allocation3 + $0xc0] sm:$0xf]  ;;  %v11013_v0 = vrot.slane %v11011_v41, 5 }
 0x790   : > { %22724 = vst [vmem:[#allocation22_spill] sm:$0xff] %v20561_v36  ;;  %v20571_v43 = vpop.f32.mrf.mxu0  ;;  %v13811_v22 = vcombine.low %v10980_v51, %v10990_v27  ;;  %v11025_v36 = vshll.u32 %v20563_v45, 16  ;;  %v11018_v2 = vrot.slane %v11016_v59, 4  ;;  %v11021_v26 = vrot.slane %v11019_v28, 5  ;;  %v20577_v54 = vld [vmem:[#allocation3 + $0xc4] sm:$0xf] }
 0x791   : > { %v10999_v12 = vrot.slane %v10998_v25, 4  ;;  %v11008_v35 = vor.u32 %v11007_v24, %v11003_v6  ;;  %v14694_v49 = vpop.f32.mrf.mxu1  ;;  %v11029_v8 = vshrl.u32 %v20563_v45, 16  ;;  %v15139_v25 = vld [vmem:[#allocation3 + $0x9c] sm:$0xff]   ;;  %v11035_v59 = vshll.u32 %v20573_v58, 16  ;;  %v20590_v28 = vld [vmem:[#allocation3 + $0xc8] sm:$0x1] }
 0x792   : > { %v20579_v61 = vpop.f32.mrf.mxu0  ;;  %14931 = vmatmul.mubr.msk.bf16.gmra.mxu0 %vm5767_vm7, %v13811_v22  ;;  %v11027_v21 = vrot.slane %v11025_v36, 5  ;;  %v20585_v51 = vadd.f32 %v20474_v44, %v14694_v49  ;;  %v11022_v24 = vor.u32 %v11021_v26, %v11018_v2  ;;  %v11040_v45 = vshrl.u32 %v10697_v39, 16 }
 0x793   : > { %v11004_v5 = vsel %vm15671_vm15, %v10999_v12, %v11003_v6  ;;  %v11009_v20 = vrot.slane %v11008_v35, 4  ;;  %v20587_v41 = vpop.f32.mrf.mxu1  ;;  %v11031_v27 = vrot.slane %v11029_v8, 4  ;;  %v11043_v44 = vshll.u32 %v10697_v39, 16  ;;  %v6711_v39 = vld [vmem:[#allocation3 + $0xcc] sm:$0x1] }
 0x794   : > { %22727 = vst [vmem:[#allocation8_spill] sm:$0xff] %v20585_v51  ;;  %22728 = vst [vmem:[#allocation46_spill] sm:$0xff] %v20587_v41  ;;  %v20592_v22 = vpop.f32.mrf.mxu0  ;;  %v11049_v49 = vshll.u32 %v20577_v54, 16  ;;  %v11053_v6 = vshrl.u32 %v20577_v54, 16  ;;  %v11023_v2 = vrot.slane %v11022_v24, 4  ;;  %v11042_v8 = vrot.slane %v11040_v45, 4 }
 0x795   : > { %22729 = vst [vmem:[#allocation53_spill] sm:$0xff] %v20592_v22  ;;  %v11014_v12 = vsel %vm15671_vm15, %v11009_v20, %v11013_v0  ;;  %14897 = vmatmul.mubr.msk.bf16.gmra.mxu1 %vm5767_vm7, %v15139_v25  ;;  %v14695_v36 = vpop.f32.mrf.mxu1  ;;  %v11032_v26 = vor.u32 %v11031_v27, %v11027_v21  ;;  %v11045_v22 = vrot.slane %v11043_v44, 5  ;;  %v11059_v0 = vshll.u32 %v20590_v28, 16 }
 0x796   : > { %v13812_v35 = vcombine.low %v11004_v5, %v11014_v12  ;;  %14900 = vmatprep.mubr.msk.bf16.mxu1 %vm5767_vm7, %v15140_v13  ;;  %v20600_v51 = vpop.f32.mrf.mxu0  ;;  %v11051_v41 = vrot.slane %v11049_v49, 5  ;;  %v11055_v58 = vrot.slane %v11053_v6, 4  ;;  %v11028_v5 = vsel %vm15671_vm15, %v11023_v2, %v11027_v21  ;;  %v11381_v49 = vld [vmem:[#allocation3 + $0x18] sm:$0xe]  ;;  %v6766_v6 = vld [vmem:[#allocation3 + $0xd4] sm:$0x1] }
 0x797   : > { %22730 = vst [vmem:[#allocation13_spill] sm:$0xff] %v20600_v51  ;;  %v20603_v20 = vpop.f32.mrf.mxu1  ;;  %v11033_v25 = vrot.slane %v11032_v26, 4  ;;  %v11037_v24 = vrot.slane %v11035_v59, 5  ;;  %v20609_v45 = vadd.f32 %v20494_v38, %v14695_v36  ;;  %v11046_v27 = vor.u32 %v11045_v22, %v11042_v8  ;;  %v20613_v51 = vld [vmem:[#allocation3 + $0xd0] sm:$0xf]  ;;  %v15141_v2 = vld [vmem:[#allocation3 + $0xb4] sm:$0xff]  }
 0x798   : > { %22731 = vst [vmem:[#allocation25_spill] sm:$0xff] %v20603_v20  ;;  %14934 = vmatprep.mubr.msk.bf16.mxu0 %vm5767_vm7, %v13812_v35  ;;  %v20611_v13 = vpop.f32.mrf.mxu0  ;;  %v11056_v12 = vor.u32 %v11055_v58, %v11051_v41  ;;  %v11061_v20 = vrot.slane %v11059_v0, 5  ;;  %v6712_v38 = vsel %vm17729_vm1, 0, %v6711_v39  ;;  %v11447_v8 = vrot.slane %v20261_v10, 5 }
 0x799   : > { %22732 = vst [vmem:[#allocation5_spill] sm:$0xff] %v20609_v45  ;;  %v14698_v44 = vpop.f32.mrf.mxu1  ;;  %v11038_v35 = vsel %vm15671_vm15, %v11033_v25, %v11037_v24  ;;  %v11047_v22 = vrot.slane %v11046_v27, 4  ;;  %6713 = vst [vmem:[#allocation3 + $0xcc] sm:$0x1] %v6712_v38  ;;  %v15142_v45 = vld [vmem:[#allocation3 + $0xc0] sm:$0xff]   ;;  %v13832_v0 = vrot.slane %v11381_v49, 9 }
 0x79a   : > { %v20618_v21 = vadd.f32 %v20525_v57, %v14698_v44  ;;  %v20622_v59 = vpop.f32.mrf.mxu0  ;;  %v13813_v36 = vcombine.low %v11028_v5, %v11038_v35  ;;  %v11057_v58 = vrot.slane %v11056_v12, 4  ;;  %v6767_v24 = vsel %vm17735_vm5, 0, %v6766_v6  ;;  %v11382_v5 = vld [vmem:[#allocation3 + $0x24] sm:$0xe] }
 0x79b   : > { %v7965_v26 = vpop.f32.mrf.mxu1  ;;  %v11073_v40 = vshll.u32 %v20613_v51, 16  ;;  %v11052_v27 = vsel %vm15671_vm15, %v11047_v22, %v11051_v41  ;;  %v11449_v12 = vrot.slane %v11447_v8, 4  ;;  %v11450_v44 = vrot.slane %v20268_v42, 5  ;;  %6768 = vst [vmem:[#allocation3 + $0xd4] sm:$0x1] %v6767_v24 }
 0x79c   : > { %v20626_v25 = vadd.f32 %v20531_v33, %v7965_v26  ;;  %v20631_v39 = vpop.f32.mrf.mxu0  ;;  %14935 = vmatmul.mubr.msk.bf16.gmra.mxu0 %vm5767_vm7, %v13813_v36  ;;  %v11062_v10 = vsel %vm15671_vm15, %v11057_v58, %v11061_v20  ;;  %v11077_v41 = vshrl.u32 %v20613_v51, 16  ;;  %v20651_v20 = vadd.f32 %v20263_v62, %v20348_v60 }
 0x79d   : > { %22734 = vst [vmem:[#allocation18_spill] sm:$0xff] %v20631_v39  ;;  %14901 = vmatmul.mubr.msk.bf16.gmra.mxu1 %vm5767_vm7, %v15141_v2  ;;  %v14699_v33 = vpop.f32.mrf.mxu1  ;;  %v13814_v49 = vcombine.low %v11052_v27, %v11062_v10  ;;  %v20644_v35 = vrot.slane %v11073_v40, 5  ;;  %v11451_v42 = vsel %vm16076_vm10, %v11449_v12, %v11450_v44  ;;  %v13833_v22 = vrot.slane %v11382_v5, 9 }
 0x79e   : > { %14904 = vmatprep.mubr.msk.bf16.mxu1 %vm5767_vm7, %v15142_v45  ;;  %v20642_v6 = vadd.f32 %v20544_v16, %v14699_v33  ;;  %v20647_v38 = vpop.f32.mrf.mxu0  ;;  %v11454_v45 = vrot.slane %v20284_v34, 5  ;;  %v11383_v16 = vld [vmem:[#allocation3 + $0x30] sm:$0xe]  ;;  %v20660_v58 = vadd.f32 %v20273_v19, %v20358_v29  ;;  %v20664_v2 = vadd.f32 %v20286_v32, %v20366_v17  ;;  %v11384_v29 = vld [vmem:[#allocation3 + $0x3c] sm:$0xe] }
 0x79f   : > { %v20653_v36 = vpop.f32.mrf.mxu1  ;;  %14938 = vmatprep.mubr.msk.bf16.mxu0 %vm5767_vm7, %v13814_v49  ;;  %v11448_v62 = vsel %vm16076_vm10, %v13832_v0, %v11447_v8  ;;  %v11079_v60 = vrot.slane %v11077_v41, 4  ;;  %v11457_v40 = vrot.slane %v20295_v11, 5  ;;  %v11461_v19 = vrot.slane %v20312_v55, 5 }
 0x7a0   : > { %v20669_v26 = vpop.f32.mrf.mxu0  ;;  %v13849_v24 = vcombine.low %v11448_v62, %v11451_v42  ;;  %v11456_v34 = vrot.slane %v11454_v45, 4  ;;  %v15143_v32 = vld [vmem:[#allocation3 + $0xcc] sm:$0xff]   ;;  %v11455_v8 = vsel %vm16076_vm10, %v13833_v22, %v11454_v45  ;;  %v13834_v0 = vrot.slane %v11383_v16, 9 }
 0x7a1   : > { %v14702_v57 = vpop.f32.mrf.mxu1  ;;  %v10700_v17 = vld [vmem:[#allocation3 + $0xcc] sm:$0xf]  ;;  %v11080_v27 = vor.u32 %v11079_v60, %v20644_v35  ;;  %v11464_v55 = vrot.slane %v20319_v1, 5  ;;  %v11463_v62 = vrot.slane %v11461_v19, 4  ;;  %v13835_v45 = vrot.slane %v11384_v29, 9 }
 0x7a2   : > { %v20674_v5 = vadd.f32 %v20565_v15, %v14702_v57  ;;  %v20679_v10 = vpop.f32.mrf.mxu0  ;;  %v11064_v12 = vshrl.u32 %v10700_v17, 16  ;;  %v11067_v44 = vshll.u32 %v10700_v17, 16  ;;  %v11458_v11 = vsel %vm16076_vm10, %v11456_v34, %v11457_v40  ;;  %v11385_v15 = vld [vmem:[#allocation3 + $0x48] sm:$0xe]  ;;  %v20687_v41 = vld [vmem:[#allocation3 + $0xd4] sm:$0x1] }
 0x7a3   : > { %v7981_v33 = vpop.f32.mrf.mxu1  ;;  %v11081_v42 = vrot.slane %v11080_v27, 4  ;;  %v11083_v57 = vshll.u32 %v20687_v41, 16  ;;  %v11468_v1 = vrot.slane %v20328_v23, 5  ;;  %v13850_v40 = vcombine.low %v11455_v8, %v11458_v11  ;;  %v11386_v27 = vld [vmem:[#allocation3 + $0x54] sm:$0xe] }
 0x7a4   : > { %v20685_v49 = vadd.f32 %v20571_v43, %v7981_v33  ;;  %v20689_v22 = vpop.f32.mrf.mxu0  ;;  %v11066_v16 = vrot.slane %v11064_v12, 4  ;;  %v11069_v60 = vrot.slane %v11067_v44, 5  ;;  %v11462_v17 = vsel %vm16076_vm10, %v13834_v0, %v11461_v19 }
 0x7a5   : > { %22736 = vst [vmem:[#allocation9_spill] sm:$0xff] %v20689_v22  ;;  %14905 = vmatmul.mubr.msk.bf16.gmra.mxu1 %vm5767_vm7, %v15143_v32  ;;  %v14703_v34 = vpop.f32.mrf.mxu1  ;;  %v11465_v29 = vsel %vm16076_vm10, %v11463_v62, %v11464_v55  ;;  %v11085_v12 = vrot.slane %v11083_v57, 5  ;;  %v11471_v23 = vrot.slane %v20339_v14, 5  ;;  %v11470_v8 = vrot.slane %v11468_v1, 4 }
 0x7a6   : > { %22735 = vst [vmem:[#allocation17_spill] sm:$0xff] %v20685_v49  ;;  %14944 = vmatprep.mubr.msk.bf16.mxu1 %vm5767_vm7, %v13849_v24  ;;  %v20696_v43 = vadd.f32 %v20579_v61, %v14703_v34  ;;  %v20702_v32 = vpop.f32.mrf.mxu0  ;;  %v11070_v33 = vor.u32 %v11069_v60, %v11066_v16  ;;  %v13836_v24 = vrot.slane %v11385_v15, 9  ;;  %v13851_v22 = vcombine.low %v11462_v17, %v11465_v29  ;;  %v11388_v29 = vld [vmem:[#allocation3 + $0x6c] sm:$0xe] }
 0x7a7   : > { %v20704_v44 = vpop.f32.mrf.mxu1  ;;  %v20709_v61 = vsel %vm16076_vm10, %v13835_v45, %v11468_v1  ;;  %v11475_v0 = vrot.slane %v20345_v30, 5  ;;  %v11086_v55 = vsel %vm15671_vm15, %v11081_v42, %v11085_v12  ;;  %v13837_v16 = vrot.slane %v11386_v27, 9  ;;  %v11387_v30 = vld [vmem:[#allocation3 + $0x60] sm:$0xe] }
 0x7a8   : > { %22737 = vst [vmem:[#allocation24_spill] sm:$0xff] %v20696_v43  ;;  %22738 = vst [vmem:[#allocation36_spill] sm:$0xff] %v20704_v44  ;;  %v20711_v19 = vpop.f32.mrf.mxu0  ;;  %v11071_v11 = vrot.slane %v11070_v33, 4  ;;  %v11482_v60 = vrot.slane %v20373_v46, 5  ;;  %v20722_v15 = vsel %vm16076_vm10, %v11470_v8, %v11471_v23  ;;  %v11478_v57 = vrot.slane %v20355_v9, 5 }
 0x7a9   : > { %v14742_v62 = vpop.f32.mrf.mxu1  ;;  %v11477_v45 = vrot.slane %v11475_v0, 4  ;;  %v13852_v46 = vcombine.low %v20709_v61, %v20722_v15  ;;  %v11485_v56 = vrot.slane %v20380_v48, 5  ;;  %v13838_v61 = vrot.slane %v11387_v30, 9  ;;  %v11389_v8 = vld [vmem:[#allocation3 + $0x78] sm:$0xe] }
 0x7aa   : > { %v20718_v14 = vadd.f32 %v14742_v62, %v20651_v20  ;;  %v20725_v34 = vpop.f32.mrf.mxu0  ;;  %v11076_v42 = vsel %vm15671_vm15, %v11071_v11, %v20644_v35  ;;  %v20734_v20 = vsel %vm16076_vm10, %v13836_v24, %v11475_v0  ;;  %v11484_v17 = vrot.slane %v11482_v60, 4  ;;  %v11390_v62 = vld [vmem:[#allocation3 + $0x84] sm:$0xe] }
 0x7ab   : > { %v8583_v1 = vpop.f32.mrf.mxu1  ;;  %v13815_v27 = vcombine.low %v11076_v42, %v11086_v55  ;;  %v11479_v33 = vsel %vm16076_vm10, %v11477_v45, %v11478_v57  ;;  %v20748_v24 = vsel %vm16076_vm10, %v13837_v16, %v11482_v60  ;;  %v13839_v11 = vrot.slane %v11388_v29, 9 }
 0x7ac   : > { %v20737_v9 = vadd.f32 %v8583_v1, %v20660_v58  ;;  %v20741_v12 = vpop.f32.mrf.mxu0  ;;  %v13853_v23 = vcombine.low %v20734_v20, %v11479_v33  ;;  %v11489_v58 = vrot.slane %v20393_v47, 5  ;;  %v11496_v55 = vrot.slane %v20419_v52, 5  ;;  %v22750_v47 = vld [vmem:[#allocation50_spill] sm:$0xff] }
 0x7ad   : > { %22739 = vst [vmem:[#allocation40_spill] sm:$0xff] %v20741_v12  ;;  %14945 = vmatmul.mubr.msk.bf16.vlgmr.msra.gmra.mxu1 %vm5767_vm7, %v13850_v40  ;;  %v14743_v35 = vpop.f32.mrf.mxu1  ;;  %14939 = vmatmul.mubr.msk.bf16.gmra.mxu0 %vm5767_vm7, %v13815_v27  ;;  %v20760_v40 = vsel %vm16076_vm10, %v11484_v17, %v11485_v56  ;;  %v11492_v60 = vrot.slane %v20398_v4, 5  ;;  %v11499_v57 = vrot.slane %v20426_v3, 5  ;;  %v13840_v30 = vrot.slane %v11389_v8, 9  ;;  %v22741_v56 = vld [vmem:[#allocation11_spill] sm:$0xff] }
 0x7ae   : > { %14948 = vmatprep.mubr.msk.bf16.mxu1 %vm5767_vm7, %v13851_v22  ;;  %v20754_v0 = vadd.f32 %v14743_v35, %v20664_v2  ;;  %v20756_v48 = vpop.f32.mrf.mxu0  ;;  %v20767_v22 = vsel %vm16076_vm10, %v13838_v61, %v11489_v58  ;;  %v11491_v2 = vrot.slane %v11489_v58, 4  ;;  %14978 = vmatprep.mubr.msk.f32.mxu0 %vm15483_vm3, %v22697_v63  ;;  %v11498_v52 = vrot.slane %v11496_v55, 4  ;;  %v11392_v61 = vld [vmem:[#allocation3 + $0x9c] sm:$0xe] }
 0x7af   : > { %v8586_v16 = vpop.f32.mrf.mxu1  ;;  %v20784_v4 = vsel %vm16076_vm10, %v13839_v11, %v11496_v55  ;;  %v11503_v20 = vrot.slane %v20440_v18, 5  ;;  %v13841_v17 = vrot.slane %v11390_v62, 9  ;;  %v11510_v35 = vrot.slane %v22741_v56, 5  ;;  %v22742_v11 = vld [vmem:[#allocation20_spill] sm:$0xff]  ;;  %v22743_v62 = vld [vmem:[#allocation42_spill] sm:$0xff] }
 0x7b0   : > { %v20773_v15 = vadd.f32 %v8586_v16, %v20385_v31  ;;  %v20775_v45 = vpop.f32.mrf.mxu0  ;;  %v20780_v1 = vsel %vm16076_vm10, %v11491_v2, %v11492_v60  ;;  %v11391_v31 = vld [vmem:[#allocation3 + $0x90] sm:$0xe]  ;;  %v20796_v33 = vsel %vm16076_vm10, %v11498_v52, %v11499_v57  ;;  %v11506_v55 = vrot.slane %v22742_v11, 5  ;;  %v22745_v52 = vld [vmem:[#allocation33_spill] sm:$0xff]  ;;  %v22746_v11 = vld [vmem:[#allocation32_spill] sm:$0xff] }
 0x7b1   : > { %v14746_v42 = vpop.f32.mrf.mxu1  ;;  %v11505_v8 = vrot.slane %v11503_v20, 4  ;;  %v11512_v60 = vrot.slane %v11510_v35, 4  ;;  %v11513_v57 = vrot.slane %v22745_v52, 5  ;;  %v11527_v63 = vrot.slane %v22750_v47, 5  ;;  %v22753_v47 = vld [vmem:[#allocation52_spill] sm:$0xff] }
 0x7b2   : > { %22740 = vst [vmem:[#allocation28_spill] sm:$0xff] %v20773_v15  ;;  %v20788_v29 = vadd.f32 %v14746_v42, %v20406_v37  ;;  %v20792_v27 = vpop.f32.mrf.mxu0  ;;  %v20803_v37 = vsel %vm16076_vm10, %v13840_v30, %v11503_v20  ;;  %v13842_v42 = vrot.slane %v11391_v31, 9  ;;  %v20819_v30 = vsel %vm16076_vm10, %v13841_v17, %v11510_v35  ;;  %v11393_v35 = vld [vmem:[#allocation3 + $0xa8] sm:$0xe]  ;;  %v11395_v15 = vld [vmem:[#allocation3 + $0xc0] sm:$0xe] }
 0x7b3   : > { %v8599_v58 = vpop.f32.mrf.mxu1  ;;  %v20815_v18 = vsel %vm16076_vm10, %v11505_v8, %v11506_v55  ;;  %v11517_v20 = vrot.slane %v20488_v7, 5  ;;  %v20832_v8 = vsel %vm16076_vm10, %v11512_v60, %v11513_v57  ;;  %v11524_v17 = vrot.slane %v20510_v53, 5  ;;  %v11394_v55 = vld [vmem:[#allocation3 + $0xb4] sm:$0xe] }
 0x7b4   : > { %v20807_v16 = vadd.f32 %v8599_v58, %v22743_v62  ;;  %v20809_v2 = vpop.f32.mrf.mxu0  ;;  %v13843_v58 = vrot.slane %v11392_v61, 9  ;;  %v13845_v12 = vrot.slane %v11394_v55, 9  ;;  %v11538_v39 = vrot.slane %v22753_v47, 5  ;;  %v22754_v55 = vld [vmem:[#allocation34_spill] sm:$0xff] }
 0x7b5   : > { %22744 = vst [vmem:[#allocation4_spill] sm:$0xff] %v20809_v2  ;;  %14949 = vmatmul.mubr.msk.bf16.gmra.mxu1 %vm5767_vm7, %v13852_v46  ;;  %v14747_v56 = vpop.f32.mrf.mxu1  ;;  %v20839_v61 = vsel %vm16076_vm10, %v13842_v42, %v11517_v20  ;;  %v11519_v52 = vrot.slane %v11517_v20, 4  ;;  %v22748_v46 = vld [vmem:[#allocation21_spill] sm:$0xff]  ;;  %v11526_v57 = vrot.slane %v11524_v17, 4  ;;  %v13844_v20 = vrot.slane %v11393_v35, 9  ;;  %v22751_v2 = vld [vmem:[#allocation39_spill] sm:$0xff] }
 0x7b6   : > { %14952 = vmatprep.mubr.msk.bf16.mxu1 %vm5767_vm7, %v13853_v23  ;;  %v20824_v62 = vadd.f32 %v14747_v56, %v22746_v11  ;;  %v20826_v31 = vpop.f32.mrf.mxu0  ;;  %v22747_v56 = vld [vmem:[#allocation31_spill] sm:$0xff]  ;;  %v20849_v53 = vsel %vm16076_vm10, %v13843_v58, %v11524_v17  ;;  %v11540_v44 = vrot.slane %v11538_v39, 4 }
 0x7b7   : > { %v8602_v7 = vpop.f32.mrf.mxu1  ;;  %v11520_v11 = vrot.slane %v22747_v56, 5  ;;  %v11531_v56 = vrot.slane %v22751_v2, 5  ;;  %v20864_v17 = vsel %vm16076_vm10, %v11526_v57, %v11527_v63  ;;  %v22756_v58 = vld [vmem:[#allocation43_spill] sm:$0xff]  ;;  %v22757_v63 = vcombine.low %v20748_v24, %v20760_v40  ;;  %v22759_v24 = vld [vmem:[#allocation16_spill] sm:$0xff] }
 0x7b8   : > { %v20843_v3 = vadd.f32 %v8602_v7, %v22748_v46  ;;  %v20845_v60 = vpop.f32.mrf.mxu0  ;;  %v22752_v46 = vld [vmem:[#allocation45_spill] sm:$0xff]  ;;  %v13860_v35 = vcombine.low %v20849_v53, %v20864_v17  ;;  %v11541_v49 = vrot.slane %v22756_v58, 5  ;;  %v22758_v58 = vcombine.low %v20767_v22, %v20780_v1  ;;  %v11396_v17 = vld [vmem:[#allocation3 + $0xcc] sm:$0xe] }
 0x7b9   : > { %v14750_v23 = vpop.f32.mrf.mxu1  ;;  %v20854_v42 = vsel %vm16076_vm10, %v11519_v52, %v11520_v11  ;;  %v11533_v2 = vrot.slane %v11531_v56, 4  ;;  %v11534_v11 = vrot.slane %v22754_v55, 5  ;;  %v20880_v47 = vsel %vm16076_vm10, %v13844_v20, %v11531_v56 }
 0x7ba   : > { %22749 = vst [vmem:[#allocation30_spill] sm:$0xff] %v20843_v3  ;;  %v8720_v7 = vadd.f32 %v14750_v23, %v22752_v46  ;;  %v20858_v3 = vpop.f32.mrf.mxu0  ;;  %v22755_v23 = vld [vmem:[#allocation44_spill] sm:$0xff]  ;;  %v20898_v56 = vsel %vm16076_vm10, %v13845_v12, %v11538_v39 }
 0x7bb   : > { %v8615_v52 = vpop.f32.mrf.mxu1  ;;  %v20884_v55 = vsel %vm16076_vm10, %v11533_v2, %v11534_v11  ;;  %v11548_v2 = vrot.slane %v20590_v28, 5  ;;  %v22760_v11 = vld [vmem:[#allocation47_spill] sm:$0xff]  ;;  %v20926_v28 = vadd.f32 %v20611_v13, %v20737_v9  ;;  %v20945_v13 = vadd.f32 %v20679_v10, %v20824_v62 }
 0x7bc   : > { %v8718_v46 = vadd.f32 %v8615_v52, %v22755_v23  ;;  %v20871_v43 = vpop.f32.mrf.mxu0  ;;  %v13846_v52 = vrot.slane %v11395_v15, 9  ;;  %v11545_v23 = vrot.slane %v20577_v54, 5  ;;  %v13861_v20 = vcombine.low %v20880_v47, %v20884_v55 }
 0x7bd   : > { %14953 = vmatmul.mubr.msk.bf16.gmra.mxu1 %vm5767_vm7, %v22757_v63  ;;  %v14751_v57 = vpop.f32.mrf.mxu1  ;;  %v20902_v15 = vsel %vm16076_vm10, %v11540_v44, %v11541_v49  ;;  %v13847_v55 = vrot.slane %v11396_v17, 9 }
 0x7be   : > { %14956 = vmatprep.mubr.msk.bf16.mxu1 %vm5767_vm7, %v22758_v58  ;;  %v8721_v40 = vadd.f32 %v14751_v57, %v22759_v24  ;;  %v20892_v63 = vpop.f32.mrf.mxu0  ;;  %v11547_v1 = vrot.slane %v11545_v23, 4  ;;  %v22761_v24 = vld [vmem:[#allocation13_spill] sm:$0xff]  ;;  %v20918_v49 = vsel %vm16076_vm10, %v13846_v52, %v11545_v23  ;;  %v20937_v52 = vadd.f32 %v20647_v38, %v20788_v29 }
 0x7bf   : > { %v8618_v54 = vpop.f32.mrf.mxu1  ;;  %v20914_v39 = vadd.f32 %v22761_v24, %v20718_v14 }
 0x7c0   : > { %v20908_v57 = vadd.f32 %v8618_v54, %v22760_v11  ;;  %v20910_v58 = vpop.f32.mrf.mxu0  ;;  %v20922_v44 = vsel %vm16076_vm10, %v11547_v1, %v11548_v2  ;;  %v20930_v54 = vadd.f32 %v20622_v59, %v20754_v0  ;;  %v22762_v11 = vld [vmem:[#allocation23_spill] sm:$0xff]  ;;  %v20941_v1 = vadd.f32 %v20669_v26, %v20807_v16  ;;  %v22763_v59 = vld [vmem:[#allocation48_spill] sm:$0xff] }
 0x7c1   : > { %v14754_v12 = vpop.f32.mrf.mxu1  ;;  %v13863_v22 = vcombine.low %v20918_v49, %v20922_v44  ;;  %v20951_v2 = vadd.f32 %v20702_v32, %v8720_v7  ;;  %v20957_v38 = vadd.f32 %v20725_v34, %v8721_v40  ;;  %v22764_v26 = vcombine.low %v20784_v4, %v20796_v33  ;;  %v22766_v32 = vld [vmem:[#allocation15_spill] sm:$0xff] }
 0x7c2   : > { %v8724_v14 = vadd.f32 %v14754_v12, %v22762_v11  ;;  %v14797_v24 = vpop.f32.mrf.mxu0  ;;  %v20954_v12 = vadd.f32 %v20711_v19, %v8718_v46  ;;  %v22765_v16 = vcombine.low %v20803_v37, %v20815_v18  ;;  %v22767_v46 = vld [vmem:[#allocation19_spill] sm:$0xff]  ;;  %v22770_v37 = vld [vmem:[#allocation49_spill] sm:$0xff] }
 0x7c3   : > { %v8631_v23 = vpop.f32.mrf.mxu1  ;;  %v22768_v11 = vld [vmem:[#allocation35_spill] sm:$0xff] }
 0x7c4   : > { %v8722_v9 = vadd.f32 %v8631_v23, %v22763_v59  ;;  %v20948_v0 = vpop.f32.mrf.mxu0  ;;  %v20964_v29 = vadd.f32 %v20756_v48, %v8724_v14  ;;  %v22769_v14 = vld [vmem:[#allocation27_spill] sm:$0xff] }
 0x7c5   : > { %14957 = vmatmul.mubr.msk.bf16.gmra.mxu1 %vm5767_vm7, %v22764_v26  ;;  %v14755_v10 = vpop.f32.mrf.mxu1  ;;  %v8226_v18 = vadd.f32 %v22769_v14, %v22768_v11 }
 0x7c6   : > { %14960 = vmatprep.mubr.msk.bf16.mxu1 %vm5767_vm7, %v22765_v16  ;;  %v8725_v19 = vadd.f32 %v14755_v10, %v22766_v32  ;;  %v14800_v62 = vpop.f32.mrf.mxu0  ;;  %v20972_v34 = vadd.f32 %v20775_v45, %v8722_v9  ;;  %v22771_v9 = vcombine.low %v20819_v30, %v20832_v8  ;;  %v22772_v32 = vld [vmem:[#allocation51_spill] sm:$0xff] }
 0x7c7   : > { %v8634_v7 = vpop.f32.mrf.mxu1 }
 0x7c8   : > { %v20975_v4 = vadd.f32 %v8634_v7, %v22767_v46  ;;  %v9037_v33 = vpop.f32.mrf.mxu0  ;;  %v20978_v40 = vadd.f32 %v20792_v27, %v8725_v19  ;;  %v22773_v19 = vld [vmem:[#allocation29_spill] sm:$0xff]  ;;  %v22774_v46 = vcombine.low %v20839_v61, %v20854_v42  ;;  %v22778_v61 = vld [vmem:[#allocation8_spill] sm:$0xff] }
 0x7c9   : > { %v14758_v48 = vpop.f32.mrf.mxu1  ;;  %v8229_v7 = vadd.f32 %v22773_v19, %v22772_v32 }
 0x7ca   : > { %v8728_v23 = vadd.f32 %v14758_v48, %v22770_v37  ;;  %v14801_v59 = vpop.f32.mrf.mxu0  ;;  %v22775_v48 = vld [vmem:[#allocation22_spill] sm:$0xff] }
 0x7cb   : > { %v8647_v26 = vpop.f32.mrf.mxu1 }
 0x7cc   : > { %v8726_v10 = vadd.f32 %v8647_v26, %v8226_v18  ;;  %v9040_v16 = vpop.f32.mrf.mxu0  ;;  %v20984_v45 = vadd.f32 %v20826_v31, %v8728_v23  ;;  %v22776_v26 = vld [vmem:[#allocation46_spill] sm:$0xff] }
 0x7cd   : > { %14961 = vmatmul.mubr.msk.bf16.gmra.mxu1 %vm5767_vm7, %v22771_v9  ;;  %v14759_v27 = vpop.f32.mrf.mxu1  ;;  %v22777_v9 = vld [vmem:[#allocation37_spill] sm:$0xff] }
 0x7ce   : > { %14964 = vmatprep.mubr.msk.bf16.mxu1 %vm5767_vm7, %v22774_v46  ;;  %v8729_v11 = vadd.f32 %v14759_v27, %v22775_v48  ;;  %v14804_v14 = vpop.f32.mrf.mxu0  ;;  %v20998_v31 = vadd.f32 %v20845_v60, %v8726_v10  ;;  %v8242_v32 = vadd.f32 %v22777_v9, %v22776_v26  ;;  %v22779_v10 = vld [vmem:[#allocation25_spill] sm:$0xff] }
 0x7cf   : > { %v8650_v18 = vpop.f32.mrf.mxu1 }
 0x7d0   : > { %v21000_v37 = vadd.f32 %v8650_v18, %v8229_v7  ;;  %v9053_v30 = vpop.f32.mrf.mxu0  ;;  %v21003_v8 = vadd.f32 %v20858_v3, %v8729_v11  ;;  %v22780_v7 = vld [vmem:[#allocation38_spill] sm:$0xff]  ;;  %v22781_v18 = vld [vmem:[#allocation5_spill] sm:$0xff] }
 0x7d1   : > { %v14762_v23 = vpop.f32.mrf.mxu1  ;;  %v8245_v11 = vadd.f32 %v22780_v7, %v22779_v10  ;;  %v22782_v7 = vld [vmem:[#allocation41_spill] sm:$0xff] }
 0x7d2   : > { %v8732_v42 = vadd.f32 %v14762_v23, %v22778_v61  ;;  %v14805_v19 = vpop.f32.mrf.mxu0 }
 0x7d3   : > { %v8663_v46 = vpop.f32.mrf.mxu1 }
 0x7d4   : > { %v8730_v27 = vadd.f32 %v8663_v46, %v8242_v32  ;;  %v9056_v48 = vpop.f32.mrf.mxu0  ;;  %v21009_v60 = vadd.f32 %v20892_v63, %v8732_v42  ;;  %v11552_v63 = vrot.slane %v20613_v51, 5  ;;  %v11555_v46 = vrot.slane %v20687_v41, 5 }
 0x7d5   : > { %14965 = vmatmul.mubr.msk.bf16.gmra.mxu1 %vm5767_vm7, %v13860_v35  ;;  %v14763_v3 = vpop.f32.mrf.mxu1 }
 0x7d6   : > { %14968 = vmatprep.mubr.msk.bf16.mxu1 %vm5767_vm7, %v13861_v20  ;;  %v8733_v23 = vadd.f32 %v14763_v3, %v22781_v18  ;;  %v14844_v26 = vpop.f32.mrf.mxu0  ;;  %v21024_v9 = vadd.f32 %v20910_v58, %v8730_v27  ;;  %v11554_v20 = vrot.slane %v11552_v63, 4  ;;  %v11553_v41 = vsel %vm16076_vm10, %v13847_v55, %v11552_v63 }
 0x7d7   : > { %v8666_v53 = vpop.f32.mrf.mxu1 }
 0x7d8   : > { %v21026_v35 = vadd.f32 %v8666_v53, %v8245_v11  ;;  %v10137_v32 = vpop.f32.mrf.mxu0  ;;  %v21028_v61 = vadd.f32 %v14797_v24, %v8733_v23  ;;  %v8261_v11 = vadd.f32 %v22782_v7, %v20653_v36  ;;  %v22783_v24 = vcombine.low %v20898_v56, %v20902_v15 }
 0x7da   : > { %v14766_v42 = vpop.f32.mrf.mxu1  ;;  %v14845_v3 = vpop.f32.mrf.mxu0 }
 0x7db   : > { %v8736_v47 = vadd.f32 %v14766_v42, %v20618_v21  ;;  %v22784_v42 = vld [vmem:[#allocation17_spill] sm:$0xff] }
 0x7dc   : > { %v8679_v10 = vpop.f32.mrf.mxu1  ;;  %v21033_v58 = vpop.f32.mrf.mxu0 }
 0x7dd   : > { %v8734_v51 = vadd.f32 %v8679_v10, %v20626_v25  ;;  %v21035_v27 = vadd.f32 %v14800_v62, %v8736_v47  ;;  %14969 = vmatmul.mubr.msk.bf16.gmra.mxu1 %vm5767_vm7, %v22783_v24  ;;  %v11556_v62 = vsel %vm16076_vm10, %v11554_v20, %v11555_v46  ;;  %v22785_v20 = vld [vmem:[#allocation36_spill] sm:$0xff] }
 0x7de   : > { %v14767_v21 = vpop.f32.mrf.mxu1  ;;  %14972 = vmatprep.mubr.msk.bf16.mxu1 %vm5767_vm7, %v13863_v22  ;;  %v14848_v36 = vpop.f32.mrf.mxu0  ;;  %v13864_v44 = vcombine.low %v11553_v41, %v11556_v62  ;;  %v22787_v10 = vld [vmem:[#allocation24_spill] sm:$0xff] }
 0x7df   : > { %v8737_v25 = vadd.f32 %v14767_v21, %v20642_v6  ;;  %v21052_v18 = vadd.f32 %v9037_v33, %v8734_v51 }
 0x7e0   : > { %v8682_v56 = vpop.f32.mrf.mxu1  ;;  %v21054_v23 = vpop.f32.mrf.mxu0 }
 0x7e1   : > { %v8735_v15 = vadd.f32 %v8682_v56, %v8261_v11  ;;  %v21056_v53 = vadd.f32 %v14801_v59, %v8737_v25  ;;  %v22786_v59 = vld [vmem:[#allocation53_spill] sm:$0xff] }
 0x7e2   : > { %v14770_v49 = vpop.f32.mrf.mxu1  ;;  %v14849_v6 = vpop.f32.mrf.mxu0  ;;  %v8277_v46 = vadd.f32 %v22786_v59, %v22785_v20 }
 0x7e3   : > { %v8740_v22 = vadd.f32 %v14770_v49, %v20674_v5  ;;  %v21059_v17 = vadd.f32 %v9040_v16, %v8735_v15 }
 0x7e4   : > { %v8695_v63 = vpop.f32.mrf.mxu1  ;;  %v21062_v47 = vpop.f32.mrf.mxu0 }
 0x7e5   : > { %v8738_v50 = vadd.f32 %v8695_v63, %v22784_v42  ;;  %v21064_v33 = vadd.f32 %v14804_v14, %v8740_v22  ;;  %14973 = vmatmul.mubr.msk.bf16.gmra.mxu1 %vm5767_vm7, %v13864_v44  ;;  %v22788_v63 = vld [vmem:[#allocation28_spill] sm:$0xff]  ;;  %v22789_v42 = vld [vmem:[#allocation18_spill] sm:$0xff] }
 0x7e6   : > { %v14771_v55 = vpop.f32.mrf.mxu1  ;;  %v14852_v7 = vpop.f32.mrf.mxu0 }
 0x7e7   : > { %v8741_v51 = vadd.f32 %v14771_v55, %v22787_v10  ;;  %v21070_v5 = vadd.f32 %v9053_v30, %v8738_v50 }
 0x7e8   : > { %v8698_v16 = vpop.f32.mrf.mxu1  ;;  %v21072_v24 = vpop.f32.mrf.mxu0 }
 0x7e9   : > { %v8739_v11 = vadd.f32 %v8698_v16, %v8277_v46  ;;  %v21074_v21 = vadd.f32 %v14805_v19, %v8741_v51  ;;  %v9069_v19 = vadd.f32 %v22789_v42, %v22788_v63 }
 0x7ea   : > { %v14810_v25 = vpop.f32.mrf.mxu1  ;;  %v14853_v41 = vpop.f32.mrf.mxu0 }
 0x7eb   : > { %v9796_v14 = vadd.f32 %v14810_v25, %v20914_v39  ;;  %v21077_v62 = vadd.f32 %v9056_v48, %v8739_v11  ;;  %v22790_v25 = vld [vmem:[#allocation30_spill] sm:$0xff] }
 0x7ec   : > { %v9667_v56 = vpop.f32.mrf.mxu1  ;;  %v21080_v49 = vpop.f32.mrf.mxu0 }
 0x7ed   : > { %v9794_v15 = vadd.f32 %v9667_v56, %v20926_v28  ;;  %v21082_v44 = vadd.f32 %v14844_v26, %v9796_v14  ;;  %v22791_v14 = vld [vmem:[#allocation9_spill] sm:$0xff] }
 0x7ee   : > { %v14811_v30 = vpop.f32.mrf.mxu1  ;;  %v14856_v50 = vpop.f32.mrf.mxu0  ;;  %v9073_v56 = vadd.f32 %v22791_v14, %v22790_v25 }
 0x7ef   : > { %v9797_v22 = vadd.f32 %v14811_v30, %v20930_v54  ;;  %v21087_v55 = vadd.f32 %v10137_v32, %v9794_v15 }
 0x7f0   : > { %v9670_v39 = vpop.f32.mrf.mxu1  ;;  %v21091_v48 = vpop.f32.mrf.mxu0 }
 0x7f1   : > { %v21089_v20 = vadd.f32 %v9670_v39, %v9069_v19  ;;  %v21093_v59 = vadd.f32 %v14845_v3, %v9797_v22 }
 0x7f2   : > { %v14814_v28 = vpop.f32.mrf.mxu1  ;;  %v14857_v46 = vpop.f32.mrf.mxu0 }
 0x7f3   : > { %v9800_v26 = vadd.f32 %v14814_v28, %v20937_v52 }
 0x7f4   : > { %v9683_v10 = vpop.f32.mrf.mxu1  ;;  %v21099_v51 = vpop.f32.mrf.mxu0 }
 0x7f5   : > { %v21097_v54 = vadd.f32 %v9683_v10, %v20941_v1  ;;  %v21101_v16 = vadd.f32 %v14848_v36, %v9800_v26  ;;  %v22792_v10 = vld [vmem:[#allocation40_spill] sm:$0xff] }
 0x7f6   : > { %v14815_v32 = vpop.f32.mrf.mxu1  ;;  %v14860_v3 = vpop.f32.mrf.mxu0 }
 0x7f7   : > { %v9801_v11 = vadd.f32 %v14815_v32, %v20945_v13  ;;  %v9077_v32 = vadd.f32 %v22792_v10, %v20908_v57 }
 0x7f8   : > { %v9686_v15 = vpop.f32.mrf.mxu1  ;;  %v21108_v52 = vpop.f32.mrf.mxu0 }
 0x7f9   : > { %v21106_v30 = vadd.f32 %v9686_v15, %v9073_v56  ;;  %v21110_v22 = vadd.f32 %v14849_v6, %v9801_v11 }
 0x7fa   : > { %v14818_v1 = vpop.f32.mrf.mxu1  ;;  %v14861_v42 = vpop.f32.mrf.mxu0 }
 0x7fb   : > { %v9804_v63 = vadd.f32 %v14818_v1, %v20951_v2 }
 0x7fc   : > { %v9699_v36 = vpop.f32.mrf.mxu1  ;;  %v21116_v13 = vpop.f32.mrf.mxu0 }
 0x7fd   : > { %v21114_v19 = vadd.f32 %v9699_v36, %v20954_v12  ;;  %v21118_v39 = vadd.f32 %v14852_v7, %v9804_v63  ;;  %v22794_v36 = vld [vmem:[#allocation4_spill] sm:$0xff] }
 0x7fe   : > { %v14819_v28 = vpop.f32.mrf.mxu1  ;;  %v14864_v6 = vpop.f32.mrf.mxu0 }
 0x7ff   : > { %v9805_v26 = vadd.f32 %v14819_v28, %v20957_v38  ;;  %v9081_v28 = vadd.f32 %v22794_v36, %v20975_v4 }
 0x800   : > { %v9702_v11 = vpop.f32.mrf.mxu1  ;;  %v21127_v56 = vpop.f32.mrf.mxu0 }
 0x801   : > { %v21123_v25 = vadd.f32 %v9702_v11, %v9077_v32  ;;  %v21125_v2 = vadd.f32 %v14853_v41, %v9805_v26  ;;  %22793 = vst [vmem:[#allocation14_spill] sm:$0xff] %v21127_v56 }
 0x802   : > { %v14822_v14 = vpop.f32.mrf.mxu1  ;;  %v14865_v63 = vpop.f32.mrf.mxu0 }
 0x803   : > { %v9808_v12 = vadd.f32 %v14822_v14, %v20964_v29 }
 0x804   : > { %v9715_v15 = vpop.f32.mrf.mxu1  ;;  %v21142_v29 = vpop.f32.mrf.mxu0 }
 0x805   : > { %v21131_v7 = vadd.f32 %v9715_v15, %v20972_v34  ;;  %v21133_v1 = vadd.f32 %v14856_v50, %v9808_v12  ;;  %22795 = vst [vmem:[#allocation6_spill] sm:$0xff] %v21142_v29  ;;  %v21148_v50 = vld [vmem:[%s22378_s10] sm:$0xff]  ;;  %v22797_v12 = vmov 0.0  }
 0x806   : > { %v14823_v38 = vpop.f32.mrf.mxu1  ;;  %22796 = vst [vmem:[#allocation10_spill] sm:$0xff] %v21148_v50  ;;  %14977 = vmatpush3.msra.mxu0 %v21148_v50  ;;  %v14868_v14 = vpop.f32.mrf.mxu0 }
 0x807   : > { %v9809_v57 = vadd.f32 %v14823_v38, %v20978_v40  ;;  %14981 = vmatprep.subr.mxu0 %v22797_v12 }
 0x808   : > { %v9718_v41 = vpop.f32.mrf.mxu1 }
 0x809   : > { %v21138_v26 = vadd.f32 %v9718_v41, %v9081_v28  ;;  %v21140_v10 = vadd.f32 %v14857_v46, %v9809_v57  ;;  %v21164_v28 = vpop.f32.mrf.mxu0 }
 0x80a   : > { %v14826_v32 = vpop.f32.mrf.mxu1  ;;  %22798 = vst [vmem:[#allocation7_spill] sm:$0xff] %v21164_v28 }
 0x80b   : > { %v9812_v34 = vadd.f32 %v14826_v32, %v20984_v45  ;;  %v9085_v45 = vadd.f32 %v20871_v43, %v21000_v37  ;;  %v9089_v37 = vadd.f32 %v20948_v0, %v21026_v35 }
 0x80c   : > { %v9731_v11 = vpop.f32.mrf.mxu1 }
 0x80d   : > { %v21151_v40 = vadd.f32 %v9731_v11, %v20998_v31  ;;  %v21153_v4 = vadd.f32 %v14860_v3, %v9812_v34 }
 0x80e   : > { %v14827_v46 = vpop.f32.mrf.mxu1 }
 0x80f   : > { %v9813_v15 = vadd.f32 %v14827_v46, %v21003_v8  ;;  %v14869_v8 = vpop.f32.mrf.mxu0 }
 0x810   : > { %v9734_v38 = vpop.f32.mrf.mxu1 }
 0x811   : > { %v21160_v57 = vadd.f32 %v9734_v38, %v9085_v45  ;;  %v21162_v36 = vadd.f32 %v14861_v42, %v9813_v15  ;;  %v21179_v45 = vpop.f32.mrf.mxu0 }
 0x812   : > { %v14830_v31 = vpop.f32.mrf.mxu1  ;;  %22801 = vst [vmem:[#allocation20_spill] sm:$0xff] %v21179_v45 }
 0x813   : > { %v9816_v3 = vadd.f32 %v14830_v31, %v21009_v60 }
 0x814   : > { %v9747_v41 = vpop.f32.mrf.mxu1 }
 0x815   : > { %v21168_v32 = vadd.f32 %v9747_v41, %v21024_v9  ;;  %v21170_v34 = vadd.f32 %v14864_v6, %v9816_v3 }
 0x816   : > { %v14831_v11 = vpop.f32.mrf.mxu1 }
 0x817   : > { %22799 = vst [vmem:[#allocation26_spill] sm:$0xff] %v21168_v32  ;;  %v9817_v43 = vadd.f32 %v14831_v11, %v21028_v61  ;;  %v14872_v61 = vpop.f32.mrf.mxu0 }
 0x818   : > { %v9750_v42 = vpop.f32.mrf.mxu1 }
 0x819   : > { %v21175_v46 = vadd.f32 %v9750_v42, %v9089_v37  ;;  %v21177_v15 = vadd.f32 %v14865_v63, %v9817_v43  ;;  %v21193_v11 = vpop.f32.mrf.mxu0 }
 0x81a   : > { %v14834_v60 = vpop.f32.mrf.mxu1  ;;  %22804 = vst [vmem:[#allocation32_spill] sm:$0xff] %v21193_v11 }
 0x81b   : > { %22800 = vst [vmem:[#allocation11_spill] sm:$0xff] %v21175_v46  ;;  %v9820_v9 = vadd.f32 %v14834_v60, %v21035_v27  ;;  %v14873_v43 = vpop.f32.mrf.mxu0 }
 0x81c   : > { %v9763_v38 = vpop.f32.mrf.mxu1 }
 0x81d   : > { %v21183_v6 = vadd.f32 %v9763_v38, %v21052_v18  ;;  %v21185_v31 = vadd.f32 %v14868_v14, %v9820_v9  ;;  %v21201_v60 = vpop.f32.mrf.mxu0 }
 0x81e   : > { %v14835_v3 = vpop.f32.mrf.mxu1  ;;  %22806 = vst [vmem:[#allocation21_spill] sm:$0xff] %v21201_v60 }
 0x81f   : > { %22802 = vst [vmem:[#allocation42_spill] sm:$0xff] %v21183_v6  ;;  %v9821_v0 = vadd.f32 %v14835_v3, %v21056_v53 }
 0x820   : > { %v9766_v35 = vpop.f32.mrf.mxu1  ;;  %v21209_v3 = vpop.f32.mrf.mxu0 }
 0x821   : > { %v21189_v41 = vadd.f32 %v9766_v35, %v21059_v17  ;;  %v21191_v63 = vadd.f32 %v14869_v8, %v9821_v0 }
 0x822   : > { %v21217_v35 = vpop.f32.mrf.mxu0 }
 0x823   : > { %22803 = vst [vmem:[#allocation33_spill] sm:$0xff] %v21189_v41 }
 0x825   : > { %v14838_v27 = vpop.f32.mrf.mxu1 }
 0x826   : > { %v9824_v37 = vadd.f32 %v14838_v27, %v21064_v33 }
 0x827   : > { %v9779_v18 = vpop.f32.mrf.mxu1 }
 0x828   : > { %v21197_v14 = vadd.f32 %v9779_v18, %v21070_v5  ;;  %v21199_v42 = vadd.f32 %v14872_v61, %v9824_v37  ;;  %v21222_v37 = vpop.f32.mrf.mxu0 }
 0x829   : > { %v14839_v53 = vpop.f32.mrf.mxu1 }
 0x82a   : > { %22805 = vst [vmem:[#allocation31_spill] sm:$0xff] %v21197_v14  ;;  %v9825_v17 = vadd.f32 %v14839_v53, %v21074_v21 }
 0x82b   : > { %v9782_v9 = vpop.f32.mrf.mxu1 }
 0x82c   : > { %v21205_v8 = vadd.f32 %v9782_v9, %v21077_v62  ;;  %v21207_v38 = vadd.f32 %v14873_v43, %v9825_v17 }
 0x82d   : > { %v14878_v33 = vpop.f32.mrf.mxu1 }
 0x82e   : > { %22807 = vst [vmem:[#allocation50_spill] sm:$0xff] %v21205_v8  ;;  %v21212_v0 = vadd.f32 %v14878_v33, %v21082_v44  ;;  %v21229_v44 = vpop.f32.mrf.mxu0 }
 0x82f   : > { %v10496_v5 = vpop.f32.mrf.mxu1 }
 0x830   : > { %v21215_v61 = vadd.f32 %v10496_v5, %v21087_v55  ;;  %v21236_v33 = vpop.f32.mrf.mxu0 }
 0x831   : > { %v14879_v27 = vpop.f32.mrf.mxu1 }
 0x832   : > { %v21220_v21 = vadd.f32 %v14879_v27, %v21093_v59 }
 0x833   : > { %v10499_v62 = vpop.f32.mrf.mxu1 }
 0x835   : > { %v14882_v43 = vpop.f32.mrf.mxu1 }
 0x836   : > { %v21225_v18 = vadd.f32 %v14882_v43, %v21101_v16  ;;  %v21243_v16 = vpop.f32.mrf.mxu0 }
 0x837   : > { %v21227_v53 = vpop.f32.mrf.mxu1 }
 0x839   : > { %v14883_v17 = vpop.f32.mrf.mxu1 }
 0x83a   : > { %v21232_v55 = vadd.f32 %v14883_v17, %v21110_v22  ;;  %v21250_v22 = vpop.f32.mrf.mxu0 }
 0x83b   : > { %v21234_v9 = vpop.f32.mrf.mxu1 }
 0x83d   : > { %v14886_v59 = vpop.f32.mrf.mxu1 }
 0x83e   : > { %v21239_v5 = vadd.f32 %v14886_v59, %v21118_v39  ;;  %v21257_v39 = vpop.f32.mrf.mxu0 }
 0x83f   : > { %v21241_v27 = vpop.f32.mrf.mxu1 }
 0x841   : > { %v14887_v43 = vpop.f32.mrf.mxu1 }
 0x842   : > { %v21246_v50 = vadd.f32 %v14887_v43, %v21125_v2  ;;  %v21264_v2 = vpop.f32.mrf.mxu0 }
 0x843   : > { %v21248_v12 = vpop.f32.mrf.mxu1 }
 0x845   : > { %v14890_v17 = vpop.f32.mrf.mxu1 }
 0x846   : > { %v21253_v60 = vadd.f32 %v14890_v17, %v21133_v1  ;;  %v21271_v1 = vpop.f32.mrf.mxu0 }
 0x847   : > { %v21255_v8 = vpop.f32.mrf.mxu1 }
 0x849   : > { %v14891_v59 = vpop.f32.mrf.mxu1 }
 0x84a   : > { %v21260_v11 = vadd.f32 %v14891_v59, %v21140_v10  ;;  %v21278_v10 = vpop.f32.mrf.mxu0 }
 0x84b   : > { %v21262_v14 = vpop.f32.mrf.mxu1 }
 0x84d   : > { %v14894_v43 = vpop.f32.mrf.mxu1 }
 0x84e   : > { %v21267_v45 = vadd.f32 %v14894_v43, %v21153_v4  ;;  %v21285_v4 = vpop.f32.mrf.mxu0 }
 0x84f   : > { %v21269_v41 = vpop.f32.mrf.mxu1 }
 0x850   : > { %22808 = vst [vmem:[#allocation39_spill] sm:$0xff] %v21267_v45 }
 0x851   : > { %v14895_v17 = vpop.f32.mrf.mxu1 }
 0x852   : > { %v21274_v28 = vadd.f32 %v14895_v17, %v21162_v36  ;;  %v21292_v36 = vpop.f32.mrf.mxu0 }
 0x853   : > { %v21276_v6 = vpop.f32.mrf.mxu1 }
 0x854   : > { %22809 = vst [vmem:[#allocation45_spill] sm:$0xff] %v21274_v28 }
 0x855   : > { %v14898_v59 = vpop.f32.mrf.mxu1 }
 0x856   : > { %v21281_v29 = vadd.f32 %v14898_v59, %v21170_v34  ;;  %v21299_v34 = vpop.f32.mrf.mxu0 }
 0x857   : > { %v21283_v46 = vpop.f32.mrf.mxu1 }
 0x858   : > { %22810 = vst [vmem:[#allocation52_spill] sm:$0xff] %v21281_v29  ;;  %22811 = vst [vmem:[#allocation34_spill] sm:$0xff] %v21283_v46 }
 0x859   : > { %v14899_v43 = vpop.f32.mrf.mxu1 }
 0x85a   : > { %v21288_v45 = vadd.f32 %v14899_v43, %v21177_v15  ;;  %v21306_v15 = vpop.f32.mrf.mxu0 }
 0x85b   : > { %v21290_v56 = vpop.f32.mrf.mxu1 }
 0x85c   : > { %22812 = vst [vmem:[#allocation44_spill] sm:$0xff] %v21288_v45  ;;  %22813 = vst [vmem:[#allocation43_spill] sm:$0xff] %v21290_v56 }
 0x85d   : > { %v14902_v17 = vpop.f32.mrf.mxu1 }
 0x85e   : > { %v21295_v28 = vadd.f32 %v14902_v17, %v21185_v31  ;;  %v21313_v31 = vpop.f32.mrf.mxu0 }
 0x85f   : > { %v21297_v32 = vpop.f32.mrf.mxu1 }
 0x860   : > { %22814 = vst [vmem:[#allocation16_spill] sm:$0xff] %v21295_v28  ;;  %22815 = vst [vmem:[#allocation47_spill] sm:$0xff] %v21297_v32 }
 0x861   : > { %v14903_v59 = vpop.f32.mrf.mxu1 }
 0x862   : > { %v21302_v29 = vadd.f32 %v14903_v59, %v21191_v63  ;;  %v10265_v63 = vadd.f32 %v21033_v58, %v21089_v20  ;;  %v21322_v59 = vpop.f32.mrf.mxu0 }
 0x863   : > { %v21304_v46 = vpop.f32.mrf.mxu1 }
 0x864   : > { %22816 = vst [vmem:[#allocation13_spill] sm:$0xff] %v21302_v29  ;;  %22817 = vst [vmem:[#allocation23_spill] sm:$0xff] %v21304_v46  ;;  %v10624_v46 = vadd.f32 %v10499_v62, %v10265_v63  ;;  %v11352_v62 = vadd.f32 %v21222_v37, %v21220_v21  ;;  %v10272_v37 = vadd.f32 %v21072_v24, %v21114_v19 }
 0x865   : > { %v14906_v43 = vpop.f32.mrf.mxu1  ;;  %v11356_v24 = vadd.f32 %v21250_v22, %v21232_v55 }
 0x866   : > { %v21309_v45 = vadd.f32 %v14906_v43, %v21199_v42  ;;  %v11349_v42 = vadd.f32 %v21217_v35, %v21215_v61  ;;  %v11350_v63 = vadd.f32 %v21229_v44, %v10624_v46  ;;  %v10269_v61 = vadd.f32 %v21062_v47, %v21106_v30 }
 0x867   : > { %v21311_v56 = vpop.f32.mrf.mxu1 }
 0x868   : > { %22818 = vst [vmem:[#allocation48_spill] sm:$0xff] %v21309_v45  ;;  %v10268_v45 = vadd.f32 %v21054_v23, %v21097_v54  ;;  %v21341_v23 = vld [vmem:[%s22375_s7] ss:$0 sm:$0xff] }
 0x869   : > { %v14907_v17 = vpop.f32.mrf.mxu1 }
 0x86a   : > { %v21316_v28 = vadd.f32 %v14907_v17, %v21207_v38  ;;  %v11351_v38 = vadd.f32 %v21209_v3, %v21212_v0  ;;  %v10627_v58 = vadd.f32 %v21227_v53, %v10268_v45 }
 0x86b   : > { %v21318_v32 = vpop.f32.mrf.mxu1 }
 0x86c   : > { %22819 = vst [vmem:[#allocation15_spill] sm:$0xff] %v21316_v28  ;;  %22820 = vst [vmem:[#allocation19_spill] sm:$0xff] %v21318_v32  ;;  %v21330_v28 = vpop.f32.mrf.mxu0  ;;  %v11353_v30 = vadd.f32 %v21243_v16, %v10627_v58 }
 0x86d   : > { %v14946_v29 = vpop.f32.mrf.mxu1 }
 0x86e   : > { %v11821_v20 = vadd.f32 %v14946_v29, %v11351_v38  ;;  %v10628_v29 = vadd.f32 %v21234_v9, %v10269_v61  ;;  %v21347_v35 = vpop.f32.mrf.mxu0 }
 0x86f   : > { %v11692_v43 = vpop.f32.mrf.mxu1 }
 0x870   : > { %v11819_v17 = vadd.f32 %v11692_v43, %v11349_v42  ;;  %v21350_v46 = vadd.f32 %v21341_v23, %v11821_v20  ;;  %v21367_v38 = vpop.f32.mrf.mxu0 }
 0x871   : > { %v14947_v32 = vpop.f32.mrf.mxu1 }
 0x872   : > { %v21344_v3 = vadd.f32 %v21341_v23, %v11819_v17  ;;  %v11822_v0 = vadd.f32 %v14947_v32, %v11352_v62  ;;  %v11355_v32 = vadd.f32 %v21236_v33, %v21225_v18  ;;  %v11354_v18 = vadd.f32 %v21257_v39, %v10628_v29 }
 0x873   : > { %v11695_v54 = vpop.f32.mrf.mxu1  ;;  %v10631_v33 = vadd.f32 %v21241_v27, %v10272_v37  ;;  %v11893_v17 = vsel %vm5767_vm7, %v21350_v46, 0.0  ;;  %v10273_v62 = vadd.f32 %v21080_v49, %v21123_v25  ;;  %v21383_v27 = vpop.f32.mrf.mxu0 }
 0x874   : > { %v11820_v45 = vadd.f32 %v11695_v54, %v11350_v63  ;;  %v11890_v44 = vsel %vm5767_vm7, %v21344_v3, 0.0  ;;  %v21363_v9 = vadd.f32 %v21341_v23, %v11822_v0 }
 0x875   : > { %v14950_v21 = vpop.f32.mrf.mxu1  ;;  %v10632_v39 = vadd.f32 %v21248_v12, %v10273_v62  ;;  %v11357_v25 = vadd.f32 %v21271_v1, %v10631_v33  ;;  %v11360_v1 = vadd.f32 %v21278_v10, %v21246_v50 }
 0x876   : > { %v21353_v47 = vadd.f32 %v21341_v23, %v11820_v45  ;;  %v11825_v58 = vadd.f32 %v14950_v21, %v11355_v32  ;;  %v11895_v55 = vsel %vm5767_vm7, %v21363_v9, 0.0 }
 0x877   : > { %v11708_v53 = vpop.f32.mrf.mxu1 }
 0x878   : > { %v11891_v42 = vsel %vm5767_vm7, %v21353_v47, 0.0  ;;  %v11823_v43 = vadd.f32 %v11708_v53, %v11353_v30  ;;  %v21386_v29 = vadd.f32 %v21341_v23, %v11825_v58  ;;  %v10276_v30 = vadd.f32 %v21091_v48, %v21131_v7 }
 0x879   : > { %v11892_v16 = vadd.f32 %v11891_v42, %v11890_v44  ;;  %v14951_v19 = vpop.f32.mrf.mxu1  ;;  %v11359_v44 = vadd.f32 %v21264_v2, %v21239_v5  ;;  %v11358_v48 = vadd.f32 %v21285_v4, %v10632_v39  ;;  %v10277_v5 = vadd.f32 %v21099_v51, %v21138_v26 }
 0x87a   : > { %v21376_v20 = vadd.f32 %v21341_v23, %v11823_v43  ;;  %v11826_v22 = vadd.f32 %v14951_v19, %v11356_v24  ;;  %v21403_v43 = vpop.f32.mrf.mxu0  ;;  %v10635_v7 = vadd.f32 %v21255_v8, %v10276_v30  ;;  %v11901_v19 = vsel %vm5767_vm7, %v21386_v29, 0.0 }
 0x87b   : > { %v11894_v63 = vadd.f32 %v11893_v17, %v11892_v16  ;;  %v11711_v61 = vpop.f32.mrf.mxu1  ;;  %v10636_v4 = vadd.f32 %v21262_v14, %v10277_v5 }
 0x87c   : > { %v11824_v54 = vadd.f32 %v11711_v61, %v11354_v18  ;;  %v11897_v21 = vsel %vm5767_vm7, %v21376_v20, 0.0  ;;  %v21397_v32 = vadd.f32 %v21341_v23, %v11826_v22  ;;  %v21419_v8 = vpop.f32.mrf.mxu0  ;;  %v11361_v26 = vadd.f32 %v21299_v34, %v10635_v7 }
 0x87d   : > { %v11896_v0 = vadd.f32 %v11895_v55, %v11894_v63  ;;  %v14954_v45 = vpop.f32.mrf.mxu1  ;;  %v10280_v22 = vadd.f32 %v21108_v52, %v21151_v40  ;;  %v11364_v34 = vadd.f32 %v21306_v15, %v21260_v11  ;;  %v11362_v52 = vadd.f32 %v21313_v31, %v10636_v4 }
 0x87e   : > { %v21391_v49 = vadd.f32 %v21341_v23, %v11824_v54  ;;  %v11829_v18 = vadd.f32 %v14954_v45, %v11359_v44  ;;  %v11903_v50 = vsel %vm5767_vm7, %v21397_v32, 0.0  ;;  %v11363_v45 = vadd.f32 %v21292_v36, %v21253_v60 }
 0x87f   : > { %v11898_v37 = vadd.f32 %v11897_v21, %v11896_v0  ;;  %v11724_v12 = vpop.f32.mrf.mxu1  ;;  %v10639_v40 = vadd.f32 %v21269_v41, %v10280_v22  ;;  %v10281_v60 = vadd.f32 %v21116_v13, %v21160_v57 }
 0x880   : > { %v11899_v53 = vsel %vm5767_vm7, %v21391_v49, 0.0  ;;  %v11827_v42 = vadd.f32 %v11724_v12, %v11357_v25  ;;  %v21422_v61 = vadd.f32 %v21341_v23, %v11829_v18  ;;  %v21439_v25 = vpop.f32.mrf.mxu0  ;;  %v22822_v18 = vld [vmem:[#allocation14_spill] sm:$0xff] }
 0x881   : > { %v11900_v16 = vadd.f32 %v11899_v53, %v11898_v37  ;;  %v14955_v24 = vpop.f32.mrf.mxu1  ;;  %v10640_v31 = vadd.f32 %v21276_v6, %v10281_v60  ;;  %v11365_v57 = vadd.f32 %v21330_v28, %v10639_v40 }
 0x882   : > { %v21412_v33 = vadd.f32 %v21341_v23, %v11827_v42  ;;  %v11830_v10 = vadd.f32 %v14955_v24, %v11360_v1  ;;  %v11909_v12 = vsel %vm5767_vm7, %v21422_v61, 0.0  ;;  %v21455_v41 = vpop.f32.mrf.mxu0 }
 0x883   : > { %v11902_v2 = vadd.f32 %v11901_v19, %v11900_v16  ;;  %v11727_v17 = vpop.f32.mrf.mxu1  ;;  %v22821_v19 = vld [vmem:[#allocation26_spill] sm:$0xff]  ;;  %v11366_v22 = vadd.f32 %v21367_v38, %v10640_v31 }
 0x884   : > { %v11828_v58 = vadd.f32 %v11727_v17, %v11358_v48  ;;  %v11905_v55 = vsel %vm5767_vm7, %v21412_v33, 0.0  ;;  %v21433_v39 = vadd.f32 %v21341_v23, %v11830_v10  ;;  %v10284_v5 = vadd.f32 %v22822_v18, %v22821_v19  ;;  %v22823_v10 = vld [vmem:[#allocation39_spill] sm:$0xff] }
 0x885   : > { %v11904_v62 = vadd.f32 %v11903_v50, %v11902_v2  ;;  %v14958_v63 = vpop.f32.mrf.mxu1 }
 0x886   : > { %v21427_v51 = vadd.f32 %v21341_v23, %v11828_v58  ;;  %v11833_v53 = vadd.f32 %v14958_v63, %v11363_v45  ;;  %v11911_v11 = vsel %vm5767_vm7, %v21433_v39, 0.0  ;;  %v11367_v58 = vadd.f32 %v21322_v59, %v22823_v10  ;;  %v22827_v59 = vld [vmem:[#allocation6_spill] sm:$0xff] }
 0x887   : > { %v11906_v54 = vadd.f32 %v11905_v55, %v11904_v62  ;;  %v11740_v14 = vpop.f32.mrf.mxu1  ;;  %v11318_v62 = vpop.f32.mrf.mxu0  ;;  %v22824_v55 = vld [vmem:[#allocation45_spill] sm:$0xff] }
 0x888   : > { %v11907_v0 = vsel %vm5767_vm7, %v21427_v51, 0.0  ;;  %v11831_v21 = vadd.f32 %v11740_v14, %v11361_v26  ;;  %v21458_v48 = vadd.f32 %v21341_v23, %v11833_v53  ;;  %v11368_v28 = vadd.f32 %v21347_v35, %v22824_v55  ;;  %v22828_v53 = vld [vmem:[#allocation43_spill] sm:$0xff] }
 0x889   : > { %v11908_v30 = vadd.f32 %v11907_v0, %v11906_v54  ;;  %v14959_v37 = vpop.f32.mrf.mxu1  ;;  %v22825_v54 = vld [vmem:[#allocation34_spill] sm:$0xff]  ;;  %v14937_v38 = vpop.f32.mrf.mxu0 }
 0x88a   : > { %v21448_v44 = vadd.f32 %v21341_v23, %v11831_v21  ;;  %v11834_v15 = vadd.f32 %v14959_v37, %v11364_v34  ;;  %v10643_v14 = vadd.f32 %v22825_v54, %v10284_v5  ;;  %v11917_v0 = vsel %vm5767_vm7, %v21458_v48, 0.0 }
 0x88b   : > { %v11910_v36 = vadd.f32 %v11909_v12, %v11908_v30  ;;  %v11743_v42 = vpop.f32.mrf.mxu1  ;;  %v22826_v30 = vld [vmem:[#allocation11_spill] sm:$0xff]  ;;  %v11321_v10 = vpop.f32.mrf.mxu0 }
 0x88c   : > { %v11832_v16 = vadd.f32 %v11743_v42, %v11362_v52  ;;  %v11913_v7 = vsel %vm5767_vm7, %v21448_v44, 0.0  ;;  %v21469_v17 = vadd.f32 %v21341_v23, %v11834_v15  ;;  %v10285_v34 = vadd.f32 %v22827_v59, %v22826_v30 }
 0x88d   : > { %v11912_v1 = vadd.f32 %v11911_v11, %v11910_v36  ;;  %v14962_v24 = vpop.f32.mrf.mxu1  ;;  %v11369_v31 = vadd.f32 %v21403_v43, %v10643_v14  ;;  %v14940_v30 = vpop.f32.mrf.mxu0 }
 0x88e   : > { %v21463_v13 = vadd.f32 %v21341_v23, %v11832_v16  ;;  %v11837_v45 = vadd.f32 %v14962_v24, %v11367_v58  ;;  %v11919_v35 = vsel %vm5767_vm7, %v21469_v17, 0.0  ;;  %v10644_v60 = vadd.f32 %v22828_v53, %v10285_v34  ;;  %v22830_v24 = vld [vmem:[#allocation7_spill] sm:$0xff] }
 0x88f   : > { %v11914_v2 = vadd.f32 %v11913_v7, %v11912_v1  ;;  %v11756_v6 = vpop.f32.mrf.mxu1  ;;  %v22829_v1 = vld [vmem:[#allocation42_spill] sm:$0xff] }
 0x890   : > { %v11915_v50 = vsel %vm5767_vm7, %v21463_v13, 0.0  ;;  %v11835_v4 = vadd.f32 %v11756_v6, %v11365_v57  ;;  %v21490_v11 = vadd.f32 %v21341_v23, %v11837_v45  ;;  %v10288_v7 = vadd.f32 %v22830_v24, %v22829_v1  ;;  %v11334_v24 = vpop.f32.mrf.mxu0 }
 0x891   : > { %v11916_v63 = vadd.f32 %v11915_v50, %v11914_v2  ;;  %v14963_v26 = vpop.f32.mrf.mxu1  ;;  %v22831_v2 = vld [vmem:[#allocation52_spill] sm:$0xff]  ;;  %v11370_v55 = vadd.f32 %v21439_v25, %v10644_v60 }
 0x892   : > { %v21482_v21 = vadd.f32 %v21341_v23, %v11835_v4  ;;  %v11838_v40 = vadd.f32 %v14963_v26, %v11368_v28  ;;  %v11371_v6 = vadd.f32 %v21383_v27, %v22831_v2  ;;  %v22832_v4 = vld [vmem:[#allocation44_spill] sm:$0xff]  ;;  %v22833_v28 = vld [vmem:[#allocation47_spill] sm:$0xff] }
 0x893   : > { %v11918_v37 = vadd.f32 %v11917_v0, %v11916_v63  ;;  %v11759_v52 = vpop.f32.mrf.mxu1  ;;  %v11372_v43 = vadd.f32 %v21419_v8, %v22832_v4  ;;  %v10647_v26 = vadd.f32 %v22833_v28, %v10288_v7  ;;  %v22834_v0 = vld [vmem:[#allocation33_spill] sm:$0xff]  ;;  %v22835_v27 = vld [vmem:[#allocation20_spill] sm:$0xff] }
 0x894   : > { %v11836_v12 = vadd.f32 %v11759_v52, %v11366_v22  ;;  %v11921_v15 = vsel %vm5767_vm7, %v21482_v21, 0.0  ;;  %v21501_v18 = vadd.f32 %v21341_v23, %v11838_v40  ;;  %v11925_v22 = vsel %vm5767_vm7, %v21490_v11, 0.0  ;;  %v22836_v52 = vld [vmem:[#allocation23_spill] sm:$0xff]  ;;  %v22839_v2 = vld [vmem:[#allocation16_spill] sm:$0xff]  ;;  %v22840_v4 = vld [vmem:[#allocation13_spill] sm:$0xff] }
 0x895   : > { %v11920_v36 = vadd.f32 %v11919_v35, %v11918_v37  ;;  %v14966_v42 = vpop.f32.mrf.mxu1  ;;  %v10289_v45 = vadd.f32 %v22835_v27, %v22834_v0  ;;  %v22842_v0 = vld [vmem:[#allocation21_spill] sm:$0xff] }
 0x896   : > { %v21495_v16 = vadd.f32 %v21341_v23, %v11836_v12  ;;  %v11841_v54 = vadd.f32 %v14966_v42, %v11371_v6  ;;  %v11927_v8 = vsel %vm5767_vm7, %v21501_v18, 0.0  ;;  %v11373_v42 = vadd.f32 %v11318_v62, %v10647_v26 }
 0x897   : > { %v11922_v57 = vadd.f32 %v11921_v15, %v11920_v36  ;;  %v11772_v19 = vpop.f32.mrf.mxu1  ;;  %v10648_v35 = vadd.f32 %v22836_v52, %v10289_v45  ;;  %v22837_v15 = vld [vmem:[#allocation31_spill] sm:$0xff]  ;;  %v11375_v6 = vadd.f32 %v21455_v41, %v22839_v2  ;;  %v14941_v45 = vpop.f32.mrf.mxu0 }
 0x898   : > { %v11923_v5 = vsel %vm5767_vm7, %v21495_v16, 0.0  ;;  %v11839_v50 = vadd.f32 %v11772_v19, %v11369_v31  ;;  %v21522_v53 = vadd.f32 %v21341_v23, %v11841_v54  ;;  %v22838_v31 = vld [vmem:[#allocation32_spill] sm:$0xff]  ;;  %v22841_v54 = vld [vmem:[#allocation50_spill] sm:$0xff] }
 0x899   : > { %v11924_v58 = vadd.f32 %v11923_v5, %v11922_v57  ;;  %v14967_v63 = vpop.f32.mrf.mxu1  ;;  %v10292_v1 = vadd.f32 %v22838_v31, %v22837_v15  ;;  %v10293_v27 = vadd.f32 %v22842_v0, %v22841_v54  ;;  %v22844_v31 = vld [vmem:[#allocation48_spill] sm:$0xff] }
 0x89a   : > { %v21514_v14 = vadd.f32 %v21341_v23, %v11839_v50  ;;  %v11842_v37 = vadd.f32 %v14967_v63, %v11372_v43  ;;  %v11376_v43 = vadd.f32 %v14937_v38, %v22840_v4  ;;  %v11374_v63 = vadd.f32 %v11321_v10, %v10648_v35 }
 0x89b   : > { %v11926_v59 = vadd.f32 %v11925_v22, %v11924_v58  ;;  %v11775_v34 = vpop.f32.mrf.mxu1  ;;  %v11933_v28 = vsel %vm5767_vm7, %v21522_v53, 0.0 }
 0x89c   : > { %v11840_v25 = vadd.f32 %v11775_v34, %v11370_v55  ;;  %v11929_v60 = vsel %vm5767_vm7, %v21514_v14, 0.0  ;;  %v21532_v19 = vadd.f32 %v21341_v23, %v11842_v37  ;;  %v10651_v55 = vadd.f32 %v21311_v56, %v10292_v1 }
 0x89d   : > { %v11928_v40 = vadd.f32 %v11927_v8, %v11926_v59  ;;  %v14970_v12 = vpop.f32.mrf.mxu1  ;;  %v22843_v8 = vld [vmem:[#allocation19_spill] sm:$0xff]  ;;  %v11379_v1 = vadd.f32 %v14940_v30, %v22844_v31  ;;  %v22846_v31 = vmov 0.0  }
 0x89e   : > { %v21527_v36 = vadd.f32 %v21341_v23, %v11840_v25  ;;  %v11845_v26 = vadd.f32 %v14970_v12, %v11375_v6  ;;  %v11935_v38 = vsel %vm5767_vm7, %v21532_v19, 0.0  ;;  %v10652_v56 = vadd.f32 %v22843_v8, %v10293_v27 }
 0x89f   : > { %v11930_v7 = vadd.f32 %v11929_v60, %v11928_v40  ;;  %v11788_v57 = vpop.f32.mrf.mxu1  ;;  %v11377_v52 = vadd.f32 %v11334_v24, %v10651_v55  ;;  %v11337_v60 = vpop.f32.mrf.mxu0 }
 0x8a0   : > { %v11931_v5 = vsel %vm5767_vm7, %v21527_v36, 0.0  ;;  %v11843_v50 = vadd.f32 %v11788_v57, %v11373_v42  ;;  %v21551_v35 = vadd.f32 %v21341_v23, %v11845_v26 }
 0x8a1   : > { %v11932_v58 = vadd.f32 %v11931_v5, %v11930_v7  ;;  %v14971_v62 = vpop.f32.mrf.mxu1  ;;  %v22845_v5 = vld [vmem:[#allocation15_spill] sm:$0xff] }
 0x8a2   : > { %v21543_v22 = vadd.f32 %v21341_v23, %v11843_v50  ;;  %v11846_v34 = vadd.f32 %v14971_v62, %v11376_v43  ;;  %v11380_v2 = vadd.f32 %v14941_v45, %v22845_v5  ;;  %v11941_v4 = vsel %vm5767_vm7, %v21551_v35, 0.0 }
 0x8a3   : > { %v11934_v41 = vadd.f32 %v11933_v28, %v11932_v58  ;;  %v11791_v59 = vpop.f32.mrf.mxu1  ;;  %v11378_v58 = vadd.f32 %v11337_v60, %v10652_v56 }
 0x8a4   : > { %v11844_v10 = vadd.f32 %v11791_v59, %v11374_v63  ;;  %v11937_v40 = vsel %vm5767_vm7, %v21543_v22, 0.0  ;;  %v21560_v7 = vadd.f32 %v21341_v23, %v11846_v34 }
 0x8a5   : > { %v11936_v37 = vadd.f32 %v11935_v38, %v11934_v41  ;;  %v14974_v25 = vpop.f32.mrf.mxu1 }
 0x8a6   : > { %v21556_v12 = vadd.f32 %v21341_v23, %v11844_v10  ;;  %v11849_v43 = vadd.f32 %v14974_v25, %v11379_v1  ;;  %v11943_v55 = vsel %vm5767_vm7, %v21560_v7, 0.0 }
 0x8a7   : > { %v11938_v42 = vadd.f32 %v11937_v40, %v11936_v37  ;;  %v11804_v15 = vpop.f32.mrf.mxu1 }
 0x8a8   : > { %v11939_v24 = vsel %vm5767_vm7, %v21556_v12, 0.0  ;;  %v11847_v57 = vadd.f32 %v11804_v15, %v11377_v52  ;;  %v21573_v0 = vadd.f32 %v21341_v23, %v11849_v43 }
 0x8a9   : > { %v11940_v6 = vadd.f32 %v11939_v24, %v11938_v42  ;;  %v14975_v50 = vpop.f32.mrf.mxu1 }
 0x8aa   : > { %v21568_v62 = vadd.f32 %v21341_v23, %v11847_v57  ;;  %v11850_v28 = vadd.f32 %v14975_v50, %v11380_v2  ;;  %v11949_v10 = vsel %vm5767_vm7, %v21573_v0, 0.0  ;;  %v22847_v57 = vld [vmem:[#allocation10_spill] sm:$0xff]  ;;  %v22848_v50 = vld [vmem:[#allocation12_spill] sm:$0xff] }
 0x8ab   : > { %v11942_v30 = vadd.f32 %v11941_v4, %v11940_v6  ;;  %v11807_v63 = vpop.f32.mrf.mxu1 }
 0x8ac   : > { %v11848_v26 = vadd.f32 %v11807_v63, %v11378_v58  ;;  %v11945_v27 = vsel %vm5767_vm7, %v21568_v62, 0.0  ;;  %v21581_v59 = vadd.f32 %v21341_v23, %v11850_v28 }
 0x8ad   : > { %v11944_v54 = vadd.f32 %v11943_v55, %v11942_v30 }
 0x8ae   : > { %v21578_v45 = vadd.f32 %v21341_v23, %v11848_v26  ;;  %v11951_v56 = vsel %vm5767_vm7, %v21581_v59, 0.0  ;;  %v21592_v23 = vld [vmem:[%s22379_s11] sm:$0xff] }
 0x8af   : > { %v11946_v41 = vadd.f32 %v11945_v27, %v11944_v54 }
 0x8b0   : > { %v11947_v38 = vsel %vm5767_vm7, %v21578_v45, 0.0 }
 0x8b1   : > { %v11948_v34 = vadd.f32 %v11947_v38, %v11946_v41 }
 0x8b3   : > { %v11950_v8 = vadd.f32 %v11949_v10, %v11948_v34 }
 0x8b5   : > { %v11952_v37 = vadd.f32 %v11951_v56, %v11950_v8 }
 0x8b7   : > { %v11953_v25 = vrot.slane %v11952_v37, 4 }
 0x8b9   : > { %v11954_v52 = vadd.f32 %v11953_v25, %v11952_v37 }
 0x8bb   : > { %v11955_v40 = vrot.slane %v11954_v52, 2 }
 0x8bd   : > { %v11956_v60 = vadd.f32 %v11955_v40, %v11954_v52 }
 0x8bf   : > { %v11957_v42 = vrot.slane %v11956_v60, 1 }
 0x8c1   : > { %v11958_v15 = vadd.f32 %v11957_v42, %v11956_v60 }
 0x8c3   : > { %14979 = vmatmul.mubr.msk.f32.vlgmr.msra.gmra.mxu0 %vm5767_vm7, %v11958_v15 }
 0x8c4   : > { %14982 = vmatpush3.msra.mxu0 %v21592_v23  ;;  %14983 = vmatprep.mubr.msk.f32.mxu0 %vm15483_vm3, %v22846_v31 }
 0x8c5   : > { %14986 = vmatprep.subr.mxu0 %v22846_v31 }
 0x983   : > { %v12029_v1 = vpop.f32.mrf.mxu0 }
 0x984   : > { %14984 = vmatmul.mubr.msk.f32.vlgmr.msra.gmra.mxu0 %vm5767_vm7, %v12029_v1 }
 0x985   : > { %v14980_v24 = vpop.f32.mrf.mxu0  ;;  %14987 = vmatpush3.msra.mxu0 %v22847_v57  ;;  %14988 = vmatprep.mubr.msk.f32.mxu0 %vm15483_vm3, %v22846_v31 }
 0x986   : > { %14991 = vmatprep.subr.mxu0 %v22846_v31 }
 0xa44   : > { %v12103_v5 = vpop.f32.mrf.mxu0 }
 0xa45   : > { %v12107_v6 = vmul.f32 0.00390625, %v12103_v5 }
 0xa46   : > { %v14985_v2 = vpop.f32.mrf.mxu0 }
 0xa47   : > { %v21605_v58 = vrot.slane %v12107_v6, %v22848_v50 }
 0xa49   : > { %v21609_v4 = vsub.f32 %v21344_v3, %v21605_v58  ;;  %v21613_v43 = vsub.f32 %v21353_v47, %v21605_v58  ;;  %v21617_v30 = vsub.f32 %v21350_v46, %v21605_v58  ;;  %v21621_v63 = vsub.f32 %v21363_v9, %v21605_v58 }
 0xa4a   : > { %v21629_v3 = vsub.f32 %v21376_v20, %v21605_v58  ;;  %v21635_v46 = vsub.f32 %v21391_v49, %v21605_v58  ;;  %v21643_v41 = vsub.f32 %v21386_v29, %v21605_v58  ;;  %v21650_v49 = vsub.f32 %v21397_v32, %v21605_v58 }
 0xa4b   : > { %v12144_v55 = vmul.f32 %v21609_v4, %v21609_v4  ;;  %v12145_v28 = vmul.f32 %v21613_v43, %v21613_v43  ;;  %v12146_v47 = vmul.f32 %v21617_v30, %v21617_v30  ;;  %v12147_v9 = vmul.f32 %v21621_v63, %v21621_v63 }
 0xa4c   : > { %v12148_v20 = vmul.f32 %v21629_v3, %v21629_v3  ;;  %v12149_v10 = vmul.f32 %v21635_v46, %v21635_v46  ;;  %v21657_v29 = vsub.f32 %v21412_v33, %v21605_v58  ;;  %v12150_v37 = vmul.f32 %v21643_v41, %v21643_v41 }
 0xa4d   : > { %v12176_v26 = vsel %vm5767_vm7, %v12144_v55, 0.0  ;;  %v12177_v54 = vsel %vm5767_vm7, %v12145_v28, 0.0  ;;  %v12179_v38 = vsel %vm5767_vm7, %v12146_v47, 0.0  ;;  %v12181_v8 = vsel %vm5767_vm7, %v12147_v9, 0.0 }
 0xa4e   : > { %v12178_v27 = vadd.f32 %v12177_v54, %v12176_v26  ;;  %v12183_v25 = vsel %vm5767_vm7, %v12148_v20, 0.0  ;;  %v21664_v32 = vsub.f32 %v21427_v51, %v21605_v58  ;;  %v12151_v40 = vmul.f32 %v21650_v49, %v21650_v49 }
 0xa4f   : > { %v12185_v60 = vsel %vm5767_vm7, %v12149_v10, 0.0  ;;  %v21671_v33 = vsub.f32 %v21422_v61, %v21605_v58  ;;  %v12152_v15 = vmul.f32 %v21657_v29, %v21657_v29  ;;  %v12187_v1 = vsel %vm5767_vm7, %v12150_v37, 0.0 }
 0xa50   : > { %v12180_v34 = vadd.f32 %v12179_v38, %v12178_v27  ;;  %v21678_v51 = vsub.f32 %v21433_v39, %v21605_v58  ;;  %v12153_v57 = vmul.f32 %v21664_v32, %v21664_v32  ;;  %v12189_v5 = vsel %vm5767_vm7, %v12151_v40, 0.0 }
 0xa51   : > { %v21685_v61 = vsub.f32 %v21448_v44, %v21605_v58  ;;  %v12154_v6 = vmul.f32 %v21671_v33, %v21671_v33  ;;  %v12191_v55 = vsel %vm5767_vm7, %v12152_v15, 0.0  ;;  %v21692_v39 = vsub.f32 %v21463_v13, %v21605_v58 }
 0xa52   : > { %v12182_v56 = vadd.f32 %v12181_v8, %v12180_v34  ;;  %v12155_v47 = vmul.f32 %v21678_v51, %v21678_v51  ;;  %v12193_v9 = vsel %vm5767_vm7, %v12153_v57, 0.0  ;;  %v21699_v44 = vsub.f32 %v21458_v48, %v21605_v58 }
 0xa53   : > { %v12156_v54 = vmul.f32 %v21685_v61, %v21685_v61  ;;  %v12195_v27 = vsel %vm5767_vm7, %v12154_v6, 0.0  ;;  %v21706_v13 = vsub.f32 %v21469_v17, %v21605_v58  ;;  %v12157_v38 = vmul.f32 %v21692_v39, %v21692_v39 }
 0xa54   : > { %v12184_v52 = vadd.f32 %v12183_v25, %v12182_v56  ;;  %v12197_v34 = vsel %vm5767_vm7, %v12155_v47, 0.0  ;;  %v21713_v48 = vsub.f32 %v21482_v21, %v21605_v58  ;;  %v12158_v8 = vmul.f32 %v21699_v44, %v21699_v44 }
 0xa55   : > { %v12199_v56 = vsel %vm5767_vm7, %v12156_v54, 0.0  ;;  %v21720_v17 = vsub.f32 %v21495_v16, %v21605_v58  ;;  %v12159_v25 = vmul.f32 %v21706_v13, %v21706_v13  ;;  %v21727_v21 = vsub.f32 %v21490_v11, %v21605_v58 }
 0xa56   : > { %v12186_v42 = vadd.f32 %v12185_v60, %v12184_v52  ;;  %v12201_v52 = vsel %vm5767_vm7, %v12157_v38, 0.0  ;;  %v12160_v60 = vmul.f32 %v21713_v48, %v21713_v48  ;;  %v21734_v16 = vsub.f32 %v21501_v18, %v21605_v58 }
 0xa57   : > { %v21741_v11 = vsub.f32 %v21514_v14, %v21605_v58  ;;  %v21748_v18 = vsub.f32 %v21527_v36, %v21605_v58  ;;  %v21755_v14 = vsub.f32 %v21522_v53, %v21605_v58  ;;  %v21762_v36 = vsub.f32 %v21532_v19, %v21605_v58 }
 0xa58   : > { %v12188_v24 = vadd.f32 %v12187_v1, %v12186_v42  ;;  %v12203_v42 = vsel %vm5767_vm7, %v12158_v8, 0.0  ;;  %v12161_v1 = vmul.f32 %v21720_v17, %v21720_v17  ;;  %v21769_v53 = vsub.f32 %v21543_v22, %v21605_v58 }
 0xa59   : > { %v21776_v19 = vsub.f32 %v21556_v12, %v21605_v58  ;;  %v21783_v22 = vsub.f32 %v21551_v35, %v21605_v58  ;;  %v21790_v12 = vsub.f32 %v21560_v7, %v21605_v58  ;;  %v21797_v35 = vsub.f32 %v21568_v62, %v21605_v58 }
 0xa5a   : > { %v12190_v2 = vadd.f32 %v12189_v5, %v12188_v24  ;;  %v12205_v24 = vsel %vm5767_vm7, %v12159_v25, 0.0  ;;  %v12162_v5 = vmul.f32 %v21727_v21, %v21727_v21  ;;  %v21804_v7 = vsub.f32 %v21578_v45, %v21605_v58 }
 0xa5b   : > { %v21811_v62 = vsub.f32 %v21573_v0, %v21605_v58  ;;  %v21818_v45 = vsub.f32 %v21581_v59, %v21605_v58 }
 0xa5c   : > { %v12192_v28 = vadd.f32 %v12191_v55, %v12190_v2  ;;  %v12207_v2 = vsel %vm5767_vm7, %v12160_v60, 0.0  ;;  %v12163_v55 = vmul.f32 %v21734_v16, %v21734_v16 }
 0xa5d   : > { %v12174_v0 = vmul.f32 %v21811_v62, %v21811_v62 }
 0xa5e   : > { %v12194_v26 = vadd.f32 %v12193_v9, %v12192_v28  ;;  %v12209_v28 = vsel %vm5767_vm7, %v12161_v1, 0.0  ;;  %v12164_v9 = vmul.f32 %v21741_v11, %v21741_v11 }
 0xa5f   : > { %v12235_v59 = vsel %vm5767_vm7, %v12174_v0, 0.0 }
 0xa60   : > { %v12196_v20 = vadd.f32 %v12195_v27, %v12194_v26  ;;  %v12211_v26 = vsel %vm5767_vm7, %v12162_v5, 0.0  ;;  %v12165_v27 = vmul.f32 %v21748_v18, %v21748_v18 }
 0xa62   : > { %v12198_v10 = vadd.f32 %v12197_v34, %v12196_v20  ;;  %v12213_v20 = vsel %vm5767_vm7, %v12163_v55, 0.0  ;;  %v12166_v34 = vmul.f32 %v21755_v14, %v21755_v14 }
 0xa64   : > { %v12200_v37 = vadd.f32 %v12199_v56, %v12198_v10  ;;  %v12215_v10 = vsel %vm5767_vm7, %v12164_v9, 0.0  ;;  %v12167_v56 = vmul.f32 %v21762_v36, %v21762_v36 }
 0xa66   : > { %v12202_v40 = vadd.f32 %v12201_v52, %v12200_v37  ;;  %v12217_v37 = vsel %vm5767_vm7, %v12165_v27, 0.0  ;;  %v12168_v52 = vmul.f32 %v21769_v53, %v21769_v53 }
 0xa68   : > { %v12204_v15 = vadd.f32 %v12203_v42, %v12202_v40  ;;  %v12219_v40 = vsel %vm5767_vm7, %v12166_v34, 0.0  ;;  %v12169_v42 = vmul.f32 %v21776_v19, %v21776_v19  ;;  %v12175_v34 = vmul.f32 %v21818_v45, %v21818_v45 }
 0xa6a   : > { %v12206_v57 = vadd.f32 %v12205_v24, %v12204_v15  ;;  %v12221_v15 = vsel %vm5767_vm7, %v12167_v56, 0.0  ;;  %v12170_v24 = vmul.f32 %v21783_v22, %v21783_v22  ;;  %v12237_v56 = vsel %vm5767_vm7, %v12175_v34, 0.0 }
 0xa6c   : > { %v12208_v6 = vadd.f32 %v12207_v2, %v12206_v57  ;;  %v12223_v57 = vsel %vm5767_vm7, %v12168_v52, 0.0  ;;  %v12171_v2 = vmul.f32 %v21790_v12, %v21790_v12 }
 0xa6e   : > { %v12210_v47 = vadd.f32 %v12209_v28, %v12208_v6  ;;  %v12225_v6 = vsel %vm5767_vm7, %v12169_v42, 0.0  ;;  %v12172_v28 = vmul.f32 %v21797_v35, %v21797_v35 }
 0xa70   : > { %v12212_v54 = vadd.f32 %v12211_v26, %v12210_v47  ;;  %v12227_v47 = vsel %vm5767_vm7, %v12170_v24, 0.0  ;;  %v12173_v26 = vmul.f32 %v21804_v7, %v21804_v7  ;;  %v15441_v24 = vld [vmem:[%s15630_s24] sm:$0xff] }
 0xa72   : > { %v12214_v38 = vadd.f32 %v12213_v20, %v12212_v54  ;;  %v12229_v54 = vsel %vm5767_vm7, %v12171_v2, 0.0  ;;  %v12231_v20 = vsel %vm5767_vm7, %v12172_v28, 0.0 }
 0xa74   : > { %v12216_v8 = vadd.f32 %v12215_v10, %v12214_v38  ;;  %v12233_v10 = vsel %vm5767_vm7, %v12173_v26, 0.0 }
 0xa76   : > { %v12218_v25 = vadd.f32 %v12217_v37, %v12216_v8 }
 0xa78   : > { %v12220_v60 = vadd.f32 %v12219_v40, %v12218_v25 }
 0xa7a   : > { %v12222_v1 = vadd.f32 %v12221_v15, %v12220_v60 }
 0xa7c   : > { %v12224_v5 = vadd.f32 %v12223_v57, %v12222_v1  ;;  %v12732_v1 = vld [vmem:[%s22380_s12] sm:$0x3]  ;;  %v15442_v57 = vld [vmem:[%s15630_s24 + $0x8] sm:$0xff] }
 0xa7d   : > { %v12789_v2 = vsel %vm1705_vm0, %v12732_v1, 0 }
 0xa7e   : > { %v12226_v55 = vadd.f32 %v12225_v6, %v12224_v5  ;;  %v637_v5 = vpack.c.bf16 %v15442_v57, %v15441_v24  ;;  %v15460_v24 = vld [vmem:[%s15630_s24 + $0x98] sm:$0xff] }
 0xa80   : > { %v12228_v9 = vadd.f32 %v12227_v47, %v12226_v55  ;;  %v15445_v47 = vld [vmem:[%s15630_s24 + $0x20] sm:$0xff] }
 0xa82   : > { %v12230_v27 = vadd.f32 %v12229_v54, %v12228_v9  ;;  %v15446_v9 = vld [vmem:[%s15630_s24 + $0x28] sm:$0xff]  ;;  %v15447_v54 = vld [vmem:[%s15630_s24 + $0x30] sm:$0xff] }
 0xa83   : > { %v639_v26 = vpack.c.bf16 %v15446_v9, %v15445_v47  ;;  %v15466_v47 = vld [vmem:[%s15630_s24 + $0xc8] sm:$0xff] }
 0xa84   : > { %v12232_v38 = vadd.f32 %v12231_v20, %v12230_v27  ;;  %v15448_v27 = vld [vmem:[%s15630_s24 + $0x38] sm:$0xff]  ;;  %v15449_v20 = vld [vmem:[%s15630_s24 + $0x40] sm:$0xff] }
 0xa85   : > { %v640_v0 = vpack.c.bf16 %v15448_v27, %v15447_v54  ;;  %v15468_v54 = vld [vmem:[%s15630_s24 + $0xd8] sm:$0xff] }
 0xa86   : > { %v12234_v8 = vadd.f32 %v12233_v10, %v12232_v38  ;;  %v15450_v38 = vld [vmem:[%s15630_s24 + $0x48] sm:$0xff]  ;;  %v15451_v10 = vld [vmem:[%s15630_s24 + $0x50] sm:$0xff] }
 0xa87   : > { %v641_v34 = vpack.c.bf16 %v15450_v38, %v15449_v20  ;;  %v15470_v20 = vld [vmem:[%s15630_s24 + $0xe8] sm:$0xff] }
 0xa88   : > { %v12236_v58 = vadd.f32 %v12235_v59, %v12234_v8  ;;  %v15452_v8 = vld [vmem:[%s15630_s24 + $0x58] sm:$0xff] }
 0xa89   : > { %v642_v59 = vpack.c.bf16 %v15452_v8, %v15451_v10  ;;  %v15472_v10 = vld [vmem:[%s15630_s24 + $0xf8] sm:$0xff] }
 0xa8a   : > { %v12238_v37 = vadd.f32 %v12237_v56, %v12236_v58  ;;  %v15453_v58 = vld [vmem:[%s15630_s24 + $0x60] sm:$0xff]  ;;  %v15454_v56 = vld [vmem:[%s15630_s24 + $0x68] sm:$0xff] }
 0xa8c   : > { %v12239_v25 = vrot.slane %v12238_v37, 4 }
 0xa8e   : > { %v12240_v52 = vadd.f32 %v12239_v25, %v12238_v37  ;;  %v643_v37 = vpack.c.bf16 %v15454_v56, %v15453_v58  ;;  %v15455_v25 = vld [vmem:[%s15630_s24 + $0x70] sm:$0xff] }
 0xa90   : > { %v12241_v40 = vrot.slane %v12240_v52, 2 }
 0xa92   : > { %v12242_v60 = vadd.f32 %v12241_v40, %v12240_v52  ;;  %v15456_v52 = vld [vmem:[%s15630_s24 + $0x78] sm:$0xff] }
 0xa93   : > { %v644_v40 = vpack.c.bf16 %v15456_v52, %v15455_v25 }
 0xa94   : > { %v12243_v42 = vrot.slane %v12242_v60, 1 }
 0xa96   : > { %v12244_v15 = vadd.f32 %v12243_v42, %v12242_v60  ;;  %v15457_v60 = vld [vmem:[%s15630_s24 + $0x80] sm:$0xff]  ;;  %v15458_v42 = vld [vmem:[%s15630_s24 + $0x88] sm:$0xff] }
 0xa98   : > { %14989 = vmatmul.mubr.msk.f32.vlgmr.msra.gmra.mxu0 %vm5767_vm7, %v12244_v15  ;;  %v645_v15 = vpack.c.bf16 %v15458_v42, %v15457_v60 }
 0xa99   : > { %14992 = vmatpush3.msra.mxu0 %v21592_v23  ;;  %14993 = vmatprep.mubr.msk.f32.mxu0 %vm15483_vm3, %v22846_v31  ;;  %v15443_v23 = vld [vmem:[%s15630_s24 + $0x10] sm:$0xff]  ;;  %v15444_v31 = vld [vmem:[%s15630_s24 + $0x18] sm:$0xff] }
 0xa9a   : > { %15051 = vmatprep.subr.msk.bf16.mxu0 %vm1705_vm0, %v12732_v1  ;;  %v638_v55 = vpack.c.bf16 %v15444_v31, %v15443_v23  ;;  %v15459_v1 = vld [vmem:[%s15630_s24 + $0x90] sm:$0xff]  ;;  %v15464_v31 = vld [vmem:[%s15630_s24 + $0xb8] sm:$0xff] }
 0xa9b   : > { %v646_v57 = vpack.c.bf16 %v15460_v24, %v15459_v1  ;;  %v15463_v23 = vld [vmem:[%s15630_s24 + $0xb0] sm:$0xff] }
 0xb58   : > { %v12314_v6 = vpop.f32.mrf.mxu0 }
 0xb59   : > { %14994 = vmatmul.mubr.msk.f32.vlgmr.msra.gmra.mxu0 %vm5767_vm7, %v12314_v6 }
 0xb5a   : > { %14997 = vmatpush3.bf16.msra.mxu0 %v12789_v2  ;;  %v14990_v28 = vpop.f32.mrf.mxu0  ;;  %14998 = vmatprep.mubr.msk.bf16.mxu0 %vm1656_vm14, %v637_v5  ;;  %v15461_v5 = vld [vmem:[%s15630_s24 + $0xa0] sm:$0xff]  ;;  %v15462_v2 = vld [vmem:[%s15630_s24 + $0xa8] sm:$0xff] }
 0xb5b   : > { %v647_v6 = vpack.c.bf16 %v15462_v2, %v15461_v5  ;;  %v15465_v28 = vld [vmem:[%s15630_s24 + $0xc0] sm:$0xff] }
 0xb5c   : > { %v649_v9 = vpack.c.bf16 %v15466_v47, %v15465_v28  ;;  %v21909_v5 = vld [vmem:[%s22376_s8] ss:$0 sm:$0xff] }
 0xb5d   : > { %14999 = vmatmul.mubr.msk.bf16.vlgmr.msra.gmra.mxu0 %vm1656_vm14, %v638_v55  ;;  %v648_v55 = vpack.c.bf16 %v15464_v31, %v15463_v23 }
 0xb5e   : > { %15002 = vmatprep.mubr.msk.bf16.mxu0 %vm1656_vm14, %v639_v26  ;;  %v15467_v26 = vld [vmem:[%s15630_s24 + $0xd0] sm:$0xff] }
 0xb5f   : > { %v650_v27 = vpack.c.bf16 %v15468_v54, %v15467_v26 }
 0xb65   : > { %15003 = vmatmul.mubr.msk.bf16.gmra.mxu0 %vm1656_vm14, %v640_v0  ;;  %v15469_v0 = vld [vmem:[%s15630_s24 + $0xe0] sm:$0xff] }
 0xb66   : > { %15006 = vmatprep.mubr.msk.bf16.mxu0 %vm1656_vm14, %v641_v34  ;;  %v651_v38 = vpack.c.bf16 %v15470_v20, %v15469_v0  ;;  %v15471_v34 = vld [vmem:[%s15630_s24 + $0xf0] sm:$0xff] }
 0xb67   : > { %v652_v8 = vpack.c.bf16 %v15472_v10, %v15471_v34 }
 0xb6d   : > { %15007 = vmatmul.mubr.msk.bf16.gmra.mxu0 %vm1656_vm14, %v642_v59 }
 0xb6e   : > { %15010 = vmatprep.mubr.msk.bf16.mxu0 %vm1656_vm14, %v643_v37 }
 0xb75   : > { %15011 = vmatmul.mubr.msk.bf16.gmra.mxu0 %vm1656_vm14, %v644_v40 }
 0xb76   : > { %15014 = vmatprep.mubr.msk.bf16.mxu0 %vm1656_vm14, %v645_v15 }
 0xb7d   : > { %15015 = vmatmul.mubr.msk.bf16.gmra.mxu0 %vm1656_vm14, %v646_v57 }
 0xb7e   : > { %15018 = vmatprep.mubr.msk.bf16.mxu0 %vm1656_vm14, %v647_v6 }
 0xb85   : > { %15019 = vmatmul.mubr.msk.bf16.gmra.mxu0 %vm1656_vm14, %v648_v55 }
 0xb86   : > { %15022 = vmatprep.mubr.msk.bf16.mxu0 %vm1656_vm14, %v649_v9 }
 0xb8d   : > { %15023 = vmatmul.mubr.msk.bf16.gmra.mxu0 %vm1656_vm14, %v650_v27 }
 0xb8e   : > { %15026 = vmatprep.mubr.msk.bf16.mxu0 %vm1656_vm14, %v651_v38 }
 0xb95   : > { %15027 = vmatmul.mubr.msk.bf16.gmra.mxu0 %vm1656_vm14, %v652_v8 }
 0xc19   : > { %v12387_v59 = vpop.f32.mrf.mxu0 }
 0xc1a   : > { %v12391_v58 = vmul.f32 0.00390625, %v12387_v59 }
 0xc1b   : > { %v14995_v56 = vpop.f32.mrf.mxu0 }
 0xc1c   : > { %v12392_v37 = vadd.f32 1e-05, %v12391_v58 }
 0xc1d   : > { %v21889_v25 = vpop.f32.mrf.mxu0 }
 0xc1e   : > { %15274 = vrsqrt.f32 %v12392_v37 }
 0xc1f   : > { %v21891_v52 = vpop.f32.mrf.mxu0 }
 0xc21   : > { %v21893_v40 = vpop.f32.mrf.mxu0 }
 0xc23   : > { %v21895_v60 = vpop.f32.mrf.mxu0 }
 0xc25   : > { %v21897_v42 = vpop.f32.mrf.mxu0 }
 0xc27   : > { %v21899_v15 = vpop.f32.mrf.mxu0 }
 0xc29   : > { %v21901_v1 = vpop.f32.mrf.mxu0 }
 0xc2b   : > { %v15275_v24 = vpop.eup %15274  ;;  %v21919_v55 = vpop.f32.mrf.mxu0 }
 0xc2c   : > { %v21904_v57 = vrot.slane %v15275_v24, %v22848_v50  ;;  %v21924_v50 = vld [vmem:[%s22377_s9] ss:$0 sm:$0xff] }
 0xc2d   : > { %v21954_v38 = vpop.f32.mrf.mxu0 }
 0xc2e   : > { %v12400_v2 = vmul.f32 %v21904_v57, %v21617_v30  ;;  %v12398_v6 = vmul.f32 %v21904_v57, %v21609_v4  ;;  %v12401_v23 = vmul.f32 %v21904_v57, %v21621_v63  ;;  %v12399_v31 = vmul.f32 %v21904_v57, %v21613_v43 }
 0xc2f   : > { %v12404_v28 = vmul.f32 %v21904_v57, %v21643_v41  ;;  %v12402_v30 = vmul.f32 %v21904_v57, %v21629_v3  ;;  %v12405_v4 = vmul.f32 %v21904_v57, %v21650_v49  ;;  %v12403_v63 = vmul.f32 %v21904_v57, %v21635_v46 }
 0xc30   : > { %v12439_v43 = vmul.f32 %v21909_v5, %v12400_v2  ;;  %v12437_v47 = vmul.f32 %v21909_v5, %v12398_v6  ;;  %v12440_v9 = vmul.f32 %v21909_v5, %v12401_v23  ;;  %v12438_v26 = vmul.f32 %v21909_v5, %v12399_v31  ;;  %v21976_v31 = vpop.f32.mrf.mxu0 }
 0xc31   : > { %v12443_v54 = vmul.f32 %v21909_v5, %v12404_v28  ;;  %v12441_v41 = vmul.f32 %v21909_v5, %v12402_v30  ;;  %v12444_v3 = vmul.f32 %v21909_v5, %v12405_v4  ;;  %v12442_v27 = vmul.f32 %v21909_v5, %v12403_v63 }
 0xc32   : > { %v21943_v49 = vadd.f32 %v21924_v50, %v12439_v43  ;;  %v21946_v46 = vadd.f32 %v21924_v50, %v12437_v47  ;;  %v21949_v0 = vadd.f32 %v21924_v50, %v12440_v9  ;;  %v21952_v20 = vadd.f32 %v21924_v50, %v12438_v26 }
 0xc33   : > { %v21957_v34 = vadd.f32 %v21924_v50, %v12443_v54  ;;  %v21960_v10 = vadd.f32 %v21924_v50, %v12441_v41  ;;  %v21963_v8 = vadd.f32 %v21924_v50, %v12444_v3  ;;  %v12408_v37 = vmul.f32 %v21904_v57, %v21671_v33 }
 0xc34   : > { %v13890_v59 = vmul.f32 -1.442695, %v21943_v49  ;;  %v13888_v58 = vmul.f32 -1.442695, %v21946_v46  ;;  %v13891_v56 = vmul.f32 -1.442695, %v21949_v0  ;;  %v21972_v2 = vadd.f32 %v21924_v50, %v12442_v27 }
 0xc35   : > { %v13889_v24 = vmul.f32 -1.442695, %v21952_v20  ;;  %v13894_v6 = vmul.f32 -1.442695, %v21957_v34  ;;  %v12447_v23 = vmul.f32 %v21909_v5, %v12408_v37  ;;  %v13892_v28 = vmul.f32 -1.442695, %v21960_v10 }
 0xc36   : > { %15276 = vpow2.f32 %v13890_v59  ;;  %v12406_v30 = vmul.f32 %v21904_v57, %v21657_v29  ;;  %v12409_v33 = vmul.f32 %v21904_v57, %v21678_v51  ;;  %v13895_v4 = vmul.f32 -1.442695, %v21963_v8  ;;  %v21993_v51 = vpop.f32.mrf.mxu0  ;;  %v22015_v37 = vld [vmem:[%s22381_s13] ss:$0 sm:$0xff] }
 0xc37   : > { %15278 = vpow2.f32 %v13888_v58  ;;  %v21985_v63 = vadd.f32 %v21924_v50, %v12447_v23  ;;  %v12407_v43 = vmul.f32 %v21904_v57, %v21664_v32  ;;  %v13893_v47 = vmul.f32 -1.442695, %v21972_v2 }
 0xc38   : > { %15280 = vpow2.f32 %v13891_v56  ;;  %v12445_v9 = vmul.f32 %v21909_v5, %v12406_v30  ;;  %v12448_v26 = vmul.f32 %v21909_v5, %v12409_v33  ;;  %v12412_v41 = vmul.f32 %v21904_v57, %v21699_v44 }
 0xc39   : > { %15282 = vpow2.f32 %v13889_v24  ;;  %v13898_v29 = vmul.f32 -1.442695, %v21985_v63  ;;  %v12446_v54 = vmul.f32 %v21909_v5, %v12407_v43  ;;  %v12410_v58 = vmul.f32 %v21904_v57, %v21685_v61 }
 0xc3a   : > { %15284 = vpow2.f32 %v13894_v6  ;;  %v21999_v32 = vadd.f32 %v21924_v50, %v12445_v9  ;;  %v22002_v3 = vadd.f32 %v21924_v50, %v12448_v26  ;;  %v12451_v59 = vmul.f32 %v21909_v5, %v12412_v41  ;;  %v22018_v6 = vpop.f32.mrf.mxu0 }
 0xc3b   : > { %15286 = vpow2.f32 %v13892_v28  ;;  %v22005_v27 = vadd.f32 %v21924_v50, %v12446_v54  ;;  %v12449_v61 = vmul.f32 %v21909_v5, %v12410_v58  ;;  %v12413_v28 = vmul.f32 %v21904_v57, %v21706_v13 }
 0xc3c   : > { %15288 = vpow2.f32 %v13895_v4  ;;  %v13896_v56 = vmul.f32 -1.442695, %v21999_v32  ;;  %v13899_v44 = vmul.f32 -1.442695, %v22002_v3  ;;  %v22021_v23 = vadd.f32 %v21924_v50, %v12451_v59 }
 0xc3d   : > { %15290 = vpow2.f32 %v13893_v47  ;;  %v13897_v24 = vmul.f32 -1.442695, %v22005_v27  ;;  %v12411_v30 = vmul.f32 %v21904_v57, %v21692_v39  ;;  %v22030_v4 = vadd.f32 %v21924_v50, %v12449_v61  ;;  %v22042_v39 = vpop.f32.mrf.mxu0 }
 0xc3e   : > { %15292 = vpow2.f32 %v13898_v29  ;;  %v13902_v33 = vmul.f32 -1.442695, %v22021_v23  ;;  %v22034_v43 = vadd.f32 %v21889_v25, %v22015_v37  ;;  %v12452_v47 = vmul.f32 %v21909_v5, %v12413_v28 }
 0xc3f   : > { %15294 = vpow2.f32 %v13896_v56  ;;  %v12450_v9 = vmul.f32 %v21909_v5, %v12411_v30  ;;  %v22040_v13 = vadd.f32 %v22015_v37, %v21891_v52  ;;  %v13900_v26 = vmul.f32 -1.442695, %v22030_v4 }
 0xc40   : > { %15296 = vpow2.f32 %v13899_v44  ;;  %v12416_v29 = vmul.f32 %v21904_v57, %v21727_v21  ;;  %v22049_v25 = vadd.f32 %v21893_v40, %v22015_v37  ;;  %v22053_v41 = vadd.f32 %v22015_v37, %v21895_v60 }
 0xc41   : > { %15298 = vpow2.f32 %v13897_v24  ;;  %v22057_v52 = vadd.f32 %v21897_v42, %v22015_v37  ;;  %v12414_v59 = vmul.f32 %v21904_v57, %v21713_v48  ;;  %v22062_v21 = vadd.f32 %v21924_v50, %v12452_v47 }
 0xc42   : > { %15300 = vpow2.f32 %v13902_v33  ;;  %v22065_v40 = vadd.f32 %v21924_v50, %v12450_v9  ;;  %v22069_v60 = vadd.f32 %v22015_v37, %v21899_v15  ;;  %v22073_v42 = vadd.f32 %v21901_v1, %v22015_v37  ;;  %v22081_v33 = vpop.f32.mrf.mxu0 }
 0xc43   : > { %v15277_v54 = vpop.eup %15276  ;;  %15302 = vpow2.f32 %v13900_v26  ;;  %22849 = vst [vmem:[#allocation35_spill] sm:$0xff] %v22062_v21  ;;  %v12417_v48 = vmul.f32 %v21904_v57, %v21734_v16  ;;  %v22079_v30 = vadd.f32 %v22015_v37, %v21919_v55  ;;  %v12455_v47 = vmul.f32 %v21909_v5, %v12416_v29 }
 0xc44   : > { %v15279_v58 = vpop.eup %15278  ;;  %v12606_v56 = vadd.f32 1.0, %v15277_v54  ;;  %22850 = vst [vmem:[#allocation27_spill] sm:$0xff] %v22065_v40  ;;  %v22086_v1 = vadd.f32 %v21954_v38, %v22015_v37  ;;  %v12453_v16 = vmul.f32 %v21909_v5, %v12414_v59  ;;  %v22091_v55 = vmul.f32 -1.442695, %v22065_v40  ;;  %v22096_v59 = vpop.f32.mrf.mxu0 }
 0xc45   : > { %v15281_v44 = vpop.eup %15280  ;;  %v12604_v24 = vadd.f32 1.0, %v15279_v58  ;;  %v13903_v58 = vmul.f32 -1.442695, %v22062_v21  ;;  %22851 = vst [vmem:[#allocation49_spill] sm:$0xff] %v22096_v59 }
 0xc46   : > { %v15283_v61 = vpop.eup %15282  ;;  %15304 = vrcp.f32 %v12606_v56  ;;  %v12607_v28 = vadd.f32 1.0, %v15281_v44  ;;  %v12456_v44 = vmul.f32 %v21909_v5, %v12417_v48 }
 0xc47   : > { %v15285_v15 = vpop.eup %15284  ;;  %15306 = vrcp.f32 %v12604_v24  ;;  %v12605_v9 = vadd.f32 1.0, %v15283_v61  ;;  %v12415_v24 = vmul.f32 %v21904_v57, %v21720_v17 }
 0xc48   : > { %v15287_v26 = vpop.eup %15286  ;;  %15308 = vrcp.f32 %v12607_v28  ;;  %v12610_v54 = vadd.f32 1.0, %v15285_v15  ;;  %v22099_v28 = vadd.f32 %v21924_v50, %v12455_v47  ;;  %v12420_v15 = vmul.f32 %v21904_v57, %v21755_v14 }
 0xc49   : > { %v15289_v56 = vpop.eup %15288  ;;  %15310 = vrcp.f32 %v12605_v9  ;;  %v12608_v29 = vadd.f32 1.0, %v15287_v26  ;;  %v22104_v26 = vadd.f32 %v21924_v50, %v12453_v16  ;;  %v12454_v48 = vmul.f32 %v21909_v5, %v12415_v24 }
 0xc4a   : > { %v15291_v38 = vpop.eup %15290  ;;  %15312 = vrcp.f32 %v12610_v54  ;;  %v12611_v61 = vadd.f32 1.0, %v15289_v56  ;;  %v12459_v56 = vmul.f32 %v21909_v5, %v12420_v15  ;;  %v12418_v47 = vmul.f32 %v21904_v57, %v21741_v11 }
 0xc4b   : > { %v15293_v40 = vpop.eup %15292  ;;  %15314 = vrcp.f32 %v12608_v29  ;;  %v12609_v9 = vadd.f32 1.0, %v15291_v38  ;;  %v22111_v14 = vadd.f32 %v21924_v50, %v12456_v44  ;;  %v22114_v29 = vadd.f32 %v21924_v50, %v12454_v48  ;;  %v22116_v38 = vpop.f32.mrf.mxu0 }
 0xc4c   : > { %v15295_v17 = vpop.eup %15294  ;;  %15316 = vrcp.f32 %v12611_v61  ;;  %v12614_v54 = vadd.f32 1.0, %v15293_v40  ;;  %v22119_v40 = vadd.f32 %v21924_v50, %v12459_v56  ;;  %v12457_v61 = vmul.f32 %v21909_v5, %v12418_v47 }
 0xc4d   : > { %v15297_v59 = vpop.eup %15296  ;;  %15318 = vrcp.f32 %v12609_v9  ;;  %v12612_v21 = vadd.f32 1.0, %v15295_v17  ;;  %22852 = vst [vmem:[#allocation51_spill] sm:$0xff] %v22111_v14  ;;  %22853 = vst [vmem:[#allocation29_spill] sm:$0xff] %v22114_v29  ;;  %v13906_v9 = vmul.f32 -1.442695, %v22099_v28  ;;  %v12421_v44 = vmul.f32 %v21904_v57, %v21762_v36  ;;  %v22133_v36 = vpop.f32.mrf.mxu0 }
 0xc4e   : > { %v15299_v16 = vpop.eup %15298  ;;  %15320 = vrcp.f32 %v12614_v54  ;;  %v12615_v24 = vadd.f32 1.0, %v15297_v59  ;;  %22854 = vst [vmem:[#allocation22_spill] sm:$0xff] %v22119_v40  ;;  %v13904_v17 = vmul.f32 -1.442695, %v22104_v26  ;;  %v22127_v59 = vadd.f32 %v21924_v50, %v12457_v61 }
 0xc4f   : > { %v15301_v11 = vpop.eup %15300  ;;  %15322 = vrcp.f32 %v12612_v21  ;;  %v12613_v15 = vadd.f32 1.0, %v15299_v16  ;;  %v13907_v56 = vmul.f32 -1.442695, %v22111_v14  ;;  %v12460_v47 = vmul.f32 %v21909_v5, %v12421_v44 }
 0xc50   : > { %15324 = vrcp.f32 %v12615_v24  ;;  %v12618_v48 = vadd.f32 1.0, %v15301_v11  ;;  %v15303_v54 = vpop.eup %15302  ;;  %v12419_v21 = vmul.f32 %v21904_v57, %v21748_v18  ;;  %v13905_v24 = vmul.f32 -1.442695, %v22114_v29 }
 0xc51   : > { %15326 = vrcp.f32 %v12613_v15  ;;  %v12616_v16 = vadd.f32 1.0, %v15303_v54  ;;  %v13910_v11 = vmul.f32 -1.442695, %v22119_v40  ;;  %v22138_v15 = vadd.f32 %v21924_v50, %v12460_v47 }
 0xc52   : > { %15328 = vrcp.f32 %v12618_v48  ;;  %v12458_v14 = vmul.f32 %v21909_v5, %v12419_v21  ;;  %v12424_v44 = vmul.f32 %v21904_v57, %v21783_v22  ;;  %v13908_v54 = vmul.f32 -1.442695, %v22127_v59 }
 0xc53   : > { %v15305_v61 = vpop.eup %15304  ;;  %15330 = vpow2.f32 %v13903_v58  ;;  %22855 = vst [vmem:[#allocation46_spill] sm:$0xff] %v22138_v15  ;;  %v12422_v29 = vmul.f32 %v21904_v57, %v21769_v53  ;;  %v13911_v22 = vmul.f32 -1.442695, %v22138_v15 }
 0xc54   : > { %v15307_v18 = vpop.eup %15306  ;;  %v12702_v48 = vmul.f32 %v15305_v61, %v21943_v49  ;;  %15332 = vrcp.f32 %v12616_v16  ;;  %v22158_v49 = vadd.f32 %v21924_v50, %v12458_v14  ;;  %v22162_v16 = vpop.f32.mrf.mxu0  ;;  %v12463_v61 = vmul.f32 %v21909_v5, %v12424_v44 }
 0xc55   : > { %v15309_v40 = vpop.eup %15308  ;;  %v12700_v58 = vmul.f32 %v15307_v18, %v21946_v46  ;;  %15334 = vpow2.f32 %v22091_v55 }
 0xc56   : > { %v15311_v47 = vpop.eup %15310  ;;  %v12954_v53 = vadd.f32 %v22034_v43, %v12702_v48  ;;  %v12703_v21 = vmul.f32 %v15309_v40, %v21949_v0  ;;  %15336 = vpow2.f32 %v13906_v9  ;;  %v13909_v14 = vmul.f32 -1.442695, %v22158_v49 }
 0xc57   : > { %v15313_v46 = vpop.eup %15312  ;;  %v12952_v18 = vadd.f32 %v22040_v13, %v12700_v58  ;;  %v12701_v55 = vmul.f32 %v15311_v47, %v21952_v20  ;;  %15338 = vpow2.f32 %v13904_v17  ;;  %v22173_v40 = vadd.f32 %v21924_v50, %v12463_v61 }
 0xc58   : > { %v15315_v15 = vpop.eup %15314  ;;  %12986 = vst.msk [vmem:[%s22152_s17 + $0x10] sm:$0xff] %vm5767_vm7, %v12954_v53  ;;  %v12955_v0 = vadd.f32 %v22049_v25, %v12703_v21  ;;  %v12706_v43 = vmul.f32 %v15313_v46, %v21957_v34  ;;  %15340 = vpow2.f32 %v13907_v56  ;;  %v12461_v17 = vmul.f32 %v21909_v5, %v12422_v29  ;;  %v22184_v56 = vpop.f32.mrf.mxu0 }
 0xc59   : > { %v15317_v9 = vpop.eup %15316  ;;  %12984 = vst.msk [vmem:[%s22152_s17] sm:$0xff] %vm5767_vm7, %v12952_v18  ;;  %v12953_v20 = vadd.f32 %v22053_v41, %v12701_v55  ;;  %v12704_v13 = vmul.f32 %v15315_v15, %v21960_v10  ;;  %15342 = vpow2.f32 %v13905_v24  ;;  %v13914_v48 = vmul.f32 -1.442695, %v22173_v40 }
 0xc5a   : > { %v15319_v44 = vpop.eup %15318  ;;  %12987 = vst.msk [vmem:[%s22152_s17 + $0x18] sm:$0xff] %vm5767_vm7, %v12955_v0  ;;  %v12958_v34 = vadd.f32 %v22057_v52, %v12706_v43  ;;  %v12707_v25 = vmul.f32 %v15317_v9, %v21963_v8  ;;  %15344 = vpow2.f32 %v13910_v11  ;;  %v22192_v24 = vadd.f32 %v21924_v50, %v12461_v17 }
 0xc5b   : > { %v15321_v41 = vpop.eup %15320  ;;  %12985 = vst.msk [vmem:[%s22152_s17 + $0x8] sm:$0xff] %vm5767_vm7, %v12953_v20  ;;  %v12956_v10 = vadd.f32 %v22069_v60, %v12704_v13  ;;  %v12705_v29 = vmul.f32 %v15319_v44, %v21972_v2  ;;  %15346 = vpow2.f32 %v13908_v54  ;;  %v12858_v15 = vadd.f32 %v22015_v37, %v21976_v31 }
 0xc5c   : > { %v15323_v52 = vpop.eup %15322  ;;  %12990 = vst.msk [vmem:[%s22152_s17 + $0x30] sm:$0xff] %vm5767_vm7, %v12958_v34  ;;  %v12959_v8 = vadd.f32 %v22073_v42, %v12707_v25  ;;  %v12710_v11 = vmul.f32 %v15321_v41, %v21985_v63  ;;  %15348 = vpow2.f32 %v13911_v22  ;;  %v13912_v58 = vmul.f32 -1.442695, %v22192_v24  ;;  %v22211_v22 = vpop.f32.mrf.mxu0 }
 0xc5d   : > { %v15325_v60 = vpop.eup %15324  ;;  %12988 = vst.msk [vmem:[%s22152_s17 + $0x20] sm:$0xff] %vm5767_vm7, %v12956_v10  ;;  %v12957_v2 = vadd.f32 %v22079_v30, %v12705_v29  ;;  %v12708_v54 = vmul.f32 %v15323_v52, %v21999_v32  ;;  %15350 = vpow2.f32 %v13909_v14  ;;  %v12869_v42 = vadd.f32 %v21993_v51, %v22015_v37 }
 0xc5e   : > { %v15327_v47 = vpop.eup %15326  ;;  %12991 = vst.msk [vmem:[%s22152_s17 + $0x38] sm:$0xff] %vm5767_vm7, %v12959_v8  ;;  %v12962_v63 = vadd.f32 %v22086_v1, %v12710_v11  ;;  %v12711_v31 = vmul.f32 %v15325_v60, %v22002_v3  ;;  %15352 = vpow2.f32 %v13914_v48  ;;  %v12861_v21 = vadd.f32 %v22015_v37, %v22018_v6  ;;  %v22234_v43 = vpop.f32.mrf.mxu0 }
 0xc5f   : > { %v15329_v30 = vpop.eup %15328  ;;  %12989 = vst.msk [vmem:[%s22152_s17 + $0x28] sm:$0xff] %vm5767_vm7, %v12957_v2  ;;  %v12960_v32 = vadd.f32 %v12858_v15, %v12708_v54  ;;  %v12709_v53 = vmul.f32 %v15327_v47, %v22005_v27  ;;  %15354 = vpow2.f32 %v13912_v58  ;;  %v12882_v61 = vadd.f32 %v22042_v39, %v22015_v37 }
 0xc60   : > { %v15331_v1 = vpop.eup %15330  ;;  %12994 = vst.msk [vmem:[%s22152_s17 + $0x50] sm:$0xff] %vm5767_vm7, %v12962_v63  ;;  %v12963_v3 = vadd.f32 %v12869_v42, %v12711_v31  ;;  %v12714_v51 = vmul.f32 %v15329_v30, %v22021_v23  ;;  %v12425_v46 = vmul.f32 %v21904_v57, %v21790_v12  ;;  %v12423_v55 = vmul.f32 %v21904_v57, %v21776_v19  ;;  %v22248_v41 = vpop.f32.mrf.mxu0 }
 0xc61   : > { %v15333_v18 = vpop.eup %15332  ;;  %12992 = vst.msk [vmem:[%s22152_s17 + $0x40] sm:$0xff] %vm5767_vm7, %v12960_v32  ;;  %v12961_v27 = vadd.f32 %v12861_v21, %v12709_v53  ;;  %v12619_v6 = vadd.f32 1.0, %v15331_v1  ;;  %v12874_v39 = vadd.f32 %v22015_v37, %v22081_v33  ;;  %v12428_v12 = vmul.f32 %v21904_v57, %v21811_v62 }
 0xc62   : > { %v15335_v14 = vpop.eup %15334  ;;  %12995 = vst.msk [vmem:[%s22152_s17 + $0x58] sm:$0xff] %vm5767_vm7, %v12963_v3  ;;  %v12966_v23 = vadd.f32 %v12882_v61, %v12714_v51  ;;  %v12712_v0 = vmul.f32 %v15333_v18, %v22030_v4  ;;  %v12464_v4 = vmul.f32 %v21909_v5, %v12425_v46  ;;  %v12462_v34 = vmul.f32 %v21909_v5, %v12423_v55  ;;  %v22262_v42 = vpop.f32.mrf.mxu0 }
 0xc63   : > { %v15337_v9 = vpop.eup %15336  ;;  %12993 = vst.msk [vmem:[%s22152_s17 + $0x48] sm:$0xff] %vm5767_vm7, %v12961_v27  ;;  %15356 = vrcp.f32 %v12619_v6  ;;  %v12617_v19 = vadd.f32 1.0, %v15335_v14  ;;  %v12426_v62 = vmul.f32 %v21904_v57, %v21797_v35  ;;  %v12467_v10 = vmul.f32 %v21909_v5, %v12428_v12 }
 0xc64   : > { %v15339_v20 = vpop.eup %15338  ;;  %12998 = vst.msk [vmem:[%s22152_s17 + $0x70] sm:$0xff] %vm5767_vm7, %v12966_v23  ;;  %v12964_v13 = vadd.f32 %v12874_v39, %v12712_v0  ;;  %v12622_v17 = vadd.f32 1.0, %v15337_v9  ;;  %v22253_v60 = vadd.f32 %v21924_v50, %v12464_v4  ;;  %v12429_v35 = vmul.f32 %v21904_v57, %v21818_v45  ;;  %v12908_v27 = vpop.f32.mrf.mxu0  ;;  %v22856_v23 = vld [vmem:[#allocation35_spill] sm:$0xff]  ;;  %v22857_v39 = vld [vmem:[#allocation49_spill] sm:$0xff] }
 0xc65   : > { %v15341_v44 = vpop.eup %15340  ;;  %15358 = vrcp.f32 %v12617_v19  ;;  %v12620_v33 = vadd.f32 1.0, %v15339_v20  ;;  %v12465_v8 = vmul.f32 %v21909_v5, %v12426_v62  ;;  %v22258_v58 = vadd.f32 %v21924_v50, %v12462_v34 }
 0xc66   : > { %v15343_v25 = vpop.eup %15342  ;;  %12996 = vst.msk [vmem:[%s22152_s17 + $0x60] sm:$0xff] %vm5767_vm7, %v12964_v13  ;;  %15360 = vrcp.f32 %v12622_v17  ;;  %v12623_v48 = vadd.f32 1.0, %v15341_v44  ;;  %v12427_v47 = vmul.f32 %v21904_v57, %v21804_v7  ;;  %v22265_v30 = vadd.f32 %v21924_v50, %v12467_v10  ;;  %v15024_v19 = vpop.f32.mrf.mxu0  ;;  %v22858_v17 = vld [vmem:[#allocation27_spill] sm:$0xff] }
 0xc67   : > { %v15345_v29 = vpop.eup %15344  ;;  %15362 = vrcp.f32 %v12620_v33  ;;  %v12621_v52 = vadd.f32 1.0, %v15343_v25  ;;  %v12468_v32 = vmul.f32 %v21909_v5, %v12429_v35  ;;  %v22269_v21 = vadd.f32 %v21924_v50, %v12465_v8  ;;  %v22859_v8 = vld [vmem:[#allocation51_spill] sm:$0xff] }
 0xc68   : > { %v15347_v11 = vpop.eup %15346  ;;  %15364 = vrcp.f32 %v12623_v48  ;;  %v12626_v15 = vadd.f32 1.0, %v15345_v29  ;;  %v12466_v1 = vmul.f32 %v21909_v5, %v12427_v47  ;;  %v13915_v57 = vmul.f32 -1.442695, %v22253_v60 }
 0xc69   : > { %v15349_v2 = vpop.eup %15348  ;;  %15366 = vrcp.f32 %v12621_v52  ;;  %v12624_v54 = vadd.f32 1.0, %v15347_v11  ;;  %v22274_v51 = vadd.f32 %v21924_v50, %v12468_v32  ;;  %v13913_v46 = vmul.f32 -1.442695, %v22258_v58  ;;  %v12921_v11 = vpop.f32.mrf.mxu0 }
 0xc6a   : > { %v15351_v63 = vpop.eup %15350  ;;  %15368 = vrcp.f32 %v12626_v15  ;;  %v12627_v31 = vadd.f32 1.0, %v15349_v2  ;;  %v22278_v18 = vadd.f32 %v21924_v50, %v12466_v1  ;;  %v13918_v6 = vmul.f32 -1.442695, %v22265_v30  ;;  %v22860_v2 = vld [vmem:[#allocation29_spill] sm:$0xff] }
 0xc6b   : > { %v15353_v45 = vpop.eup %15352  ;;  %15370 = vrcp.f32 %v12624_v54  ;;  %v12625_v53 = vadd.f32 1.0, %v15351_v63  ;;  %v13916_v5 = vmul.f32 -1.442695, %v22269_v21  ;;  %v13919_v14 = vmul.f32 -1.442695, %v22274_v51  ;;  %v22861_v63 = vld [vmem:[#allocation22_spill] sm:$0xff] }
 0xc6c   : > { %v15355_v3 = vpop.eup %15354  ;;  %15372 = vrcp.f32 %v12627_v31  ;;  %v12630_v7 = vadd.f32 1.0, %v15353_v45  ;;  %v12885_v12 = vadd.f32 %v22857_v39, %v22015_v37  ;;  %v13917_v50 = vmul.f32 -1.442695, %v22278_v18 }
 0xc6d   : > { %15374 = vrcp.f32 %v12625_v53  ;;  %v12628_v61 = vadd.f32 1.0, %v15355_v3  ;;  %v12877_v44 = vadd.f32 %v22015_v37, %v22116_v38  ;;  %v12898_v62 = vadd.f32 %v22133_v36, %v22015_v37 }
 0xc6e   : > { %15376 = vrcp.f32 %v12630_v7  ;;  %v12890_v29 = vadd.f32 %v22015_v37, %v22162_v16  ;;  %v12901_v36 = vadd.f32 %v22184_v56, %v22015_v37  ;;  %v12893_v16 = vadd.f32 %v22015_v37, %v22211_v22  ;;  %v22862_v7 = vld [vmem:[#allocation46_spill] sm:$0xff] }
 0xc6f   : > { %15378 = vrcp.f32 %v12628_v61  ;;  %v12914_v56 = vadd.f32 %v22234_v43, %v22015_v37  ;;  %v12906_v22 = vadd.f32 %v22015_v37, %v22248_v41  ;;  %v12917_v43 = vadd.f32 %v22262_v42, %v22015_v37  ;;  %v15025_v61 = vpop.f32.mrf.mxu0 }
 0xc70   : > { %v15357_v55 = vpop.eup %15356  ;;  %15380 = vpow2.f32 %v13915_v57  ;;  %v12909_v41 = vadd.f32 %v22015_v37, %v12908_v27 }
 0xc71   : > { %v12715_v0 = vmul.f32 %v15357_v55, %v22856_v23  ;;  %15382 = vpow2.f32 %v13913_v46  ;;  %v12930_v23 = vadd.f32 %v15024_v19, %v22015_v37 }
 0xc72   : > { %v15359_v9 = vpop.eup %15358  ;;  %15384 = vpow2.f32 %v13918_v6 }
 0xc73   : > { %v15361_v20 = vpop.eup %15360  ;;  %v12967_v13 = vadd.f32 %v12885_v12, %v12715_v0  ;;  %v12713_v4 = vmul.f32 %v15359_v9, %v22858_v17  ;;  %15386 = vpow2.f32 %v13916_v5  ;;  %v12924_v9 = vpop.f32.mrf.mxu0 }
 0xc74   : > { %v15363_v33 = vpop.eup %15362  ;;  %v12718_v34 = vmul.f32 %v15361_v20, %v22099_v28  ;;  %15388 = vpow2.f32 %v13919_v14 }
 0xc75   : > { %v15365_v25 = vpop.eup %15364  ;;  %12999 = vst.msk [vmem:[%s22152_s17 + $0x78] sm:$0xff] %vm5767_vm7, %v12967_v13  ;;  %v12965_v48 = vadd.f32 %v12877_v44, %v12713_v4  ;;  %v12716_v10 = vmul.f32 %v15363_v33, %v22104_v26  ;;  %15390 = vpow2.f32 %v13917_v50  ;;  %v15028_v33 = vpop.f32.mrf.mxu0 }
 0xc76   : > { %v15367_v38 = vpop.eup %15366  ;;  %v12970_v52 = vadd.f32 %v12898_v62, %v12718_v34  ;;  %v12719_v28 = vmul.f32 %v15365_v25, %v22859_v8  ;;  %v12933_v8 = vadd.f32 %v15025_v61, %v22015_v37 }
 0xc77   : > { %v15369_v15 = vpop.eup %15368  ;;  %12997 = vst.msk [vmem:[%s22152_s17 + $0x68] sm:$0xff] %vm5767_vm7, %v12965_v48  ;;  %v12968_v35 = vadd.f32 %v12890_v29, %v12716_v10  ;;  %v12717_v26 = vmul.f32 %v15367_v38, %v22860_v2  ;;  %v12937_v25 = vpop.f32.mrf.mxu0  ;;  %v12925_v29 = vadd.f32 %v22015_v37, %v12924_v9 }
 0xc78   : > { %v15371_v54 = vpop.eup %15370  ;;  %13002 = vst.msk [vmem:[%s22152_s17 + $0x90] sm:$0xff] %vm5767_vm7, %v12970_v52  ;;  %v12971_v47 = vadd.f32 %v12901_v36, %v12719_v28  ;;  %v12722_v31 = vmul.f32 %v15369_v15, %v22861_v63  ;;  %v12946_v28 = vadd.f32 %v15028_v33, %v22015_v37 }
 0xc79   : > { %v15373_v32 = vpop.eup %15372  ;;  %13000 = vst.msk [vmem:[%s22152_s17 + $0x80] sm:$0xff] %vm5767_vm7, %v12968_v35  ;;  %v12969_v45 = vadd.f32 %v12893_v16, %v12717_v26  ;;  %v12720_v53 = vmul.f32 %v15371_v54, %v22127_v59  ;;  %v15029_v48 = vpop.f32.mrf.mxu0  ;;  %v12938_v35 = vadd.f32 %v22015_v37, %v12937_v25 }
 0xc7a   : > { %v15375_v1 = vpop.eup %15374  ;;  %13003 = vst.msk [vmem:[%s22152_s17 + $0x98] sm:$0xff] %vm5767_vm7, %v12971_v47  ;;  %v12974_v3 = vadd.f32 %v12914_v56, %v12722_v31  ;;  %v12723_v57 = vmul.f32 %v15373_v32, %v22862_v7 }
 0xc7b   : > { %v15377_v46 = vpop.eup %15376  ;;  %13001 = vst.msk [vmem:[%s22152_s17 + $0x88] sm:$0xff] %vm5767_vm7, %v12969_v45  ;;  %v12972_v6 = vadd.f32 %v12906_v22, %v12720_v53  ;;  %v12721_v59 = vmul.f32 %v15375_v1, %v22158_v49  ;;  %v12922_v49 = vadd.f32 %v22015_v37, %v12921_v11  ;;  %v12940_v36 = vpop.f32.mrf.mxu0 }
 0xc7c   : > { %v15379_v5 = vpop.eup %15378  ;;  %13006 = vst.msk [vmem:[%s22152_s17 + $0xb0] sm:$0xff] %vm5767_vm7, %v12974_v3  ;;  %v12975_v55 = vadd.f32 %v12917_v43, %v12723_v57  ;;  %v12726_v14 = vmul.f32 %v15377_v46, %v22173_v40  ;;  %v12941_v31 = vadd.f32 %v22015_v37, %v12940_v36 }
 0xc7d   : > { %v15381_v42 = vpop.eup %15380  ;;  %13004 = vst.msk [vmem:[%s22152_s17 + $0xa0] sm:$0xff] %vm5767_vm7, %v12972_v6  ;;  %v12973_v0 = vadd.f32 %v12909_v41, %v12721_v59  ;;  %v12724_v39 = vmul.f32 %v15379_v5, %v22192_v24 }
 0xc7e   : > { %v15383_v27 = vpop.eup %15382  ;;  %13007 = vst.msk [vmem:[%s22152_s17 + $0xb8] sm:$0xff] %vm5767_vm7, %v12975_v55  ;;  %v12978_v12 = vadd.f32 %v12930_v23, %v12726_v14  ;;  %v12631_v50 = vadd.f32 1.0, %v15381_v42 }
 0xc7f   : > { %v15385_v20 = vpop.eup %15384  ;;  %13005 = vst.msk [vmem:[%s22152_s17 + $0xa8] sm:$0xff] %vm5767_vm7, %v12973_v0  ;;  %v12976_v40 = vadd.f32 %v12922_v49, %v12724_v39  ;;  %v12629_v19 = vadd.f32 1.0, %v15383_v27 }
 0xc80   : > { %v15387_v13 = vpop.eup %15386  ;;  %13010 = vst.msk [vmem:[%s22152_s17 + $0xd0] sm:$0xff] %vm5767_vm7, %v12978_v12  ;;  %15392 = vrcp.f32 %v12631_v50  ;;  %v12634_v17 = vadd.f32 1.0, %v15385_v20 }
 0xc81   : > { %v15389_v24 = vpop.eup %15388  ;;  %13008 = vst.msk [vmem:[%s22152_s17 + $0xc0] sm:$0xff] %vm5767_vm7, %v12976_v40  ;;  %15394 = vrcp.f32 %v12629_v19  ;;  %v12632_v4 = vadd.f32 1.0, %v15387_v13 }
 0xc82   : > { %v15391_v44 = vpop.eup %15390  ;;  %15396 = vrcp.f32 %v12634_v17  ;;  %v12635_v34 = vadd.f32 1.0, %v15389_v24 }
 0xc83   : > { %15398 = vrcp.f32 %v12632_v4  ;;  %v12633_v62 = vadd.f32 1.0, %v15391_v44 }
 0xc84   : > { %15400 = vrcp.f32 %v12635_v34 }
 0xc85   : > { %15402 = vrcp.f32 %v12633_v62 }
 0xc8d   : > { %v15393_v10 = vpop.eup %15392 }
 0xc8e   : > { %v15395_v38 = vpop.eup %15394  ;;  %v12727_v52 = vmul.f32 %v15393_v10, %v22253_v60  ;;  %v12949_v60 = vadd.f32 %v15029_v48, %v22015_v37 }
 0xc8f   : > { %v15397_v11 = vpop.eup %15396  ;;  %v12725_v15 = vmul.f32 %v15395_v38, %v22258_v58 }
 0xc90   : > { %v15399_v2 = vpop.eup %15398  ;;  %v12979_v26 = vadd.f32 %v12933_v8, %v12727_v52  ;;  %v12730_v16 = vmul.f32 %v15397_v11, %v22265_v30 }
 0xc91   : > { %v15401_v54 = vpop.eup %15400  ;;  %v12977_v47 = vadd.f32 %v12925_v29, %v12725_v15  ;;  %v12728_v63 = vmul.f32 %v15399_v2, %v22269_v21 }
 0xc92   : > { %v15403_v56 = vpop.eup %15402  ;;  %13011 = vst.msk [vmem:[%s22152_s17 + $0xd8] sm:$0xff] %vm5767_vm7, %v12979_v26  ;;  %v12982_v58 = vadd.f32 %v12946_v28, %v12730_v16  ;;  %v12731_v32 = vmul.f32 %v15401_v54, %v22274_v51 }
 0xc93   : > { %13009 = vst.msk [vmem:[%s22152_s17 + $0xc8] sm:$0xff] %vm5767_vm7, %v12977_v47  ;;  %v12980_v45 = vadd.f32 %v12938_v35, %v12728_v63  ;;  %v12729_v30 = vmul.f32 %v15403_v56, %v22278_v18 }
 0xc94   : > { %13014 = vst.msk [vmem:[%s22152_s17 + $0xf0] sm:$0xff] %vm5767_vm7, %v12982_v58  ;;  %v12983_v53 = vadd.f32 %v12949_v60, %v12731_v32 }
 0xc95   : > { %13012 = vst.msk [vmem:[%s22152_s17 + $0xe0] sm:$0xff] %vm5767_vm7, %v12980_v45  ;;  %v12981_v22 = vadd.f32 %v12941_v31, %v12729_v30 }
 0xc96   : > { %13015 = vst.msk [vmem:[%s22152_s17 + $0xf8] sm:$0xff] %vm5767_vm7, %v12983_v53 }
 0xc97   : > { %13013 = vst.msk [vmem:[%s22152_s17 + $0xe8] sm:$0xff] %vm5767_vm7, %v12981_v22 }
 0xc98 PF: > { %s24_s29 = sadd.s32 1, %s15479_s29  }
 0xc99   : > { %p21_p4 = scmp.ge.s32.totalorder %s24_s29, 4  }
 0xc9b   :  { %23 = sbr.rel (!%p21_p4) target bundleno = 1 (0x1), region = 131 }

</bundles_post_ra>
